<compile_context>
chip_gen: v7x
topology: tpu7x:2x2x1
jax: 0.10.0
libtpu: 0.0.40
codegen_flags: <defaults>
</compile_context>

<pallas_src>
import functools

import numpy as np
import jax
import jax.numpy as jnp
from jax import lax
from jax.experimental import pallas as pl
from jax.experimental.pallas import tpu as pltpu


# --------------------------------------------------------------------------
# Fused Pallas kernel: conv2..conv4 + pool + trunk + LayerNorm + tanh + PE
# --------------------------------------------------------------------------
def _fused_kernel(x1_ref, w1_ref, wc_ref, b_ref, pool_ref, wl_ref, hv_ref,
                  pe_ref, o_ref, ca_ref, cb_ref, *, canvas_w, n_sizes):
    # ---- conv1 (stride 2): patches already im2col'd, K padded to 32 ----
    h1 = jnp.dot(x1_ref[0], w1_ref[...], preferred_element_type=jnp.float32)
    ca_ref[...] = jnp.maximum(h1 + b_ref[pl.ds(0, 1), :], 0.0)      # (n1, 32) f32

    # ---- conv2..conv4: stride-1 3x3 convs on the flat canvas ----
    # canvas row p = yo * canvas_w + xo; a 3x3 tap (dy, dx) of the next layer
    # reads row p + dy*canvas_w + dx, so each tap is a contiguous row slice.
    src, dst = ca_ref, cb_ref
    for layer, n in enumerate(n_sizes[1:]):
        acc = jnp.zeros((n, 32), jnp.float32)
        for dy in range(3):
            for dx in range(3):
                patch = src[pl.ds(dy * canvas_w + dx, n), :].astype(jnp.bfloat16)
                wk = wc_ref[pl.ds(layer * 288 + (dy * 3 + dx) * 32, 32), :]
                acc = acc + jnp.dot(patch, wk, preferred_element_type=jnp.float32)
        dst[pl.ds(0, n), :] = jnp.maximum(acc + b_ref[pl.ds(layer + 1, 1), :], 0.0)
        src, dst = dst, src

    # ---- adaptive avg-pool (constant matrix) + trunk + LayerNorm + tanh ----
    c4 = src[pl.ds(0, n_sizes[-1]), :].astype(jnp.bfloat16)          # (n4, 32)
    pooled = jnp.dot(pool_ref[...], c4, preferred_element_type=jnp.float32)   # (64, 32)
    y = jnp.dot(pooled.astype(jnp.bfloat16), wl_ref[...],
                preferred_element_type=jnp.float32)
    y = y + hv_ref[pl.ds(0, 1), :]                                   # trunk bias
    mean = jnp.mean(y, axis=-1, keepdims=True)
    var = jnp.mean((y - mean) ** 2, axis=-1, keepdims=True)          # biased, eps=1e-5
    yn = (y - mean) * lax.rsqrt(var + 1e-5)
    yn = yn * hv_ref[pl.ds(1, 1), :] + hv_ref[pl.ds(2, 1), :]        # gamma / beta
    o_ref[0] = jnp.tanh(yn) + pe_ref[...]


def _fused_call(x1, w1p, wc, bias, pool, wl, hv, pe, *, canvas_w, n_sizes, E):
    B = x1.shape[0]
    n1 = n_sizes[0]
    kern = functools.partial(_fused_kernel, canvas_w=canvas_w, n_sizes=n_sizes)
    return pl.pallas_call(
        kern,
        out_shape=jax.ShapeDtypeStruct((B, 64, E), jnp.float32),
        grid=(B,),
        in_specs=[
            pl.BlockSpec((1, n1, 32), lambda i: (i, 0, 0)),    # conv1 patches (per batch)
            pl.BlockSpec(w1p.shape, lambda i: (0, 0)),         # conv1 weight (32, 32)
            pl.BlockSpec(wc.shape, lambda i: (0, 0)),          # conv2-4 weights (864, 32)
            pl.BlockSpec(bias.shape, lambda i: (0, 0)),        # biases (4, 32)
            pl.BlockSpec(pool.shape, lambda i: (0, 0)),        # pooling matrix (64, n4)
            pl.BlockSpec(wl.shape, lambda i: (0, 0)),          # trunk weight (32, E)
            pl.BlockSpec(hv.shape, lambda i: (0, 0)),          # trunk bias / gamma / beta
            pl.BlockSpec(pe.shape, lambda i: (0, 0)),          # positional encoding (64, E)
        ],
        out_specs=pl.BlockSpec((1, 64, E), lambda i: (i, 0, 0)),
        scratch_shapes=[pltpu.VMEM((n1, 32), jnp.float32),     # ping-pong activation canvases
                        pltpu.VMEM((n1, 32), jnp.float32)],
        compiler_params=pltpu.CompilerParams(
            dimension_semantics=("parallel",)),
    )(x1, w1p, wc, bias, pool, wl, hv, pe)


# --------------------------------------------------------------------------
# Host-side constants / wrapper glue
# --------------------------------------------------------------------------
def _pool_matrix(h4, w4, canvas_w, n4):
    # adaptive_avg_pool2d (h4, w4) -> (8, 8) with h4, w4 divisible by 8 is an
    # exact uniform average; express it as a constant matmul over canvas rows.
    bh, bw = h4 // 8, w4 // 8
    P = np.zeros((64, n4), np.float32)
    inv = 1.0 / (bh * bw)
    for py in range(8):
        for px in range(8):
            for dy in range(bh):
                for dx in range(bw):
                    P[py * 8 + px, (py * bh + dy) * canvas_w + (px * bw + dx)] = inv
    return P


def static_encoder_forward(x_nchw, params):
    # x_nchw: (B, 3, H, W) like PyTorch; transpose once to NHWC.
    x = jnp.transpose(x_nchw, (0, 2, 3, 1)).astype(jnp.float32)
    B, H, W, C = x.shape
    assert 9 * C <= 32, "conv1 im2col K must fit the padded 32 contraction"
    H1, W1 = (H - 3) // 2 + 1, (W - 3) // 2 + 1        # conv1 (stride 2) output
    H4, W4 = H1 - 6, W1 - 6                            # conv4 output
    # TODO(synk): general adaptive_avg_pool2d with non-uniform bins.
    assert H4 % 8 == 0 and W4 % 8 == 0, "conv output must be divisible by 8"
    # flat-canvas row counts after conv1..conv4
    n_sizes = tuple(H1 * W1 - l * (2 * W1 + 2) for l in range(4))
    E = params['wl'].shape[1]

    # ---- layer-1 im2col (stride 2), feature order (dy, dx, c), K pad 27->32 ----
    cols = []
    for dy in range(3):
        for dx in range(3):
            cols.append(x[:, dy:dy + 2 * H1 - 1:2, dx:dx + 2 * W1 - 1:2, :])
    x1 = jnp.concatenate(cols, axis=-1).reshape(B, H1 * W1, 9 * C)
    x1 = jnp.pad(x1, ((0, 0), (0, 0), (0, 32 - 9 * C))).astype(jnp.bfloat16)

    # ---- weights / constants in kernel layout (bf16 MXU operands) ----
    w1p = jnp.pad(params['w1'], ((0, 32 - 9 * C), (0, 0))).astype(jnp.bfloat16)
    wc = jnp.concatenate([params['w2'], params['w3'], params['w4']],
                         axis=0).astype(jnp.bfloat16)                      # (864, 32)
    b1_eff = params['b1'] - 0.5 * jnp.sum(params['w1'], axis=0)            # fold "obs - 0.5"
    bias = jnp.stack([b1_eff, params['b2'], params['b3'], params['b4']], axis=0)
    pool = jnp.asarray(_pool_matrix(H4, W4, W1, n_sizes[-1]), dtype=jnp.bfloat16)
    wl = params['wl'].astype(jnp.bfloat16)
    hv = jnp.stack([params['bl'], params['gamma'], params['beta']], axis=0)
    pe = params['pe']

    return _fused_call(x1, w1p, wc, bias, pool, wl, hv, pe,
                       canvas_w=W1, n_sizes=n_sizes, E=E)                  # (B, 64, E)


# --------------------------------------------------------------------------
# Parameters (deterministic, synthetic) + position-encoding buffer
# --------------------------------------------------------------------------
def positional_encoding_1d_np(x, i, d_model):
    k = np.arange(0, 2 * i, 2, dtype=np.float64) / d_model
    denom = 10000.0 ** k
    return np.concatenate([np.sin(x[:, None] / denom),
                           np.cos(x[:, None] / denom)], axis=-1)


def positional_encoding_2d_np(pos, d_model):
    xe = positional_encoding_1d_np(pos[:, 0], d_model / 4, d_model / 2)
    ye = positional_encoding_1d_np(pos[:, 1], d_model / 4, d_model / 2)
    return np.concatenate([xe, ye], axis=1).astype(np.float32)


def init_params(key, E):
    ks = jax.random.split(key, 6)
    gain = np.sqrt(2.0)

    def xav(k, shape, fi, fo):
        std = gain * np.sqrt(2.0 / (fi + fo))
        return std * jax.random.normal(k, shape, dtype=jnp.float32)

    p = {}
    cins = [3, 32, 32, 32]
    for i in range(4):
        cin = cins[i]
        # conv weight stored as (kh*kw*Cin, Cout), row order (dy, dx, c)
        p[f'w{i + 1}'] = xav(ks[i], (9 * cin, 32), cin * 9, 32 * 9)
        p[f'b{i + 1}'] = jnp.zeros((32,), jnp.float32)
    p['wl'] = xav(ks[4], (32, E), 32, E)
    p['bl'] = jnp.zeros((E,), jnp.float32)
    p['gamma'] = jnp.ones((E,), jnp.float32)
    p['beta'] = jnp.zeros((E,), jnp.float32)

    row = np.linspace(-7.0 / 8.0, 7.0 / 8.0, 8, dtype=np.float64)
    pos = np.stack(np.meshgrid(row, row, indexing='ij'), axis=-1).reshape(64, 2)
    p['pe'] = jnp.asarray(positional_encoding_2d_np(pos, float(E)))
    return p


# --------------------------------------------------------------------------
# Pure-JAX (f32) reference of the original module for a correctness check
# --------------------------------------------------------------------------
def reference_forward(x_nchw, params):
    x = jnp.transpose(x_nchw, (0, 2, 3, 1)).astype(jnp.float32) - 0.5
    h = x
    for i, stride in zip(range(1, 5), (2, 1, 1, 1)):
        cin = h.shape[-1]
        w = params[f'w{i}'].reshape(3, 3, cin, 32)          # HWIO, matches row order
        h = lax.conv_general_dilated(h, w, (stride, stride), 'VALID',
                                     dimension_numbers=('NHWC', 'HWIO', 'NHWC'),
                                     precision=lax.Precision.HIGHEST)
        h = jnp.maximum(h + params[f'b{i}'], 0.0)
    B, Hc, Wc, _ = h.shape
    hp = h.reshape(B, 8, Hc // 8, 8, Wc // 8, 32).mean(axis=(2, 4))
    t = hp.reshape(B, 64, 32)
    y = jnp.dot(t, params['wl'], precision=lax.Precision.HIGHEST) + params['bl']
    mean = y.mean(-1, keepdims=True)
    var = ((y - mean) ** 2).mean(-1, keepdims=True)
    yn = (y - mean) * lax.rsqrt(var + 1e-5)
    yn = yn * params['gamma'] + params['beta']
    return jnp.tanh(yn) + params['pe'][None]


if __name__ == "__main__":
    key = jax.random.PRNGKey(0)
    k_x, k_p = jax.random.split(key)

    B, C, H, W = 2, 3, 45, 45          # conv stack -> 16x16 -> exact 8x8 adaptive pool
    E = 32                             # embedding_size

    x = jax.random.uniform(k_x, (B, C, H, W), dtype=jnp.float32)   # image-like in [0, 1]
    params = init_params(k_p, E)

    forward = jax.jit(static_encoder_forward)
    out = jax.block_until_ready(forward(x, params))
    assert out.shape == (B, 64, E), out.shape

    ref = reference_forward(x, params)
    err = float(jnp.max(jnp.abs(out - ref)))
    # Loose bound: kernel uses bf16 MXU operands (f32 accumulation) through six
    # chained matmuls followed by LayerNorm amplification; structural/indexing
    # bugs would show up as O(1) mismatches, far above this tolerance.
    assert err < 1e-1, f"max abs err too large: {err}"

    print("KERNEL_OK")
</pallas_src>

<mosaic_0001>
module attributes {stable_mosaic.version = 11 : i64} {
  func.func @_fused_kernel(%arg0: i32, %arg1: memref<1x484x32xbf16, #tpu.memory_space<vmem>>, %arg2: memref<32x32xbf16, #tpu.memory_space<vmem>>, %arg3: memref<864x32xbf16, #tpu.memory_space<vmem>>, %arg4: memref<4x32xf32, #tpu.memory_space<vmem>>, %arg5: memref<64x346xbf16, #tpu.memory_space<vmem>>, %arg6: memref<32x32xbf16, #tpu.memory_space<vmem>>, %arg7: memref<3x32xf32, #tpu.memory_space<vmem>>, %arg8: memref<64x32xf32, #tpu.memory_space<vmem>>, %arg9: memref<1x64x32xf32, #tpu.memory_space<vmem>>, %arg10: memref<484x32xf32, #tpu.memory_space<vmem>>, %arg11: memref<484x32xf32, #tpu.memory_space<vmem>>) attributes {dimension_semantics = [#tpu.dimension_semantics<parallel>], iteration_bounds = array<i64: 2>, scalar_prefetch = 0 : i64, scratch_operands = 2 : i64, tpu.core_type = #tpu.core_type<tc>, window_params = [{transform_indices = @transform_0, window_bounds = array<i64: 1, 484, 32>}, {pipeline_mode = #tpu.pipeline_mode<synchronous>, transform_indices = @transform_1, window_bounds = array<i64: 32, 32>}, {pipeline_mode = #tpu.pipeline_mode<synchronous>, transform_indices = @transform_2, window_bounds = array<i64: 864, 32>}, {pipeline_mode = #tpu.pipeline_mode<synchronous>, transform_indices = @transform_3, window_bounds = array<i64: 4, 32>}, {pipeline_mode = #tpu.pipeline_mode<synchronous>, transform_indices = @transform_4, window_bounds = array<i64: 64, 346>}, {pipeline_mode = #tpu.pipeline_mode<synchronous>, transform_indices = @transform_5, window_bounds = array<i64: 32, 32>}, {pipeline_mode = #tpu.pipeline_mode<synchronous>, transform_indices = @transform_6, window_bounds = array<i64: 3, 32>}, {pipeline_mode = #tpu.pipeline_mode<synchronous>, transform_indices = @transform_7, window_bounds = array<i64: 64, 32>}, {transform_indices = @transform_8, window_bounds = array<i64: 1, 64, 32>}]} {
    %c0 = arith.constant 0 : index
    %c0_0 = arith.constant 0 : index
    %c0_1 = arith.constant 0 : index
    %0 = vector.load %arg1[%c0, %c0_0, %c0_1] : memref<1x484x32xbf16, #tpu.memory_space<vmem>>, vector<1x484x32xbf16>
    %1 = vector.shape_cast %0 : vector<1x484x32xbf16> to vector<484x32xbf16>
    %c0_2 = arith.constant 0 : index
    %c0_3 = arith.constant 0 : index
    %2 = vector.load %arg2[%c0_2, %c0_3] : memref<32x32xbf16, #tpu.memory_space<vmem>>, vector<32x32xbf16>
    %cst = arith.constant dense<0.000000e+00> : vector<484x32xf32>
    %3 = tpu.matmul %1, %2, %cst {dimension_numbers = #tpu.dot_dimension_numbers<[1], [0], [0], [1], [0, 0, 1, 1], [], []>} : vector<484x32xbf16>, vector<32x32xbf16>, vector<484x32xf32> -> vector<484x32xf32>
    %c0_4 = arith.constant 0 : index
    %c0_5 = arith.constant 0 : index
    %4 = vector.load %arg4[%c0_4, %c0_5] : memref<4x32xf32, #tpu.memory_space<vmem>>, vector<1x32xf32>
    %5 = vector.broadcast %4 : vector<1x32xf32> to vector<484x32xf32>
    %6 = arith.addf %3, %5 : vector<484x32xf32>
    %cst_6 = arith.constant 0.000000e+00 : f32
    %7 = vector.broadcast %cst_6 : f32 to vector<484x32xf32>
    %8 = arith.maximumf %6, %7 : vector<484x32xf32>
    %c0_7 = arith.constant 0 : index
    %c0_8 = arith.constant 0 : index
    %9 = vector.load %arg10[%c0_7, %c0_8] : memref<484x32xf32, #tpu.memory_space<vmem>>, vector<484x32xf32>
    tpu.vector_store %arg10[%c0_7, %c0_8], %8 {strides = array<i32>} : memref<484x32xf32, #tpu.memory_space<vmem>>, vector<484x32xf32>,
    %cst_9 = arith.constant 0.000000e+00 : f32
    %10 = vector.broadcast %cst_9 : f32 to vector<438x32xf32>
    %c0_10 = arith.constant 0 : index
    %c0_11 = arith.constant 0 : index
    %11 = vector.load %arg10[%c0_10, %c0_11] : memref<484x32xf32, #tpu.memory_space<vmem>>, vector<438x32xf32>
    %12 = arith.truncf %11 : vector<438x32xf32> to vector<438x32xbf16>
    %c0_12 = arith.constant 0 : index
    %c0_13 = arith.constant 0 : index
    %13 = vector.load %arg3[%c0_12, %c0_13] : memref<864x32xbf16, #tpu.memory_space<vmem>>, vector<32x32xbf16>
    %cst_14 = arith.constant dense<0.000000e+00> : vector<438x32xf32>
    %14 = tpu.matmul %12, %13, %cst_14 {dimension_numbers = #tpu.dot_dimension_numbers<[1], [0], [0], [1], [0, 0, 1, 1], [], []>} : vector<438x32xbf16>, vector<32x32xbf16>, vector<438x32xf32> -> vector<438x32xf32>
    %15 = arith.addf %10, %14 : vector<438x32xf32>
    %c1 = arith.constant 1 : index
    %c0_15 = arith.constant 0 : index
    %16 = vector.load %arg10[%c1, %c0_15] : memref<484x32xf32, #tpu.memory_space<vmem>>, vector<438x32xf32>
    %17 = arith.truncf %16 : vector<438x32xf32> to vector<438x32xbf16>
    %c32 = arith.constant 32 : index
    %c0_16 = arith.constant 0 : index
    %18 = vector.load %arg3[%c32, %c0_16] : memref<864x32xbf16, #tpu.memory_space<vmem>>, vector<32x32xbf16>
    %cst_17 = arith.constant dense<0.000000e+00> : vector<438x32xf32>
    %19 = tpu.matmul %17, %18, %cst_17 {dimension_numbers = #tpu.dot_dimension_numbers<[1], [0], [0], [1], [0, 0, 1, 1], [], []>} : vector<438x32xbf16>, vector<32x32xbf16>, vector<438x32xf32> -> vector<438x32xf32>
    %20 = arith.addf %15, %19 : vector<438x32xf32>
    %c2 = arith.constant 2 : index
    %c0_18 = arith.constant 0 : index
    %21 = vector.load %arg10[%c2, %c0_18] : memref<484x32xf32, #tpu.memory_space<vmem>>, vector<438x32xf32>
    %22 = arith.truncf %21 : vector<438x32xf32> to vector<438x32xbf16>
    %c64 = arith.constant 64 : index
    %c0_19 = arith.constant 0 : index
    %23 = vector.load %arg3[%c64, %c0_19] : memref<864x32xbf16, #tpu.memory_space<vmem>>, vector<32x32xbf16>
    %cst_20 = arith.constant dense<0.000000e+00> : vector<438x32xf32>
    %24 = tpu.matmul %22, %23, %cst_20 {dimension_numbers = #tpu.dot_dimension_numbers<[1], [0], [0], [1], [0, 0, 1, 1], [], []>} : vector<438x32xbf16>, vector<32x32xbf16>, vector<438x32xf32> -> vector<438x32xf32>
    %25 = arith.addf %20, %24 : vector<438x32xf32>
    %c22 = arith.constant 22 : index
    %c0_21 = arith.constant 0 : index
    %26 = vector.load %arg10[%c22, %c0_21] : memref<484x32xf32, #tpu.memory_space<vmem>>, vector<438x32xf32>
    %27 = arith.truncf %26 : vector<438x32xf32> to vector<438x32xbf16>
    %c96 = arith.constant 96 : index
    %c0_22 = arith.constant 0 : index
    %28 = vector.load %arg3[%c96, %c0_22] : memref<864x32xbf16, #tpu.memory_space<vmem>>, vector<32x32xbf16>
    %cst_23 = arith.constant dense<0.000000e+00> : vector<438x32xf32>
    %29 = tpu.matmul %27, %28, %cst_23 {dimension_numbers = #tpu.dot_dimension_numbers<[1], [0], [0], [1], [0, 0, 1, 1], [], []>} : vector<438x32xbf16>, vector<32x32xbf16>, vector<438x32xf32> -> vector<438x32xf32>
    %30 = arith.addf %25, %29 : vector<438x32xf32>
    %c23 = arith.constant 23 : index
    %c0_24 = arith.constant 0 : index
    %31 = vector.load %arg10[%c23, %c0_24] : memref<484x32xf32, #tpu.memory_space<vmem>>, vector<438x32xf32>
    %32 = arith.truncf %31 : vector<438x32xf32> to vector<438x32xbf16>
    %c128 = arith.constant 128 : index
    %c0_25 = arith.constant 0 : index
    %33 = vector.load %arg3[%c128, %c0_25] : memref<864x32xbf16, #tpu.memory_space<vmem>>, vector<32x32xbf16>
    %cst_26 = arith.constant dense<0.000000e+00> : vector<438x32xf32>
    %34 = tpu.matmul %32, %33, %cst_26 {dimension_numbers = #tpu.dot_dimension_numbers<[1], [0], [0], [1], [0, 0, 1, 1], [], []>} : vector<438x32xbf16>, vector<32x32xbf16>, vector<438x32xf32> -> vector<438x32xf32>
    %35 = arith.addf %30, %34 : vector<438x32xf32>
    %c24 = arith.constant 24 : index
    %c0_27 = arith.constant 0 : index
    %36 = vector.load %arg10[%c24, %c0_27] : memref<484x32xf32, #tpu.memory_space<vmem>>, vector<438x32xf32>
    %37 = arith.truncf %36 : vector<438x32xf32> to vector<438x32xbf16>
    %c160 = arith.constant 160 : index
    %c0_28 = arith.constant 0 : index
    %38 = vector.load %arg3[%c160, %c0_28] : memref<864x32xbf16, #tpu.memory_space<vmem>>, vector<32x32xbf16>
    %cst_29 = arith.constant dense<0.000000e+00> : vector<438x32xf32>
    %39 = tpu.matmul %37, %38, %cst_29 {dimension_numbers = #tpu.dot_dimension_numbers<[1], [0], [0], [1], [0, 0, 1, 1], [], []>} : vector<438x32xbf16>, vector<32x32xbf16>, vector<438x32xf32> -> vector<438x32xf32>
    %40 = arith.addf %35, %39 : vector<438x32xf32>
    %c44 = arith.constant 44 : index
    %c0_30 = arith.constant 0 : index
    %41 = vector.load %arg10[%c44, %c0_30] : memref<484x32xf32, #tpu.memory_space<vmem>>, vector<438x32xf32>
    %42 = arith.truncf %41 : vector<438x32xf32> to vector<438x32xbf16>
    %c192 = arith.constant 192 : index
    %c0_31 = arith.constant 0 : index
    %43 = vector.load %arg3[%c192, %c0_31] : memref<864x32xbf16, #tpu.memory_space<vmem>>, vector<32x32xbf16>
    %cst_32 = arith.constant dense<0.000000e+00> : vector<438x32xf32>
    %44 = tpu.matmul %42, %43, %cst_32 {dimension_numbers = #tpu.dot_dimension_numbers<[1], [0], [0], [1], [0, 0, 1, 1], [], []>} : vector<438x32xbf16>, vector<32x32xbf16>, vector<438x32xf32> -> vector<438x32xf32>
    %45 = arith.addf %40, %44 : vector<438x32xf32>
    %c45 = arith.constant 45 : index
    %c0_33 = arith.constant 0 : index
    %46 = vector.load %arg10[%c45, %c0_33] : memref<484x32xf32, #tpu.memory_space<vmem>>, vector<438x32xf32>
    %47 = arith.truncf %46 : vector<438x32xf32> to vector<438x32xbf16>
    %c224 = arith.constant 224 : index
    %c0_34 = arith.constant 0 : index
    %48 = vector.load %arg3[%c224, %c0_34] : memref<864x32xbf16, #tpu.memory_space<vmem>>, vector<32x32xbf16>
    %cst_35 = arith.constant dense<0.000000e+00> : vector<438x32xf32>
    %49 = tpu.matmul %47, %48, %cst_35 {dimension_numbers = #tpu.dot_dimension_numbers<[1], [0], [0], [1], [0, 0, 1, 1], [], []>} : vector<438x32xbf16>, vector<32x32xbf16>, vector<438x32xf32> -> vector<438x32xf32>
    %50 = arith.addf %45, %49 : vector<438x32xf32>
    %c46 = arith.constant 46 : index
    %c0_36 = arith.constant 0 : index
    %51 = vector.load %arg10[%c46, %c0_36] : memref<484x32xf32, #tpu.memory_space<vmem>>, vector<438x32xf32>
    %52 = arith.truncf %51 : vector<438x32xf32> to vector<438x32xbf16>
    %c256 = arith.constant 256 : index
    %c0_37 = arith.constant 0 : index
    %53 = vector.load %arg3[%c256, %c0_37] : memref<864x32xbf16, #tpu.memory_space<vmem>>, vector<32x32xbf16>
    %cst_38 = arith.constant dense<0.000000e+00> : vector<438x32xf32>
    %54 = tpu.matmul %52, %53, %cst_38 {dimension_numbers = #tpu.dot_dimension_numbers<[1], [0], [0], [1], [0, 0, 1, 1], [], []>} : vector<438x32xbf16>, vector<32x32xbf16>, vector<438x32xf32> -> vector<438x32xf32>
    %55 = arith.addf %50, %54 : vector<438x32xf32>
    %c1_39 = arith.constant 1 : index
    %c0_40 = arith.constant 0 : index
    %56 = vector.load %arg4[%c1_39, %c0_40] : memref<4x32xf32, #tpu.memory_space<vmem>>, vector<1x32xf32>
    %57 = vector.broadcast %56 : vector<1x32xf32> to vector<438x32xf32>
    %58 = arith.addf %55, %57 : vector<438x32xf32>
    %cst_41 = arith.constant 0.000000e+00 : f32
    %59 = vector.broadcast %cst_41 : f32 to vector<438x32xf32>
    %60 = arith.maximumf %58, %59 : vector<438x32xf32>
    %c0_42 = arith.constant 0 : index
    %c0_43 = arith.constant 0 : index
    %61 = vector.load %arg11[%c0_42, %c0_43] : memref<484x32xf32, #tpu.memory_space<vmem>>, vector<438x32xf32>
    tpu.vector_store %arg11[%c0_42, %c0_43], %60 {strides = array<i32>} : memref<484x32xf32, #tpu.memory_space<vmem>>, vector<438x32xf32>,
    %cst_44 = arith.constant 0.000000e+00 : f32
    %62 = vector.broadcast %cst_44 : f32 to vector<392x32xf32>
    %c0_45 = arith.constant 0 : index
    %c0_46 = arith.constant 0 : index
    %63 = vector.load %arg11[%c0_45, %c0_46] : memref<484x32xf32, #tpu.memory_space<vmem>>, vector<392x32xf32>
    %64 = arith.truncf %63 : vector<392x32xf32> to vector<392x32xbf16>
    %c288 = arith.constant 288 : index
    %c0_47 = arith.constant 0 : index
    %65 = vector.load %arg3[%c288, %c0_47] : memref<864x32xbf16, #tpu.memory_space<vmem>>, vector<32x32xbf16>
    %cst_48 = arith.constant dense<0.000000e+00> : vector<392x32xf32>
    %66 = tpu.matmul %64, %65, %cst_48 {dimension_numbers = #tpu.dot_dimension_numbers<[1], [0], [0], [1], [0, 0, 1, 1], [], []>} : vector<392x32xbf16>, vector<32x32xbf16>, vector<392x32xf32> -> vector<392x32xf32>
    %67 = arith.addf %62, %66 : vector<392x32xf32>
    %c1_49 = arith.constant 1 : index
    %c0_50 = arith.constant 0 : index
    %68 = vector.load %arg11[%c1_49, %c0_50] : memref<484x32xf32, #tpu.memory_space<vmem>>, vector<392x32xf32>
    %69 = arith.truncf %68 : vector<392x32xf32> to vector<392x32xbf16>
    %c320 = arith.constant 320 : index
    %c0_51 = arith.constant 0 : index
    %70 = vector.load %arg3[%c320, %c0_51] : memref<864x32xbf16, #tpu.memory_space<vmem>>, vector<32x32xbf16>
    %cst_52 = arith.constant dense<0.000000e+00> : vector<392x32xf32>
    %71 = tpu.matmul %69, %70, %cst_52 {dimension_numbers = #tpu.dot_dimension_numbers<[1], [0], [0], [1], [0, 0, 1, 1], [], []>} : vector<392x32xbf16>, vector<32x32xbf16>, vector<392x32xf32> -> vector<392x32xf32>
    %72 = arith.addf %67, %71 : vector<392x32xf32>
    %c2_53 = arith.constant 2 : index
    %c0_54 = arith.constant 0 : index
    %73 = vector.load %arg11[%c2_53, %c0_54] : memref<484x32xf32, #tpu.memory_space<vmem>>, vector<392x32xf32>
    %74 = arith.truncf %73 : vector<392x32xf32> to vector<392x32xbf16>
    %c352 = arith.constant 352 : index
    %c0_55 = arith.constant 0 : index
    %75 = vector.load %arg3[%c352, %c0_55] : memref<864x32xbf16, #tpu.memory_space<vmem>>, vector<32x32xbf16>
    %cst_56 = arith.constant dense<0.000000e+00> : vector<392x32xf32>
    %76 = tpu.matmul %74, %75, %cst_56 {dimension_numbers = #tpu.dot_dimension_numbers<[1], [0], [0], [1], [0, 0, 1, 1], [], []>} : vector<392x32xbf16>, vector<32x32xbf16>, vector<392x32xf32> -> vector<392x32xf32>
    %77 = arith.addf %72, %76 : vector<392x32xf32>
    %c22_57 = arith.constant 22 : index
    %c0_58 = arith.constant 0 : index
    %78 = vector.load %arg11[%c22_57, %c0_58] : memref<484x32xf32, #tpu.memory_space<vmem>>, vector<392x32xf32>
    %79 = arith.truncf %78 : vector<392x32xf32> to vector<392x32xbf16>
    %c384 = arith.constant 384 : index
    %c0_59 = arith.constant 0 : index
    %80 = vector.load %arg3[%c384, %c0_59] : memref<864x32xbf16, #tpu.memory_space<vmem>>, vector<32x32xbf16>
    %cst_60 = arith.constant dense<0.000000e+00> : vector<392x32xf32>
    %81 = tpu.matmul %79, %80, %cst_60 {dimension_numbers = #tpu.dot_dimension_numbers<[1], [0], [0], [1], [0, 0, 1, 1], [], []>} : vector<392x32xbf16>, vector<32x32xbf16>, vector<392x32xf32> -> vector<392x32xf32>
    %82 = arith.addf %77, %81 : vector<392x32xf32>
    %c23_61 = arith.constant 23 : index
    %c0_62 = arith.constant 0 : index
    %83 = vector.load %arg11[%c23_61, %c0_62] : memref<484x32xf32, #tpu.memory_space<vmem>>, vector<392x32xf32>
    %84 = arith.truncf %83 : vector<392x32xf32> to vector<392x32xbf16>
    %c416 = arith.constant 416 : index
    %c0_63 = arith.constant 0 : index
    %85 = vector.load %arg3[%c416, %c0_63] : memref<864x32xbf16, #tpu.memory_space<vmem>>, vector<32x32xbf16>
    %cst_64 = arith.constant dense<0.000000e+00> : vector<392x32xf32>
    %86 = tpu.matmul %84, %85, %cst_64 {dimension_numbers = #tpu.dot_dimension_numbers<[1], [0], [0], [1], [0, 0, 1, 1], [], []>} : vector<392x32xbf16>, vector<32x32xbf16>, vector<392x32xf32> -> vector<392x32xf32>
    %87 = arith.addf %82, %86 : vector<392x32xf32>
    %c24_65 = arith.constant 24 : index
    %c0_66 = arith.constant 0 : index
    %88 = vector.load %arg11[%c24_65, %c0_66] : memref<484x32xf32, #tpu.memory_space<vmem>>, vector<392x32xf32>
    %89 = arith.truncf %88 : vector<392x32xf32> to vector<392x32xbf16>
    %c448 = arith.constant 448 : index
    %c0_67 = arith.constant 0 : index
    %90 = vector.load %arg3[%c448, %c0_67] : memref<864x32xbf16, #tpu.memory_space<vmem>>, vector<32x32xbf16>
    %cst_68 = arith.constant dense<0.000000e+00> : vector<392x32xf32>
    %91 = tpu.matmul %89, %90, %cst_68 {dimension_numbers = #tpu.dot_dimension_numbers<[1], [0], [0], [1], [0, 0, 1, 1], [], []>} : vector<392x32xbf16>, vector<32x32xbf16>, vector<392x32xf32> -> vector<392x32xf32>
    %92 = arith.addf %87, %91 : vector<392x32xf32>
    %c44_69 = arith.constant 44 : index
    %c0_70 = arith.constant 0 : index
    %93 = vector.load %arg11[%c44_69, %c0_70] : memref<484x32xf32, #tpu.memory_space<vmem>>, vector<392x32xf32>
    %94 = arith.truncf %93 : vector<392x32xf32> to vector<392x32xbf16>
    %c480 = arith.constant 480 : index
    %c0_71 = arith.constant 0 : index
    %95 = vector.load %arg3[%c480, %c0_71] : memref<864x32xbf16, #tpu.memory_space<vmem>>, vector<32x32xbf16>
    %cst_72 = arith.constant dense<0.000000e+00> : vector<392x32xf32>
    %96 = tpu.matmul %94, %95, %cst_72 {dimension_numbers = #tpu.dot_dimension_numbers<[1], [0], [0], [1], [0, 0, 1, 1], [], []>} : vector<392x32xbf16>, vector<32x32xbf16>, vector<392x32xf32> -> vector<392x32xf32>
    %97 = arith.addf %92, %96 : vector<392x32xf32>
    %c45_73 = arith.constant 45 : index
    %c0_74 = arith.constant 0 : index
    %98 = vector.load %arg11[%c45_73, %c0_74] : memref<484x32xf32, #tpu.memory_space<vmem>>, vector<392x32xf32>
    %99 = arith.truncf %98 : vector<392x32xf32> to vector<392x32xbf16>
    %c512 = arith.constant 512 : index
    %c0_75 = arith.constant 0 : index
    %100 = vector.load %arg3[%c512, %c0_75] : memref<864x32xbf16, #tpu.memory_space<vmem>>, vector<32x32xbf16>
    %cst_76 = arith.constant dense<0.000000e+00> : vector<392x32xf32>
    %101 = tpu.matmul %99, %100, %cst_76 {dimension_numbers = #tpu.dot_dimension_numbers<[1], [0], [0], [1], [0, 0, 1, 1], [], []>} : vector<392x32xbf16>, vector<32x32xbf16>, vector<392x32xf32> -> vector<392x32xf32>
    %102 = arith.addf %97, %101 : vector<392x32xf32>
    %c46_77 = arith.constant 46 : index
    %c0_78 = arith.constant 0 : index
    %103 = vector.load %arg11[%c46_77, %c0_78] : memref<484x32xf32, #tpu.memory_space<vmem>>, vector<392x32xf32>
    %104 = arith.truncf %103 : vector<392x32xf32> to vector<392x32xbf16>
    %c544 = arith.constant 544 : index
    %c0_79 = arith.constant 0 : index
    %105 = vector.load %arg3[%c544, %c0_79] : memref<864x32xbf16, #tpu.memory_space<vmem>>, vector<32x32xbf16>
    %cst_80 = arith.constant dense<0.000000e+00> : vector<392x32xf32>
    %106 = tpu.matmul %104, %105, %cst_80 {dimension_numbers = #tpu.dot_dimension_numbers<[1], [0], [0], [1], [0, 0, 1, 1], [], []>} : vector<392x32xbf16>, vector<32x32xbf16>, vector<392x32xf32> -> vector<392x32xf32>
    %107 = arith.addf %102, %106 : vector<392x32xf32>
    %c2_81 = arith.constant 2 : index
    %c0_82 = arith.constant 0 : index
    %108 = vector.load %arg4[%c2_81, %c0_82] : memref<4x32xf32, #tpu.memory_space<vmem>>, vector<1x32xf32>
    %109 = vector.broadcast %108 : vector<1x32xf32> to vector<392x32xf32>
    %110 = arith.addf %107, %109 : vector<392x32xf32>
    %cst_83 = arith.constant 0.000000e+00 : f32
    %111 = vector.broadcast %cst_83 : f32 to vector<392x32xf32>
    %112 = arith.maximumf %110, %111 : vector<392x32xf32>
    %c0_84 = arith.constant 0 : index
    %c0_85 = arith.constant 0 : index
    %113 = vector.load %arg10[%c0_84, %c0_85] : memref<484x32xf32, #tpu.memory_space<vmem>>, vector<392x32xf32>
    tpu.vector_store %arg10[%c0_84, %c0_85], %112 {strides = array<i32>} : memref<484x32xf32, #tpu.memory_space<vmem>>, vector<392x32xf32>,
    %cst_86 = arith.constant 0.000000e+00 : f32
    %114 = vector.broadcast %cst_86 : f32 to vector<346x32xf32>
    %c0_87 = arith.constant 0 : index
    %c0_88 = arith.constant 0 : index
    %115 = vector.load %arg10[%c0_87, %c0_88] : memref<484x32xf32, #tpu.memory_space<vmem>>, vector<346x32xf32>
    %116 = arith.truncf %115 : vector<346x32xf32> to vector<346x32xbf16>
    %c576 = arith.constant 576 : index
    %c0_89 = arith.constant 0 : index
    %117 = vector.load %arg3[%c576, %c0_89] : memref<864x32xbf16, #tpu.memory_space<vmem>>, vector<32x32xbf16>
    %cst_90 = arith.constant dense<0.000000e+00> : vector<346x32xf32>
    %118 = tpu.matmul %116, %117, %cst_90 {dimension_numbers = #tpu.dot_dimension_numbers<[1], [0], [0], [1], [0, 0, 1, 1], [], []>} : vector<346x32xbf16>, vector<32x32xbf16>, vector<346x32xf32> -> vector<346x32xf32>
    %119 = arith.addf %114, %118 : vector<346x32xf32>
    %c1_91 = arith.constant 1 : index
    %c0_92 = arith.constant 0 : index
    %120 = vector.load %arg10[%c1_91, %c0_92] : memref<484x32xf32, #tpu.memory_space<vmem>>, vector<346x32xf32>
    %121 = arith.truncf %120 : vector<346x32xf32> to vector<346x32xbf16>
    %c608 = arith.constant 608 : index
    %c0_93 = arith.constant 0 : index
    %122 = vector.load %arg3[%c608, %c0_93] : memref<864x32xbf16, #tpu.memory_space<vmem>>, vector<32x32xbf16>
    %cst_94 = arith.constant dense<0.000000e+00> : vector<346x32xf32>
    %123 = tpu.matmul %121, %122, %cst_94 {dimension_numbers = #tpu.dot_dimension_numbers<[1], [0], [0], [1], [0, 0, 1, 1], [], []>} : vector<346x32xbf16>, vector<32x32xbf16>, vector<346x32xf32> -> vector<346x32xf32>
    %124 = arith.addf %119, %123 : vector<346x32xf32>
    %c2_95 = arith.constant 2 : index
    %c0_96 = arith.constant 0 : index
    %125 = vector.load %arg10[%c2_95, %c0_96] : memref<484x32xf32, #tpu.memory_space<vmem>>, vector<346x32xf32>
    %126 = arith.truncf %125 : vector<346x32xf32> to vector<346x32xbf16>
    %c640 = arith.constant 640 : index
    %c0_97 = arith.constant 0 : index
    %127 = vector.load %arg3[%c640, %c0_97] : memref<864x32xbf16, #tpu.memory_space<vmem>>, vector<32x32xbf16>
    %cst_98 = arith.constant dense<0.000000e+00> : vector<346x32xf32>
    %128 = tpu.matmul %126, %127, %cst_98 {dimension_numbers = #tpu.dot_dimension_numbers<[1], [0], [0], [1], [0, 0, 1, 1], [], []>} : vector<346x32xbf16>, vector<32x32xbf16>, vector<346x32xf32> -> vector<346x32xf32>
    %129 = arith.addf %124, %128 : vector<346x32xf32>
    %c22_99 = arith.constant 22 : index
    %c0_100 = arith.constant 0 : index
    %130 = vector.load %arg10[%c22_99, %c0_100] : memref<484x32xf32, #tpu.memory_space<vmem>>, vector<346x32xf32>
    %131 = arith.truncf %130 : vector<346x32xf32> to vector<346x32xbf16>
    %c672 = arith.constant 672 : index
    %c0_101 = arith.constant 0 : index
    %132 = vector.load %arg3[%c672, %c0_101] : memref<864x32xbf16, #tpu.memory_space<vmem>>, vector<32x32xbf16>
    %cst_102 = arith.constant dense<0.000000e+00> : vector<346x32xf32>
    %133 = tpu.matmul %131, %132, %cst_102 {dimension_numbers = #tpu.dot_dimension_numbers<[1], [0], [0], [1], [0, 0, 1, 1], [], []>} : vector<346x32xbf16>, vector<32x32xbf16>, vector<346x32xf32> -> vector<346x32xf32>
    %134 = arith.addf %129, %133 : vector<346x32xf32>
    %c23_103 = arith.constant 23 : index
    %c0_104 = arith.constant 0 : index
    %135 = vector.load %arg10[%c23_103, %c0_104] : memref<484x32xf32, #tpu.memory_space<vmem>>, vector<346x32xf32>
    %136 = arith.truncf %135 : vector<346x32xf32> to vector<346x32xbf16>
    %c704 = arith.constant 704 : index
    %c0_105 = arith.constant 0 : index
    %137 = vector.load %arg3[%c704, %c0_105] : memref<864x32xbf16, #tpu.memory_space<vmem>>, vector<32x32xbf16>
    %cst_106 = arith.constant dense<0.000000e+00> : vector<346x32xf32>
    %138 = tpu.matmul %136, %137, %cst_106 {dimension_numbers = #tpu.dot_dimension_numbers<[1], [0], [0], [1], [0, 0, 1, 1], [], []>} : vector<346x32xbf16>, vector<32x32xbf16>, vector<346x32xf32> -> vector<346x32xf32>
    %139 = arith.addf %134, %138 : vector<346x32xf32>
    %c24_107 = arith.constant 24 : index
    %c0_108 = arith.constant 0 : index
    %140 = vector.load %arg10[%c24_107, %c0_108] : memref<484x32xf32, #tpu.memory_space<vmem>>, vector<346x32xf32>
    %141 = arith.truncf %140 : vector<346x32xf32> to vector<346x32xbf16>
    %c736 = arith.constant 736 : index
    %c0_109 = arith.constant 0 : index
    %142 = vector.load %arg3[%c736, %c0_109] : memref<864x32xbf16, #tpu.memory_space<vmem>>, vector<32x32xbf16>
    %cst_110 = arith.constant dense<0.000000e+00> : vector<346x32xf32>
    %143 = tpu.matmul %141, %142, %cst_110 {dimension_numbers = #tpu.dot_dimension_numbers<[1], [0], [0], [1], [0, 0, 1, 1], [], []>} : vector<346x32xbf16>, vector<32x32xbf16>, vector<346x32xf32> -> vector<346x32xf32>
    %144 = arith.addf %139, %143 : vector<346x32xf32>
    %c44_111 = arith.constant 44 : index
    %c0_112 = arith.constant 0 : index
    %145 = vector.load %arg10[%c44_111, %c0_112] : memref<484x32xf32, #tpu.memory_space<vmem>>, vector<346x32xf32>
    %146 = arith.truncf %145 : vector<346x32xf32> to vector<346x32xbf16>
    %c768 = arith.constant 768 : index
    %c0_113 = arith.constant 0 : index
    %147 = vector.load %arg3[%c768, %c0_113] : memref<864x32xbf16, #tpu.memory_space<vmem>>, vector<32x32xbf16>
    %cst_114 = arith.constant dense<0.000000e+00> : vector<346x32xf32>
    %148 = tpu.matmul %146, %147, %cst_114 {dimension_numbers = #tpu.dot_dimension_numbers<[1], [0], [0], [1], [0, 0, 1, 1], [], []>} : vector<346x32xbf16>, vector<32x32xbf16>, vector<346x32xf32> -> vector<346x32xf32>
    %149 = arith.addf %144, %148 : vector<346x32xf32>
    %c45_115 = arith.constant 45 : index
    %c0_116 = arith.constant 0 : index
    %150 = vector.load %arg10[%c45_115, %c0_116] : memref<484x32xf32, #tpu.memory_space<vmem>>, vector<346x32xf32>
    %151 = arith.truncf %150 : vector<346x32xf32> to vector<346x32xbf16>
    %c800 = arith.constant 800 : index
    %c0_117 = arith.constant 0 : index
    %152 = vector.load %arg3[%c800, %c0_117] : memref<864x32xbf16, #tpu.memory_space<vmem>>, vector<32x32xbf16>
    %cst_118 = arith.constant dense<0.000000e+00> : vector<346x32xf32>
    %153 = tpu.matmul %151, %152, %cst_118 {dimension_numbers = #tpu.dot_dimension_numbers<[1], [0], [0], [1], [0, 0, 1, 1], [], []>} : vector<346x32xbf16>, vector<32x32xbf16>, vector<346x32xf32> -> vector<346x32xf32>
    %154 = arith.addf %149, %153 : vector<346x32xf32>
    %c46_119 = arith.constant 46 : index
    %c0_120 = arith.constant 0 : index
    %155 = vector.load %arg10[%c46_119, %c0_120] : memref<484x32xf32, #tpu.memory_space<vmem>>, vector<346x32xf32>
    %156 = arith.truncf %155 : vector<346x32xf32> to vector<346x32xbf16>
    %c832 = arith.constant 832 : index
    %c0_121 = arith.constant 0 : index
    %157 = vector.load %arg3[%c832, %c0_121] : memref<864x32xbf16, #tpu.memory_space<vmem>>, vector<32x32xbf16>
    %cst_122 = arith.constant dense<0.000000e+00> : vector<346x32xf32>
    %158 = tpu.matmul %156, %157, %cst_122 {dimension_numbers = #tpu.dot_dimension_numbers<[1], [0], [0], [1], [0, 0, 1, 1], [], []>} : vector<346x32xbf16>, vector<32x32xbf16>, vector<346x32xf32> -> vector<346x32xf32>
    %159 = arith.addf %154, %158 : vector<346x32xf32>
    %c3 = arith.constant 3 : index
    %c0_123 = arith.constant 0 : index
    %160 = vector.load %arg4[%c3, %c0_123] : memref<4x32xf32, #tpu.memory_space<vmem>>, vector<1x32xf32>
    %161 = vector.broadcast %160 : vector<1x32xf32> to vector<346x32xf32>
    %162 = arith.addf %159, %161 : vector<346x32xf32>
    %cst_124 = arith.constant 0.000000e+00 : f32
    %163 = vector.broadcast %cst_124 : f32 to vector<346x32xf32>
    %164 = arith.maximumf %162, %163 : vector<346x32xf32>
    %c0_125 = arith.constant 0 : index
    %c0_126 = arith.constant 0 : index
    %165 = vector.load %arg11[%c0_125, %c0_126] : memref<484x32xf32, #tpu.memory_space<vmem>>, vector<346x32xf32>
    tpu.vector_store %arg11[%c0_125, %c0_126], %164 {strides = array<i32>} : memref<484x32xf32, #tpu.memory_space<vmem>>, vector<346x32xf32>,
    %c0_127 = arith.constant 0 : index
    %c0_128 = arith.constant 0 : index
    %166 = vector.load %arg11[%c0_127, %c0_128] : memref<484x32xf32, #tpu.memory_space<vmem>>, vector<346x32xf32>
    %167 = arith.truncf %166 : vector<346x32xf32> to vector<346x32xbf16>
    %c0_129 = arith.constant 0 : index
    %c0_130 = arith.constant 0 : index
    %168 = vector.load %arg5[%c0_129, %c0_130] : memref<64x346xbf16, #tpu.memory_space<vmem>>, vector<64x346xbf16>
    %cst_131 = arith.constant dense<0.000000e+00> : vector<64x32xf32>
    %169 = tpu.matmul %168, %167, %cst_131 {dimension_numbers = #tpu.dot_dimension_numbers<[1], [0], [0], [1], [0, 0, 1, 1], [], []>} : vector<64x346xbf16>, vector<346x32xbf16>, vector<64x32xf32> -> vector<64x32xf32>
    %170 = arith.truncf %169 : vector<64x32xf32> to vector<64x32xbf16>
    %c0_132 = arith.constant 0 : index
    %c0_133 = arith.constant 0 : index
    %171 = vector.load %arg6[%c0_132, %c0_133] : memref<32x32xbf16, #tpu.memory_space<vmem>>, vector<32x32xbf16>
    %cst_134 = arith.constant dense<0.000000e+00> : vector<64x32xf32>
    %172 = tpu.matmul %170, %171, %cst_134 {dimension_numbers = #tpu.dot_dimension_numbers<[1], [0], [0], [1], [0, 0, 1, 1], [], []>} : vector<64x32xbf16>, vector<32x32xbf16>, vector<64x32xf32> -> vector<64x32xf32>
    %c0_135 = arith.constant 0 : index
    %c0_136 = arith.constant 0 : index
    %173 = vector.load %arg7[%c0_135, %c0_136] : memref<3x32xf32, #tpu.memory_space<vmem>>, vector<1x32xf32>
    %174 = vector.broadcast %173 : vector<1x32xf32> to vector<64x32xf32>
    %175 = arith.addf %172, %174 : vector<64x32xf32>
    %cst_137 = arith.constant dense<0.000000e+00> : vector<64xf32>
    %176 = vector.multi_reduction <add>, %175, %cst_137 [1] : vector<64x32xf32> to vector<64xf32>
    %177 = vector.shape_cast %176 : vector<64xf32> to vector<64x1xf32>
    %cst_138 = arith.constant 3.200000e+01 : f32
    %178 = vector.broadcast %cst_138 : f32 to vector<64x1xf32>
    %179 = arith.divf %177, %178 : vector<64x1xf32>
    %180 = vector.broadcast %179 : vector<64x1xf32> to vector<64x32xf32>
    %181 = arith.subf %175, %180 : vector<64x32xf32>
    %182 = arith.mulf %181, %181 : vector<64x32xf32>
    %cst_139 = arith.constant dense<0.000000e+00> : vector<64xf32>
    %183 = vector.multi_reduction <add>, %182, %cst_139 [1] : vector<64x32xf32> to vector<64xf32>
    %184 = vector.shape_cast %183 : vector<64xf32> to vector<64x1xf32>
    %cst_140 = arith.constant 3.200000e+01 : f32
    %185 = vector.broadcast %cst_140 : f32 to vector<64x1xf32>
    %186 = arith.divf %184, %185 : vector<64x1xf32>
    %187 = vector.broadcast %179 : vector<64x1xf32> to vector<64x32xf32>
    %188 = arith.subf %175, %187 : vector<64x32xf32>
    %cst_141 = arith.constant 9.99999974E-6 : f32
    %189 = vector.broadcast %cst_141 : f32 to vector<64x1xf32>
    %190 = arith.addf %186, %189 : vector<64x1xf32>
    %191 = math.rsqrt %190 : vector<64x1xf32>
    %192 = vector.broadcast %191 : vector<64x1xf32> to vector<64x32xf32>
    %193 = arith.mulf %188, %192 : vector<64x32xf32>
    %c1_142 = arith.constant 1 : index
    %c0_143 = arith.constant 0 : index
    %194 = vector.load %arg7[%c1_142, %c0_143] : memref<3x32xf32, #tpu.memory_space<vmem>>, vector<1x32xf32>
    %195 = vector.broadcast %194 : vector<1x32xf32> to vector<64x32xf32>
    %196 = arith.mulf %193, %195 : vector<64x32xf32>
    %c2_144 = arith.constant 2 : index
    %c0_145 = arith.constant 0 : index
    %197 = vector.load %arg7[%c2_144, %c0_145] : memref<3x32xf32, #tpu.memory_space<vmem>>, vector<1x32xf32>
    %198 = vector.broadcast %197 : vector<1x32xf32> to vector<64x32xf32>
    %199 = arith.addf %196, %198 : vector<64x32xf32>
    %200 = math.tanh %199 : vector<64x32xf32>
    %c0_146 = arith.constant 0 : index
    %c0_147 = arith.constant 0 : index
    %201 = vector.load %arg8[%c0_146, %c0_147] : memref<64x32xf32, #tpu.memory_space<vmem>>, vector<64x32xf32>
    %202 = arith.addf %200, %201 : vector<64x32xf32>
    %c0_148 = arith.constant 0 : index
    %c0_149 = arith.constant 0 : index
    %c0_150 = arith.constant 0 : index
    %203 = vector.load %arg9[%c0_148, %c0_149, %c0_150] : memref<1x64x32xf32, #tpu.memory_space<vmem>>, vector<1x64x32xf32>
    %204 = vector.shape_cast %203 : vector<1x64x32xf32> to vector<64x32xf32>
    %205 = vector.shape_cast %202 : vector<64x32xf32> to vector<1x64x32xf32>
    tpu.vector_store %arg9[%c0_148, %c0_149, %c0_150], %205 {strides = array<i32>} : memref<1x64x32xf32, #tpu.memory_space<vmem>>, vector<1x64x32xf32>,
    return
  }
  func.func @transform_0(%arg0: i32) -> (i32, i32, i32) {
    %c0_i32 = arith.constant 0 : i32
    %c0_i32_0 = arith.constant 0 : i32
    %c0_i32_1 = arith.constant 0 : i32
    return %arg0, %c0_i32, %c0_i32_0 : i32, i32, i32
  }
  func.func @transform_1(%arg0: i32) -> (i32, i32) {
    %c0_i32 = arith.constant 0 : i32
    %c0_i32_0 = arith.constant 0 : i32
    %c0_i32_1 = arith.constant 0 : i32
    return %c0_i32, %c0_i32_0 : i32, i32
  }
  func.func @transform_2(%arg0: i32) -> (i32, i32) {
    %c0_i32 = arith.constant 0 : i32
    %c0_i32_0 = arith.constant 0 : i32
    %c0_i32_1 = arith.constant 0 : i32
    return %c0_i32, %c0_i32_0 : i32, i32
  }
  func.func @transform_3(%arg0: i32) -> (i32, i32) {
    %c0_i32 = arith.constant 0 : i32
    %c0_i32_0 = arith.constant 0 : i32
    %c0_i32_1 = arith.constant 0 : i32
    return %c0_i32, %c0_i32_0 : i32, i32
  }
  func.func @transform_4(%arg0: i32) -> (i32, i32) {
    %c0_i32 = arith.constant 0 : i32
    %c0_i32_0 = arith.constant 0 : i32
    %c0_i32_1 = arith.constant 0 : i32
    return %c0_i32, %c0_i32_0 : i32, i32
  }
  func.func @transform_5(%arg0: i32) -> (i32, i32) {
    %c0_i32 = arith.constant 0 : i32
    %c0_i32_0 = arith.constant 0 : i32
    %c0_i32_1 = arith.constant 0 : i32
    return %c0_i32, %c0_i32_0 : i32, i32
  }
  func.func @transform_6(%arg0: i32) -> (i32, i32) {
    %c0_i32 = arith.constant 0 : i32
    %c0_i32_0 = arith.constant 0 : i32
    %c0_i32_1 = arith.constant 0 : i32
    return %c0_i32, %c0_i32_0 : i32, i32
  }
  func.func @transform_7(%arg0: i32) -> (i32, i32) {
    %c0_i32 = arith.constant 0 : i32
    %c0_i32_0 = arith.constant 0 : i32
    %c0_i32_1 = arith.constant 0 : i32
    return %c0_i32, %c0_i32_0 : i32, i32
  }
  func.func @transform_8(%arg0: i32) -> (i32, i32, i32) {
    %c0_i32 = arith.constant 0 : i32
    %c0_i32_0 = arith.constant 0 : i32
    %c0_i32_1 = arith.constant 0 : i32
    return %arg0, %c0_i32, %c0_i32_0 : i32, i32, i32
  }
}

</mosaic_0001>

<bundles_post_ra>
// kernel: static_encoder_forward.1
= control target key start
LH: loop header
LB: loop body
LE: loop exit
PB: predicated region body
PF: predicated region fallthrough
CT: control target
= control target key end

     0   :  { %s18590_s27 = smov 0   ;;  %s22562_s0 = inlined_call_operand.vmem [shape: bf16[2,484,32], index: 0, kind: input, shape index: {}]   ;;  %s22563_s1 = inlined_call_operand.vmem [shape: bf16[32,32], index: 1, kind: input, shape index: {}]   ;;  %s22564_s2 = inlined_call_operand.vmem [shape: bf16[864,32], index: 2, kind: input, shape index: {}]   ;;  %s22565_s3 = inlined_call_operand.vmem [shape: f32[4,32], index: 3, kind: input, shape index: {}]   ;;  %s22566_s4 = inlined_call_operand.vmem [shape: bf16[64,346], index: 4, kind: input, shape index: {}]   ;;  %s22567_s5 = inlined_call_operand.vmem [shape: bf16[32,32], index: 5, kind: input, shape index: {}]   ;;  %s22568_s6 = inlined_call_operand.vmem [shape: f32[3,32], index: 6, kind: input, shape index: {}]   ;;  %s22569_s7 = inlined_call_operand.vmem [shape: f32[64,32], index: 7, kind: input, shape index: {}]   ;;  %s22570_s8 = inlined_call_operand.vmem [shape: f32[2,64,32], index: 8, kind: output, shape index: {}]  }
   0x1 LB: > { %s13882_s28 = sadd.s32 4294967295, %s18541_s27   ;;  %p13886_p0 = scmp.ge.s32.totalorder %s18541_s27, 1  ;;  %s18541_s27 = sphi %s18590_s27, %s18_s27  }
   0x2   : > { %p262_p1 = scmp.lt.s32.totalorder %s18541_s27, 3 }
   0x4   : > { %p263_p2 = pnand %p13886_p0, %p262_p1 }
   0x6   : > { %266 = sbr.rel (%p263_p2) target bundleno = 4580 (0x11e4), region = 52 }
   0xd   : > { %v18385_v0 = vld [vmem:[%s22563_s1] sm:$0xff]   ;;  %v22571_v1 = vmov 0.0   ;;  %v18386_v2 = vld [vmem:[%s22563_s1 + $0x8] sm:$0xff]   ;;  %vm18544_vm0 = vmmov 0   ;;  %p296_p3 = scmp.lt.s32.totalorder %s13882_s28, 1  ;;  %vm542_vm1 = vcmask 261120  }
   0xe   : > { %15533 = vmatprep.subr.bf16.mxu1 %v22571_v1  ;;  %16201 = vmatprep.subr.bf16.mxu0 %v22571_v1  ;;  %v18418_v18 = vld [vmem:[%s22564_s2 + $0x10] sm:$0xff]   ;;  %v18419_v19 = vld [vmem:[%s22564_s2 + $0x18] sm:$0xff]   ;;  %v18734_v32 = vld [vmem:[%s22565_s3] ss:$0 sm:$0xff]  ;;  %vm1037_vm2 = vcmask 257024   ;;  %vm5544_vm3 = vcmask 259072  }
   0xf   : > { %15534 = vmatpush3.bf16.msra.mxu1 %v18385_v0  ;;  %15537 = vmatprep.mubr.msk.bf16.mxu1 %vm18544_vm0, %v22571_v1  ;;  %s23105_s28 = smov (!%p296_p3, %s13882_s28), 1  ;;  %vm13271_vm4 = vcmask 254976   ;;  %vm13428_vm5 = vcmask 1044480   ;;  %vm13415_vm6 = vcmask 736256  }
  0x10   : > { %15535 = vmatprep.subr.bf16.mxu1 %v22571_v1  ;;  %16205 = vmatprep.mubr.msk.bf16.mxu0 %vm18544_vm0, %v22571_v1  ;;  %s18374_s11 = smul.u32 244, %s23105_s28  ;;  %s14714_s29 = sshll.u32 %s23105_s28, 6 }
  0x11   : > { %s22519_s12 = scalar_lea.vmem %s22570_s8, %s14714_s29 }
  0x12   : > { %s18617_s14 = scalar_lea.vmem %s22562_s0, %s18374_s11 }
  0x13   : > { %15536 = vmatpush3.bf16.msra.mxu1 %v18386_v2  ;;  %v18387_v3 = vld [vmem:[%s18617_s14] sm:$0xff]   ;;  %v18388_v4 = vld [vmem:[%s18617_s14 + $0x8] sm:$0xff]   ;;  %v18389_v5 = vld [vmem:[%s18617_s14 + $0x10] sm:$0xff]  }
  0x14   : > { %v18390_v6 = vld [vmem:[%s18617_s14 + $0x18] sm:$0xff]   ;;  %v18391_v7 = vld [vmem:[%s18617_s14 + $0x20] sm:$0xff]   ;;  %v18392_v8 = vld [vmem:[%s18617_s14 + $0x28] sm:$0xff]   ;;  %15661 = vmatprep.subr.bf16.mxu1 %v18418_v18 }
  0x15   : > { %v18393_v9 = vld [vmem:[%s18617_s14 + $0x30] sm:$0xff]   ;;  %v18394_v10 = vld [vmem:[%s18617_s14 + $0x38] sm:$0xff]   ;;  %v18395_v11 = vld [vmem:[%s18617_s14 + $0x40] sm:$0xff]  }
  0x16   : > { %15538 = vmatmul.mubr.msk.bf16.vlgmr.msra.gmra.mrb[0].mxu1 %vm542_vm1, %v18387_v3  ;;  %v18396_v12 = vld [vmem:[%s18617_s14 + $0x48] sm:$0xff]   ;;  %v18397_v13 = vld [vmem:[%s18617_s14 + $0x50] sm:$0xff]   ;;  %v18398_v14 = vld [vmem:[%s18617_s14 + $0x58] sm:$0xff]  }
  0x17   : > { %15541 = vmatprep.mubr.msk.bf16.mxu1 %vm18544_vm0, %v22571_v1  ;;  %v18399_v15 = vld [vmem:[%s18617_s14 + $0x60] sm:$0xff]   ;;  %v18400_v16 = vld [vmem:[%s18617_s14 + $0x68] sm:$0xff]   ;;  %v18401_v17 = vld [vmem:[%s18617_s14 + $0x70] sm:$0xff]   ;;  %15662 = vmatpush3.bf16.msra.mxu1 %v18418_v18 }
  0x18   : > { %v18402_v20 = vld [vmem:[%s18617_s14 + $0x78] sm:$0xff]   ;;  %15663 = vmatprep.subr.bf16.mxu1 %v18419_v19  ;;  %v18403_v21 = vld [vmem:[%s18617_s14 + $0x80] sm:$0xff]   ;;  %v18404_v22 = vld [vmem:[%s18617_s14 + $0x88] sm:$0xff]  }
  0x19   : > { %v18405_v23 = vld [vmem:[%s18617_s14 + $0x90] sm:$0xff]   ;;  %v18406_v24 = vld [vmem:[%s18617_s14 + $0x98] sm:$0xff]   ;;  %v18407_v25 = vld [vmem:[%s18617_s14 + $0xa0] sm:$0xff]  }
  0x1a   : > { %v18408_v26 = vld [vmem:[%s18617_s14 + $0xa8] sm:$0xff]   ;;  %v18409_v27 = vld [vmem:[%s18617_s14 + $0xb0] sm:$0xff]   ;;  %v18410_v28 = vld [vmem:[%s18617_s14 + $0xb8] sm:$0xff]  }
  0x1b   : > { %15664 = vmatpush3.bf16.msra.mxu1 %v18419_v19  ;;  %v18411_v29 = vld [vmem:[%s18617_s14 + $0xc0] sm:$0xff]   ;;  %v18412_v30 = vld [vmem:[%s18617_s14 + $0xc8] sm:$0xff]   ;;  %v18413_v31 = vld [vmem:[%s18617_s14 + $0xd0] sm:$0xff]  }
  0x1c   : > { %v18414_v36 = vld [vmem:[%s18617_s14 + $0xd8] sm:$0xff]   ;;  %v18415_v45 = vld [vmem:[%s18617_s14 + $0xe0] sm:$0xff]   ;;  %v18416_v54 = vld [vmem:[%s18617_s14 + $0xe8] sm:$0xff]  }
  0x1d   : > { %v18417_v63 = vld [vmem:[%s18617_s14 + $0xf0] ss:$0 sps:$4 sm:$0x33]  }
  0x1e   : > { %15542 = vmatmul.mubr.msk.bf16.gmra.mrb[4].mxu1 %vm542_vm1, %v18388_v4 }
  0x1f   : > { %15545 = vmatprep.mubr.msk.bf16.mxu1 %vm18544_vm0, %v22571_v1 }
  0x26   : > { %15546 = vmatmul.mubr.msk.bf16.gmra.mrb[8].mxu1 %vm542_vm1, %v18389_v5 }
  0x27   : > { %15549 = vmatprep.mubr.msk.bf16.mxu1 %vm18544_vm0, %v22571_v1 }
  0x2e   : > { %15550 = vmatmul.mubr.msk.bf16.gmra.mrb[12].mxu1 %vm542_vm1, %v18390_v6 }
  0x2f   : > { %15553 = vmatprep.mubr.msk.bf16.mxu1 %vm18544_vm0, %v22571_v1 }
  0x36   : > { %15554 = vmatmul.mubr.msk.bf16.gmra.mrb[16].mxu1 %vm542_vm1, %v18391_v7 }
  0x37   : > { %15557 = vmatprep.mubr.msk.bf16.mxu1 %vm18544_vm0, %v22571_v1 }
  0x3e   : > { %15558 = vmatmul.mubr.msk.bf16.gmra.mrb[20].mxu1 %vm542_vm1, %v18392_v8 }
  0x3f   : > { %15561 = vmatprep.mubr.msk.bf16.mxu1 %vm18544_vm0, %v22571_v1 }
  0x46   : > { %15562 = vmatmul.mubr.msk.bf16.gmra.mrb[24].mxu1 %vm542_vm1, %v18393_v9 }
  0x47   : > { %15565 = vmatprep.mubr.msk.bf16.mxu1 %vm18544_vm0, %v22571_v1 }
  0x4e   : > { %15566 = vmatmul.mubr.msk.bf16.gmra.mrb[28].mxu1 %vm542_vm1, %v18394_v10 }
  0x4f   : > { %15569 = vmatprep.mubr.msk.bf16.mxu1 %vm18544_vm0, %v22571_v1 }
  0x56   : > { %15570 = vmatmul.mubr.msk.bf16.gmra.mrb[32].mxu1 %vm542_vm1, %v18395_v11 }
  0x57   : > { %15573 = vmatprep.mubr.msk.bf16.mxu1 %vm18544_vm0, %v22571_v1 }
  0x5e   : > { %15574 = vmatmul.mubr.msk.bf16.gmra.mrb[36].mxu1 %vm542_vm1, %v18396_v12 }
  0x5f   : > { %15577 = vmatprep.mubr.msk.bf16.mxu1 %vm18544_vm0, %v22571_v1 }
  0x66   : > { %15578 = vmatmul.mubr.msk.bf16.gmra.mrb[40].mxu1 %vm542_vm1, %v18397_v13 }
  0x67   : > { %15581 = vmatprep.mubr.msk.bf16.mxu1 %vm18544_vm0, %v22571_v1 }
  0x6e   : > { %15582 = vmatmul.mubr.msk.bf16.gmra.mrb[44].mxu1 %vm542_vm1, %v18398_v14 }
  0x6f   : > { %15585 = vmatprep.mubr.msk.bf16.mxu1 %vm18544_vm0, %v22571_v1 }
  0x76   : > { %15586 = vmatmul.mubr.msk.bf16.gmra.mrb[48].mxu1 %vm542_vm1, %v18399_v15 }
  0x77   : > { %15589 = vmatprep.mubr.msk.bf16.mxu1 %vm18544_vm0, %v22571_v1 }
  0x7e   : > { %15590 = vmatmul.mubr.msk.bf16.gmra.mrb[52].mxu1 %vm542_vm1, %v18400_v16 }
  0x7f   : > { %15593 = vmatprep.mubr.msk.bf16.mxu1 %vm18544_vm0, %v22571_v1 }
  0x86   : > { %15594 = vmatmul.mubr.msk.bf16.gmra.mrb[56].mxu1 %vm542_vm1, %v18401_v17 }
  0x87   : > { %15597 = vmatprep.mubr.msk.bf16.mxu1 %vm18544_vm0, %v22571_v1 }
  0x8e   : > { %15598 = vmatmul.mubr.msk.bf16.gmra.mrb[60].mxu1 %vm542_vm1, %v18402_v20 }
  0x8f   : > { %15601 = vmatprep.mubr.msk.bf16.mxu1 %vm18544_vm0, %v22571_v1 }
  0x96   : > { %15602 = vmatmul.mubr.msk.bf16.gmra.mrb[64].mxu1 %vm542_vm1, %v18403_v21 }
  0x97   : > { %15605 = vmatprep.mubr.msk.bf16.mxu1 %vm18544_vm0, %v22571_v1 }
  0x9e   : > { %15606 = vmatmul.mubr.msk.bf16.gmra.mrb[68].mxu1 %vm542_vm1, %v18404_v22 }
  0x9f   : > { %15609 = vmatprep.mubr.msk.bf16.mxu1 %vm18544_vm0, %v22571_v1 }
  0xa6   : > { %15610 = vmatmul.mubr.msk.bf16.gmra.mrb[72].mxu1 %vm542_vm1, %v18405_v23 }
  0xa7   : > { %15613 = vmatprep.mubr.msk.bf16.mxu1 %vm18544_vm0, %v22571_v1 }
  0xae   : > { %15614 = vmatmul.mubr.msk.bf16.gmra.mrb[76].mxu1 %vm542_vm1, %v18406_v24 }
  0xaf   : > { %15617 = vmatprep.mubr.msk.bf16.mxu1 %vm18544_vm0, %v22571_v1 }
  0xb6   : > { %15618 = vmatmul.mubr.msk.bf16.gmra.mrb[80].mxu1 %vm542_vm1, %v18407_v25 }
  0xb7   : > { %15621 = vmatprep.mubr.msk.bf16.mxu1 %vm18544_vm0, %v22571_v1 }
  0xbe   : > { %15622 = vmatmul.mubr.msk.bf16.gmra.mrb[84].mxu1 %vm542_vm1, %v18408_v26 }
  0xbf   : > { %15625 = vmatprep.mubr.msk.bf16.mxu1 %vm18544_vm0, %v22571_v1 }
  0xc6   : > { %15626 = vmatmul.mubr.msk.bf16.gmra.mrb[88].mxu1 %vm542_vm1, %v18409_v27 }
  0xc7   : > { %15629 = vmatprep.mubr.msk.bf16.mxu1 %vm18544_vm0, %v22571_v1 }
  0xce   : > { %15630 = vmatmul.mubr.msk.bf16.gmra.mrb[92].mxu1 %vm542_vm1, %v18410_v28 }
  0xcf   : > { %15633 = vmatprep.mubr.msk.bf16.mxu1 %vm18544_vm0, %v22571_v1 }
  0xd6   : > { %15634 = vmatmul.mubr.msk.bf16.gmra.mrb[96].mxu1 %vm542_vm1, %v18411_v29 }
  0xd7   : > { %15637 = vmatprep.mubr.msk.bf16.mxu1 %vm18544_vm0, %v22571_v1 }
  0xde   : > { %15638 = vmatmul.mubr.msk.bf16.gmra.mrb[100].mxu1 %vm542_vm1, %v18412_v30 }
  0xdf   : > { %15641 = vmatprep.mubr.msk.bf16.mxu1 %vm18544_vm0, %v22571_v1 }
  0xe6   : > { %15642 = vmatmul.mubr.msk.bf16.gmra.mrb[104].mxu1 %vm542_vm1, %v18413_v31 }
  0xe7   : > { %15645 = vmatprep.mubr.msk.bf16.mxu1 %vm18544_vm0, %v22571_v1 }
  0xe9   : > { %v670_v33 = vpop.f32.mrb[0].mxu1 }
  0xea   : > { %v671_v34 = vadd.f32 %v18734_v32, %v670_v33  ;;  %v15539_v35 = vpop.f32.mrb[1].mxu1 }
  0xeb   : > { %v673_v37 = vpop.f32.mrb[2].mxu1 }
  0xec   : > { %v916_v38 = vmax.f32 %v671_v34, 0.0  ;;  %v674_v39 = vadd.f32 %v18734_v32, %v673_v37  ;;  %v15540_v40 = vpop.f32.mrb[3].mxu1 }
  0xee   : > { %977 = vst.msk [vmem:[#allocation2] sm:$0xff] %vm542_vm1, %v916_v38  ;;  %v917_v41 = vmax.f32 %v674_v39, 0.0  ;;  %15646 = vmatmul.mubr.msk.bf16.gmra.mrb[108].mxu1 %vm542_vm1, %v18414_v36 }
  0xef   : > { %15649 = vmatprep.mubr.msk.bf16.mxu1 %vm18544_vm0, %v22571_v1 }
  0xf0   : > { %978 = vst.msk [vmem:[#allocation2 + $0x8] sm:$0xff] %vm542_vm1, %v917_v41 }
  0xf1   : > { %v678_v42 = vpop.f32.mrb[4].mxu1 }
  0xf2   : > { %v679_v43 = vadd.f32 %v18734_v32, %v678_v42  ;;  %v15543_v44 = vpop.f32.mrb[5].mxu1 }
  0xf3   : > { %v681_v46 = vpop.f32.mrb[6].mxu1 }
  0xf4   : > { %v918_v47 = vmax.f32 %v679_v43, 0.0  ;;  %v682_v48 = vadd.f32 %v18734_v32, %v681_v46  ;;  %v15544_v49 = vpop.f32.mrb[7].mxu1 }
  0xf6   : > { %979 = vst.msk [vmem:[#allocation2 + $0x10] sm:$0xff] %vm542_vm1, %v918_v47  ;;  %v919_v50 = vmax.f32 %v682_v48, 0.0  ;;  %15650 = vmatmul.mubr.msk.bf16.gmra.mrb[112].mxu1 %vm542_vm1, %v18415_v45 }
  0xf7   : > { %15653 = vmatprep.mubr.msk.bf16.mxu1 %vm18544_vm0, %v22571_v1  ;;  %v1126_v6 = vld [vmem:[#allocation2 + $0x1] sm:$0xff] }
  0xf8   : > { %980 = vst.msk [vmem:[#allocation2 + $0x18] sm:$0xff] %vm542_vm1, %v919_v50 }
  0xf9   : > { %v686_v51 = vpop.f32.mrb[8].mxu1 }
  0xfa   : > { %v687_v52 = vadd.f32 %v18734_v32, %v686_v51  ;;  %v15547_v53 = vpop.f32.mrb[9].mxu1 }
  0xfb   : > { %v689_v55 = vpop.f32.mrb[10].mxu1 }
  0xfc   : > { %v920_v56 = vmax.f32 %v687_v52, 0.0  ;;  %v690_v57 = vadd.f32 %v18734_v32, %v689_v55  ;;  %v15548_v58 = vpop.f32.mrb[11].mxu1 }
  0xfd   : > { %v1127_v0 = vld [vmem:[#allocation2 + $0x9] sm:$0xff] }
  0xfe   : > { %981 = vst.msk [vmem:[#allocation2 + $0x20] sm:$0xff] %vm542_vm1, %v920_v56  ;;  %v921_v59 = vmax.f32 %v690_v57, 0.0  ;;  %15654 = vmatmul.mubr.msk.bf16.gmra.mrb[116].mxu1 %vm542_vm1, %v18416_v54  ;;  %v1181_v7 = vpack.c.bf16 %v1127_v0, %v1126_v6 }
  0xff   : > { %15657 = vmatprep.mubr.msk.bf16.mxu1 %vm18544_vm0, %v22571_v1  ;;  %v1128_v14 = vld [vmem:[#allocation2 + $0x11] sm:$0xff] }
 0x100   : > { %982 = vst.msk [vmem:[#allocation2 + $0x28] sm:$0xff] %vm542_vm1, %v921_v59 }
 0x101   : > { %v694_v60 = vpop.f32.mrb[12].mxu1 }
 0x102   : > { %v695_v61 = vadd.f32 %v18734_v32, %v694_v60  ;;  %v15551_v62 = vpop.f32.mrb[13].mxu1 }
 0x103   : > { %v697_v2 = vpop.f32.mrb[14].mxu1 }
 0x104   : > { %v922_v3 = vmax.f32 %v695_v61, 0.0  ;;  %v698_v4 = vadd.f32 %v18734_v32, %v697_v2  ;;  %v15552_v5 = vpop.f32.mrb[15].mxu1 }
 0x105   : > { %v1129_v10 = vld [vmem:[#allocation2 + $0x19] sm:$0xff] }
 0x106   : > { %983 = vst.msk [vmem:[#allocation2 + $0x30] sm:$0xff] %vm542_vm1, %v922_v3  ;;  %v923_v8 = vmax.f32 %v698_v4, 0.0  ;;  %15658 = vmatmul.mubr.msk.bf16.gmra.mrb[120].mxu1 %vm542_vm1, %v18417_v63  ;;  %v1182_v18 = vpack.c.bf16 %v1129_v10, %v1128_v14 }
 0x107   : > { %15665 = vmatprep.mubr.msk.bf16.mxu1 %vm542_vm1, %v1181_v7  ;;  %v1130_v19 = vld [vmem:[#allocation2 + $0x21] sm:$0xff] }
 0x108   : > { %984 = vst.msk [vmem:[#allocation2 + $0x38] sm:$0xff] %vm542_vm1, %v923_v8 }
 0x109   : > { %v702_v9 = vpop.f32.mrb[16].mxu1 }
 0x10a   : > { %v703_v11 = vadd.f32 %v18734_v32, %v702_v9  ;;  %v15555_v12 = vpop.f32.mrb[17].mxu1 }
 0x10b   : > { %v705_v13 = vpop.f32.mrb[18].mxu1 }
 0x10c   : > { %v924_v15 = vmax.f32 %v703_v11, 0.0  ;;  %v706_v16 = vadd.f32 %v18734_v32, %v705_v13  ;;  %v15556_v17 = vpop.f32.mrb[19].mxu1 }
 0x10d   : > { %v1131_v20 = vld [vmem:[#allocation2 + $0x29] sm:$0xff] }
 0x10e   : > { %985 = vst.msk [vmem:[#allocation2 + $0x40] sm:$0xff] %vm542_vm1, %v924_v15  ;;  %v925_v21 = vmax.f32 %v706_v16, 0.0  ;;  %15666 = vmatmul.mubr.msk.bf16.vlgmr.msra.gmra.mrb[124].mxu1 %vm542_vm1, %v1182_v18  ;;  %v1183_v22 = vpack.c.bf16 %v1131_v20, %v1130_v19 }
 0x10f   : > { %v1132_v30 = vld [vmem:[#allocation2 + $0x31] sm:$0xff] }
 0x110   : > { %986 = vst.msk [vmem:[#allocation2 + $0x48] sm:$0xff] %vm542_vm1, %v925_v21  ;;  %15669 = vmatprep.mubr.msk.bf16.mxu1 %vm542_vm1, %v1183_v22 }
 0x111   : > { %v710_v23 = vpop.f32.mrb[20].mxu1 }
 0x112   : > { %v711_v24 = vadd.f32 %v18734_v32, %v710_v23  ;;  %v15559_v25 = vpop.f32.mrb[21].mxu1 }
 0x113   : > { %v713_v26 = vpop.f32.mrb[22].mxu1 }
 0x114   : > { %v926_v27 = vmax.f32 %v711_v24, 0.0  ;;  %v714_v28 = vadd.f32 %v18734_v32, %v713_v26  ;;  %v15560_v29 = vpop.f32.mrb[23].mxu1 }
 0x115   : > { %v1133_v31 = vld [vmem:[#allocation2 + $0x39] sm:$0xff] }
 0x116   : > { %987 = vst.msk [vmem:[#allocation2 + $0x50] sm:$0xff] %vm542_vm1, %v926_v27  ;;  %v927_v33 = vmax.f32 %v714_v28, 0.0  ;;  %v1184_v34 = vpack.c.bf16 %v1133_v31, %v1132_v30 }
 0x117   : > { %v1134_v42 = vld [vmem:[#allocation2 + $0x41] sm:$0xff] }
 0x118   : > { %988 = vst.msk [vmem:[#allocation2 + $0x58] sm:$0xff] %vm542_vm1, %v927_v33  ;;  %15670 = vmatmul.mubr.msk.bf16.gmra.mrb[128].mxu1 %vm542_vm1, %v1184_v34 }
 0x119   : > { %v718_v35 = vpop.f32.mrb[24].mxu1 }
 0x11a   : > { %v719_v36 = vadd.f32 %v18734_v32, %v718_v35  ;;  %v15563_v37 = vpop.f32.mrb[25].mxu1 }
 0x11b   : > { %v721_v38 = vpop.f32.mrb[26].mxu1 }
 0x11c   : > { %v928_v39 = vmax.f32 %v719_v36, 0.0  ;;  %v722_v40 = vadd.f32 %v18734_v32, %v721_v38  ;;  %v15564_v41 = vpop.f32.mrb[27].mxu1 }
 0x11d   : > { %v1135_v43 = vld [vmem:[#allocation2 + $0x49] sm:$0xff] }
 0x11e   : > { %989 = vst.msk [vmem:[#allocation2 + $0x60] sm:$0xff] %vm542_vm1, %v928_v39  ;;  %v929_v44 = vmax.f32 %v722_v40, 0.0  ;;  %v1185_v45 = vpack.c.bf16 %v1135_v43, %v1134_v42 }
 0x11f   : > { %v1136_v53 = vld [vmem:[#allocation2 + $0x51] sm:$0xff] }
 0x120   : > { %990 = vst.msk [vmem:[#allocation2 + $0x68] sm:$0xff] %vm542_vm1, %v929_v44  ;;  %15673 = vmatprep.mubr.msk.bf16.mxu1 %vm542_vm1, %v1185_v45 }
 0x121   : > { %v726_v46 = vpop.f32.mrb[28].mxu1 }
 0x122   : > { %v727_v47 = vadd.f32 %v18734_v32, %v726_v46  ;;  %v15567_v48 = vpop.f32.mrb[29].mxu1 }
 0x123   : > { %v729_v49 = vpop.f32.mrb[30].mxu1 }
 0x124   : > { %v930_v50 = vmax.f32 %v727_v47, 0.0  ;;  %v730_v51 = vadd.f32 %v18734_v32, %v729_v49  ;;  %v15568_v52 = vpop.f32.mrb[31].mxu1 }
 0x125   : > { %v1137_v54 = vld [vmem:[#allocation2 + $0x59] sm:$0xff] }
 0x126   : > { %991 = vst.msk [vmem:[#allocation2 + $0x70] sm:$0xff] %vm542_vm1, %v930_v50  ;;  %v931_v55 = vmax.f32 %v730_v51, 0.0  ;;  %v1186_v56 = vpack.c.bf16 %v1137_v54, %v1136_v53  ;;  %v18420_v50 = vld [vmem:[%s22564_s2] sm:$0xff]   ;;  %v18421_v54 = vld [vmem:[%s22564_s2 + $0x8] sm:$0xff]  }
 0x127   : > { %v1138_v0 = vld [vmem:[#allocation2 + $0x61] sm:$0xff]  ;;  %15721 = vmatprep.subr.bf16.mxu1 %v18420_v50 }
 0x128   : > { %992 = vst.msk [vmem:[#allocation2 + $0x78] sm:$0xff] %vm542_vm1, %v931_v55  ;;  %15674 = vmatmul.mubr.msk.bf16.gmra.mrb[132].mxu1 %vm542_vm1, %v1186_v56 }
 0x129   : > { %v734_v57 = vpop.f32.mrb[32].mxu1  ;;  %15722 = vmatpush3.bf16.msra.mxu1 %v18420_v50 }
 0x12a   : > { %v735_v58 = vadd.f32 %v18734_v32, %v734_v57  ;;  %v15571_v59 = vpop.f32.mrb[33].mxu1  ;;  %15723 = vmatprep.subr.bf16.mxu1 %v18421_v54 }
 0x12b   : > { %v737_v60 = vpop.f32.mrb[34].mxu1 }
 0x12c   : > { %v932_v61 = vmax.f32 %v735_v58, 0.0  ;;  %v738_v62 = vadd.f32 %v18734_v32, %v737_v60  ;;  %v15572_v63 = vpop.f32.mrb[35].mxu1 }
 0x12d   : > { %v1139_v2 = vld [vmem:[#allocation2 + $0x69] sm:$0xff]  ;;  %15724 = vmatpush3.bf16.msra.mxu1 %v18421_v54 }
 0x12e   : > { %993 = vst.msk [vmem:[#allocation2 + $0x80] sm:$0xff] %vm542_vm1, %v932_v61  ;;  %v933_v3 = vmax.f32 %v738_v62, 0.0  ;;  %v1187_v4 = vpack.c.bf16 %v1139_v2, %v1138_v0 }
 0x12f   : > { %v1140_v12 = vld [vmem:[#allocation2 + $0x71] sm:$0xff] }
 0x130   : > { %994 = vst.msk [vmem:[#allocation2 + $0x88] sm:$0xff] %vm542_vm1, %v933_v3  ;;  %15677 = vmatprep.mubr.msk.bf16.mxu1 %vm542_vm1, %v1187_v4 }
 0x131   : > { %v742_v5 = vpop.f32.mrb[36].mxu1 }
 0x132   : > { %v743_v6 = vadd.f32 %v18734_v32, %v742_v5  ;;  %v15575_v7 = vpop.f32.mrb[37].mxu1 }
 0x133   : > { %v745_v8 = vpop.f32.mrb[38].mxu1 }
 0x134   : > { %v934_v9 = vmax.f32 %v743_v6, 0.0  ;;  %v746_v10 = vadd.f32 %v18734_v32, %v745_v8  ;;  %v15576_v11 = vpop.f32.mrb[39].mxu1 }
 0x135   : > { %v1141_v13 = vld [vmem:[#allocation2 + $0x79] sm:$0xff] }
 0x136   : > { %995 = vst.msk [vmem:[#allocation2 + $0x90] sm:$0xff] %vm542_vm1, %v934_v9  ;;  %v935_v14 = vmax.f32 %v746_v10, 0.0  ;;  %v1188_v15 = vpack.c.bf16 %v1141_v13, %v1140_v12 }
 0x137   : > { %v1142_v23 = vld [vmem:[#allocation2 + $0x81] sm:$0xff] }
 0x138   : > { %996 = vst.msk [vmem:[#allocation2 + $0x98] sm:$0xff] %vm542_vm1, %v935_v14  ;;  %15678 = vmatmul.mubr.msk.bf16.gmra.mrb[136].mxu1 %vm542_vm1, %v1188_v15 }
 0x139   : > { %v750_v16 = vpop.f32.mrb[40].mxu1 }
 0x13a   : > { %v751_v17 = vadd.f32 %v18734_v32, %v750_v16  ;;  %v15579_v18 = vpop.f32.mrb[41].mxu1 }
 0x13b   : > { %v753_v19 = vpop.f32.mrb[42].mxu1 }
 0x13c   : > { %v936_v20 = vmax.f32 %v751_v17, 0.0  ;;  %v754_v21 = vadd.f32 %v18734_v32, %v753_v19  ;;  %v15580_v22 = vpop.f32.mrb[43].mxu1 }
 0x13d   : > { %v1143_v24 = vld [vmem:[#allocation2 + $0x89] sm:$0xff] }
 0x13e   : > { %997 = vst.msk [vmem:[#allocation2 + $0xa0] sm:$0xff] %vm542_vm1, %v936_v20  ;;  %v937_v25 = vmax.f32 %v754_v21, 0.0  ;;  %v1189_v26 = vpack.c.bf16 %v1143_v24, %v1142_v23 }
 0x13f   : > { %v1144_v35 = vld [vmem:[#allocation2 + $0x91] sm:$0xff] }
 0x140   : > { %998 = vst.msk [vmem:[#allocation2 + $0xa8] sm:$0xff] %vm542_vm1, %v937_v25  ;;  %15681 = vmatprep.mubr.msk.bf16.mxu1 %vm542_vm1, %v1189_v26 }
 0x141   : > { %v758_v27 = vpop.f32.mrb[44].mxu1 }
 0x142   : > { %v759_v28 = vadd.f32 %v18734_v32, %v758_v27  ;;  %v15583_v29 = vpop.f32.mrb[45].mxu1 }
 0x143   : > { %v761_v30 = vpop.f32.mrb[46].mxu1 }
 0x144   : > { %v938_v31 = vmax.f32 %v759_v28, 0.0  ;;  %v762_v33 = vadd.f32 %v18734_v32, %v761_v30  ;;  %v15584_v34 = vpop.f32.mrb[47].mxu1 }
 0x145   : > { %v1145_v36 = vld [vmem:[#allocation2 + $0x99] sm:$0xff] }
 0x146   : > { %999 = vst.msk [vmem:[#allocation2 + $0xb0] sm:$0xff] %vm542_vm1, %v938_v31  ;;  %v939_v37 = vmax.f32 %v762_v33, 0.0  ;;  %v1190_v38 = vpack.c.bf16 %v1145_v36, %v1144_v35 }
 0x147   : > { %v1146_v46 = vld [vmem:[#allocation2 + $0xa1] sm:$0xff] }
 0x148   : > { %1000 = vst.msk [vmem:[#allocation2 + $0xb8] sm:$0xff] %vm542_vm1, %v939_v37  ;;  %15682 = vmatmul.mubr.msk.bf16.gmra.mrb[140].mxu1 %vm542_vm1, %v1190_v38 }
 0x149   : > { %v766_v39 = vpop.f32.mrb[48].mxu1 }
 0x14a   : > { %v767_v40 = vadd.f32 %v18734_v32, %v766_v39  ;;  %v15587_v41 = vpop.f32.mrb[49].mxu1 }
 0x14b   : > { %v769_v42 = vpop.f32.mrb[50].mxu1 }
 0x14c   : > { %v940_v43 = vmax.f32 %v767_v40, 0.0  ;;  %v770_v44 = vadd.f32 %v18734_v32, %v769_v42  ;;  %v15588_v45 = vpop.f32.mrb[51].mxu1 }
 0x14d   : > { %v1147_v47 = vld [vmem:[#allocation2 + $0xa9] sm:$0xff] }
 0x14e   : > { %1001 = vst.msk [vmem:[#allocation2 + $0xc0] sm:$0xff] %vm542_vm1, %v940_v43  ;;  %v941_v48 = vmax.f32 %v770_v44, 0.0  ;;  %v1191_v49 = vpack.c.bf16 %v1147_v47, %v1146_v46 }
 0x14f   : > { %v1148_v59 = vld [vmem:[#allocation2 + $0xb1] sm:$0xff] }
 0x150   : > { %1002 = vst.msk [vmem:[#allocation2 + $0xc8] sm:$0xff] %vm542_vm1, %v941_v48  ;;  %15685 = vmatprep.mubr.msk.bf16.mxu1 %vm542_vm1, %v1191_v49 }
 0x151   : > { %v774_v51 = vpop.f32.mrb[52].mxu1 }
 0x152   : > { %v775_v52 = vadd.f32 %v18734_v32, %v774_v51  ;;  %v15591_v53 = vpop.f32.mrb[53].mxu1 }
 0x153   : > { %v777_v55 = vpop.f32.mrb[54].mxu1 }
 0x154   : > { %v942_v56 = vmax.f32 %v775_v52, 0.0  ;;  %v778_v57 = vadd.f32 %v18734_v32, %v777_v55  ;;  %v15592_v58 = vpop.f32.mrb[55].mxu1 }
 0x155   : > { %v1149_v60 = vld [vmem:[#allocation2 + $0xb9] sm:$0xff] }
 0x156   : > { %1003 = vst.msk [vmem:[#allocation2 + $0xd0] sm:$0xff] %vm542_vm1, %v942_v56  ;;  %v943_v61 = vmax.f32 %v778_v57, 0.0  ;;  %v1192_v62 = vpack.c.bf16 %v1149_v60, %v1148_v59 }
 0x157   : > { %v1150_v7 = vld [vmem:[#allocation2 + $0xc1] sm:$0xff] }
 0x158   : > { %1004 = vst.msk [vmem:[#allocation2 + $0xd8] sm:$0xff] %vm542_vm1, %v943_v61  ;;  %15686 = vmatmul.mubr.msk.bf16.gmra.mrb[144].mxu1 %vm542_vm1, %v1192_v62 }
 0x159   : > { %v782_v63 = vpop.f32.mrb[56].mxu1 }
 0x15a   : > { %v783_v0 = vadd.f32 %v18734_v32, %v782_v63  ;;  %v15595_v2 = vpop.f32.mrb[57].mxu1 }
 0x15b   : > { %v785_v3 = vpop.f32.mrb[58].mxu1 }
 0x15c   : > { %v944_v4 = vmax.f32 %v783_v0, 0.0  ;;  %v786_v5 = vadd.f32 %v18734_v32, %v785_v3  ;;  %v15596_v6 = vpop.f32.mrb[59].mxu1 }
 0x15d   : > { %v1151_v8 = vld [vmem:[#allocation2 + $0xc9] sm:$0xff] }
 0x15e   : > { %1005 = vst.msk [vmem:[#allocation2 + $0xe0] sm:$0xff] %vm542_vm1, %v944_v4  ;;  %v945_v9 = vmax.f32 %v786_v5, 0.0  ;;  %v1193_v10 = vpack.c.bf16 %v1151_v8, %v1150_v7 }
 0x15f   : > { %v1152_v18 = vld [vmem:[#allocation2 + $0xd1] sm:$0xff] }
 0x160   : > { %1006 = vst.msk [vmem:[#allocation2 + $0xe8] sm:$0xff] %vm542_vm1, %v945_v9  ;;  %15689 = vmatprep.mubr.msk.bf16.mxu1 %vm542_vm1, %v1193_v10 }
 0x161   : > { %v790_v11 = vpop.f32.mrb[60].mxu1 }
 0x162   : > { %v791_v12 = vadd.f32 %v18734_v32, %v790_v11  ;;  %v15599_v13 = vpop.f32.mrb[61].mxu1 }
 0x163   : > { %v793_v14 = vpop.f32.mrb[62].mxu1 }
 0x164   : > { %v946_v15 = vmax.f32 %v791_v12, 0.0  ;;  %v794_v16 = vadd.f32 %v18734_v32, %v793_v14  ;;  %v15600_v17 = vpop.f32.mrb[63].mxu1 }
 0x165   : > { %v1153_v19 = vld [vmem:[#allocation2 + $0xd9] sm:$0xff] }
 0x166   : > { %1007 = vst.msk [vmem:[#allocation2 + $0xf0] sm:$0xff] %vm542_vm1, %v946_v15  ;;  %v947_v20 = vmax.f32 %v794_v16, 0.0  ;;  %v1194_v21 = vpack.c.bf16 %v1153_v19, %v1152_v18 }
 0x167   : > { %v1154_v29 = vld [vmem:[#allocation2 + $0xe1] sm:$0xff] }
 0x168   : > { %1008 = vst.msk [vmem:[#allocation2 + $0xf8] sm:$0xff] %vm542_vm1, %v947_v20  ;;  %15690 = vmatmul.mubr.msk.bf16.gmra.mrb[148].mxu1 %vm542_vm1, %v1194_v21 }
 0x169   : > { %v798_v22 = vpop.f32.mrb[64].mxu1 }
 0x16a   : > { %v799_v23 = vadd.f32 %v18734_v32, %v798_v22  ;;  %v15603_v24 = vpop.f32.mrb[65].mxu1 }
 0x16b   : > { %v801_v25 = vpop.f32.mrb[66].mxu1 }
 0x16c   : > { %v948_v26 = vmax.f32 %v799_v23, 0.0  ;;  %v802_v27 = vadd.f32 %v18734_v32, %v801_v25  ;;  %v15604_v28 = vpop.f32.mrb[67].mxu1 }
 0x16d   : > { %v1155_v30 = vld [vmem:[#allocation2 + $0xe9] sm:$0xff] }
 0x16e   : > { %1009 = vst.msk [vmem:[#allocation2 + $0x100] sm:$0xff] %vm542_vm1, %v948_v26  ;;  %v949_v31 = vmax.f32 %v802_v27, 0.0  ;;  %v1195_v33 = vpack.c.bf16 %v1155_v30, %v1154_v29 }
 0x16f   : > { %v1156_v41 = vld [vmem:[#allocation2 + $0xf1] sm:$0xff] }
 0x170   : > { %1010 = vst.msk [vmem:[#allocation2 + $0x108] sm:$0xff] %vm542_vm1, %v949_v31  ;;  %15693 = vmatprep.mubr.msk.bf16.mxu1 %vm542_vm1, %v1195_v33 }
 0x171   : > { %v806_v34 = vpop.f32.mrb[68].mxu1 }
 0x172   : > { %v807_v35 = vadd.f32 %v18734_v32, %v806_v34  ;;  %v15607_v36 = vpop.f32.mrb[69].mxu1 }
 0x173   : > { %v809_v37 = vpop.f32.mrb[70].mxu1 }
 0x174   : > { %v950_v38 = vmax.f32 %v807_v35, 0.0  ;;  %v810_v39 = vadd.f32 %v18734_v32, %v809_v37  ;;  %v15608_v40 = vpop.f32.mrb[71].mxu1 }
 0x175   : > { %v1157_v42 = vld [vmem:[#allocation2 + $0xf9] sm:$0xff] }
 0x176   : > { %1011 = vst.msk [vmem:[#allocation2 + $0x110] sm:$0xff] %vm542_vm1, %v950_v38  ;;  %v951_v43 = vmax.f32 %v810_v39, 0.0  ;;  %v1196_v44 = vpack.c.bf16 %v1157_v42, %v1156_v41 }
 0x177   : > { %v1158_v52 = vld [vmem:[#allocation2 + $0x101] sm:$0xff] }
 0x178   : > { %1012 = vst.msk [vmem:[#allocation2 + $0x118] sm:$0xff] %vm542_vm1, %v951_v43  ;;  %15694 = vmatmul.mubr.msk.bf16.gmra.mrb[152].mxu1 %vm542_vm1, %v1196_v44 }
 0x179   : > { %v814_v45 = vpop.f32.mrb[72].mxu1 }
 0x17a   : > { %v815_v46 = vadd.f32 %v18734_v32, %v814_v45  ;;  %v15611_v47 = vpop.f32.mrb[73].mxu1 }
 0x17b   : > { %v817_v48 = vpop.f32.mrb[74].mxu1 }
 0x17c   : > { %v952_v49 = vmax.f32 %v815_v46, 0.0  ;;  %v818_v50 = vadd.f32 %v18734_v32, %v817_v48  ;;  %v15612_v51 = vpop.f32.mrb[75].mxu1 }
 0x17d   : > { %v1159_v53 = vld [vmem:[#allocation2 + $0x109] sm:$0xff] }
 0x17e   : > { %1013 = vst.msk [vmem:[#allocation2 + $0x120] sm:$0xff] %vm542_vm1, %v952_v49  ;;  %v953_v54 = vmax.f32 %v818_v50, 0.0  ;;  %v1197_v55 = vpack.c.bf16 %v1159_v53, %v1158_v52 }
 0x17f   : > { %v1160_v63 = vld [vmem:[#allocation2 + $0x111] sm:$0xff] }
 0x180   : > { %1014 = vst.msk [vmem:[#allocation2 + $0x128] sm:$0xff] %vm542_vm1, %v953_v54  ;;  %15697 = vmatprep.mubr.msk.bf16.mxu1 %vm542_vm1, %v1197_v55 }
 0x181   : > { %v822_v56 = vpop.f32.mrb[76].mxu1 }
 0x182   : > { %v823_v57 = vadd.f32 %v18734_v32, %v822_v56  ;;  %v15615_v58 = vpop.f32.mrb[77].mxu1 }
 0x183   : > { %v825_v59 = vpop.f32.mrb[78].mxu1 }
 0x184   : > { %v954_v60 = vmax.f32 %v823_v57, 0.0  ;;  %v826_v61 = vadd.f32 %v18734_v32, %v825_v59  ;;  %v15616_v62 = vpop.f32.mrb[79].mxu1 }
 0x185   : > { %v1161_v0 = vld [vmem:[#allocation2 + $0x119] sm:$0xff] }
 0x186   : > { %1015 = vst.msk [vmem:[#allocation2 + $0x130] sm:$0xff] %vm542_vm1, %v954_v60  ;;  %v955_v2 = vmax.f32 %v826_v61, 0.0  ;;  %v1198_v3 = vpack.c.bf16 %v1161_v0, %v1160_v63 }
 0x187   : > { %v1162_v11 = vld [vmem:[#allocation2 + $0x121] sm:$0xff] }
 0x188   : > { %1016 = vst.msk [vmem:[#allocation2 + $0x138] sm:$0xff] %vm542_vm1, %v955_v2  ;;  %15698 = vmatmul.mubr.msk.bf16.gmra.mrb[156].mxu1 %vm542_vm1, %v1198_v3 }
 0x189   : > { %v830_v4 = vpop.f32.mrb[80].mxu1 }
 0x18a   : > { %v831_v5 = vadd.f32 %v18734_v32, %v830_v4  ;;  %v15619_v6 = vpop.f32.mrb[81].mxu1 }
 0x18b   : > { %v833_v7 = vpop.f32.mrb[82].mxu1 }
 0x18c   : > { %v956_v8 = vmax.f32 %v831_v5, 0.0  ;;  %v834_v9 = vadd.f32 %v18734_v32, %v833_v7  ;;  %v15620_v10 = vpop.f32.mrb[83].mxu1 }
 0x18d   : > { %v1163_v12 = vld [vmem:[#allocation2 + $0x129] sm:$0xff] }
 0x18e   : > { %1017 = vst.msk [vmem:[#allocation2 + $0x140] sm:$0xff] %vm542_vm1, %v956_v8  ;;  %v957_v13 = vmax.f32 %v834_v9, 0.0  ;;  %v1199_v14 = vpack.c.bf16 %v1163_v12, %v1162_v11 }
 0x18f   : > { %v1164_v22 = vld [vmem:[#allocation2 + $0x131] sm:$0xff] }
 0x190   : > { %1018 = vst.msk [vmem:[#allocation2 + $0x148] sm:$0xff] %vm542_vm1, %v957_v13  ;;  %15701 = vmatprep.mubr.msk.bf16.mxu1 %vm542_vm1, %v1199_v14 }
 0x191   : > { %v838_v15 = vpop.f32.mrb[84].mxu1 }
 0x192   : > { %v839_v16 = vadd.f32 %v18734_v32, %v838_v15  ;;  %v15623_v17 = vpop.f32.mrb[85].mxu1 }
 0x193   : > { %v841_v18 = vpop.f32.mrb[86].mxu1 }
 0x194   : > { %v958_v19 = vmax.f32 %v839_v16, 0.0  ;;  %v842_v20 = vadd.f32 %v18734_v32, %v841_v18  ;;  %v15624_v21 = vpop.f32.mrb[87].mxu1 }
 0x195   : > { %v1165_v23 = vld [vmem:[#allocation2 + $0x139] sm:$0xff] }
 0x196   : > { %1019 = vst.msk [vmem:[#allocation2 + $0x150] sm:$0xff] %vm542_vm1, %v958_v19  ;;  %v959_v24 = vmax.f32 %v842_v20, 0.0  ;;  %v1200_v25 = vpack.c.bf16 %v1165_v23, %v1164_v22  ;;  %v18898_v22 = vld [vmem:[%s22564_s2 + $0x20] sm:$0xff]  }
 0x197   : > { %v1166_v34 = vld [vmem:[#allocation2 + $0x141] sm:$0xff]  ;;  %15781 = vmatprep.subr.bf16.mxu1 %v18898_v22 }
 0x198   : > { %1020 = vst.msk [vmem:[#allocation2 + $0x158] sm:$0xff] %vm542_vm1, %v959_v24  ;;  %15702 = vmatmul.mubr.msk.bf16.gmra.mrb[160].mxu1 %vm542_vm1, %v1200_v25 }
 0x199   : > { %v846_v26 = vpop.f32.mrb[88].mxu1 }
 0x19a   : > { %v847_v27 = vadd.f32 %v18734_v32, %v846_v26  ;;  %v15627_v28 = vpop.f32.mrb[89].mxu1 }
 0x19b   : > { %v849_v29 = vpop.f32.mrb[90].mxu1 }
 0x19c   : > { %v960_v30 = vmax.f32 %v847_v27, 0.0  ;;  %v850_v31 = vadd.f32 %v18734_v32, %v849_v29  ;;  %v15628_v33 = vpop.f32.mrb[91].mxu1 }
 0x19d   : > { %v1167_v35 = vld [vmem:[#allocation2 + $0x149] sm:$0xff] }
 0x19e   : > { %1021 = vst.msk [vmem:[#allocation2 + $0x160] sm:$0xff] %vm542_vm1, %v960_v30  ;;  %v961_v36 = vmax.f32 %v850_v31, 0.0  ;;  %v1201_v37 = vpack.c.bf16 %v1167_v35, %v1166_v34 }
 0x19f   : > { %v1168_v45 = vld [vmem:[#allocation2 + $0x151] sm:$0xff] }
 0x1a0   : > { %1022 = vst.msk [vmem:[#allocation2 + $0x168] sm:$0xff] %vm542_vm1, %v961_v36  ;;  %15705 = vmatprep.mubr.msk.bf16.mxu1 %vm542_vm1, %v1201_v37 }
 0x1a1   : > { %v854_v38 = vpop.f32.mrb[92].mxu1 }
 0x1a2   : > { %v855_v39 = vadd.f32 %v18734_v32, %v854_v38  ;;  %v15631_v40 = vpop.f32.mrb[93].mxu1 }
 0x1a3   : > { %v857_v41 = vpop.f32.mrb[94].mxu1 }
 0x1a4   : > { %v962_v42 = vmax.f32 %v855_v39, 0.0  ;;  %v858_v43 = vadd.f32 %v18734_v32, %v857_v41  ;;  %v15632_v44 = vpop.f32.mrb[95].mxu1 }
 0x1a5   : > { %v1169_v46 = vld [vmem:[#allocation2 + $0x159] sm:$0xff]  ;;  %v1040_v44 = vld [vmem:[#allocation2 + $0x8] sm:$0xff] }
 0x1a6   : > { %1023 = vst.msk [vmem:[#allocation2 + $0x170] sm:$0xff] %vm542_vm1, %v962_v42  ;;  %v963_v47 = vmax.f32 %v858_v43, 0.0  ;;  %v1202_v48 = vpack.c.bf16 %v1169_v46, %v1168_v45 }
 0x1a7   : > { %v1170_v56 = vld [vmem:[#allocation2 + $0x161] sm:$0xff] }
 0x1a8   : > { %1024 = vst.msk [vmem:[#allocation2 + $0x178] sm:$0xff] %vm542_vm1, %v963_v47  ;;  %15706 = vmatmul.mubr.msk.bf16.gmra.mrb[164].mxu1 %vm542_vm1, %v1202_v48 }
 0x1a9   : > { %v862_v49 = vpop.f32.mrb[96].mxu1 }
 0x1aa   : > { %v863_v50 = vadd.f32 %v18734_v32, %v862_v49  ;;  %v15635_v51 = vpop.f32.mrb[97].mxu1 }
 0x1ab   : > { %v865_v52 = vpop.f32.mrb[98].mxu1 }
 0x1ac   : > { %v964_v53 = vmax.f32 %v863_v50, 0.0  ;;  %v866_v54 = vadd.f32 %v18734_v32, %v865_v52  ;;  %v15636_v55 = vpop.f32.mrb[99].mxu1  ;;  %v1039_v52 = vld [vmem:[#allocation2] sm:$0xff] }
 0x1ad   : > { %v1171_v57 = vld [vmem:[#allocation2 + $0x169] sm:$0xff] }
 0x1ae   : > { %1025 = vst.msk [vmem:[#allocation2 + $0x180] sm:$0xff] %vm542_vm1, %v964_v53  ;;  %v965_v58 = vmax.f32 %v866_v54, 0.0  ;;  %v1203_v59 = vpack.c.bf16 %v1171_v57, %v1170_v56  ;;  %v1094_v53 = vpack.c.bf16 %v1040_v44, %v1039_v52  ;;  %v1061_v44 = vld [vmem:[#allocation2 + $0xb0] sm:$0xff]  ;;  %v1067_v52 = vld [vmem:[#allocation2 + $0xe0] sm:$0xff] }
 0x1af   : > { %v1172_v4 = vld [vmem:[#allocation2 + $0x171] sm:$0xff] }
 0x1b0   : > { %1026 = vst.msk [vmem:[#allocation2 + $0x188] sm:$0xff] %vm542_vm1, %v965_v58  ;;  %15709 = vmatprep.mubr.msk.bf16.mxu1 %vm542_vm1, %v1203_v59  ;;  %v18922_v58 = vld [vmem:[#allocation2 + $0x18] sm:$0xff] }
 0x1b1   : > { %v870_v60 = vpop.f32.mrb[100].mxu1 }
 0x1b2   : > { %v871_v61 = vadd.f32 %v18734_v32, %v870_v60  ;;  %v15639_v62 = vpop.f32.mrb[101].mxu1 }
 0x1b3   : > { %v873_v63 = vpop.f32.mrb[102].mxu1  ;;  %v1044_v62 = vld [vmem:[#allocation2 + $0x28] sm:$0xff] }
 0x1b4   : > { %v966_v0 = vmax.f32 %v871_v61, 0.0  ;;  %v874_v2 = vadd.f32 %v18734_v32, %v873_v63  ;;  %v15640_v3 = vpop.f32.mrb[103].mxu1  ;;  %v1041_v63 = vld [vmem:[#allocation2 + $0x10] sm:$0xff] }
 0x1b5   : > { %v1173_v5 = vld [vmem:[#allocation2 + $0x179] sm:$0xff] }
 0x1b6   : > { %1027 = vst.msk [vmem:[#allocation2 + $0x190] sm:$0xff] %vm542_vm1, %v966_v0  ;;  %v967_v6 = vmax.f32 %v874_v2, 0.0  ;;  %v1204_v7 = vpack.c.bf16 %v1173_v5, %v1172_v4  ;;  %v1095_v2 = vpack.c.bf16 %v18922_v58, %v1041_v63  ;;  %v18927_v3 = vld [vmem:[#allocation2 + $0x20] sm:$0xff]  ;;  %v18423_v4 = vld [vmem:[%s22564_s2 + $0x28] sm:$0xff]   ;;  %v1073_v63 = vld [vmem:[#allocation2 + $0x110] sm:$0xff] }
 0x1b7   : > { %v1174_v15 = vld [vmem:[#allocation2 + $0x181] sm:$0xff]  ;;  %v1096_v5 = vpack.c.bf16 %v1044_v62, %v18927_v3 }
 0x1b8   : > { %1028 = vst.msk [vmem:[#allocation2 + $0x198] sm:$0xff] %vm542_vm1, %v967_v6  ;;  %15710 = vmatmul.mubr.msk.bf16.gmra.mrb[168].mxu1 %vm542_vm1, %v1204_v7  ;;  %v18888_v17 = vld [vmem:[#allocation2 + $0x188] sm:$0xff] }
 0x1b9   : > { %v878_v8 = vpop.f32.mrb[104].mxu1  ;;  %v1076_v62 = vld [vmem:[#allocation2 + $0x128] sm:$0xff] }
 0x1ba   : > { %v879_v9 = vadd.f32 %v18734_v32, %v878_v8  ;;  %v15643_v10 = vpop.f32.mrb[105].mxu1 }
 0x1bb   : > { %v881_v11 = vpop.f32.mrb[106].mxu1  ;;  %v1046_v10 = vld [vmem:[#allocation2 + $0x38] sm:$0xff] }
 0x1bc   : > { %v968_v12 = vmax.f32 %v879_v9, 0.0  ;;  %v882_v13 = vadd.f32 %v18734_v32, %v881_v11  ;;  %v15644_v14 = vpop.f32.mrb[107].mxu1 }
 0x1bd   : > { %v1175_v16 = vld [vmem:[#allocation2 + $0x189] sm:$0xff] }
 0x1be   : > { %v18890_v18 = vld [vmem:[#allocation2 + $0x190] sm:$0xff]  ;;  %1029 = vst.msk [vmem:[#allocation2 + $0x1a0] sm:$0xff] %vm542_vm1, %v968_v12  ;;  %v969_v19 = vmax.f32 %v882_v13, 0.0  ;;  %v1205_v20 = vpack.c.bf16 %v1175_v16, %v1174_v15  ;;  %v1048_v13 = vld [vmem:[#allocation2 + $0x48] sm:$0xff]  ;;  %v1047_v16 = vld [vmem:[#allocation2 + $0x40] sm:$0xff] }
 0x1bf   : > { %v3477_v21 = vpack.c.bf16 %v18890_v18, %v18888_v17  ;;  %v1176_v30 = vld [vmem:[#allocation2 + $0x191] sm:$0xff] }
 0x1c0   : > { %1030 = vst.msk [vmem:[#allocation2 + $0x1a8] sm:$0xff] %vm542_vm1, %v969_v19  ;;  %15713 = vmatprep.mubr.msk.bf16.mxu1 %vm542_vm1, %v1205_v20  ;;  %v18905_v33 = vld [vmem:[#allocation2 + $0x198] sm:$0xff]  ;;  %v1045_v14 = vld [vmem:[#allocation2 + $0x30] sm:$0xff]  ;;  %v1098_v19 = vpack.c.bf16 %v1048_v13, %v1047_v16  ;;  %v1052_v20 = vld [vmem:[#allocation2 + $0x68] sm:$0xff] }
 0x1c1   : > { %v886_v23 = vpop.f32.mrb[108].mxu1  ;;  %v1097_v15 = vpack.c.bf16 %v1046_v10, %v1045_v14  ;;  %v18966_v13 = vld [vmem:[#allocation2 + $0x150] sm:$0xff] }
 0x1c2   : > { %v887_v24 = vadd.f32 %v18734_v32, %v886_v23  ;;  %v15647_v25 = vpop.f32.mrb[109].mxu1 }
 0x1c3   : > { %v889_v26 = vpop.f32.mrb[110].mxu1 }
 0x1c4   : > { %v970_v27 = vmax.f32 %v887_v24, 0.0  ;;  %v890_v28 = vadd.f32 %v18734_v32, %v889_v26  ;;  %v15648_v29 = vpop.f32.mrb[111].mxu1  ;;  %v1051_v24 = vld [vmem:[#allocation2 + $0x60] sm:$0xff]  ;;  %v1054_v26 = vld [vmem:[#allocation2 + $0x78] sm:$0xff] }
 0x1c5   : > { %v1177_v31 = vld [vmem:[#allocation2 + $0x199] sm:$0xff]  ;;  %v1100_v25 = vpack.c.bf16 %v1052_v20, %v1051_v24  ;;  %v18424_v24 = vld [vmem:[%s22564_s2 + $0x30] sm:$0xff]  }
 0x1c6   : > { %v18907_v34 = vld [vmem:[#allocation2 + $0x1a0] sm:$0xff]  ;;  %1031 = vst.msk [vmem:[#allocation2 + $0x1b0] sm:$0xff] %vm542_vm1, %v970_v27  ;;  %v971_v35 = vmax.f32 %v890_v28, 0.0  ;;  %v1206_v36 = vpack.c.bf16 %v1177_v31, %v1176_v30  ;;  %v1056_v27 = vld [vmem:[#allocation2 + $0x88] sm:$0xff]  ;;  %v1053_v28 = vld [vmem:[#allocation2 + $0x70] sm:$0xff] }
 0x1c7   : > { %v3478_v37 = vpack.c.bf16 %v18907_v34, %v18905_v33  ;;  %v1178_v46 = vld [vmem:[#allocation2 + $0x1a1] sm:$0xff]  ;;  %v1101_v29 = vpack.c.bf16 %v1054_v26, %v1053_v28  ;;  %v1119_v26 = vpack.c.bf16 %v18905_v33, %v18890_v18 }
 0x1c8   : > { %1032 = vst.msk [vmem:[#allocation2 + $0x1b8] sm:$0xff] %vm542_vm1, %v971_v35  ;;  %15714 = vmatmul.mubr.msk.bf16.gmra.mrb[172].mxu1 %vm542_vm1, %v1206_v36  ;;  %v1055_v30 = vld [vmem:[#allocation2 + $0x80] sm:$0xff]  ;;  %v1058_v35 = vld [vmem:[#allocation2 + $0x98] sm:$0xff]  ;;  %v1060_v36 = vld [vmem:[#allocation2 + $0xa8] sm:$0xff] }
 0x1c9   : > { %v894_v38 = vpop.f32.mrb[112].mxu1  ;;  %v1102_v31 = vpack.c.bf16 %v1056_v27, %v1055_v30 }
 0x1ca   : > { %v895_v39 = vadd.f32 %v18734_v32, %v894_v38  ;;  %v15651_v40 = vpop.f32.mrb[113].mxu1  ;;  %v1057_v38 = vld [vmem:[#allocation2 + $0x90] sm:$0xff] }
 0x1cb   : > { %v897_v41 = vpop.f32.mrb[114].mxu1  ;;  %v1059_v40 = vld [vmem:[#allocation2 + $0xa0] sm:$0xff] }
 0x1cc   : > { %v972_v42 = vmax.f32 %v895_v39, 0.0  ;;  %v898_v43 = vadd.f32 %v18734_v32, %v897_v41  ;;  %v15652_v45 = vpop.f32.mrb[115].mxu1  ;;  %v1103_v39 = vpack.c.bf16 %v1058_v35, %v1057_v38  ;;  %v1104_v41 = vpack.c.bf16 %v1060_v36, %v1059_v40  ;;  %v1920_v36 = vld [vmem:[#allocation2 + $0x1a] sm:$0xff]  ;;  %v1922_v38 = vld [vmem:[#allocation2 + $0x2a] sm:$0xff] }
 0x1cd   : > { %v1179_v47 = vld [vmem:[#allocation2 + $0x1a9] sm:$0xff]  ;;  %v1180_v48 = vld [vmem:[#allocation2 + $0x1b1] sm:$0x3f] }
 0x1ce   : > { %1033 = vst.msk [vmem:[#allocation2 + $0x1c0] sm:$0xff] %vm542_vm1, %v972_v42  ;;  %v973_v49 = vmax.f32 %v898_v43, 0.0  ;;  %v1207_v50 = vpack.c.bf16 %v1179_v47, %v1178_v46  ;;  %v1208_v51 = vpack.c.bf16 %v1180_v48, %v1180_v48  ;;  %v1062_v42 = vld [vmem:[#allocation2 + $0xb8] sm:$0xff]  ;;  %v1064_v43 = vld [vmem:[#allocation2 + $0xc8] sm:$0xff]  ;;  %v1063_v46 = vld [vmem:[#allocation2 + $0xc0] sm:$0xff] }
 0x1cf   : > { %v1105_v45 = vpack.c.bf16 %v1062_v42, %v1061_v44  ;;  %v1106_v47 = vpack.c.bf16 %v1064_v43, %v1063_v46  ;;  %v1066_v48 = vld [vmem:[#allocation2 + $0xd8] sm:$0xff]  ;;  %v1093_v28 = vld [vmem:[#allocation2 + $0x1b0] sm:$0x3f] }
 0x1d0   : > { %1034 = vst.msk [vmem:[#allocation2 + $0x1c8] sm:$0xff] %vm542_vm1, %v973_v49  ;;  %15717 = vmatprep.mubr.msk.bf16.mxu1 %vm542_vm1, %v1207_v50  ;;  %v1068_v49 = vld [vmem:[#allocation2 + $0xe8] sm:$0xff]  ;;  %v1065_v50 = vld [vmem:[#allocation2 + $0xd0] sm:$0xff]  ;;  %v1121_v30 = vpack.c.bf16 %v1093_v28, %v1093_v28  ;;  %v18425_v42 = vld [vmem:[%s22564_s2 + $0x38] sm:$0xff]  }
 0x1d1   : > { %15718 = vmatmul.mubr.msk.bf16.gmra.mrb[176].mxu1 %vm542_vm1, %v1208_v51  ;;  %v902_v54 = vpop.f32.mrb[116].mxu1  ;;  %v1107_v51 = vpack.c.bf16 %v1066_v48, %v1065_v50  ;;  %v1924_v44 = vld [vmem:[#allocation2 + $0x3a] sm:$0xff]  ;;  %v1923_v46 = vld [vmem:[#allocation2 + $0x32] sm:$0xff]  ;;  %v1925_v48 = vld [vmem:[#allocation2 + $0x42] sm:$0xff] }
 0x1d2   : > { %15725 = vmatprep.mubr.msk.bf16.mxu1 %vm542_vm1, %v1094_v53  ;;  %v903_v55 = vadd.f32 %v18734_v32, %v902_v54  ;;  %v15655_v56 = vpop.f32.mrb[117].mxu1  ;;  %v1108_v53 = vpack.c.bf16 %v1068_v49, %v1067_v52  ;;  %v1070_v54 = vld [vmem:[#allocation2 + $0xf8] sm:$0xff] }
 0x1d3   : > { %v905_v57 = vpop.f32.mrb[118].mxu1  ;;  %v1069_v56 = vld [vmem:[#allocation2 + $0xf0] sm:$0xff]  ;;  %v1928_v50 = vld [vmem:[#allocation2 + $0x5a] sm:$0xff] }
 0x1d4   : > { %v974_v59 = vmax.f32 %v903_v55, 0.0  ;;  %v906_v60 = vadd.f32 %v18734_v32, %v905_v57  ;;  %v15656_v61 = vpop.f32.mrb[119].mxu1  ;;  %v1072_v55 = vld [vmem:[#allocation2 + $0x108] sm:$0xff]  ;;  %v1109_v57 = vpack.c.bf16 %v1070_v54, %v1069_v56  ;;  %v1927_v52 = vld [vmem:[#allocation2 + $0x52] sm:$0xff]  ;;  %v1932_v56 = vld [vmem:[#allocation2 + $0x7a] sm:$0xff] }
 0x1d5   : > { %v1074_v61 = vld [vmem:[#allocation2 + $0x118] sm:$0xff]  ;;  %v1929_v54 = vld [vmem:[#allocation2 + $0x62] sm:$0xff] }
 0x1d6   : > { %1035 = vst.msk [vmem:[#allocation2 + $0x1d0] sm:$0xff] %vm542_vm1, %v974_v59  ;;  %v975_v0 = vmax.f32 %v906_v60, 0.0  ;;  %v1071_v59 = vld [vmem:[#allocation2 + $0x100] sm:$0xff] }
 0x1d7   : > { %v1110_v60 = vpack.c.bf16 %v1072_v55, %v1071_v59  ;;  %v1931_v59 = vld [vmem:[#allocation2 + $0x72] sm:$0xff] }
 0x1d8   : > { %1036 = vst.msk [vmem:[#allocation2 + $0x1d8] sm:$0xff] %vm542_vm1, %v975_v0  ;;  %v1111_v0 = vpack.c.bf16 %v1074_v61, %v1073_v63  ;;  %v1933_v61 = vld [vmem:[#allocation2 + $0x82] sm:$0xff]  ;;  %v1936_v63 = vld [vmem:[#allocation2 + $0x9a] sm:$0xff] }
 0x1d9   : > { %15726 = vmatmul.mubr.msk.bf16.vlgmr.msra.gmra.mrb[124].mxu1 %vm542_vm1, %v1095_v2  ;;  %v910_v6 = vpop.f32.mrb[120].mxu1  ;;  %v1075_v2 = vld [vmem:[#allocation2 + $0x120] sm:$0xff] }
 0x1da   : > { %15729 = vmatprep.mubr.msk.bf16.mxu1 %vm542_vm1, %v1096_v5  ;;  %v911_v7 = vadd.f32 %v18734_v32, %v910_v6  ;;  %v15659_v8 = vpop.f32.mrb[121].mxu1  ;;  %15782 = vmatpush3.bf16.msra.mxu1 %v18898_v22  ;;  %v1050_v32 = vld [vmem:[#allocation2 + $0x58] sm:$0xff]  ;;  %v1049_v22 = vld [vmem:[#allocation2 + $0x50] sm:$0xff]  ;;  %v18954_v6 = vld [vmem:[#allocation2 + $0x148] sm:$0xff] }
 0x1db   : > { %v913_v9 = vpop.f32.mrb[122].mxu1  ;;  %15783 = vmatprep.subr.bf16.mxu1 %v18423_v4  ;;  %v1099_v23 = vpack.c.bf16 %v1050_v32, %v1049_v22  ;;  %v1078_v5 = vld [vmem:[#allocation2 + $0x138] sm:$0xff]  ;;  %v18978_v32 = vld [vmem:[#allocation2 + $0x170] sm:$0xff]  ;;  %v18982_v22 = vld [vmem:[#allocation2 + $0x180] sm:$0xff] }
 0x1dc   : > { %v976_v11 = vmax.f32 %v911_v7, 0.0  ;;  %v15660_v12 = vpop.f32.mrb[123].mxu1  ;;  %v1077_v7 = vld [vmem:[#allocation2 + $0x130] sm:$0xff]  ;;  %v18956_v9 = vld [vmem:[#allocation2 + $0x140] sm:$0xff] }
 0x1dd   : > { %v1113_v8 = vpack.c.bf16 %v1078_v5, %v1077_v7  ;;  %v1114_v10 = vpack.c.bf16 %v18954_v6, %v18956_v9  ;;  %v18964_v12 = vld [vmem:[#allocation2 + $0x168] sm:$0xff] }
 0x1de   : > { %1038 = vst.msk [vmem:[#allocation2 + $0x1e0] sm:$0xf] %vm1037_vm2, %v976_v11  ;;  %15784 = vmatpush3.bf16.msra.mxu1 %v18423_v4  ;;  %v1112_v4 = vpack.c.bf16 %v1076_v62, %v1075_v2  ;;  %v18962_v11 = vld [vmem:[#allocation2 + $0x158] sm:$0xff]  ;;  %v1937_v5 = vld [vmem:[#allocation2 + $0xa2] sm:$0xff] }
 0x1df   : > { %v1115_v14 = vpack.c.bf16 %v18962_v11, %v18966_v13  ;;  %15841 = vmatprep.subr.bf16.mxu1 %v18424_v24  ;;  %v1935_v2 = vld [vmem:[#allocation2 + $0x92] sm:$0xff] }
 0x1e1   : > { %15730 = vmatmul.mubr.msk.bf16.gmra.mrb[128].mxu1 %vm542_vm1, %v1097_v15  ;;  %v18970_v15 = vld [vmem:[#allocation2 + $0x160] sm:$0xff] }
 0x1e2   : > { %15733 = vmatprep.mubr.msk.bf16.mxu1 %vm542_vm1, %v1098_v19  ;;  %v1116_v16 = vpack.c.bf16 %v18964_v12, %v18970_v15  ;;  %v18976_v19 = vld [vmem:[#allocation2 + $0x178] sm:$0xff] }
 0x1e3   : > { %v1117_v20 = vpack.c.bf16 %v18976_v19, %v18978_v32 }
 0x1e9   : > { %15734 = vmatmul.mubr.msk.bf16.gmra.mrb[132].mxu1 %vm542_vm1, %v1099_v23  ;;  %v1118_v23 = vpack.c.bf16 %v18888_v17, %v18982_v22 }
 0x1ea   : > { %15737 = vmatprep.mubr.msk.bf16.mxu1 %vm542_vm1, %v1100_v25  ;;  %v18991_v25 = vld [vmem:[#allocation2 + $0x1a8] sm:$0xff] }
 0x1eb   : > { %v1120_v27 = vpack.c.bf16 %v18991_v25, %v18907_v34 }
 0x1f1   : > { %15738 = vmatmul.mubr.msk.bf16.gmra.mrb[136].mxu1 %vm542_vm1, %v1101_v29  ;;  %v1918_v29 = vld [vmem:[#allocation2 + $0xa] sm:$0xff] }
 0x1f2   : > { %15741 = vmatprep.mubr.msk.bf16.mxu1 %vm542_vm1, %v1102_v31  ;;  %v1917_v31 = vld [vmem:[#allocation2 + $0x2] sm:$0xff] }
 0x1f3   : > { %v1972_v35 = vpack.c.bf16 %v1918_v29, %v1917_v31  ;;  %v1945_v29 = vld [vmem:[#allocation2 + $0xe2] sm:$0xff]  ;;  %v1948_v31 = vld [vmem:[#allocation2 + $0xfa] sm:$0xff] }
 0x1f9   : > { %15742 = vmatmul.mubr.msk.bf16.gmra.mrb[140].mxu1 %vm542_vm1, %v1103_v39  ;;  %v1919_v39 = vld [vmem:[#allocation2 + $0x12] sm:$0xff] }
 0x1fa   : > { %15745 = vmatprep.mubr.msk.bf16.mxu1 %vm542_vm1, %v1104_v41  ;;  %v1973_v40 = vpack.c.bf16 %v1920_v36, %v1919_v39  ;;  %v1921_v41 = vld [vmem:[#allocation2 + $0x22] sm:$0xff]  ;;  %v1947_v36 = vld [vmem:[#allocation2 + $0xf2] sm:$0xff] }
 0x1fb   : > { %v1974_v43 = vpack.c.bf16 %v1922_v38, %v1921_v41  ;;  %v1987_v38 = vpack.c.bf16 %v1948_v31, %v1947_v36  ;;  %v1949_v39 = vld [vmem:[#allocation2 + $0x102] sm:$0xff]  ;;  %v1952_v41 = vld [vmem:[#allocation2 + $0x11a] sm:$0xff] }
 0x1fc   : > { %v2416_v36 = vld [vmem:[#allocation2 + $0x3e] sm:$0xff] }
 0x201   : > { %15746 = vmatmul.mubr.msk.bf16.gmra.mrb[144].mxu1 %vm542_vm1, %v1105_v45  ;;  %v1926_v45 = vld [vmem:[#allocation2 + $0x4a] sm:$0xff] }
 0x202   : > { %15749 = vmatprep.mubr.msk.bf16.mxu1 %vm542_vm1, %v1106_v47  ;;  %v1975_v47 = vpack.c.bf16 %v1924_v44, %v1923_v46  ;;  %v1976_v49 = vpack.c.bf16 %v1926_v45, %v1925_v48  ;;  %v1953_v45 = vld [vmem:[#allocation2 + $0x122] sm:$0xff]  ;;  %v1958_v48 = vld [vmem:[#allocation2 + $0x14a] sm:$0xff] }
 0x209   : > { %15750 = vmatmul.mubr.msk.bf16.gmra.mrb[148].mxu1 %vm542_vm1, %v1107_v51  ;;  %v1930_v51 = vld [vmem:[#allocation2 + $0x6a] sm:$0xff] }
 0x20a   : > { %15753 = vmatprep.mubr.msk.bf16.mxu1 %vm542_vm1, %v1108_v53  ;;  %v1977_v53 = vpack.c.bf16 %v1928_v50, %v1927_v52  ;;  %v1978_v55 = vpack.c.bf16 %v1930_v51, %v1929_v54  ;;  %v1957_v51 = vld [vmem:[#allocation2 + $0x142] sm:$0xff]  ;;  %v1962_v54 = vld [vmem:[#allocation2 + $0x16a] sm:$0xff] }
 0x20b   : > { %v1992_v52 = vpack.c.bf16 %v1958_v48, %v1957_v51  ;;  %v2421_v51 = vld [vmem:[#allocation2 + $0x66] sm:$0xff] }
 0x211   : > { %15754 = vmatmul.mubr.msk.bf16.gmra.mrb[152].mxu1 %vm542_vm1, %v1109_v57  ;;  %v1934_v57 = vld [vmem:[#allocation2 + $0x8a] sm:$0xff] }
 0x212   : > { %15757 = vmatprep.mubr.msk.bf16.mxu1 %vm542_vm1, %v1110_v60  ;;  %v1979_v60 = vpack.c.bf16 %v1932_v56, %v1931_v59  ;;  %v1980_v62 = vpack.c.bf16 %v1934_v57, %v1933_v61  ;;  %v1961_v57 = vld [vmem:[#allocation2 + $0x162] sm:$0xff]  ;;  %v1966_v61 = vld [vmem:[#allocation2 + $0x18a] sm:$0xff] }
 0x213   : > { %v1994_v59 = vpack.c.bf16 %v1962_v54, %v1961_v57  ;;  %v2425_v57 = vld [vmem:[#allocation2 + $0x86] sm:$0xff] }
 0x219   : > { %15758 = vmatmul.mubr.msk.bf16.gmra.mrb[156].mxu1 %vm542_vm1, %v1111_v0  ;;  %v1938_v0 = vld [vmem:[#allocation2 + $0xaa] sm:$0xff] }
 0x21a   : > { %15761 = vmatprep.mubr.msk.bf16.mxu1 %vm542_vm1, %v1112_v4  ;;  %v1981_v4 = vpack.c.bf16 %v1936_v63, %v1935_v2  ;;  %v1982_v7 = vpack.c.bf16 %v1938_v0, %v1937_v5  ;;  %v1965_v0 = vld [vmem:[#allocation2 + $0x182] sm:$0xff] }
 0x21b   : > { %v1996_v2 = vpack.c.bf16 %v1966_v61, %v1965_v0  ;;  %v2429_v0 = vld [vmem:[#allocation2 + $0xa6] sm:$0xff] }
 0x221   : > { %15762 = vmatmul.mubr.msk.bf16.gmra.mrb[160].mxu1 %vm542_vm1, %v1113_v8  ;;  %v1940_v8 = vld [vmem:[#allocation2 + $0xba] sm:$0xff] }
 0x222   : > { %15765 = vmatprep.mubr.msk.bf16.mxu1 %vm542_vm1, %v1114_v10  ;;  %v1942_v10 = vld [vmem:[#allocation2 + $0xca] sm:$0xff] }
 0x229   : > { %15766 = vmatmul.mubr.msk.bf16.gmra.mrb[164].mxu1 %vm542_vm1, %v1115_v14  ;;  %v1939_v14 = vld [vmem:[#allocation2 + $0xb2] sm:$0xff] }
 0x22a   : > { %15769 = vmatprep.mubr.msk.bf16.mxu1 %vm542_vm1, %v1116_v16  ;;  %v1983_v16 = vpack.c.bf16 %v1940_v8, %v1939_v14 }
 0x231   : > { %15770 = vmatmul.mubr.msk.bf16.gmra.mrb[168].mxu1 %vm542_vm1, %v1117_v20  ;;  %v1941_v20 = vld [vmem:[#allocation2 + $0xc2] sm:$0xff] }
 0x232   : > { %15773 = vmatprep.mubr.msk.bf16.mxu1 %vm542_vm1, %v1118_v23  ;;  %v1984_v23 = vpack.c.bf16 %v1942_v10, %v1941_v20  ;;  %v1970_v10 = vld [vmem:[#allocation2 + $0x1aa] sm:$0xff] }
 0x239   : > { %15774 = vmatmul.mubr.msk.bf16.gmra.mrb[172].mxu1 %vm542_vm1, %v1119_v26  ;;  %v1946_v26 = vld [vmem:[#allocation2 + $0xea] sm:$0xff] }
 0x23a   : > { %15777 = vmatprep.mubr.msk.bf16.mxu1 %vm542_vm1, %v1120_v27  ;;  %v1943_v27 = vld [vmem:[#allocation2 + $0xd2] sm:$0xff] }
 0x241   : > { %15778 = vmatmul.mubr.msk.bf16.gmra.mrb[180].mxu1 %vm542_vm1, %v1121_v30  ;;  %v1986_v30 = vpack.c.bf16 %v1946_v26, %v1945_v29 }
 0x242   : > { %15785 = vmatprep.mubr.msk.bf16.mxu1 %vm542_vm1, %v1972_v35  ;;  %v1950_v35 = vld [vmem:[#allocation2 + $0x10a] sm:$0xff] }
 0x249   : > { %15786 = vmatmul.mubr.msk.bf16.vlgmr.msra.gmra.mrb[124].mxu1 %vm542_vm1, %v1973_v40  ;;  %v1988_v40 = vpack.c.bf16 %v1950_v35, %v1949_v39  ;;  %v2414_v35 = vld [vmem:[#allocation2 + $0x2e] sm:$0xff] }
 0x24a   : > { %15789 = vmatprep.mubr.msk.bf16.mxu1 %vm542_vm1, %v1974_v43  ;;  %15842 = vmatpush3.bf16.msra.mxu1 %v18424_v24  ;;  %v1944_v24 = vld [vmem:[#allocation2 + $0xda] sm:$0xff]  ;;  %v1951_v43 = vld [vmem:[#allocation2 + $0x112] sm:$0xff] }
 0x24b   : > { %15843 = vmatprep.subr.bf16.mxu1 %v18425_v42  ;;  %v1985_v28 = vpack.c.bf16 %v1944_v24, %v1943_v27  ;;  %v1989_v44 = vpack.c.bf16 %v1952_v41, %v1951_v43  ;;  %v1969_v24 = vld [vmem:[#allocation2 + $0x1a2] sm:$0xff]  ;;  %v1971_v27 = vld [vmem:[#allocation2 + $0x1b2] sm:$0x3f] }
 0x24c   : > { %v1998_v26 = vpack.c.bf16 %v1970_v10, %v1969_v24  ;;  %v1999_v29 = vpack.c.bf16 %v1971_v27, %v1971_v27  ;;  %v18427_v41 = vld [vmem:[%s22564_s2 + $0x48] sm:$0xff]   ;;  %v2435_v24 = vld [vmem:[#allocation2 + $0xd6] sm:$0xff] }
 0x24d   : > { %v2418_v43 = vld [vmem:[#allocation2 + $0x4e] sm:$0xff] }
 0x24e   : > { %15844 = vmatpush3.bf16.msra.mxu1 %v18425_v42  ;;  %v1954_v42 = vld [vmem:[#allocation2 + $0x12a] sm:$0xff] }
 0x24f   : > { %v1990_v46 = vpack.c.bf16 %v1954_v42, %v1953_v45  ;;  %v2417_v45 = vld [vmem:[#allocation2 + $0x46] sm:$0xff]  ;;  %v2434_v10 = vld [vmem:[#allocation2 + $0xce] sm:$0xff] }
 0x250   : > { %v2438_v27 = vld [vmem:[#allocation2 + $0xee] sm:$0xff] }
 0x251   : > { %15790 = vmatmul.mubr.msk.bf16.gmra.mrb[128].mxu1 %vm542_vm1, %v1975_v47  ;;  %v1956_v47 = vld [vmem:[#allocation2 + $0x13a] sm:$0xff] }
 0x252   : > { %15793 = vmatprep.mubr.msk.bf16.mxu1 %vm542_vm1, %v1976_v49  ;;  %v1955_v49 = vld [vmem:[#allocation2 + $0x132] sm:$0xff] }
 0x253   : > { %v1991_v50 = vpack.c.bf16 %v1956_v47, %v1955_v49  ;;  %v2419_v47 = vld [vmem:[#allocation2 + $0x56] sm:$0xff]  ;;  %v2422_v49 = vld [vmem:[#allocation2 + $0x6e] sm:$0xff] }
 0x259   : > { %15794 = vmatmul.mubr.msk.bf16.gmra.mrb[132].mxu1 %vm542_vm1, %v1977_v53  ;;  %v1960_v53 = vld [vmem:[#allocation2 + $0x15a] sm:$0xff] }
 0x25a   : > { %15797 = vmatprep.mubr.msk.bf16.mxu1 %vm542_vm1, %v1978_v55  ;;  %v1959_v55 = vld [vmem:[#allocation2 + $0x152] sm:$0xff] }
 0x25b   : > { %v1993_v56 = vpack.c.bf16 %v1960_v53, %v1959_v55  ;;  %v2423_v53 = vld [vmem:[#allocation2 + $0x76] sm:$0xff]  ;;  %v2426_v55 = vld [vmem:[#allocation2 + $0x8e] sm:$0xff] }
 0x261   : > { %15798 = vmatmul.mubr.msk.bf16.gmra.mrb[136].mxu1 %vm542_vm1, %v1979_v60  ;;  %v1964_v60 = vld [vmem:[#allocation2 + $0x17a] sm:$0xff] }
 0x262   : > { %15801 = vmatprep.mubr.msk.bf16.mxu1 %vm542_vm1, %v1980_v62  ;;  %v1963_v62 = vld [vmem:[#allocation2 + $0x172] sm:$0xff] }
 0x263   : > { %v1995_v63 = vpack.c.bf16 %v1964_v60, %v1963_v62  ;;  %v2427_v60 = vld [vmem:[#allocation2 + $0x96] sm:$0xff]  ;;  %v2430_v62 = vld [vmem:[#allocation2 + $0xae] sm:$0xff] }
 0x269   : > { %15802 = vmatmul.mubr.msk.bf16.gmra.mrb[140].mxu1 %vm542_vm1, %v1981_v4  ;;  %v18426_v4 = vld [vmem:[%s22564_s2 + $0x40] sm:$0xff]  }
 0x26a   : > { %15805 = vmatprep.mubr.msk.bf16.mxu1 %vm542_vm1, %v1982_v7  ;;  %15901 = vmatprep.subr.bf16.mxu1 %v18426_v4  ;;  %v1968_v7 = vld [vmem:[#allocation2 + $0x19a] sm:$0xff] }
 0x271   : > { %15806 = vmatmul.mubr.msk.bf16.gmra.mrb[144].mxu1 %vm542_vm1, %v1983_v16  ;;  %v1967_v16 = vld [vmem:[#allocation2 + $0x192] sm:$0xff] }
 0x272   : > { %15809 = vmatprep.mubr.msk.bf16.mxu1 %vm542_vm1, %v1984_v23  ;;  %v1997_v23 = vpack.c.bf16 %v1968_v7, %v1967_v16  ;;  %v2433_v16 = vld [vmem:[#allocation2 + $0xc6] sm:$0xff] }
 0x279   : > { %15810 = vmatmul.mubr.msk.bf16.gmra.mrb[148].mxu1 %vm542_vm1, %v1985_v28  ;;  %v2412_v28 = vld [vmem:[#allocation2 + $0x1e] sm:$0xff] }
 0x27a   : > { %15813 = vmatprep.mubr.msk.bf16.mxu1 %vm542_vm1, %v1986_v30  ;;  %v2411_v30 = vld [vmem:[#allocation2 + $0x16] sm:$0xff] }
 0x27b   : > { %v2466_v31 = vpack.c.bf16 %v2412_v28, %v2411_v30  ;;  %v2440_v28 = vld [vmem:[#allocation2 + $0xfe] sm:$0xff] }
 0x281   : > { %15814 = vmatmul.mubr.msk.bf16.gmra.mrb[152].mxu1 %vm542_vm1, %v1987_v38  ;;  %v2413_v38 = vld [vmem:[#allocation2 + $0x26] sm:$0xff] }
 0x282   : > { %15817 = vmatprep.mubr.msk.bf16.mxu1 %vm542_vm1, %v1988_v40  ;;  %v2467_v39 = vpack.c.bf16 %v2414_v35, %v2413_v38  ;;  %v2415_v40 = vld [vmem:[#allocation2 + $0x36] sm:$0xff]  ;;  %v2444_v38 = vld [vmem:[#allocation2 + $0x11e] sm:$0xff] }
 0x283   : > { %v2468_v42 = vpack.c.bf16 %v2416_v36, %v2415_v40  ;;  %v2442_v36 = vld [vmem:[#allocation2 + $0x10e] sm:$0xff] }
 0x289   : > { %15818 = vmatmul.mubr.msk.bf16.gmra.mrb[156].mxu1 %vm542_vm1, %v1989_v44  ;;  %v2420_v44 = vld [vmem:[#allocation2 + $0x5e] sm:$0xff] }
 0x28a   : > { %15821 = vmatprep.mubr.msk.bf16.mxu1 %vm542_vm1, %v1990_v46  ;;  %v2469_v46 = vpack.c.bf16 %v2418_v43, %v2417_v45  ;;  %v2470_v48 = vpack.c.bf16 %v2420_v44, %v2419_v47  ;;  %v2446_v43 = vld [vmem:[#allocation2 + $0x12e] sm:$0xff]  ;;  %v2448_v44 = vld [vmem:[#allocation2 + $0x13e] sm:$0xff]  ;;  %v2445_v45 = vld [vmem:[#allocation2 + $0x126] sm:$0xff] }
 0x28b   : > { %v2447_v47 = vld [vmem:[#allocation2 + $0x136] sm:$0xff] }
 0x291   : > { %15822 = vmatmul.mubr.msk.bf16.gmra.mrb[160].mxu1 %vm542_vm1, %v1991_v50  ;;  %v2424_v50 = vld [vmem:[#allocation2 + $0x7e] sm:$0xff] }
 0x292   : > { %15825 = vmatprep.mubr.msk.bf16.mxu1 %vm542_vm1, %v1992_v52  ;;  %v2471_v52 = vpack.c.bf16 %v2422_v49, %v2421_v51  ;;  %v2472_v54 = vpack.c.bf16 %v2424_v50, %v2423_v53  ;;  %v2450_v49 = vld [vmem:[#allocation2 + $0x14e] sm:$0xff]  ;;  %v2452_v50 = vld [vmem:[#allocation2 + $0x15e] sm:$0xff]  ;;  %v2449_v51 = vld [vmem:[#allocation2 + $0x146] sm:$0xff] }
 0x293   : > { %v2451_v53 = vld [vmem:[#allocation2 + $0x156] sm:$0xff] }
 0x299   : > { %15826 = vmatmul.mubr.msk.bf16.gmra.mrb[164].mxu1 %vm542_vm1, %v1993_v56  ;;  %v2428_v56 = vld [vmem:[#allocation2 + $0x9e] sm:$0xff] }
 0x29a   : > { %15829 = vmatprep.mubr.msk.bf16.mxu1 %vm542_vm1, %v1994_v59  ;;  %v2473_v59 = vpack.c.bf16 %v2426_v55, %v2425_v57  ;;  %v2474_v61 = vpack.c.bf16 %v2428_v56, %v2427_v60  ;;  %v2454_v55 = vld [vmem:[#allocation2 + $0x16e] sm:$0xff]  ;;  %v2456_v56 = vld [vmem:[#allocation2 + $0x17e] sm:$0xff]  ;;  %v2453_v57 = vld [vmem:[#allocation2 + $0x166] sm:$0xff] }
 0x29b   : > { %v2455_v60 = vld [vmem:[#allocation2 + $0x176] sm:$0xff] }
 0x2a1   : > { %15830 = vmatmul.mubr.msk.bf16.gmra.mrb[168].mxu1 %vm542_vm1, %v1995_v63  ;;  %v2432_v63 = vld [vmem:[#allocation2 + $0xbe] sm:$0xff] }
 0x2a2   : > { %15833 = vmatprep.mubr.msk.bf16.mxu1 %vm542_vm1, %v1996_v2  ;;  %v2475_v2 = vpack.c.bf16 %v2430_v62, %v2429_v0  ;;  %v2458_v62 = vld [vmem:[#allocation2 + $0x18e] sm:$0xff]  ;;  %v2457_v0 = vld [vmem:[#allocation2 + $0x186] sm:$0xff] }
 0x2a4   : > { %v19031_v5 = vpop.f32.mrb[176].mxu1 }
 0x2a5   : > { %v19033_v8 = vpop.f32.mrb[177].mxu1 }
 0x2a6   : > { %v15720_v14 = vpop.f32.mrb[178].mxu1 }
 0x2a7   : > { %v19035_v20 = vpop.f32.mrb[179].mxu1  ;;  %v2436_v14 = vld [vmem:[#allocation2 + $0xde] sm:$0xff] }
 0x2a9   : > { %15834 = vmatmul.mubr.msk.bf16.gmra.mrb[172].mxu1 %vm542_vm1, %v1997_v23  ;;  %v2477_v23 = vpack.c.bf16 %v2434_v10, %v2433_v16  ;;  %v18428_v10 = vld [vmem:[%s22564_s2 + $0x50] sm:$0xff]  }
 0x2aa   : > { %15837 = vmatprep.mubr.msk.bf16.mxu1 %vm542_vm1, %v1998_v26  ;;  %v2478_v26 = vpack.c.bf16 %v2436_v14, %v2435_v24  ;;  %v2462_v16 = vld [vmem:[#allocation2 + $0x1ae] sm:$0xff] }
 0x2b1   : > { %15838 = vmatmul.mubr.msk.bf16.gmra.mrb[184].mxu1 %vm542_vm1, %v1999_v29  ;;  %v2437_v29 = vld [vmem:[#allocation2 + $0xe6] sm:$0xff] }
 0x2b2   : > { %15845 = vmatprep.mubr.msk.bf16.mxu1 %vm542_vm1, %v2466_v31  ;;  %v2479_v30 = vpack.c.bf16 %v2438_v27, %v2437_v29  ;;  %v2439_v31 = vld [vmem:[#allocation2 + $0xf6] sm:$0xff]  ;;  %v2461_v29 = vld [vmem:[#allocation2 + $0x1a6] sm:$0xff] }
 0x2b3   : > { %v2480_v35 = vpack.c.bf16 %v2440_v28, %v2439_v31  ;;  %v2491_v31 = vpack.c.bf16 %v2462_v16, %v2461_v29  ;;  %v2930_v29 = vld [vmem:[#allocation2 + $0xdf] sm:$0xff] }
 0x2b9   : > { %15846 = vmatmul.mubr.msk.bf16.vlgmr.msra.gmra.mrb[124].mxu1 %vm542_vm1, %v2467_v39  ;;  %v2441_v39 = vld [vmem:[#allocation2 + $0x106] sm:$0xff] }
 0x2ba   : > { %15849 = vmatprep.mubr.msk.bf16.mxu1 %vm542_vm1, %v2468_v42  ;;  %15902 = vmatpush3.bf16.msra.mxu1 %v18426_v4  ;;  %v2431_v4 = vld [vmem:[#allocation2 + $0xb6] sm:$0xff]  ;;  %v2481_v40 = vpack.c.bf16 %v2442_v36, %v2441_v39  ;;  %v2906_v39 = vld [vmem:[#allocation2 + $0x1f] sm:$0xff] }
 0x2bb   : > { %15903 = vmatprep.subr.bf16.mxu1 %v18427_v41  ;;  %v2476_v7 = vpack.c.bf16 %v2432_v63, %v2431_v4  ;;  %v2460_v63 = vld [vmem:[#allocation2 + $0x19e] sm:$0xff]  ;;  %v2459_v4 = vld [vmem:[#allocation2 + $0x196] sm:$0xff] }
 0x2be   : > { %15904 = vmatpush3.bf16.msra.mxu1 %v18427_v41  ;;  %v2443_v41 = vld [vmem:[#allocation2 + $0x116] sm:$0xff] }
 0x2bf   : > { %v2482_v42 = vpack.c.bf16 %v2444_v38, %v2443_v41  ;;  %15961 = vmatprep.subr.bf16.mxu1 %v18428_v10  ;;  %v2905_v41 = vld [vmem:[#allocation2 + $0x17] sm:$0xff] }
 0x2c1   : > { %15850 = vmatmul.mubr.msk.bf16.gmra.mrb[128].mxu1 %vm542_vm1, %v2469_v46  ;;  %v2483_v46 = vpack.c.bf16 %v2446_v43, %v2445_v45  ;;  %v2910_v43 = vld [vmem:[#allocation2 + $0x3f] sm:$0xff] }
 0x2c2   : > { %15853 = vmatprep.mubr.msk.bf16.mxu1 %vm542_vm1, %v2470_v48  ;;  %v2484_v48 = vpack.c.bf16 %v2448_v44, %v2447_v47  ;;  %v2907_v44 = vld [vmem:[#allocation2 + $0x27] sm:$0xff] }
 0x2c9   : > { %15854 = vmatmul.mubr.msk.bf16.gmra.mrb[132].mxu1 %vm542_vm1, %v2471_v52  ;;  %v2485_v52 = vpack.c.bf16 %v2450_v49, %v2449_v51  ;;  %v2914_v49 = vld [vmem:[#allocation2 + $0x5f] sm:$0xff] }
 0x2ca   : > { %15857 = vmatprep.mubr.msk.bf16.mxu1 %vm542_vm1, %v2472_v54  ;;  %v2486_v54 = vpack.c.bf16 %v2452_v50, %v2451_v53  ;;  %v2911_v50 = vld [vmem:[#allocation2 + $0x47] sm:$0xff] }
 0x2d1   : > { %15858 = vmatmul.mubr.msk.bf16.gmra.mrb[136].mxu1 %vm542_vm1, %v2473_v59  ;;  %v2487_v59 = vpack.c.bf16 %v2454_v55, %v2453_v57  ;;  %v2918_v55 = vld [vmem:[#allocation2 + $0x7f] sm:$0xff] }
 0x2d2   : > { %15861 = vmatprep.mubr.msk.bf16.mxu1 %vm542_vm1, %v2474_v61  ;;  %v2488_v61 = vpack.c.bf16 %v2456_v56, %v2455_v60  ;;  %v2915_v56 = vld [vmem:[#allocation2 + $0x67] sm:$0xff] }
 0x2d9   : > { %15862 = vmatmul.mubr.msk.bf16.gmra.mrb[140].mxu1 %vm542_vm1, %v2475_v2  ;;  %v2489_v2 = vpack.c.bf16 %v2458_v62, %v2457_v0  ;;  %v2922_v62 = vld [vmem:[#allocation2 + $0x9f] sm:$0xff] }
 0x2da   : > { %15865 = vmatprep.mubr.msk.bf16.mxu1 %vm542_vm1, %v2476_v7  ;;  %v2490_v7 = vpack.c.bf16 %v2460_v63, %v2459_v4  ;;  %v2919_v63 = vld [vmem:[#allocation2 + $0x87] sm:$0xff] }
 0x2e1   : > { %15866 = vmatmul.mubr.msk.bf16.gmra.mrb[144].mxu1 %vm542_vm1, %v2477_v23 }
 0x2e2   : > { %15869 = vmatprep.mubr.msk.bf16.mxu1 %vm542_vm1, %v2478_v26  ;;  %v2464_v26 = vld [vmem:[#allocation2 + $0x1be] sm:$0xff] }
 0x2e9   : > { %15870 = vmatmul.mubr.msk.bf16.gmra.mrb[148].mxu1 %vm542_vm1, %v2479_v30 }
 0x2ea   : > { %15873 = vmatprep.mubr.msk.bf16.mxu1 %vm542_vm1, %v2480_v35  ;;  %v2463_v35 = vld [vmem:[#allocation2 + $0x1b6] sm:$0xff] }
 0x2eb   : > { %v2492_v38 = vpack.c.bf16 %v2464_v26, %v2463_v35  ;;  %v2929_v35 = vld [vmem:[#allocation2 + $0xd7] sm:$0xff] }
 0x2f1   : > { %15874 = vmatmul.mubr.msk.bf16.gmra.mrb[152].mxu1 %vm542_vm1, %v2481_v40 }
 0x2f2   : > { %15877 = vmatprep.mubr.msk.bf16.mxu1 %vm542_vm1, %v2482_v42  ;;  %v2960_v42 = vpack.c.bf16 %v2906_v39, %v2905_v41  ;;  %v2934_v39 = vld [vmem:[#allocation2 + $0xff] sm:$0xff] }
 0x2f9   : > { %15878 = vmatmul.mubr.msk.bf16.gmra.mrb[156].mxu1 %vm542_vm1, %v2483_v46  ;;  %v18429_v46 = vld [vmem:[%s22564_s2 + $0x58] sm:$0xff]  }
 0x2fa   : > { %15881 = vmatprep.mubr.msk.bf16.mxu1 %vm542_vm1, %v2484_v48  ;;  %v2912_v48 = vld [vmem:[#allocation2 + $0x4f] sm:$0xff] }
 0x2fb   : > { %v2963_v51 = vpack.c.bf16 %v2912_v48, %v2911_v50  ;;  %v2940_v48 = vld [vmem:[#allocation2 + $0x12f] sm:$0xff]  ;;  %v2939_v50 = vld [vmem:[#allocation2 + $0x127] sm:$0xff] }
 0x301   : > { %15882 = vmatmul.mubr.msk.bf16.gmra.mrb[160].mxu1 %vm542_vm1, %v2485_v52  ;;  %v2913_v52 = vld [vmem:[#allocation2 + $0x57] sm:$0xff] }
 0x302   : > { %15885 = vmatprep.mubr.msk.bf16.mxu1 %vm542_vm1, %v2486_v54  ;;  %v2964_v53 = vpack.c.bf16 %v2914_v49, %v2913_v52  ;;  %v2916_v54 = vld [vmem:[#allocation2 + $0x6f] sm:$0xff]  ;;  %v2942_v49 = vld [vmem:[#allocation2 + $0x13f] sm:$0xff]  ;;  %v2941_v52 = vld [vmem:[#allocation2 + $0x137] sm:$0xff] }
 0x303   : > { %v2965_v57 = vpack.c.bf16 %v2916_v54, %v2915_v56  ;;  %v2944_v54 = vld [vmem:[#allocation2 + $0x14f] sm:$0xff]  ;;  %v2943_v56 = vld [vmem:[#allocation2 + $0x147] sm:$0xff] }
 0x309   : > { %15886 = vmatmul.mubr.msk.bf16.gmra.mrb[164].mxu1 %vm542_vm1, %v2487_v59  ;;  %v2917_v59 = vld [vmem:[#allocation2 + $0x77] sm:$0xff] }
 0x30a   : > { %15889 = vmatprep.mubr.msk.bf16.mxu1 %vm542_vm1, %v2488_v61  ;;  %v2966_v60 = vpack.c.bf16 %v2918_v55, %v2917_v59  ;;  %v2920_v61 = vld [vmem:[#allocation2 + $0x8f] sm:$0xff]  ;;  %v2946_v55 = vld [vmem:[#allocation2 + $0x15f] sm:$0xff]  ;;  %v2945_v59 = vld [vmem:[#allocation2 + $0x157] sm:$0xff] }
 0x30b   : > { %v2967_v0 = vpack.c.bf16 %v2920_v61, %v2919_v63  ;;  %v2948_v61 = vld [vmem:[#allocation2 + $0x16f] sm:$0xff]  ;;  %v2947_v63 = vld [vmem:[#allocation2 + $0x167] sm:$0xff] }
 0x311   : > { %15890 = vmatmul.mubr.msk.bf16.gmra.mrb[168].mxu1 %vm542_vm1, %v2489_v2  ;;  %v2921_v2 = vld [vmem:[#allocation2 + $0x97] sm:$0xff] }
 0x312   : > { %15893 = vmatprep.mubr.msk.bf16.mxu1 %vm542_vm1, %v2490_v7  ;;  %v2968_v4 = vpack.c.bf16 %v2922_v62, %v2921_v2  ;;  %v2924_v7 = vld [vmem:[#allocation2 + $0xaf] sm:$0xff]  ;;  %v2950_v62 = vld [vmem:[#allocation2 + $0x17f] sm:$0xff]  ;;  %v2949_v2 = vld [vmem:[#allocation2 + $0x177] sm:$0xff] }
 0x314   : > { %v15779_v14 = vpop.f32.mrb[180].mxu1 }
 0x315   : > { %v19072_v23 = vadd.f32 %v15779_v14, %v19031_v5  ;;  %v1903_v24 = vpop.f32.mrb[181].mxu1  ;;  %v2465_v5 = vld [vmem:[#allocation2 + $0x1c6] sm:$0x3f] }
 0x316   : > { %v19075_v27 = vadd.f32 %v1903_v24, %v19033_v8  ;;  %v15780_v28 = vpop.f32.mrb[182].mxu1  ;;  %v2493_v40 = vpack.c.bf16 %v2465_v5, %v2465_v5  ;;  %v2908_v8 = vld [vmem:[#allocation2 + $0x2f] sm:$0xff]  ;;  %v2923_v14 = vld [vmem:[#allocation2 + $0xa7] sm:$0xff]  ;;  %v2925_v24 = vld [vmem:[#allocation2 + $0xb7] sm:$0xff] }
 0x317   : > { %v1906_v30 = vpop.f32.mrb[183].mxu1  ;;  %v2961_v45 = vpack.c.bf16 %v2908_v8, %v2907_v44  ;;  %v2969_v16 = vpack.c.bf16 %v2924_v7, %v2923_v14  ;;  %v2928_v28 = vld [vmem:[#allocation2 + $0xcf] sm:$0xff]  ;;  %v2938_v44 = vld [vmem:[#allocation2 + $0x11f] sm:$0xff]  ;;  %v2951_v14 = vld [vmem:[#allocation2 + $0x187] sm:$0xff] }
 0x318   : > { %v19078_v36 = vadd.f32 %v1906_v30, %v19035_v20  ;;  %v2909_v20 = vld [vmem:[#allocation2 + $0x37] sm:$0xff]  ;;  %v2927_v30 = vld [vmem:[#allocation2 + $0xc7] sm:$0xff]  ;;  %v2932_v5 = vld [vmem:[#allocation2 + $0xef] sm:$0xff] }
 0x319   : > { %15894 = vmatmul.mubr.msk.bf16.gmra.mrb[172].mxu1 %vm542_vm1, %v2491_v31  ;;  %v2962_v47 = vpack.c.bf16 %v2910_v43, %v2909_v20  ;;  %v2971_v31 = vpack.c.bf16 %v2928_v28, %v2927_v30  ;;  %v2936_v43 = vld [vmem:[#allocation2 + $0x10f] sm:$0xff]  ;;  %v18430_v28 = vld [vmem:[%s22564_s2 + $0x60] sm:$0xff]  }
 0x31a   : > { %15897 = vmatprep.mubr.msk.bf16.mxu1 %vm542_vm1, %v2492_v38  ;;  %v2972_v38 = vpack.c.bf16 %v2930_v29, %v2929_v35  ;;  %v2952_v7 = vld [vmem:[#allocation2 + $0x18f] sm:$0xff] }
 0x31b   : > { %v2956_v30 = vld [vmem:[#allocation2 + $0x1af] sm:$0xff] }
 0x321   : > { %15898 = vmatmul.mubr.msk.bf16.gmra.mrb[188].mxu1 %vm542_vm1, %v2493_v40  ;;  %v2931_v40 = vld [vmem:[#allocation2 + $0xe7] sm:$0xff] }
 0x322   : > { %15905 = vmatprep.mubr.msk.bf16.mxu1 %vm542_vm1, %v2960_v42  ;;  %v2973_v41 = vpack.c.bf16 %v2932_v5, %v2931_v40  ;;  %v2933_v42 = vld [vmem:[#allocation2 + $0xf7] sm:$0xff]  ;;  %v2955_v40 = vld [vmem:[#allocation2 + $0x1a7] sm:$0xff] }
 0x323   : > { %v2974_v8 = vpack.c.bf16 %v2934_v39, %v2933_v42  ;;  %v2985_v42 = vpack.c.bf16 %v2956_v30, %v2955_v40  ;;  %v3424_v30 = vld [vmem:[#allocation2 + $0xe0] sm:$0xff] }
 0x329   : > { %15906 = vmatmul.mubr.msk.bf16.vlgmr.msra.gmra.mrb[124].mxu1 %vm542_vm1, %v2961_v45  ;;  %v2935_v45 = vld [vmem:[#allocation2 + $0x107] sm:$0xff] }
 0x32a   : > { %15909 = vmatprep.mubr.msk.bf16.mxu1 %vm542_vm1, %v2962_v47  ;;  %15962 = vmatpush3.bf16.msra.mxu1 %v18428_v10  ;;  %v2926_v10 = vld [vmem:[#allocation2 + $0xbf] sm:$0xff]  ;;  %v2975_v20 = vpack.c.bf16 %v2936_v43, %v2935_v45 }
 0x32b   : > { %15963 = vmatprep.subr.bf16.mxu1 %v18429_v46  ;;  %v2970_v26 = vpack.c.bf16 %v2926_v10, %v2925_v24  ;;  %v2954_v10 = vld [vmem:[#allocation2 + $0x19f] sm:$0xff]  ;;  %v2953_v24 = vld [vmem:[#allocation2 + $0x197] sm:$0xff] }
 0x32e   : > { %15964 = vmatpush3.bf16.msra.mxu1 %v18429_v46  ;;  %v2937_v46 = vld [vmem:[#allocation2 + $0x117] sm:$0xff] }
 0x32f   : > { %v2976_v47 = vpack.c.bf16 %v2938_v44, %v2937_v46  ;;  %16021 = vmatprep.subr.bf16.mxu1 %v18430_v28  ;;  %v3404_v46 = vld [vmem:[#allocation2 + $0x40] sm:$0xff] }
 0x331   : > { %15910 = vmatmul.mubr.msk.bf16.gmra.mrb[128].mxu1 %vm542_vm1, %v2963_v51  ;;  %v2977_v51 = vpack.c.bf16 %v2940_v48, %v2939_v50 }
 0x332   : > { %15913 = vmatprep.mubr.msk.bf16.mxu1 %vm542_vm1, %v2964_v53  ;;  %v2978_v53 = vpack.c.bf16 %v2942_v49, %v2941_v52  ;;  %v18431_v49 = vld [vmem:[%s22564_s2 + $0x68] sm:$0xff]  }
 0x339   : > { %15914 = vmatmul.mubr.msk.bf16.gmra.mrb[132].mxu1 %vm542_vm1, %v2965_v57  ;;  %v2979_v57 = vpack.c.bf16 %v2944_v54, %v2943_v56  ;;  %v3412_v56 = vld [vmem:[#allocation2 + $0x80] sm:$0xff] }
 0x33a   : > { %15917 = vmatprep.mubr.msk.bf16.mxu1 %vm542_vm1, %v2966_v60  ;;  %v2980_v60 = vpack.c.bf16 %v2946_v55, %v2945_v59  ;;  %v3410_v55 = vld [vmem:[#allocation2 + $0x70] sm:$0xff] }
 0x341   : > { %15918 = vmatmul.mubr.msk.bf16.gmra.mrb[136].mxu1 %vm542_vm1, %v2967_v0  ;;  %v2981_v0 = vpack.c.bf16 %v2948_v61, %v2947_v63  ;;  %v3416_v63 = vld [vmem:[#allocation2 + $0xa0] sm:$0xff] }
 0x342   : > { %15921 = vmatprep.mubr.msk.bf16.mxu1 %vm542_vm1, %v2968_v4  ;;  %v2982_v4 = vpack.c.bf16 %v2950_v62, %v2949_v2  ;;  %v3414_v62 = vld [vmem:[#allocation2 + $0x90] sm:$0xff] }
 0x349   : > { %15922 = vmatmul.mubr.msk.bf16.gmra.mrb[140].mxu1 %vm542_vm1, %v2969_v16  ;;  %v2983_v16 = vpack.c.bf16 %v2952_v7, %v2951_v14  ;;  %v3420_v14 = vld [vmem:[#allocation2 + $0xc0] sm:$0xff] }
 0x34a   : > { %15925 = vmatprep.mubr.msk.bf16.mxu1 %vm542_vm1, %v2970_v26  ;;  %v2984_v26 = vpack.c.bf16 %v2954_v10, %v2953_v24  ;;  %v3418_v10 = vld [vmem:[#allocation2 + $0xb0] sm:$0xff] }
 0x351   : > { %15926 = vmatmul.mubr.msk.bf16.gmra.mrb[144].mxu1 %vm542_vm1, %v2971_v31 }
 0x352   : > { %15929 = vmatprep.mubr.msk.bf16.mxu1 %vm542_vm1, %v2972_v38  ;;  %v2958_v38 = vld [vmem:[#allocation2 + $0x1bf] sm:$0xff] }
 0x359   : > { %15930 = vmatmul.mubr.msk.bf16.gmra.mrb[148].mxu1 %vm542_vm1, %v2973_v41 }
 0x35a   : > { %15933 = vmatprep.mubr.msk.bf16.mxu1 %vm542_vm1, %v2974_v8  ;;  %v2957_v8 = vld [vmem:[#allocation2 + $0x1b7] sm:$0xff] }
 0x35b   : > { %v2986_v44 = vpack.c.bf16 %v2958_v38, %v2957_v8  ;;  %v3425_v8 = vld [vmem:[#allocation2 + $0xe8] sm:$0xff] }
 0x361   : > { %15934 = vmatmul.mubr.msk.bf16.gmra.mrb[152].mxu1 %vm542_vm1, %v2975_v20  ;;  %v3454_v20 = vpack.c.bf16 %v18927_v3, %v18922_v58  ;;  %v3406_v58 = vld [vmem:[#allocation2 + $0x50] sm:$0xff]  ;;  %v3408_v3 = vld [vmem:[#allocation2 + $0x60] sm:$0xff] }
 0x362   : > { %15937 = vmatprep.mubr.msk.bf16.mxu1 %vm542_vm1, %v2976_v47  ;;  %v3401_v47 = vld [vmem:[#allocation2 + $0x28] sm:$0xff] }
 0x369   : > { %15938 = vmatmul.mubr.msk.bf16.gmra.mrb[156].mxu1 %vm542_vm1, %v2977_v51  ;;  %v3405_v51 = vld [vmem:[#allocation2 + $0x48] sm:$0xff] }
 0x36a   : > { %15941 = vmatprep.mubr.msk.bf16.mxu1 %vm542_vm1, %v2978_v53  ;;  %v3457_v52 = vpack.c.bf16 %v3406_v58, %v3405_v51  ;;  %v3407_v53 = vld [vmem:[#allocation2 + $0x58] sm:$0xff] }
 0x36b   : > { %v3458_v54 = vpack.c.bf16 %v3408_v3, %v3407_v53  ;;  %v3435_v3 = vld [vmem:[#allocation2 + $0x138] sm:$0xff]  ;;  %v3474_v53 = vpack.c.bf16 %v18970_v15, %v18962_v11 }
 0x36c   : > { %v3472_v51 = vpack.c.bf16 %v18956_v9, %v3435_v3  ;;  %v3476_v9 = vpack.c.bf16 %v18982_v22, %v18976_v19  ;;  %v3452_v19 = vld [vmem:[#allocation2 + $0x1c0] sm:$0xff]  ;;  %v3451_v22 = vld [vmem:[#allocation2 + $0x1b8] sm:$0xff] }
 0x36d   : > { %v3480_v34 = vpack.c.bf16 %v3452_v19, %v3451_v22  ;;  %v3919_v3 = vld [vmem:[#allocation2 + $0xfc] sm:$0xff]  ;;  %v3928_v19 = vld [vmem:[#allocation2 + $0x144] sm:$0xff]  ;;  %v3929_v22 = vld [vmem:[#allocation2 + $0x14c] sm:$0xff] }
 0x371   : > { %15942 = vmatmul.mubr.msk.bf16.gmra.mrb[160].mxu1 %vm542_vm1, %v2979_v57  ;;  %v3409_v57 = vld [vmem:[#allocation2 + $0x68] sm:$0xff] }
 0x372   : > { %15945 = vmatprep.mubr.msk.bf16.mxu1 %vm542_vm1, %v2980_v60  ;;  %v3459_v59 = vpack.c.bf16 %v3410_v55, %v3409_v57  ;;  %v3411_v60 = vld [vmem:[#allocation2 + $0x78] sm:$0xff] }
 0x373   : > { %v3460_v61 = vpack.c.bf16 %v3412_v56, %v3411_v60  ;;  %v3893_v56 = vld [vmem:[#allocation2 + $0x2c] sm:$0xff] }
 0x379   : > { %15946 = vmatmul.mubr.msk.bf16.gmra.mrb[164].mxu1 %vm542_vm1, %v2981_v0  ;;  %v3413_v0 = vld [vmem:[#allocation2 + $0x88] sm:$0xff] }
 0x37a   : > { %15949 = vmatprep.mubr.msk.bf16.mxu1 %vm542_vm1, %v2982_v4  ;;  %v3461_v2 = vpack.c.bf16 %v3414_v62, %v3413_v0  ;;  %v3415_v4 = vld [vmem:[#allocation2 + $0x98] sm:$0xff] }
 0x37b   : > { %v3462_v7 = vpack.c.bf16 %v3416_v63, %v3415_v4  ;;  %v3900_v63 = vld [vmem:[#allocation2 + $0x64] sm:$0xff]  ;;  %v3902_v0 = vld [vmem:[#allocation2 + $0x74] sm:$0xff] }
 0x381   : > { %15950 = vmatmul.mubr.msk.bf16.gmra.mrb[168].mxu1 %vm542_vm1, %v2983_v16  ;;  %v3417_v16 = vld [vmem:[#allocation2 + $0xa8] sm:$0xff] }
 0x382   : > { %15953 = vmatprep.mubr.msk.bf16.mxu1 %vm542_vm1, %v2984_v26  ;;  %v3463_v24 = vpack.c.bf16 %v3418_v10, %v3417_v16  ;;  %v3419_v26 = vld [vmem:[#allocation2 + $0xb8] sm:$0xff] }
 0x383   : > { %v3906_v16 = vld [vmem:[#allocation2 + $0x94] sm:$0xff] }
 0x384   : > { %v15839_v29 = vpop.f32.mrb[184].mxu1 }
 0x385   : > { %v19115_v31 = vadd.f32 %v15839_v29, %v19072_v23  ;;  %v2342_v35 = vpop.f32.mrb[185].mxu1  ;;  %v2959_v23 = vld [vmem:[#allocation2 + $0x1c7] sm:$0x3f]  ;;  %v3422_v29 = vld [vmem:[#allocation2 + $0xd0] sm:$0xff] }
 0x386   : > { %v19118_v5 = vadd.f32 %v2342_v35, %v19075_v27  ;;  %v15840_v39 = vpop.f32.mrb[186].mxu1  ;;  %v2987_v45 = vpack.c.bf16 %v2959_v23, %v2959_v23  ;;  %v3402_v27 = vld [vmem:[#allocation2 + $0x30] sm:$0xff]  ;;  %v3421_v35 = vld [vmem:[#allocation2 + $0xc8] sm:$0xff]  ;;  %v3427_v23 = vld [vmem:[#allocation2 + $0xf8] sm:$0xff] }
 0x387   : > { %v2345_v41 = vpop.f32.mrb[187].mxu1  ;;  %v3455_v48 = vpack.c.bf16 %v3402_v27, %v3401_v47  ;;  %v3465_v38 = vpack.c.bf16 %v3422_v29, %v3421_v35  ;;  %v3423_v39 = vld [vmem:[#allocation2 + $0xd8] sm:$0xff]  ;;  %v3432_v27 = vld [vmem:[#allocation2 + $0x120] sm:$0xff] }
 0x388   : > { %v19121_v43 = vadd.f32 %v2345_v41, %v19078_v36  ;;  %v3403_v36 = vld [vmem:[#allocation2 + $0x38] sm:$0xff]  ;;  %v3466_v40 = vpack.c.bf16 %v3424_v30, %v3423_v39  ;;  %v3426_v41 = vld [vmem:[#allocation2 + $0xf0] sm:$0xff]  ;;  %v3908_v30 = vld [vmem:[#allocation2 + $0xa4] sm:$0xff] }
 0x389   : > { %15954 = vmatmul.mubr.msk.bf16.gmra.mrb[172].mxu1 %vm542_vm1, %v2985_v42  ;;  %v3456_v50 = vpack.c.bf16 %v3404_v46, %v3403_v36  ;;  %v3428_v42 = vld [vmem:[#allocation2 + $0x100] sm:$0xff]  ;;  %v3429_v46 = vld [vmem:[#allocation2 + $0x108] sm:$0xff]  ;;  %v3910_v35 = vld [vmem:[#allocation2 + $0xb4] sm:$0xff] }
 0x38a   : > { %15957 = vmatprep.mubr.msk.bf16.mxu1 %vm542_vm1, %v2986_v44  ;;  %v3467_v44 = vpack.c.bf16 %v3426_v41, %v3425_v8  ;;  %v3914_v8 = vld [vmem:[#allocation2 + $0xd4] sm:$0xff] }
 0x391   : > { %15958 = vmatmul.mubr.msk.bf16.gmra.mrb[192].mxu1 %vm542_vm1, %v2987_v45  ;;  %v3468_v45 = vpack.c.bf16 %v3428_v42, %v3427_v23  ;;  %v3912_v42 = vld [vmem:[#allocation2 + $0xc4] sm:$0xff] }
 0x392   : > { %15965 = vmatprep.mubr.msk.bf16.mxu1 %vm542_vm1, %v3454_v20  ;;  %v3430_v20 = vld [vmem:[#allocation2 + $0x110] sm:$0xff] }
 0x393   : > { %v3469_v47 = vpack.c.bf16 %v3430_v20, %v3429_v46  ;;  %v3918_v46 = vld [vmem:[#allocation2 + $0xf4] sm:$0xff] }
 0x399   : > { %15966 = vmatmul.mubr.msk.bf16.vlgmr.msra.gmra.mrb[124].mxu1 %vm542_vm1, %v3455_v48  ;;  %v3431_v48 = vld [vmem:[#allocation2 + $0x118] sm:$0xff] }
 0x39a   : > { %15969 = vmatprep.mubr.msk.bf16.mxu1 %vm542_vm1, %v3456_v50  ;;  %16022 = vmatpush3.bf16.msra.mxu1 %v18430_v28  ;;  %v3464_v28 = vpack.c.bf16 %v3420_v14, %v3419_v26  ;;  %v3470_v36 = vpack.c.bf16 %v3432_v27, %v3431_v48  ;;  %v3433_v50 = vld [vmem:[#allocation2 + $0x128] sm:$0xff] }
 0x39b   : > { %16023 = vmatprep.subr.bf16.mxu1 %v18431_v49  ;;  %v3904_v14 = vld [vmem:[#allocation2 + $0x84] sm:$0xff] }
 0x39c   : > { %v3916_v27 = vld [vmem:[#allocation2 + $0xe4] sm:$0xff] }
 0x39e   : > { %16024 = vmatpush3.bf16.msra.mxu1 %v18431_v49  ;;  %v3434_v49 = vld [vmem:[#allocation2 + $0x130] sm:$0xff] }
 0x39f   : > { %v3471_v58 = vpack.c.bf16 %v3434_v49, %v3433_v50  ;;  %v3920_v50 = vld [vmem:[#allocation2 + $0x104] sm:$0xff] }
 0x3a1   : > { %15970 = vmatmul.mubr.msk.bf16.gmra.mrb[128].mxu1 %vm542_vm1, %v3457_v52  ;;  %v3473_v52 = vpack.c.bf16 %v18966_v13, %v18954_v6  ;;  %v18432_v6 = vld [vmem:[%s22564_s2 + $0x70] sm:$0xff]  }
 0x3a2   : > { %15973 = vmatprep.mubr.msk.bf16.mxu1 %vm542_vm1, %v3458_v54  ;;  %v3475_v54 = vpack.c.bf16 %v18978_v32, %v18964_v12  ;;  %16081 = vmatprep.subr.bf16.mxu1 %v18432_v6  ;;  %v3450_v12 = vld [vmem:[#allocation2 + $0x1b0] sm:$0xff] }
 0x3a3   : > { %v3479_v32 = vpack.c.bf16 %v3450_v12, %v18991_v25  ;;  %v3898_v25 = vld [vmem:[#allocation2 + $0x54] sm:$0xff]  ;;  %v3925_v12 = vld [vmem:[#allocation2 + $0x12c] sm:$0xff] }
 0x3a9   : > { %15974 = vmatmul.mubr.msk.bf16.gmra.mrb[132].mxu1 %vm542_vm1, %v3459_v59  ;;  %v3895_v59 = vld [vmem:[#allocation2 + $0x3c] sm:$0xff] }
 0x3aa   : > { %15977 = vmatprep.mubr.msk.bf16.mxu1 %vm542_vm1, %v3460_v61  ;;  %v18433_v61 = vld [vmem:[%s22564_s2 + $0x78] sm:$0xff]  }
 0x3b1   : > { %15978 = vmatmul.mubr.msk.bf16.gmra.mrb[136].mxu1 %vm542_vm1, %v3461_v2  ;;  %v3899_v2 = vld [vmem:[#allocation2 + $0x5c] sm:$0xff] }
 0x3b2   : > { %15981 = vmatprep.mubr.msk.bf16.mxu1 %vm542_vm1, %v3462_v7  ;;  %v3951_v4 = vpack.c.bf16 %v3900_v63, %v3899_v2  ;;  %v3901_v7 = vld [vmem:[#allocation2 + $0x6c] sm:$0xff]  ;;  %v3940_v63 = vld [vmem:[#allocation2 + $0x1a4] sm:$0xff]  ;;  %v3939_v2 = vld [vmem:[#allocation2 + $0x19c] sm:$0xff] }
 0x3b3   : > { %v3952_v10 = vpack.c.bf16 %v3902_v0, %v3901_v7  ;;  %v3942_v0 = vld [vmem:[#allocation2 + $0x1b4] sm:$0xff]  ;;  %v3941_v7 = vld [vmem:[#allocation2 + $0x1ac] sm:$0xff] }
 0x3b9   : > { %15982 = vmatmul.mubr.msk.bf16.gmra.mrb[140].mxu1 %vm542_vm1, %v3463_v24  ;;  %v3903_v24 = vld [vmem:[#allocation2 + $0x7c] sm:$0xff] }
 0x3ba   : > { %15985 = vmatprep.mubr.msk.bf16.mxu1 %vm542_vm1, %v3464_v28  ;;  %v3953_v26 = vpack.c.bf16 %v3904_v14, %v3903_v24  ;;  %v3905_v28 = vld [vmem:[#allocation2 + $0x8c] sm:$0xff]  ;;  %v18434_v14 = vld [vmem:[%s22564_s2 + $0x80] sm:$0xff]  }
 0x3bb   : > { %v3954_v29 = vpack.c.bf16 %v3906_v16, %v3905_v28  ;;  %v3944_v24 = vld [vmem:[#allocation2 + $0x1c4] sm:$0xff] }
 0x3c1   : > { %15986 = vmatmul.mubr.msk.bf16.gmra.mrb[144].mxu1 %vm542_vm1, %v3465_v38  ;;  %v3907_v38 = vld [vmem:[#allocation2 + $0x9c] sm:$0xff] }
 0x3c2   : > { %15989 = vmatprep.mubr.msk.bf16.mxu1 %vm542_vm1, %v3466_v40  ;;  %v3955_v39 = vpack.c.bf16 %v3908_v30, %v3907_v38  ;;  %v3909_v40 = vld [vmem:[#allocation2 + $0xac] sm:$0xff]  ;;  %v3946_v30 = vld [vmem:[#allocation2 + $0x1d4] sm:$0xff] }
 0x3c3   : > { %v3956_v41 = vpack.c.bf16 %v3910_v35, %v3909_v40 }
 0x3c9   : > { %15990 = vmatmul.mubr.msk.bf16.gmra.mrb[148].mxu1 %vm542_vm1, %v3467_v44  ;;  %v3911_v44 = vld [vmem:[#allocation2 + $0xbc] sm:$0xff] }
 0x3ca   : > { %15993 = vmatprep.mubr.msk.bf16.mxu1 %vm542_vm1, %v3468_v45  ;;  %v3957_v23 = vpack.c.bf16 %v3912_v42, %v3911_v44  ;;  %v3913_v45 = vld [vmem:[#allocation2 + $0xcc] sm:$0xff]  ;;  %v4388_v44 = vld [vmem:[#allocation2 + $0x35] sm:$0xff] }
 0x3cb   : > { %v3958_v20 = vpack.c.bf16 %v3914_v8, %v3913_v45  ;;  %v4387_v45 = vld [vmem:[#allocation2 + $0x2d] sm:$0xff] }
 0x3d1   : > { %15994 = vmatmul.mubr.msk.bf16.gmra.mrb[152].mxu1 %vm542_vm1, %v3469_v47  ;;  %v3915_v47 = vld [vmem:[#allocation2 + $0xdc] sm:$0xff] }
 0x3d2   : > { %15997 = vmatprep.mubr.msk.bf16.mxu1 %vm542_vm1, %v3470_v36  ;;  %v3959_v48 = vpack.c.bf16 %v3916_v27, %v3915_v47  ;;  %v3917_v36 = vld [vmem:[#allocation2 + $0xec] sm:$0xff]  ;;  %v4392_v27 = vld [vmem:[#allocation2 + $0x55] sm:$0xff] }
 0x3d3   : > { %v3960_v49 = vpack.c.bf16 %v3918_v46, %v3917_v36  ;;  %v4389_v46 = vld [vmem:[#allocation2 + $0x3d] sm:$0xff] }
 0x3d9   : > { %15998 = vmatmul.mubr.msk.bf16.gmra.mrb[156].mxu1 %vm542_vm1, %v3471_v58  ;;  %v3922_v58 = vld [vmem:[#allocation2 + $0x114] sm:$0xff] }
 0x3da   : > { %16001 = vmatprep.mubr.msk.bf16.mxu1 %vm542_vm1, %v3472_v51  ;;  %v3961_v51 = vpack.c.bf16 %v3920_v50, %v3919_v3  ;;  %v4396_v50 = vld [vmem:[#allocation2 + $0x75] sm:$0xff] }
 0x3e1   : > { %16002 = vmatmul.mubr.msk.bf16.gmra.mrb[160].mxu1 %vm542_vm1, %v3473_v52  ;;  %v3921_v52 = vld [vmem:[#allocation2 + $0x10c] sm:$0xff] }
 0x3e2   : > { %16005 = vmatprep.mubr.msk.bf16.mxu1 %vm542_vm1, %v3474_v53  ;;  %v3962_v53 = vpack.c.bf16 %v3922_v58, %v3921_v52  ;;  %v4393_v58 = vld [vmem:[#allocation2 + $0x5d] sm:$0xff] }
 0x3e9   : > { %16006 = vmatmul.mubr.msk.bf16.gmra.mrb[164].mxu1 %vm542_vm1, %v3475_v54  ;;  %v3924_v54 = vld [vmem:[#allocation2 + $0x124] sm:$0xff] }
 0x3ea   : > { %16009 = vmatprep.mubr.msk.bf16.mxu1 %vm542_vm1, %v3476_v9  ;;  %v3926_v9 = vld [vmem:[#allocation2 + $0x134] sm:$0xff] }
 0x3f1   : > { %16010 = vmatmul.mubr.msk.bf16.gmra.mrb[168].mxu1 %vm542_vm1, %v3477_v21 }
 0x3f2   : > { %16013 = vmatprep.mubr.msk.bf16.mxu1 %vm542_vm1, %v3478_v37  ;;  %v3453_v37 = vld [vmem:[#allocation2 + $0x1c8] sm:$0x3f] }
 0x3f3   : > { %v3481_v55 = vpack.c.bf16 %v3453_v37, %v3453_v37  ;;  %v3932_v37 = vld [vmem:[#allocation2 + $0x164] sm:$0xff] }
 0x3f4   : > { %v15899_v11 = vpop.f32.mrb[188].mxu1 }
 0x3f5   : > { %v19175_v13 = vadd.f32 %v15899_v11, %v19115_v31  ;;  %v2836_v15 = vpop.f32.mrb[189].mxu1  ;;  %v3894_v31 = vld [vmem:[#allocation2 + $0x34] sm:$0xff] }
 0x3f6   : > { %v19178_v17 = vadd.f32 %v2836_v15, %v19118_v5  ;;  %v15900_v18 = vpop.f32.mrb[190].mxu1  ;;  %v3948_v57 = vpack.c.bf16 %v3894_v31, %v3893_v56  ;;  %v3896_v5 = vld [vmem:[#allocation2 + $0x44] sm:$0xff]  ;;  %v3964_v15 = vpack.c.bf16 %v3926_v9, %v3925_v12  ;;  %v3934_v31 = vld [vmem:[#allocation2 + $0x174] sm:$0xff] }
 0x3f7   : > { %v2839_v21 = vpop.f32.mrb[191].mxu1  ;;  %v3949_v60 = vpack.c.bf16 %v3896_v5, %v3895_v59  ;;  %v3930_v18 = vld [vmem:[#allocation2 + $0x154] sm:$0xff]  ;;  %v4397_v9 = vld [vmem:[#allocation2 + $0x7d] sm:$0xff] }
 0x3f8   : > { %v19182_v33 = vadd.f32 %v2839_v21, %v19121_v43  ;;  %v3897_v43 = vld [vmem:[#allocation2 + $0x4c] sm:$0xff]  ;;  %v3927_v21 = vld [vmem:[#allocation2 + $0x13c] sm:$0xff]  ;;  %v3938_v59 = vld [vmem:[#allocation2 + $0x194] sm:$0xff] }
 0x3f9   : > { %16014 = vmatmul.mubr.msk.bf16.gmra.mrb[172].mxu1 %vm542_vm1, %v3479_v32  ;;  %v3950_v62 = vpack.c.bf16 %v3898_v25, %v3897_v43  ;;  %v3965_v32 = vpack.c.bf16 %v3928_v19, %v3927_v21  ;;  %v3936_v25 = vld [vmem:[#allocation2 + $0x184] sm:$0xff]  ;;  %v4404_v19 = vld [vmem:[#allocation2 + $0xb5] sm:$0xff] }
 0x3fa   : > { %16017 = vmatprep.mubr.msk.bf16.mxu1 %vm542_vm1, %v3480_v34  ;;  %v3966_v34 = vpack.c.bf16 %v3930_v18, %v3929_v22  ;;  %v4401_v18 = vld [vmem:[#allocation2 + $0x9d] sm:$0xff] }
 0x401   : > { %16018 = vmatmul.mubr.msk.bf16.gmra.mrb[196].mxu1 %vm542_vm1, %v3481_v55  ;;  %v3931_v55 = vld [vmem:[#allocation2 + $0x15c] sm:$0xff] }
 0x402   : > { %16025 = vmatprep.mubr.msk.bf16.mxu1 %vm542_vm1, %v3948_v57  ;;  %v3967_v56 = vpack.c.bf16 %v3932_v37, %v3931_v55  ;;  %v3933_v57 = vld [vmem:[#allocation2 + $0x16c] sm:$0xff]  ;;  %v4408_v37 = vld [vmem:[#allocation2 + $0xd5] sm:$0xff] }
 0x403   : > { %v3968_v5 = vpack.c.bf16 %v3934_v31, %v3933_v57  ;;  %v4405_v31 = vld [vmem:[#allocation2 + $0xbd] sm:$0xff] }
 0x409   : > { %16026 = vmatmul.mubr.msk.bf16.vlgmr.msra.gmra.mrb[124].mxu1 %vm542_vm1, %v3949_v60  ;;  %v3935_v60 = vld [vmem:[#allocation2 + $0x17c] sm:$0xff] }
 0x40a   : > { %16029 = vmatprep.mubr.msk.bf16.mxu1 %vm542_vm1, %v3950_v62  ;;  %16082 = vmatpush3.bf16.msra.mxu1 %v18432_v6  ;;  %v3923_v6 = vld [vmem:[#allocation2 + $0x11c] sm:$0xff]  ;;  %v3969_v43 = vpack.c.bf16 %v3936_v25, %v3935_v60 }
 0x40b   : > { %16083 = vmatprep.subr.bf16.mxu1 %v18433_v61  ;;  %v3963_v11 = vpack.c.bf16 %v3924_v54, %v3923_v6  ;;  %v4400_v54 = vld [vmem:[#allocation2 + $0x95] sm:$0xff] }
 0x40c   : > { %v4412_v25 = vld [vmem:[#allocation2 + $0xf5] sm:$0xff] }
 0x40e   : > { %16084 = vmatpush3.bf16.msra.mxu1 %v18433_v61  ;;  %v3937_v61 = vld [vmem:[#allocation2 + $0x18c] sm:$0xff] }
 0x40f   : > { %v3970_v62 = vpack.c.bf16 %v3938_v59, %v3937_v61  ;;  %16141 = vmatprep.subr.bf16.mxu1 %v18434_v14  ;;  %v4409_v59 = vld [vmem:[#allocation2 + $0xdd] sm:$0xff] }
 0x411   : > { %16030 = vmatmul.mubr.msk.bf16.gmra.mrb[128].mxu1 %vm542_vm1, %v3951_v4  ;;  %v3971_v4 = vpack.c.bf16 %v3940_v63, %v3939_v2  ;;  %v4416_v63 = vld [vmem:[#allocation2 + $0x115] sm:$0xff] }
 0x412   : > { %16033 = vmatprep.mubr.msk.bf16.mxu1 %vm542_vm1, %v3952_v10  ;;  %v3972_v10 = vpack.c.bf16 %v3942_v0, %v3941_v7  ;;  %v4413_v0 = vld [vmem:[#allocation2 + $0xfd] sm:$0xff] }
 0x419   : > { %16034 = vmatmul.mubr.msk.bf16.gmra.mrb[132].mxu1 %vm542_vm1, %v3953_v26 }
 0x41a   : > { %16037 = vmatprep.mubr.msk.bf16.mxu1 %vm542_vm1, %v3954_v29  ;;  %v3945_v29 = vld [vmem:[#allocation2 + $0x1cc] sm:$0xff] }
 0x41b   : > { %v3974_v8 = vpack.c.bf16 %v3946_v30, %v3945_v29  ;;  %v4422_v30 = vld [vmem:[#allocation2 + $0x145] sm:$0xff] }
 0x421   : > { %16038 = vmatmul.mubr.msk.bf16.gmra.mrb[136].mxu1 %vm542_vm1, %v3955_v39  ;;  %v3943_v39 = vld [vmem:[#allocation2 + $0x1bc] sm:$0xff] }
 0x422   : > { %16041 = vmatprep.mubr.msk.bf16.mxu1 %vm542_vm1, %v3956_v41  ;;  %v3973_v41 = vpack.c.bf16 %v3944_v24, %v3943_v39  ;;  %v4421_v39 = vld [vmem:[#allocation2 + $0x13d] sm:$0xff] }
 0x429   : > { %16042 = vmatmul.mubr.msk.bf16.gmra.mrb[140].mxu1 %vm542_vm1, %v3957_v23 }
 0x42a   : > { %16045 = vmatprep.mubr.msk.bf16.mxu1 %vm542_vm1, %v3958_v20  ;;  %v4442_v20 = vpack.c.bf16 %v4388_v44, %v4387_v45  ;;  %v4428_v44 = vld [vmem:[#allocation2 + $0x175] sm:$0xff] }
 0x431   : > { %16046 = vmatmul.mubr.msk.bf16.gmra.mrb[144].mxu1 %vm542_vm1, %v3959_v48  ;;  %v18435_v48 = vld [vmem:[%s22564_s2 + $0x88] sm:$0xff]  }
 0x432   : > { %16049 = vmatprep.mubr.msk.bf16.mxu1 %vm542_vm1, %v3960_v49  ;;  %v4394_v49 = vld [vmem:[#allocation2 + $0x65] sm:$0xff] }
 0x433   : > { %v4445_v3 = vpack.c.bf16 %v4394_v49, %v4393_v58  ;;  %v4434_v49 = vld [vmem:[#allocation2 + $0x1a5] sm:$0xff]  ;;  %v4433_v58 = vld [vmem:[#allocation2 + $0x19d] sm:$0xff] }
 0x439   : > { %16050 = vmatmul.mubr.msk.bf16.gmra.mrb[148].mxu1 %vm542_vm1, %v3961_v51  ;;  %v4395_v51 = vld [vmem:[#allocation2 + $0x6d] sm:$0xff] }
 0x43a   : > { %16053 = vmatprep.mubr.msk.bf16.mxu1 %vm542_vm1, %v3962_v53  ;;  %v4446_v52 = vpack.c.bf16 %v4396_v50, %v4395_v51  ;;  %v4398_v53 = vld [vmem:[#allocation2 + $0x85] sm:$0xff]  ;;  %v4436_v50 = vld [vmem:[#allocation2 + $0x1b5] sm:$0xff]  ;;  %v4435_v51 = vld [vmem:[#allocation2 + $0x1ad] sm:$0xff] }
 0x43b   : > { %v4447_v6 = vpack.c.bf16 %v4398_v53, %v4397_v9 }
 0x441   : > { %16054 = vmatmul.mubr.msk.bf16.gmra.mrb[152].mxu1 %vm542_vm1, %v3963_v11  ;;  %v4399_v11 = vld [vmem:[#allocation2 + $0x8d] sm:$0xff] }
 0x442   : > { %16057 = vmatprep.mubr.msk.bf16.mxu1 %vm542_vm1, %v3964_v15  ;;  %v4448_v12 = vpack.c.bf16 %v4400_v54, %v4399_v11  ;;  %v4402_v15 = vld [vmem:[#allocation2 + $0xa5] sm:$0xff]  ;;  %v4439_v11 = vld [vmem:[#allocation2 + $0x1cd] sm:$0xff] }
 0x443   : > { %v4449_v21 = vpack.c.bf16 %v4402_v15, %v4401_v18  ;;  %v4438_v54 = vld [vmem:[#allocation2 + $0x1c5] sm:$0xff]  ;;  %v4437_v18 = vld [vmem:[#allocation2 + $0x1bd] sm:$0xff] }
 0x449   : > { %16058 = vmatmul.mubr.msk.bf16.gmra.mrb[156].mxu1 %vm542_vm1, %v3965_v32  ;;  %v4403_v32 = vld [vmem:[#allocation2 + $0xad] sm:$0xff] }
 0x44a   : > { %16061 = vmatprep.mubr.msk.bf16.mxu1 %vm542_vm1, %v3966_v34  ;;  %v4450_v22 = vpack.c.bf16 %v4404_v19, %v4403_v32  ;;  %v4406_v34 = vld [vmem:[#allocation2 + $0xc5] sm:$0xff]  ;;  %v4467_v32 = vpack.c.bf16 %v4438_v54, %v4437_v18  ;;  %v4913_v54 = vld [vmem:[#allocation2 + $0x12e] sm:$0xff] }
 0x44b   : > { %v4451_v55 = vpack.c.bf16 %v4406_v34, %v4405_v31 }
 0x451   : > { %16062 = vmatmul.mubr.msk.bf16.gmra.mrb[160].mxu1 %vm542_vm1, %v3967_v56  ;;  %v4407_v56 = vld [vmem:[#allocation2 + $0xcd] sm:$0xff] }
 0x452   : > { %16065 = vmatprep.mubr.msk.bf16.mxu1 %vm542_vm1, %v3968_v5  ;;  %v4452_v57 = vpack.c.bf16 %v4408_v37, %v4407_v56  ;;  %v4410_v5 = vld [vmem:[#allocation2 + $0xe5] sm:$0xff]  ;;  %v4882_v37 = vld [vmem:[#allocation2 + $0x36] sm:$0xff] }
 0x453   : > { %v4453_v60 = vpack.c.bf16 %v4410_v5, %v4409_v59  ;;  %v4883_v5 = vld [vmem:[#allocation2 + $0x3e] sm:$0xff] }
 0x459   : > { %16066 = vmatmul.mubr.msk.bf16.gmra.mrb[164].mxu1 %vm542_vm1, %v3969_v43  ;;  %v4411_v43 = vld [vmem:[#allocation2 + $0xed] sm:$0xff] }
 0x45a   : > { %16069 = vmatprep.mubr.msk.bf16.mxu1 %vm542_vm1, %v3970_v62  ;;  %v4454_v61 = vpack.c.bf16 %v4412_v25, %v4411_v43  ;;  %v4414_v62 = vld [vmem:[#allocation2 + $0x105] sm:$0xff]  ;;  %v4890_v43 = vld [vmem:[#allocation2 + $0x76] sm:$0xff] }
 0x45b   : > { %v4455_v2 = vpack.c.bf16 %v4414_v62, %v4413_v0 }
 0x461   : > { %16070 = vmatmul.mubr.msk.bf16.gmra.mrb[168].mxu1 %vm542_vm1, %v3971_v4  ;;  %v4415_v4 = vld [vmem:[#allocation2 + $0x10d] sm:$0xff] }
 0x462   : > { %16073 = vmatprep.mubr.msk.bf16.mxu1 %vm542_vm1, %v3972_v10  ;;  %v4456_v7 = vpack.c.bf16 %v4416_v63, %v4415_v4  ;;  %v4418_v10 = vld [vmem:[#allocation2 + $0x125] sm:$0xff]  ;;  %v4889_v63 = vld [vmem:[#allocation2 + $0x6e] sm:$0xff]  ;;  %v4894_v4 = vld [vmem:[#allocation2 + $0x96] sm:$0xff] }
 0x463   : > { %v4940_v0 = vpack.c.bf16 %v4890_v43, %v4889_v63  ;;  %v4930_v43 = vld [vmem:[#allocation2 + $0x1b6] sm:$0xff]  ;;  %v4929_v63 = vld [vmem:[#allocation2 + $0x1ae] sm:$0xff] }
 0x464   : > { %v15959_v16 = vpop.f32.mrb[192].mxu1 }
 0x465   : > { %v19219_v26 = vadd.f32 %v15959_v16, %v19175_v13  ;;  %v3330_v28 = vpop.f32.mrb[193].mxu1  ;;  %v3947_v13 = vld [vmem:[#allocation2 + $0x1dc] sm:$0x3f] }
 0x466   : > { %v19222_v35 = vadd.f32 %v3330_v28, %v19178_v17  ;;  %v15960_v38 = vpop.f32.mrb[194].mxu1  ;;  %v3975_v23 = vpack.c.bf16 %v3947_v13, %v3947_v13  ;;  %v4390_v17 = vld [vmem:[#allocation2 + $0x45] sm:$0xff]  ;;  %v4417_v16 = vld [vmem:[#allocation2 + $0x11d] sm:$0xff]  ;;  %v4419_v28 = vld [vmem:[#allocation2 + $0x12d] sm:$0xff] }
 0x467   : > { %v3333_v40 = vpop.f32.mrb[195].mxu1  ;;  %v4443_v47 = vpack.c.bf16 %v4390_v17, %v4389_v46  ;;  %v4457_v24 = vpack.c.bf16 %v4418_v10, %v4417_v16  ;;  %v4424_v38 = vld [vmem:[#allocation2 + $0x155] sm:$0xff]  ;;  %v4426_v13 = vld [vmem:[#allocation2 + $0x165] sm:$0xff] }
 0x468   : > { %v19225_v42 = vadd.f32 %v3333_v40, %v19182_v33  ;;  %v4391_v33 = vld [vmem:[#allocation2 + $0x4d] sm:$0xff]  ;;  %v4459_v40 = vpack.c.bf16 %v4422_v30, %v4421_v39  ;;  %v4432_v46 = vld [vmem:[#allocation2 + $0x195] sm:$0xff] }
 0x469   : > { %16074 = vmatmul.mubr.msk.bf16.gmra.mrb[172].mxu1 %vm542_vm1, %v3973_v41  ;;  %v4444_v36 = vpack.c.bf16 %v4392_v27, %v4391_v33  ;;  %v4423_v41 = vld [vmem:[#allocation2 + $0x14d] sm:$0xff]  ;;  %v4430_v27 = vld [vmem:[#allocation2 + $0x185] sm:$0xff] }
 0x46a   : > { %16077 = vmatprep.mubr.msk.bf16.mxu1 %vm542_vm1, %v3974_v8  ;;  %v4460_v8 = vpack.c.bf16 %v4424_v38, %v4423_v41  ;;  %v4897_v38 = vld [vmem:[#allocation2 + $0xae] sm:$0xff]  ;;  %v4902_v41 = vld [vmem:[#allocation2 + $0xd6] sm:$0xff] }
 0x471   : > { %16078 = vmatmul.mubr.msk.bf16.gmra.mrb[200].mxu1 %vm542_vm1, %v3975_v23  ;;  %v4425_v23 = vld [vmem:[#allocation2 + $0x15d] sm:$0xff] }
 0x472   : > { %16085 = vmatprep.mubr.msk.bf16.mxu1 %vm542_vm1, %v4442_v20  ;;  %v4461_v45 = vpack.c.bf16 %v4426_v13, %v4425_v23  ;;  %v4427_v20 = vld [vmem:[#allocation2 + $0x16d] sm:$0xff] }
 0x473   : > { %v4462_v17 = vpack.c.bf16 %v4428_v44, %v4427_v20  ;;  %v4901_v44 = vld [vmem:[#allocation2 + $0xce] sm:$0xff]  ;;  %v4906_v20 = vld [vmem:[#allocation2 + $0xf6] sm:$0xff] }
 0x474   : > { %v4946_v23 = vpack.c.bf16 %v4902_v41, %v4901_v44  ;;  %v4935_v41 = vld [vmem:[#allocation2 + $0x1de] sm:$0x3f] }
 0x479   : > { %16086 = vmatmul.mubr.msk.bf16.vlgmr.msra.gmra.mrb[124].mxu1 %vm542_vm1, %v4443_v47  ;;  %v4429_v47 = vld [vmem:[#allocation2 + $0x17d] sm:$0xff] }
 0x47a   : > { %16089 = vmatprep.mubr.msk.bf16.mxu1 %vm542_vm1, %v4444_v36  ;;  %16142 = vmatpush3.bf16.msra.mxu1 %v18434_v14  ;;  %v4420_v14 = vld [vmem:[#allocation2 + $0x135] sm:$0xff]  ;;  %v4463_v33 = vpack.c.bf16 %v4430_v27, %v4429_v47 }
 0x47b   : > { %16143 = vmatprep.subr.bf16.mxu1 %v18435_v48  ;;  %v4458_v29 = vpack.c.bf16 %v4420_v14, %v4419_v28  ;;  %v4893_v14 = vld [vmem:[#allocation2 + $0x8e] sm:$0xff]  ;;  %v4898_v28 = vld [vmem:[#allocation2 + $0xb6] sm:$0xff] }
 0x47c   : > { %v4942_v16 = vpack.c.bf16 %v4894_v4, %v4893_v14  ;;  %v4944_v39 = vpack.c.bf16 %v4898_v28, %v4897_v38  ;;  %v4932_v4 = vld [vmem:[#allocation2 + $0x1c6] sm:$0xff]  ;;  %v4933_v14 = vld [vmem:[#allocation2 + $0x1ce] sm:$0xff] }
 0x47e   : > { %16144 = vmatpush3.bf16.msra.mxu1 %v18435_v48  ;;  %v4431_v48 = vld [vmem:[#allocation2 + $0x18d] sm:$0xff] }
 0x47f   : > { %17601 = vmatprep.subr.bf16.mxu1 %v22571_v1  ;;  %v4464_v36 = vpack.c.bf16 %v4432_v46, %v4431_v48  ;;  %v4905_v46 = vld [vmem:[#allocation2 + $0xee] sm:$0xff]  ;;  %v4910_v48 = vld [vmem:[#allocation2 + $0x116] sm:$0xff] }
 0x480   : > { %v4948_v47 = vpack.c.bf16 %v4906_v20, %v4905_v46 }
 0x481   : > { %16090 = vmatmul.mubr.msk.bf16.gmra.mrb[128].mxu1 %vm542_vm1, %v4445_v3  ;;  %v4465_v3 = vpack.c.bf16 %v4434_v49, %v4433_v58 }
 0x482   : > { %16093 = vmatprep.mubr.msk.bf16.mxu1 %vm542_vm1, %v4446_v52  ;;  %v4466_v52 = vpack.c.bf16 %v4436_v50, %v4435_v51  ;;  %v4909_v50 = vld [vmem:[#allocation2 + $0x10e] sm:$0xff]  ;;  %v4914_v51 = vld [vmem:[#allocation2 + $0x136] sm:$0xff] }
 0x483   : > { %v4950_v58 = vpack.c.bf16 %v4910_v48, %v4909_v50 }
 0x489   : > { %16094 = vmatmul.mubr.msk.bf16.gmra.mrb[132].mxu1 %vm542_vm1, %v4447_v6 }
 0x48a   : > { %16097 = vmatprep.mubr.msk.bf16.mxu1 %vm542_vm1, %v4448_v12  ;;  %v4440_v12 = vld [vmem:[#allocation2 + $0x1d5] sm:$0xff] }
 0x48b   : > { %v4468_v34 = vpack.c.bf16 %v4440_v12, %v4439_v11  ;;  %v4916_v11 = vld [vmem:[#allocation2 + $0x146] sm:$0xff]  ;;  %v4918_v12 = vld [vmem:[#allocation2 + $0x156] sm:$0xff] }
 0x491   : > { %16098 = vmatmul.mubr.msk.bf16.gmra.mrb[136].mxu1 %vm542_vm1, %v4449_v21 }
 0x492   : > { %16101 = vmatprep.mubr.msk.bf16.mxu1 %vm542_vm1, %v4450_v22 }
 0x499   : > { %16102 = vmatmul.mubr.msk.bf16.gmra.mrb[140].mxu1 %vm542_vm1, %v4451_v55  ;;  %v4881_v55 = vld [vmem:[#allocation2 + $0x2e] sm:$0xff] }
 0x49a   : > { %16105 = vmatprep.mubr.msk.bf16.mxu1 %vm542_vm1, %v4452_v57  ;;  %v4936_v56 = vpack.c.bf16 %v4882_v37, %v4881_v55  ;;  %v4886_v57 = vld [vmem:[#allocation2 + $0x56] sm:$0xff]  ;;  %v4919_v37 = vld [vmem:[#allocation2 + $0x15e] sm:$0xff]  ;;  %v4921_v55 = vld [vmem:[#allocation2 + $0x16e] sm:$0xff] }
 0x4a1   : > { %16106 = vmatmul.mubr.msk.bf16.gmra.mrb[144].mxu1 %vm542_vm1, %v4453_v60  ;;  %v4888_v60 = vld [vmem:[#allocation2 + $0x66] sm:$0xff] }
 0x4a2   : > { %16109 = vmatprep.mubr.msk.bf16.mxu1 %vm542_vm1, %v4454_v61  ;;  %v4887_v61 = vld [vmem:[#allocation2 + $0x5e] sm:$0xff] }
 0x4a3   : > { %v4939_v62 = vpack.c.bf16 %v4888_v60, %v4887_v61  ;;  %v4928_v60 = vld [vmem:[#allocation2 + $0x1a6] sm:$0xff]  ;;  %v4927_v61 = vld [vmem:[#allocation2 + $0x19e] sm:$0xff] }
 0x4a9   : > { %16110 = vmatmul.mubr.msk.bf16.gmra.mrb[148].mxu1 %vm542_vm1, %v4455_v2  ;;  %v4892_v2 = vld [vmem:[#allocation2 + $0x86] sm:$0xff] }
 0x4aa   : > { %16113 = vmatprep.mubr.msk.bf16.mxu1 %vm542_vm1, %v4456_v7  ;;  %v4891_v7 = vld [vmem:[#allocation2 + $0x7e] sm:$0xff] }
 0x4ab   : > { %v4941_v10 = vpack.c.bf16 %v4892_v2, %v4891_v7 }
 0x4b1   : > { %16114 = vmatmul.mubr.msk.bf16.gmra.mrb[152].mxu1 %vm542_vm1, %v4457_v24  ;;  %v4896_v24 = vld [vmem:[#allocation2 + $0xa6] sm:$0xff] }
 0x4b2   : > { %16117 = vmatprep.mubr.msk.bf16.mxu1 %vm542_vm1, %v4458_v29  ;;  %v4895_v29 = vld [vmem:[#allocation2 + $0x9e] sm:$0xff] }
 0x4b3   : > { %v4943_v30 = vpack.c.bf16 %v4896_v24, %v4895_v29  ;;  %v4931_v29 = vld [vmem:[#allocation2 + $0x1be] sm:$0xff] }
 0x4b4   : > { %v4961_v38 = vpack.c.bf16 %v4932_v4, %v4931_v29 }
 0x4b9   : > { %16118 = vmatmul.mubr.msk.bf16.gmra.mrb[156].mxu1 %vm542_vm1, %v4459_v40  ;;  %v4900_v40 = vld [vmem:[#allocation2 + $0xc6] sm:$0xff] }
 0x4ba   : > { %16121 = vmatprep.mubr.msk.bf16.mxu1 %vm542_vm1, %v4460_v8  ;;  %v4899_v8 = vld [vmem:[#allocation2 + $0xbe] sm:$0xff] }
 0x4bb   : > { %v4945_v13 = vpack.c.bf16 %v4900_v40, %v4899_v8 }
 0x4c1   : > { %16122 = vmatmul.mubr.msk.bf16.gmra.mrb[160].mxu1 %vm542_vm1, %v4461_v45  ;;  %v4904_v45 = vld [vmem:[#allocation2 + $0xe6] sm:$0xff] }
 0x4c2   : > { %16125 = vmatprep.mubr.msk.bf16.mxu1 %vm542_vm1, %v4462_v17  ;;  %v4903_v17 = vld [vmem:[#allocation2 + $0xde] sm:$0xff] }
 0x4c3   : > { %v4947_v27 = vpack.c.bf16 %v4904_v45, %v4903_v17 }
 0x4c9   : > { %16126 = vmatmul.mubr.msk.bf16.gmra.mrb[164].mxu1 %vm542_vm1, %v4463_v33  ;;  %v4908_v33 = vld [vmem:[#allocation2 + $0x106] sm:$0xff] }
 0x4ca   : > { %16129 = vmatprep.mubr.msk.bf16.mxu1 %vm542_vm1, %v4464_v36  ;;  %v4907_v36 = vld [vmem:[#allocation2 + $0xfe] sm:$0xff] }
 0x4cb   : > { %v4949_v49 = vpack.c.bf16 %v4908_v33, %v4907_v36 }
 0x4d1   : > { %16130 = vmatmul.mubr.msk.bf16.gmra.mrb[168].mxu1 %vm542_vm1, %v4465_v3  ;;  %v4912_v3 = vld [vmem:[#allocation2 + $0x126] sm:$0xff] }
 0x4d2   : > { %16133 = vmatprep.mubr.msk.bf16.mxu1 %vm542_vm1, %v4466_v52  ;;  %v4911_v52 = vld [vmem:[#allocation2 + $0x11e] sm:$0xff] }
 0x4d4   : > { %v16019_v53 = vpop.f32.mrb[196].mxu1 }
 0x4d5   : > { %v19260_v9 = vadd.f32 %v16019_v53, %v19219_v26  ;;  %v3824_v6 = vpop.f32.mrb[197].mxu1  ;;  %v4441_v26 = vld [vmem:[#allocation2 + $0x1dd] sm:$0x3f]  ;;  %v4951_v53 = vpack.c.bf16 %v4912_v3, %v4911_v52 }
 0x4d6   : > { %v19263_v15 = vadd.f32 %v3824_v6, %v19222_v35  ;;  %v16020_v19 = vpop.f32.mrb[198].mxu1  ;;  %v4469_v31 = vpack.c.bf16 %v4441_v26, %v4441_v26  ;;  %v4884_v35 = vld [vmem:[#allocation2 + $0x46] sm:$0xff]  ;;  %v4952_v6 = vpack.c.bf16 %v4914_v51, %v4913_v54  ;;  %v4922_v26 = vld [vmem:[#allocation2 + $0x176] sm:$0xff] }
 0x4d7   : > { %v3827_v21 = vpop.f32.mrb[199].mxu1  ;;  %v4937_v25 = vpack.c.bf16 %v4884_v35, %v4883_v5  ;;  %v4915_v19 = vld [vmem:[#allocation2 + $0x13e] sm:$0xff]  ;;  %v4924_v35 = vld [vmem:[#allocation2 + $0x186] sm:$0xff] }
 0x4d8   : > { %v19266_v22 = vadd.f32 %v3827_v21, %v19225_v42  ;;  %v4885_v42 = vld [vmem:[#allocation2 + $0x4e] sm:$0xff]  ;;  %v4953_v18 = vpack.c.bf16 %v4916_v11, %v4915_v19  ;;  %v4923_v5 = vld [vmem:[#allocation2 + $0x17e] sm:$0xff] }
 0x4d9   : > { %16134 = vmatmul.mubr.msk.bf16.gmra.mrb[172].mxu1 %vm542_vm1, %v4467_v32  ;;  %v4938_v59 = vpack.c.bf16 %v4886_v57, %v4885_v42  ;;  %v4917_v21 = vld [vmem:[#allocation2 + $0x14e] sm:$0xff]  ;;  %v4926_v57 = vld [vmem:[#allocation2 + $0x196] sm:$0xff] }
 0x4da   : > { %16137 = vmatprep.mubr.msk.bf16.mxu1 %vm542_vm1, %v4468_v34  ;;  %v4954_v32 = vpack.c.bf16 %v4918_v12, %v4917_v21  ;;  %v4920_v34 = vld [vmem:[#allocation2 + $0x166] sm:$0xff]  ;;  %v4925_v42 = vld [vmem:[#allocation2 + $0x18e] sm:$0xff] }
 0x4e1   : > { %16138 = vmatmul.mubr.msk.bf16.gmra.mrb[204].mxu1 %vm542_vm1, %v4469_v31  ;;  %v4955_v31 = vpack.c.bf16 %v4920_v34, %v4919_v37 }
 0x4e2   : > { %16145 = vmatprep.mubr.msk.bf16.mxu1 %vm542_vm1, %v4936_v56  ;;  %v4956_v56 = vpack.c.bf16 %v4922_v26, %v4921_v55 }
 0x4e9   : > { %16146 = vmatmul.mubr.msk.bf16.vlgmr.msra.gmra.mrb[124].mxu1 %vm542_vm1, %v4937_v25  ;;  %v4957_v25 = vpack.c.bf16 %v4924_v35, %v4923_v5 }
 0x4ea   : > { %16149 = vmatprep.mubr.msk.bf16.mxu1 %vm542_vm1, %v4938_v59  ;;  %v4958_v59 = vpack.c.bf16 %v4926_v57, %v4925_v42 }
 0x4f1   : > { %16150 = vmatmul.mubr.msk.bf16.gmra.mrb[128].mxu1 %vm542_vm1, %v4939_v62  ;;  %v4959_v62 = vpack.c.bf16 %v4928_v60, %v4927_v61 }
 0x4f2   : > { %16153 = vmatprep.mubr.msk.bf16.mxu1 %vm542_vm1, %v4940_v0  ;;  %v4960_v0 = vpack.c.bf16 %v4930_v43, %v4929_v63 }
 0x4f9   : > { %16154 = vmatmul.mubr.msk.bf16.gmra.mrb[132].mxu1 %vm542_vm1, %v4941_v10 }
 0x4fa   : > { %16157 = vmatprep.mubr.msk.bf16.mxu1 %vm542_vm1, %v4942_v16  ;;  %v4934_v16 = vld [vmem:[#allocation2 + $0x1d6] sm:$0xff] }
 0x4fb   : > { %v4962_v40 = vpack.c.bf16 %v4934_v16, %v4933_v14 }
 0x501   : > { %16158 = vmatmul.mubr.msk.bf16.gmra.mrb[136].mxu1 %vm542_vm1, %v4943_v30 }
 0x502   : > { %16161 = vmatprep.mubr.msk.bf16.mxu1 %vm542_vm1, %v4944_v39 }
 0x509   : > { %16162 = vmatmul.mubr.msk.bf16.gmra.mrb[140].mxu1 %vm542_vm1, %v4945_v13 }
 0x50a   : > { %16165 = vmatprep.mubr.msk.bf16.mxu1 %vm542_vm1, %v4946_v23 }
 0x511   : > { %16166 = vmatmul.mubr.msk.bf16.gmra.mrb[144].mxu1 %vm542_vm1, %v4947_v27  ;;  %v19323_v27 = vld [vmem:[%s22565_s3 + $0x1] ss:$0 sm:$0xff] }
 0x512   : > { %16169 = vmatprep.mubr.msk.bf16.mxu1 %vm542_vm1, %v4948_v47 }
 0x519   : > { %16170 = vmatmul.mubr.msk.bf16.gmra.mrb[148].mxu1 %vm542_vm1, %v4949_v49 }
 0x51a   : > { %16173 = vmatprep.mubr.msk.bf16.mxu1 %vm542_vm1, %v4950_v58 }
 0x521   : > { %16174 = vmatmul.mubr.msk.bf16.gmra.mrb[152].mxu1 %vm542_vm1, %v4951_v53 }
 0x522   : > { %16177 = vmatprep.mubr.msk.bf16.mxu1 %vm542_vm1, %v4952_v6 }
 0x529   : > { %16178 = vmatmul.mubr.msk.bf16.gmra.mrb[156].mxu1 %vm542_vm1, %v4953_v18 }
 0x52a   : > { %16181 = vmatprep.mubr.msk.bf16.mxu1 %vm542_vm1, %v4954_v32 }
 0x531   : > { %16182 = vmatmul.mubr.msk.bf16.gmra.mrb[160].mxu1 %vm542_vm1, %v4955_v31 }
 0x532   : > { %16185 = vmatprep.mubr.msk.bf16.mxu1 %vm542_vm1, %v4956_v56 }
 0x539   : > { %16186 = vmatmul.mubr.msk.bf16.gmra.mrb[164].mxu1 %vm542_vm1, %v4957_v25 }
 0x53a   : > { %16189 = vmatprep.mubr.msk.bf16.mxu1 %vm542_vm1, %v4958_v59 }
 0x541   : > { %16190 = vmatmul.mubr.msk.bf16.gmra.mrb[168].mxu1 %vm542_vm1, %v4959_v62 }
 0x542   : > { %16193 = vmatprep.mubr.msk.bf16.mxu1 %vm542_vm1, %v4960_v0 }
 0x544   : > { %v16079_v2 = vpop.f32.mrb[200].mxu1 }
 0x545   : > { %v4386_v7 = vadd.f32 %v16079_v2, %v19260_v9  ;;  %v4318_v10 = vpop.f32.mrb[201].mxu1  ;;  %v18436_v9 = vld [vmem:[%s22564_s2 + $0xa0] sm:$0xff]  }
 0x546   : > { %v4384_v24 = vadd.f32 %v4318_v10, %v19263_v15  ;;  %v16080_v28 = vpop.f32.mrb[202].mxu1  ;;  %16202 = vmatpush3.bf16.msra.mxu0 %v18436_v9  ;;  %17603 = vmatpush3.bf16.msra.mxu1 %v18436_v9  ;;  %v4963_v15 = vpack.c.bf16 %v4935_v41, %v4935_v41 }
 0x547   : > { %v4321_v30 = vpop.f32.mrb[203].mxu1  ;;  %16203 = vmatprep.subr.bf16.mxu0 %v22571_v1  ;;  %17602 = vmatprep.subr.bf16.mxu1 %v22571_v1 }
 0x548   : > { %v4385_v39 = vadd.f32 %v4321_v30, %v19266_v22  ;;  %v18437_v22 = vld [vmem:[%s22564_s2 + $0xa8] sm:$0xff]  }
 0x549   : > { %16194 = vmatmul.mubr.msk.bf16.gmra.mrb[172].mxu1 %vm542_vm1, %v4961_v38 }
 0x54a   : > { %16197 = vmatprep.mubr.msk.bf16.mxu1 %vm542_vm1, %v4962_v40  ;;  %16204 = vmatpush3.bf16.msra.mxu0 %v18437_v22 }
 0x54b   : > { %17604 = vmatpush3.bf16.msra.mxu1 %v18437_v22  ;;  %16305 = vmatprep.subr.bf16.mxu0 %v22571_v1 }
 0x54c   : > { %16617 = vmatprep.subr.bf16.mxu1 %v22571_v1 }
 0x551   : > { %16198 = vmatmul.mubr.msk.bf16.gmra.mrb[208].mxu1 %vm542_vm1, %v4963_v15 }
 0x552   : > { %16289 = vmatprep.mubr.msk.bf16.mxu1 %vm18544_vm0, %v22571_v1 }
 0x5b4   : > { %v16139_v8 = vpop.f32.mrb[204].mxu1 }
 0x5b5   : > { %v19314_v13 = vadd.f32 %v16139_v8, %v4386_v7  ;;  %v4812_v44 = vpop.f32.mrb[205].mxu1 }
 0x5b6   : > { %v19316_v23 = vadd.f32 %v4812_v44, %v4384_v24  ;;  %v16140_v45 = vpop.f32.mrb[206].mxu1 }
 0x5b7   : > { %v4815_v20 = vpop.f32.mrb[207].mxu1 }
 0x5b8   : > { %v19318_v17 = vadd.f32 %v4815_v20, %v4385_v39 }
 0x5bc   : > { %v16147_v46 = vpop.f32.mrb[124].mxu1 }
 0x5bd   : > { %v5382_v47 = vadd.f32 %v16147_v46, %v19323_v27  ;;  %v5098_v33 = vpop.f32.mrb[125].mxu1 }
 0x5be   : > { %v5380_v48 = vadd.f32 %v19323_v27, %v5098_v33  ;;  %v16148_v36 = vpop.f32.mrb[126].mxu1 }
 0x5bf   : > { %v5437_v49 = vmax.f32 %v5382_v47, 0.0  ;;  %v5383_v50 = vadd.f32 %v16148_v36, %v19323_v27  ;;  %v5101_v58 = vpop.f32.mrb[127].mxu1 }
 0x5c0   : > { %v5435_v3 = vmax.f32 %v5380_v48, 0.0  ;;  %v5381_v51 = vadd.f32 %v19323_v27, %v5101_v58 }
 0x5c1   : > { %5492 = vst.msk [vmem:[#allocation3 + $0x10] sm:$0xff] %vm542_vm1, %v5437_v49  ;;  %v5438_v52 = vmax.f32 %v5383_v50, 0.0 }
 0x5c2   : > { %5490 = vst.msk [vmem:[#allocation3] sm:$0xff] %vm542_vm1, %v5435_v3  ;;  %v5436_v53 = vmax.f32 %v5381_v51, 0.0 }
 0x5c3   : > { %5493 = vst.msk [vmem:[#allocation3 + $0x18] sm:$0xff] %vm542_vm1, %v5438_v52 }
 0x5c4   : > { %5491 = vst.msk [vmem:[#allocation3 + $0x8] sm:$0xff] %vm542_vm1, %v5436_v53  ;;  %v16151_v54 = vpop.f32.mrb[128].mxu1 }
 0x5c5   : > { %v5386_v6 = vadd.f32 %v16151_v54, %v19323_v27  ;;  %v5114_v11 = vpop.f32.mrb[129].mxu1 }
 0x5c6   : > { %v5384_v12 = vadd.f32 %v19323_v27, %v5114_v11  ;;  %v16152_v19 = vpop.f32.mrb[130].mxu1 }
 0x5c7   : > { %v5441_v18 = vmax.f32 %v5386_v6, 0.0  ;;  %v5387_v21 = vadd.f32 %v16152_v19, %v19323_v27  ;;  %v5117_v32 = vpop.f32.mrb[131].mxu1 }
 0x5c8   : > { %v5439_v34 = vmax.f32 %v5384_v12, 0.0  ;;  %v5385_v26 = vadd.f32 %v19323_v27, %v5117_v32 }
 0x5c9   : > { %5496 = vst.msk [vmem:[#allocation3 + $0x30] sm:$0xff] %vm542_vm1, %v5441_v18  ;;  %v5442_v37 = vmax.f32 %v5387_v21, 0.0 }
 0x5ca   : > { %5494 = vst.msk [vmem:[#allocation3 + $0x20] sm:$0xff] %vm542_vm1, %v5439_v34  ;;  %v5440_v31 = vmax.f32 %v5385_v26, 0.0  ;;  %v5626_v7 = vld [vmem:[#allocation3 + $0x11] sm:$0xff] }
 0x5cb   : > { %5497 = vst.msk [vmem:[#allocation3 + $0x38] sm:$0xff] %vm542_vm1, %v5442_v37  ;;  %v5624_v55 = vld [vmem:[#allocation3 + $0x1] sm:$0xff]  ;;  %v5625_v56 = vld [vmem:[#allocation3 + $0x9] sm:$0xff] }
 0x5cc   : > { %5495 = vst.msk [vmem:[#allocation3 + $0x28] sm:$0xff] %vm542_vm1, %v5440_v31  ;;  %v16155_v35 = vpop.f32.mrb[132].mxu1  ;;  %v5673_v57 = vpack.c.bf16 %v5625_v56, %v5624_v55 }
 0x5cd   : > { %v5390_v5 = vadd.f32 %v16155_v35, %v19323_v27  ;;  %v5130_v25 = vpop.f32.mrb[133].mxu1 }
 0x5ce   : > { %v5388_v42 = vadd.f32 %v19323_v27, %v5130_v25  ;;  %v16156_v59 = vpop.f32.mrb[134].mxu1  ;;  %16206 = vmatmul.mubr.msk.bf16.vlgmr.msra.gmra.mrb[0].mxu0 %vm542_vm1, %v5673_v57 }
 0x5cf   : > { %v5445_v60 = vmax.f32 %v5390_v5, 0.0  ;;  %v5391_v43 = vadd.f32 %v16156_v59, %v19323_v27  ;;  %v5133_v61 = vpop.f32.mrb[135].mxu1  ;;  %16209 = vmatprep.mubr.msk.bf16.mxu0 %vm18544_vm0, %v22571_v1 }
 0x5d0   : > { %v5443_v62 = vmax.f32 %v5388_v42, 0.0  ;;  %v5389_v63 = vadd.f32 %v19323_v27, %v5133_v61 }
 0x5d1   : > { %5500 = vst.msk [vmem:[#allocation3 + $0x50] sm:$0xff] %vm542_vm1, %v5445_v60  ;;  %v5446_v0 = vmax.f32 %v5391_v43, 0.0  ;;  %v5627_v2 = vld [vmem:[#allocation3 + $0x19] sm:$0xff]  ;;  %v18440_v43 = vld [vmem:[%s22564_s2 + $0x90] sm:$0xff]  }
 0x5d2   : > { %5498 = vst.msk [vmem:[#allocation3 + $0x40] sm:$0xff] %vm542_vm1, %v5443_v62  ;;  %v5444_v4 = vmax.f32 %v5389_v63, 0.0  ;;  %v5674_v14 = vpack.c.bf16 %v5627_v2, %v5626_v7  ;;  %v5630_v53 = vld [vmem:[#allocation3 + $0x31] sm:$0xff]  ;;  %16306 = vmatpush3.bf16.msra.mxu0 %v18440_v43 }
 0x5d3   : > { %5501 = vst.msk [vmem:[#allocation3 + $0x58] sm:$0xff] %vm542_vm1, %v5446_v0  ;;  %v5628_v15 = vld [vmem:[#allocation3 + $0x21] sm:$0xff]  ;;  %v5629_v22 = vld [vmem:[#allocation3 + $0x29] sm:$0xff]  ;;  %16307 = vmatprep.subr.bf16.mxu0 %v22571_v1 }
 0x5d4   : > { %5499 = vst.msk [vmem:[#allocation3 + $0x48] sm:$0xff] %vm542_vm1, %v5444_v4  ;;  %v16159_v10 = vpop.f32.mrb[136].mxu1  ;;  %v5675_v45 = vpack.c.bf16 %v5629_v22, %v5628_v15  ;;  %v18441_v4 = vld [vmem:[%s22564_s2 + $0x98] sm:$0xff]  }
 0x5d5   : > { %v5394_v16 = vadd.f32 %v16159_v10, %v19323_v27  ;;  %v5146_v24 = vpop.f32.mrb[137].mxu1 }
 0x5d6   : > { %v5392_v28 = vadd.f32 %v19323_v27, %v5146_v24  ;;  %v16160_v29 = vpop.f32.mrb[138].mxu1  ;;  %16210 = vmatmul.mubr.msk.bf16.gmra.mrb[4].mxu0 %vm542_vm1, %v5674_v14 }
 0x5d7   : > { %v5449_v30 = vmax.f32 %v5394_v16, 0.0  ;;  %v5395_v38 = vadd.f32 %v16160_v29, %v19323_v27  ;;  %v5149_v39 = vpop.f32.mrb[139].mxu1  ;;  %16213 = vmatprep.mubr.msk.bf16.mxu0 %vm18544_vm0, %v22571_v1  ;;  %16308 = vmatpush3.bf16.msra.mxu0 %v18441_v4 }
 0x5d8   : > { %v5447_v40 = vmax.f32 %v5392_v28, 0.0  ;;  %v5393_v9 = vadd.f32 %v19323_v27, %v5149_v39  ;;  %16409 = vmatprep.subr.bf16.mxu0 %v22571_v1 }
 0x5d9   : > { %5504 = vst.msk [vmem:[#allocation3 + $0x70] sm:$0xff] %vm542_vm1, %v5449_v30  ;;  %v5450_v41 = vmax.f32 %v5395_v38, 0.0  ;;  %v5631_v51 = vld [vmem:[#allocation3 + $0x39] sm:$0xff] }
 0x5da   : > { %5502 = vst.msk [vmem:[#allocation3 + $0x60] sm:$0xff] %vm542_vm1, %v5447_v40  ;;  %v5448_v8 = vmax.f32 %v5393_v9, 0.0  ;;  %v5676_v6 = vpack.c.bf16 %v5631_v51, %v5630_v53  ;;  %v5634_v16 = vld [vmem:[#allocation3 + $0x51] sm:$0xff] }
 0x5db   : > { %5505 = vst.msk [vmem:[#allocation3 + $0x78] sm:$0xff] %vm542_vm1, %v5450_v41  ;;  %v5632_v55 = vld [vmem:[#allocation3 + $0x41] sm:$0xff]  ;;  %v5633_v56 = vld [vmem:[#allocation3 + $0x49] sm:$0xff] }
 0x5dc   : > { %5503 = vst.msk [vmem:[#allocation3 + $0x68] sm:$0xff] %vm542_vm1, %v5448_v8  ;;  %v16163_v44 = vpop.f32.mrb[140].mxu1  ;;  %v5677_v5 = vpack.c.bf16 %v5633_v56, %v5632_v55 }
 0x5dd   : > { %v5398_v20 = vadd.f32 %v16163_v44, %v19323_v27  ;;  %v5162_v46 = vpop.f32.mrb[141].mxu1 }
 0x5de   : > { %v5396_v47 = vadd.f32 %v19323_v27, %v5162_v46  ;;  %v16164_v33 = vpop.f32.mrb[142].mxu1  ;;  %16214 = vmatmul.mubr.msk.bf16.gmra.mrb[8].mxu0 %vm542_vm1, %v5675_v45 }
 0x5df   : > { %v5453_v48 = vmax.f32 %v5398_v20, 0.0  ;;  %v5399_v36 = vadd.f32 %v16164_v33, %v19323_v27  ;;  %v5165_v49 = vpop.f32.mrb[143].mxu1  ;;  %16217 = vmatprep.mubr.msk.bf16.mxu0 %vm18544_vm0, %v22571_v1 }
 0x5e0   : > { %v5451_v50 = vmax.f32 %v5396_v47, 0.0  ;;  %v5397_v58 = vadd.f32 %v19323_v27, %v5165_v49 }
 0x5e1   : > { %5508 = vst.msk [vmem:[#allocation3 + $0x90] sm:$0xff] %vm542_vm1, %v5453_v48  ;;  %v5454_v3 = vmax.f32 %v5399_v36, 0.0  ;;  %v5635_v10 = vld [vmem:[#allocation3 + $0x59] sm:$0xff] }
 0x5e2   : > { %5506 = vst.msk [vmem:[#allocation3 + $0x80] sm:$0xff] %vm542_vm1, %v5451_v50  ;;  %v5452_v52 = vmax.f32 %v5397_v58, 0.0  ;;  %v5678_v28 = vpack.c.bf16 %v5635_v10, %v5634_v16 }
 0x5e3   : > { %5509 = vst.msk [vmem:[#allocation3 + $0x98] sm:$0xff] %vm542_vm1, %v5454_v3  ;;  %v5636_v44 = vld [vmem:[#allocation3 + $0x61] sm:$0xff]  ;;  %v5637_v45 = vld [vmem:[#allocation3 + $0x69] sm:$0xff] }
 0x5e4   : > { %5507 = vst.msk [vmem:[#allocation3 + $0x88] sm:$0xff] %vm542_vm1, %v5452_v52  ;;  %v16167_v54 = vpop.f32.mrb[144].mxu1  ;;  %v5679_v47 = vpack.c.bf16 %v5637_v45, %v5636_v44 }
 0x5e5   : > { %v5402_v11 = vadd.f32 %v16167_v54, %v19323_v27  ;;  %v5178_v12 = vpop.f32.mrb[145].mxu1 }
 0x5e6   : > { %v5400_v19 = vadd.f32 %v19323_v27, %v5178_v12  ;;  %v16168_v18 = vpop.f32.mrb[146].mxu1  ;;  %16218 = vmatmul.mubr.msk.bf16.gmra.mrb[12].mxu0 %vm542_vm1, %v5676_v6 }
 0x5e7   : > { %v5457_v21 = vmax.f32 %v5402_v11, 0.0  ;;  %v5403_v32 = vadd.f32 %v16168_v18, %v19323_v27  ;;  %v5181_v34 = vpop.f32.mrb[147].mxu1  ;;  %16221 = vmatprep.mubr.msk.bf16.mxu0 %vm18544_vm0, %v22571_v1  ;;  %v5638_v11 = vld [vmem:[#allocation3 + $0x71] sm:$0xff] }
 0x5e8   : > { %v5455_v26 = vmax.f32 %v5400_v19, 0.0  ;;  %v5401_v37 = vadd.f32 %v19323_v27, %v5181_v34 }
 0x5e9   : > { %5512 = vst.msk [vmem:[#allocation3 + $0xb0] sm:$0xff] %vm542_vm1, %v5457_v21  ;;  %v5458_v31 = vmax.f32 %v5403_v32, 0.0  ;;  %v5639_v54 = vld [vmem:[#allocation3 + $0x79] sm:$0xff] }
 0x5ea   : > { %5510 = vst.msk [vmem:[#allocation3 + $0xa0] sm:$0xff] %vm542_vm1, %v5455_v26  ;;  %v5456_v35 = vmax.f32 %v5401_v37, 0.0  ;;  %v5680_v19 = vpack.c.bf16 %v5639_v54, %v5638_v11  ;;  %v18438_v54 = vld [vmem:[%s22564_s2 + $0xd0] sm:$0xff]  }
 0x5eb   : > { %5513 = vst.msk [vmem:[#allocation3 + $0xb8] sm:$0xff] %vm542_vm1, %v5458_v31 }
 0x5ec   : > { %5511 = vst.msk [vmem:[#allocation3 + $0xa8] sm:$0xff] %vm542_vm1, %v5456_v35  ;;  %v16171_v57 = vpop.f32.mrb[148].mxu1 }
 0x5ed   : > { %v5406_v25 = vadd.f32 %v16171_v57, %v19323_v27  ;;  %v5194_v42 = vpop.f32.mrb[149].mxu1  ;;  %v5640_v57 = vld [vmem:[#allocation3 + $0x81] sm:$0xff] }
 0x5ee   : > { %v5404_v59 = vadd.f32 %v19323_v27, %v5194_v42  ;;  %v16172_v60 = vpop.f32.mrb[150].mxu1  ;;  %16222 = vmatmul.mubr.msk.bf16.gmra.mrb[16].mxu0 %vm542_vm1, %v5677_v5  ;;  %v5641_v5 = vld [vmem:[#allocation3 + $0x89] sm:$0xff] }
 0x5ef   : > { %v5461_v61 = vmax.f32 %v5406_v25, 0.0  ;;  %v5407_v62 = vadd.f32 %v16172_v60, %v19323_v27  ;;  %v5197_v63 = vpop.f32.mrb[151].mxu1  ;;  %16225 = vmatprep.mubr.msk.bf16.mxu0 %vm18544_vm0, %v22571_v1 }
 0x5f0   : > { %v5459_v0 = vmax.f32 %v5404_v59, 0.0  ;;  %v5405_v2 = vadd.f32 %v19323_v27, %v5197_v63  ;;  %v5681_v59 = vpack.c.bf16 %v5641_v5, %v5640_v57 }
 0x5f1   : > { %5516 = vst.msk [vmem:[#allocation3 + $0xd0] sm:$0xff] %vm542_vm1, %v5461_v61  ;;  %v5462_v7 = vmax.f32 %v5407_v62, 0.0 }
 0x5f2   : > { %5514 = vst.msk [vmem:[#allocation3 + $0xc0] sm:$0xff] %vm542_vm1, %v5459_v0  ;;  %v5460_v14 = vmax.f32 %v5405_v2, 0.0 }
 0x5f3   : > { %5517 = vst.msk [vmem:[#allocation3 + $0xd8] sm:$0xff] %vm542_vm1, %v5462_v7  ;;  %v5644_v45 = vld [vmem:[#allocation3 + $0xa1] sm:$0xff] }
 0x5f4   : > { %5515 = vst.msk [vmem:[#allocation3 + $0xc8] sm:$0xff] %vm542_vm1, %v5460_v14  ;;  %v16175_v24 = vpop.f32.mrb[152].mxu1  ;;  %v5643_v14 = vld [vmem:[#allocation3 + $0x99] sm:$0xff] }
 0x5f5   : > { %v5410_v29 = vadd.f32 %v16175_v24, %v19323_v27  ;;  %v5210_v30 = vpop.f32.mrb[153].mxu1  ;;  %v5642_v24 = vld [vmem:[#allocation3 + $0x91] sm:$0xff] }
 0x5f6   : > { %v5408_v38 = vadd.f32 %v19323_v27, %v5210_v30  ;;  %v16176_v39 = vpop.f32.mrb[154].mxu1  ;;  %16226 = vmatmul.mubr.msk.bf16.gmra.mrb[20].mxu0 %vm542_vm1, %v5678_v28 }
 0x5f7   : > { %v5465_v40 = vmax.f32 %v5410_v29, 0.0  ;;  %v5411_v9 = vadd.f32 %v16176_v39, %v19323_v27  ;;  %v5213_v41 = vpop.f32.mrb[155].mxu1  ;;  %16229 = vmatprep.mubr.msk.bf16.mxu0 %vm18544_vm0, %v22571_v1  ;;  %v5682_v29 = vpack.c.bf16 %v5643_v14, %v5642_v24 }
 0x5f8   : > { %v5463_v15 = vmax.f32 %v5408_v38, 0.0  ;;  %v5409_v22 = vadd.f32 %v19323_v27, %v5213_v41 }
 0x5f9   : > { %5520 = vst.msk [vmem:[#allocation3 + $0xf0] sm:$0xff] %vm542_vm1, %v5465_v40  ;;  %v5466_v8 = vmax.f32 %v5411_v9, 0.0 }
 0x5fa   : > { %5518 = vst.msk [vmem:[#allocation3 + $0xe0] sm:$0xff] %vm542_vm1, %v5463_v15  ;;  %v5464_v20 = vmax.f32 %v5409_v22, 0.0 }
 0x5fb   : > { %5521 = vst.msk [vmem:[#allocation3 + $0xf8] sm:$0xff] %vm542_vm1, %v5466_v8 }
 0x5fc   : > { %5519 = vst.msk [vmem:[#allocation3 + $0xe8] sm:$0xff] %vm542_vm1, %v5464_v20  ;;  %v16179_v46 = vpop.f32.mrb[156].mxu1  ;;  %v5645_v20 = vld [vmem:[#allocation3 + $0xa9] sm:$0xff] }
 0x5fd   : > { %v5414_v33 = vadd.f32 %v16179_v46, %v19323_v27  ;;  %v5226_v48 = vpop.f32.mrb[157].mxu1 }
 0x5fe   : > { %v5412_v36 = vadd.f32 %v19323_v27, %v5226_v48  ;;  %v16180_v49 = vpop.f32.mrb[158].mxu1  ;;  %16230 = vmatmul.mubr.msk.bf16.gmra.mrb[24].mxu0 %vm542_vm1, %v5679_v47 }
 0x5ff   : > { %v5469_v50 = vmax.f32 %v5414_v33, 0.0  ;;  %v5415_v58 = vadd.f32 %v16180_v49, %v19323_v27  ;;  %v5229_v3 = vpop.f32.mrb[159].mxu1  ;;  %16233 = vmatprep.mubr.msk.bf16.mxu0 %vm18544_vm0, %v22571_v1  ;;  %v5683_v33 = vpack.c.bf16 %v5645_v20, %v5644_v45 }
 0x600   : > { %v5467_v51 = vmax.f32 %v5412_v36, 0.0  ;;  %v5413_v52 = vadd.f32 %v19323_v27, %v5229_v3 }
 0x601   : > { %5524 = vst.msk [vmem:[#allocation3 + $0x110] sm:$0xff] %vm542_vm1, %v5469_v50  ;;  %v5470_v53 = vmax.f32 %v5415_v58, 0.0 }
 0x602   : > { %5522 = vst.msk [vmem:[#allocation3 + $0x100] sm:$0xff] %vm542_vm1, %v5467_v51  ;;  %v5468_v6 = vmax.f32 %v5413_v52, 0.0 }
 0x603   : > { %5525 = vst.msk [vmem:[#allocation3 + $0x118] sm:$0xff] %vm542_vm1, %v5470_v53  ;;  %v5652_v24 = vld [vmem:[#allocation3 + $0xe1] sm:$0xff] }
 0x604   : > { %5523 = vst.msk [vmem:[#allocation3 + $0x108] sm:$0xff] %vm542_vm1, %v5468_v6  ;;  %v16183_v12 = vpop.f32.mrb[160].mxu1 }
 0x605   : > { %v5418_v18 = vadd.f32 %v16183_v12, %v19323_v27  ;;  %v5242_v21 = vpop.f32.mrb[161].mxu1 }
 0x606   : > { %v5416_v32 = vadd.f32 %v19323_v27, %v5242_v21  ;;  %v16184_v34 = vpop.f32.mrb[162].mxu1  ;;  %16234 = vmatmul.mubr.msk.bf16.gmra.mrb[28].mxu0 %vm542_vm1, %v5680_v19  ;;  %v5647_v19 = vld [vmem:[#allocation3 + $0xb9] sm:$0xff] }
 0x607   : > { %v5473_v26 = vmax.f32 %v5418_v18, 0.0  ;;  %v5419_v37 = vadd.f32 %v16184_v34, %v19323_v27  ;;  %v5245_v31 = vpop.f32.mrb[163].mxu1  ;;  %16237 = vmatprep.mubr.msk.bf16.mxu0 %vm18544_vm0, %v22571_v1 }
 0x608   : > { %v5471_v55 = vmax.f32 %v5416_v32, 0.0  ;;  %v5417_v56 = vadd.f32 %v19323_v27, %v5245_v31  ;;  %v5646_v32 = vld [vmem:[#allocation3 + $0xb1] sm:$0xff] }
 0x609   : > { %5528 = vst.msk [vmem:[#allocation3 + $0x130] sm:$0xff] %vm542_vm1, %v5473_v26  ;;  %v5474_v35 = vmax.f32 %v5419_v37, 0.0  ;;  %v5684_v26 = vpack.c.bf16 %v5647_v19, %v5646_v32  ;;  %v7242_v32 = vld [vmem:[#allocation3 + $0x67] sm:$0xff] }
 0x60a   : > { %5526 = vst.msk [vmem:[#allocation3 + $0x120] sm:$0xff] %vm542_vm1, %v5471_v55  ;;  %v5472_v25 = vmax.f32 %v5417_v56, 0.0  ;;  %v18439_v55 = vld [vmem:[%s22564_s2 + $0xd8] sm:$0xff]  }
 0x60b   : > { %5529 = vst.msk [vmem:[#allocation3 + $0x138] sm:$0xff] %vm542_vm1, %v5474_v35  ;;  %v5657_v45 = vld [vmem:[#allocation3 + $0x109] sm:$0xff] }
 0x60c   : > { %5527 = vst.msk [vmem:[#allocation3 + $0x128] sm:$0xff] %vm542_vm1, %v5472_v25  ;;  %v16187_v42 = vpop.f32.mrb[164].mxu1 }
 0x60d   : > { %v5422_v60 = vadd.f32 %v16187_v42, %v19323_v27  ;;  %v5258_v43 = vpop.f32.mrb[165].mxu1 }
 0x60e   : > { %v5420_v61 = vadd.f32 %v19323_v27, %v5258_v43  ;;  %v16188_v62 = vpop.f32.mrb[166].mxu1  ;;  %16238 = vmatmul.mubr.msk.bf16.gmra.mrb[32].mxu0 %vm542_vm1, %v5681_v59  ;;  %v5649_v43 = vld [vmem:[#allocation3 + $0xc9] sm:$0xff] }
 0x60f   : > { %v5477_v63 = vmax.f32 %v5422_v60, 0.0  ;;  %v5423_v0 = vadd.f32 %v16188_v62, %v19323_v27  ;;  %v5261_v2 = vpop.f32.mrb[167].mxu1  ;;  %16241 = vmatprep.mubr.msk.bf16.mxu0 %vm18544_vm0, %v22571_v1 }
 0x610   : > { %v5475_v4 = vmax.f32 %v5420_v61, 0.0  ;;  %v5421_v7 = vadd.f32 %v19323_v27, %v5261_v2 }
 0x611   : > { %5532 = vst.msk [vmem:[#allocation3 + $0x150] sm:$0xff] %vm542_vm1, %v5477_v63  ;;  %v5478_v10 = vmax.f32 %v5423_v0, 0.0 }
 0x612   : > { %5530 = vst.msk [vmem:[#allocation3 + $0x140] sm:$0xff] %vm542_vm1, %v5475_v4  ;;  %v5476_v16 = vmax.f32 %v5421_v7, 0.0  ;;  %v5651_v4 = vld [vmem:[#allocation3 + $0xd9] sm:$0xff] }
 0x613   : > { %5533 = vst.msk [vmem:[#allocation3 + $0x158] sm:$0xff] %vm542_vm1, %v5478_v10  ;;  %v5650_v10 = vld [vmem:[#allocation3 + $0xd1] sm:$0xff] }
 0x614   : > { %5531 = vst.msk [vmem:[#allocation3 + $0x148] sm:$0xff] %vm542_vm1, %v5476_v16  ;;  %v16191_v28 = vpop.f32.mrb[168].mxu1  ;;  %v5686_v14 = vpack.c.bf16 %v5651_v4, %v5650_v10  ;;  %v18442_v4 = vld [vmem:[%s22564_s2 + $0xf0] sm:$0xff]  }
 0x615   : > { %v5426_v30 = vadd.f32 %v16191_v28, %v19323_v27  ;;  %v5274_v38 = vpop.f32.mrb[169].mxu1  ;;  %v5653_v28 = vld [vmem:[#allocation3 + $0xe9] sm:$0xff] }
 0x616   : > { %v5424_v39 = vadd.f32 %v19323_v27, %v5274_v38  ;;  %v16192_v40 = vpop.f32.mrb[170].mxu1  ;;  %16242 = vmatmul.mubr.msk.bf16.gmra.mrb[36].mxu0 %vm542_vm1, %v5682_v29  ;;  %v7233_v38 = vld [vmem:[#allocation3 + $0x1f] sm:$0xff]  ;;  %v7251_v10 = vld [vmem:[#allocation3 + $0xaf] sm:$0xff] }
 0x617   : > { %v5481_v9 = vmax.f32 %v5426_v30, 0.0  ;;  %v5427_v41 = vadd.f32 %v16192_v40, %v19323_v27  ;;  %v5277_v15 = vpop.f32.mrb[171].mxu1  ;;  %16245 = vmatprep.mubr.msk.bf16.mxu0 %vm18544_vm0, %v22571_v1  ;;  %v5687_v30 = vpack.c.bf16 %v5653_v28, %v5652_v24  ;;  %v5655_v40 = vld [vmem:[#allocation3 + $0xf9] sm:$0xff]  ;;  %v5552_v28 = vld [vmem:[#allocation3 + $0x30] sm:$0xff] }
 0x618   : > { %v5479_v22 = vmax.f32 %v5424_v39, 0.0  ;;  %v5425_v8 = vadd.f32 %v19323_v27, %v5277_v15  ;;  %v7232_v39 = vld [vmem:[#allocation3 + $0x17] sm:$0xff] }
 0x619   : > { %5536 = vst.msk [vmem:[#allocation3 + $0x170] sm:$0xff] %vm542_vm1, %v5481_v9  ;;  %v5482_v44 = vmax.f32 %v5427_v41, 0.0  ;;  %v7281_v9 = vpack.c.bf16 %v7233_v38, %v7232_v39  ;;  %v5654_v41 = vld [vmem:[#allocation3 + $0xf1] sm:$0xff]  ;;  %v5555_v39 = vld [vmem:[#allocation3 + $0x48] sm:$0xff] }
 0x61a   : > { %5534 = vst.msk [vmem:[#allocation3 + $0x160] sm:$0xff] %vm542_vm1, %v5479_v22  ;;  %v5480_v46 = vmax.f32 %v5425_v8, 0.0  ;;  %v5666_v11 = vld [vmem:[#allocation3 + $0x151] sm:$0xff]  ;;  %v5688_v15 = vpack.c.bf16 %v5655_v40, %v5654_v41  ;;  %v7234_v22 = vld [vmem:[#allocation3 + $0x27] sm:$0xff] }
 0x61b   : > { %5537 = vst.msk [vmem:[#allocation3 + $0x178] sm:$0xff] %vm542_vm1, %v5482_v44  ;;  %v7235_v8 = vld [vmem:[#allocation3 + $0x2f] sm:$0xff]  ;;  %v5656_v44 = vld [vmem:[#allocation3 + $0x101] sm:$0xff]  ;;  %v7252_v38 = vld [vmem:[#allocation3 + $0xb7] sm:$0xff] }
 0x61c   : > { %5535 = vst.msk [vmem:[#allocation3 + $0x168] sm:$0xff] %vm542_vm1, %v5480_v46  ;;  %v16195_v47 = vpop.f32.mrb[172].mxu1  ;;  %v7282_v20 = vpack.c.bf16 %v7235_v8, %v7234_v22  ;;  %v5689_v46 = vpack.c.bf16 %v5657_v45, %v5656_v44  ;;  %v7255_v22 = vld [vmem:[#allocation3 + $0xcf] sm:$0xff]  ;;  %v5557_v8 = vld [vmem:[#allocation3 + $0x58] sm:$0xff] }
 0x61d   : > { %v5430_v48 = vadd.f32 %v16195_v47, %v19323_v27  ;;  %v5290_v36 = vpop.f32.mrb[173].mxu1  ;;  %v7237_v47 = vld [vmem:[#allocation3 + $0x3f] sm:$0xff]  ;;  %v5556_v45 = vld [vmem:[#allocation3 + $0x50] sm:$0xff] }
 0x61e   : > { %v5428_v49 = vadd.f32 %v19323_v27, %v5290_v36  ;;  %v16196_v50 = vpop.f32.mrb[174].mxu1  ;;  %16246 = vmatmul.mubr.msk.bf16.gmra.mrb[40].mxu0 %vm542_vm1, %v5683_v33  ;;  %v7236_v33 = vld [vmem:[#allocation3 + $0x37] sm:$0xff] }
 0x61f   : > { %v5485_v58 = vmax.f32 %v5430_v48, 0.0  ;;  %v5431_v3 = vadd.f32 %v16196_v50, %v19323_v27  ;;  %v5293_v51 = vpop.f32.mrb[175].mxu1  ;;  %16249 = vmatprep.mubr.msk.bf16.mxu0 %vm18544_vm0, %v22571_v1  ;;  %v5659_v48 = vld [vmem:[#allocation3 + $0x119] sm:$0xff]  ;;  %v7283_v36 = vpack.c.bf16 %v7237_v47, %v7236_v33 }
 0x620   : > { %v5483_v52 = vmax.f32 %v5428_v49, 0.0  ;;  %v5429_v53 = vadd.f32 %v19323_v27, %v5293_v51  ;;  %v5658_v49 = vld [vmem:[#allocation3 + $0x111] sm:$0xff]  ;;  %v5660_v51 = vld [vmem:[#allocation3 + $0x121] sm:$0xff] }
 0x621   : > { %5540 = vst.msk [vmem:[#allocation3 + $0x190] sm:$0xff] %vm542_vm1, %v5485_v58  ;;  %v5486_v6 = vmax.f32 %v5431_v3, 0.0  ;;  %v5667_v12 = vld [vmem:[#allocation3 + $0x159] sm:$0xff]  ;;  %v5690_v50 = vpack.c.bf16 %v5659_v48, %v5658_v49  ;;  %v7238_v58 = vld [vmem:[#allocation3 + $0x47] sm:$0xff]  ;;  %v7239_v3 = vld [vmem:[#allocation3 + $0x4f] sm:$0xff] }
 0x622   : > { %5538 = vst.msk [vmem:[#allocation3 + $0x180] sm:$0xff] %vm542_vm1, %v5483_v52  ;;  %v5484_v18 = vmax.f32 %v5429_v53, 0.0  ;;  %v5694_v21 = vpack.c.bf16 %v5667_v12, %v5666_v11  ;;  %v5661_v52 = vld [vmem:[#allocation3 + $0x129] sm:$0xff]  ;;  %v7284_v53 = vpack.c.bf16 %v7239_v3, %v7238_v58  ;;  %v7240_v11 = vld [vmem:[#allocation3 + $0x57] sm:$0xff]  ;;  %v7257_v47 = vld [vmem:[#allocation3 + $0xdf] sm:$0xff] }
 0x623   : > { %5541 = vst.msk [vmem:[#allocation3 + $0x198] sm:$0xff] %vm542_vm1, %v5486_v6  ;;  %v5669_v25 = vld [vmem:[#allocation3 + $0x169] sm:$0xff]  ;;  %v7241_v6 = vld [vmem:[#allocation3 + $0x5f] sm:$0xff]  ;;  %v7256_v48 = vld [vmem:[#allocation3 + $0xd7] sm:$0xff] }
 0x624   : > { %5539 = vst.msk [vmem:[#allocation3 + $0x188] sm:$0xff] %vm542_vm1, %v5484_v18  ;;  %v16199_v34 = vpop.f32.mrb[208].mxu1  ;;  %16290 = vmatmul.mubr.msk.bf16.vlgmr.msra.gmra.mrb[212].mxu1 %vm542_vm1, %v5694_v21  ;;  %v5663_v12 = vld [vmem:[#allocation3 + $0x139] sm:$0xff]  ;;  %v7285_v19 = vpack.c.bf16 %v7241_v6, %v7240_v11  ;;  %v5662_v18 = vld [vmem:[#allocation3 + $0x131] sm:$0xff] }
 0x625   : > { %v5374_v37 = vadd.f32 %v16199_v34, %v19314_v13  ;;  %v5306_v31 = vpop.f32.mrb[209].mxu1  ;;  %16293 = vmatprep.mubr.msk.bf16.mxu1 %vm18544_vm0, %v22571_v1  ;;  %16618 = vmatpush3.bf16.msra.mxu1 %v18438_v54  ;;  %v5668_v13 = vld [vmem:[#allocation3 + $0x161] sm:$0xff]  ;;  %v5691_v54 = vpack.c.bf16 %v5661_v52, %v5660_v51  ;;  %v5692_v21 = vpack.c.bf16 %v5663_v12, %v5662_v18  ;;  %v7243_v34 = vld [vmem:[#allocation3 + $0x6f] sm:$0xff]  ;;  %v5561_v11 = vld [vmem:[#allocation3 + $0x78] sm:$0xff] }
 0x626   : > { %v5372_v56 = vadd.f32 %v5306_v31, %v19316_v23  ;;  %v16200_v35 = vpop.f32.mrb[210].mxu1  ;;  %16250 = vmatmul.mubr.msk.bf16.gmra.mrb[44].mxu0 %vm542_vm1, %v5684_v26  ;;  %16619 = vmatprep.subr.bf16.mxu1 %v22571_v1  ;;  %v5648_v23 = vld [vmem:[#allocation3 + $0xc1] sm:$0xff]  ;;  %v5695_v63 = vpack.c.bf16 %v5669_v25, %v5668_v13  ;;  %v7286_v31 = vpack.c.bf16 %v7243_v34, %v7242_v32 }
 0x627   : > { %v5434_v57 = vadd.f32 %v19323_v27, %v5374_v37  ;;  %v5309_v5 = vpop.f32.mrb[211].mxu1  ;;  %16253 = vmatprep.mubr.msk.bf16.mxu0 %vm18544_vm0, %v22571_v1  ;;  %v5685_v2 = vpack.c.bf16 %v5649_v43, %v5648_v23  ;;  %v5664_v26 = vld [vmem:[#allocation3 + $0x141] sm:$0xff]  ;;  %v5665_v37 = vld [vmem:[#allocation3 + $0x149] sm:$0xff]  ;;  %v7244_v35 = vld [vmem:[#allocation3 + $0x77] sm:$0xff] }
 0x628   : > { %v5432_v42 = vadd.f32 %v19323_v27, %v5372_v56  ;;  %v5373_v59 = vadd.f32 %v5309_v5, %v19318_v17  ;;  %v7245_v56 = vld [vmem:[#allocation3 + $0x7f] sm:$0xff]  ;;  %v5548_v43 = vld [vmem:[#allocation3 + $0x10] sm:$0xff] }
 0x629   : > { %v5489_v60 = vmax.f32 %v5434_v57, 0.0  ;;  %16620 = vmatpush3.bf16.msra.mxu1 %v18439_v55  ;;  %v5671_v17 = vld [vmem:[#allocation3 + $0x179] sm:$0xff]  ;;  %v5693_v55 = vpack.c.bf16 %v5665_v37, %v5664_v26  ;;  %v5547_v57 = vld [vmem:[#allocation3 + $0x8] sm:$0xff]  ;;  %v7287_v5 = vpack.c.bf16 %v7245_v56, %v7244_v35 }
 0x62a   : > { %v5487_v61 = vmax.f32 %v5432_v42, 0.0  ;;  %v5433_v62 = vadd.f32 %v19323_v27, %v5373_v59  ;;  %16825 = vmatprep.subr.bf16.mxu1 %v22571_v1  ;;  %v5670_v27 = vld [vmem:[#allocation3 + $0x171] sm:$0xff]  ;;  %v5546_v13 = vld [vmem:[#allocation3] sm:$0xff] }
 0x62b   : > { %5545 = vst.msk [vmem:[#allocation3 + $0x1b0] sm:$0x3f] %vm5544_vm3, %v5489_v60  ;;  %v5696_v7 = vpack.c.bf16 %v5671_v17, %v5670_v27  ;;  %v5672_v16 = vld [vmem:[#allocation3 + $0x181] sm:$0xff]  ;;  %v5595_v25 = vpack.c.bf16 %v5547_v57, %v5546_v13  ;;  %v7247_v59 = vld [vmem:[#allocation3 + $0x8f] sm:$0xff]  ;;  %v7678_v60 = vld [vmem:[#allocation3 + $0x18] sm:$0xff] }
 0x62c   : > { %5542 = vst.msk [vmem:[#allocation3 + $0x1a0] sm:$0xff] %vm542_vm1, %v5487_v61  ;;  %v5488_v0 = vmax.f32 %v5433_v62, 0.0  ;;  %16294 = vmatmul.mubr.msk.bf16.gmra.mrb[216].mxu1 %vm542_vm1, %v5695_v63  ;;  %v5697_v29 = vpack.c.bf16 %v5672_v16, %v5672_v16  ;;  %v7246_v42 = vld [vmem:[#allocation3 + $0x87] sm:$0xff]  ;;  %v5596_v61 = vpack.c.bf16 %v7678_v60, %v5548_v43  ;;  %v7249_v62 = vld [vmem:[#allocation3 + $0x9f] sm:$0xff]  ;;  %v7248_v63 = vld [vmem:[#allocation3 + $0x97] sm:$0xff] }
 0x62d   : > { %16297 = vmatprep.mubr.msk.bf16.mxu1 %vm18544_vm0, %v22571_v1  ;;  %v7288_v23 = vpack.c.bf16 %v7247_v59, %v7246_v42  ;;  %v7679_v17 = vld [vmem:[#allocation3 + $0x20] sm:$0xff]  ;;  %v18443_v16 = vld [vmem:[%s22564_s2 + $0xf8] sm:$0xff]  }
 0x62e   : > { %5543 = vst.msk [vmem:[#allocation3 + $0x1a8] sm:$0xff] %vm542_vm1, %v5488_v0  ;;  %16254 = vmatmul.mubr.msk.bf16.gmra.mrb[48].mxu0 %vm542_vm1, %v5685_v2  ;;  %v5551_v0 = vld [vmem:[#allocation3 + $0x28] sm:$0xff]  ;;  %v7289_v2 = vpack.c.bf16 %v7249_v62, %v7248_v63  ;;  %v5558_v3 = vld [vmem:[#allocation3 + $0x60] sm:$0xff]  ;;  %v5564_v63 = vld [vmem:[#allocation3 + $0x90] sm:$0xff] }
 0x62f   : > { %16257 = vmatprep.mubr.msk.bf16.mxu0 %vm18544_vm0, %v22571_v1  ;;  %v5597_v27 = vpack.c.bf16 %v5551_v0, %v7679_v17  ;;  %v7261_v26 = vld [vmem:[#allocation3 + $0xff] sm:$0xff]  ;;  %v7262_v42 = vld [vmem:[#allocation3 + $0x107] sm:$0xff]  ;;  %v7263_v59 = vld [vmem:[#allocation3 + $0x10f] sm:$0xff] }
 0x630   : > { %v18445_v0 = vld [vmem:[%s22564_s2 + $0xb8] sm:$0xff]  }
 0x634   : > { %16298 = vmatmul.mubr.msk.bf16.gmra.mrb[220].mxu1 %vm542_vm1, %v5696_v7  ;;  %v7250_v7 = vld [vmem:[#allocation3 + $0xa7] sm:$0xff] }
 0x635   : > { %16301 = vmatprep.mubr.msk.bf16.mxu1 %vm18544_vm0, %v22571_v1  ;;  %v7290_v24 = vpack.c.bf16 %v7251_v10, %v7250_v7  ;;  %v7264_v7 = vld [vmem:[#allocation3 + $0x117] sm:$0xff]  ;;  %v5567_v10 = vld [vmem:[#allocation3 + $0xa8] sm:$0xff] }
 0x636   : > { %16258 = vmatmul.mubr.msk.bf16.gmra.mrb[52].mxu0 %vm542_vm1, %v5686_v14  ;;  %v5553_v14 = vld [vmem:[#allocation3 + $0x38] sm:$0xff] }
 0x637   : > { %16261 = vmatprep.mubr.msk.bf16.mxu0 %vm18544_vm0, %v22571_v1 }
 0x63c   : > { %16302 = vmatmul.mubr.msk.bf16.gmra.mrb[224].mxu1 %vm542_vm1, %v5697_v29  ;;  %v5598_v29 = vpack.c.bf16 %v5553_v14, %v5552_v28  ;;  %v5566_v28 = vld [vmem:[#allocation3 + $0xa0] sm:$0xff] }
 0x63d   : > { %16621 = vmatprep.mubr.msk.bf16.mxu1 %vm18544_vm0, %v22571_v1 }
 0x63e   : > { %16262 = vmatmul.mubr.msk.bf16.gmra.mrb[56].mxu0 %vm542_vm1, %v5687_v30  ;;  %v7253_v30 = vld [vmem:[#allocation3 + $0xbf] sm:$0xff] }
 0x63f   : > { %16265 = vmatprep.mubr.msk.bf16.mxu0 %vm18544_vm0, %v22571_v1  ;;  %v7291_v40 = vpack.c.bf16 %v7253_v30, %v7252_v38  ;;  %v5605_v30 = vpack.c.bf16 %v5567_v10, %v5566_v28  ;;  %v7266_v38 = vld [vmem:[#allocation3 + $0x127] sm:$0xff]  ;;  %v5576_v10 = vld [vmem:[#allocation3 + $0xf0] sm:$0xff]  ;;  %v7277_v28 = vld [vmem:[#allocation3 + $0x17f] sm:$0xff] }
 0x644   : > { %16622 = vmatmul.mubr.msk.bf16.vlgmr.msra.gmra.mrb[228].mxu1 %vm542_vm1, %v7281_v9  ;;  %v5554_v9 = vld [vmem:[#allocation3 + $0x40] sm:$0xff] }
 0x645   : > { %16625 = vmatprep.mubr.msk.bf16.mxu1 %vm18544_vm0, %v22571_v1  ;;  %16826 = vmatpush3.bf16.msra.mxu1 %v18442_v4  ;;  %v5599_v41 = vpack.c.bf16 %v5555_v39, %v5554_v9  ;;  %v7267_v39 = vld [vmem:[#allocation3 + $0x12f] sm:$0xff]  ;;  %v5569_v9 = vld [vmem:[#allocation3 + $0xb8] sm:$0xff] }
 0x646   : > { %16266 = vmatmul.mubr.msk.bf16.gmra.mrb[60].mxu0 %vm542_vm1, %v5688_v15  ;;  %16827 = vmatprep.subr.bf16.mxu1 %v22571_v1  ;;  %v7254_v15 = vld [vmem:[#allocation3 + $0xc7] sm:$0xff] }
 0x647   : > { %16269 = vmatprep.mubr.msk.bf16.mxu0 %vm18544_vm0, %v22571_v1  ;;  %v7292_v44 = vpack.c.bf16 %v7255_v22, %v7254_v15  ;;  %v7298_v15 = vpack.c.bf16 %v7267_v39, %v7266_v38  ;;  %v5579_v38 = vld [vmem:[#allocation3 + $0x108] sm:$0xff] }
 0x649   : > { %16828 = vmatpush3.bf16.msra.mxu1 %v18443_v16 }
 0x64a   : > { %17033 = vmatprep.subr.bf16.mxu1 %v22571_v1 }
 0x64c   : > { %16626 = vmatmul.mubr.msk.bf16.gmra.mrb[232].mxu1 %vm542_vm1, %v7282_v20  ;;  %v5600_v20 = vpack.c.bf16 %v5557_v8, %v5556_v45  ;;  %v5568_v8 = vld [vmem:[#allocation3 + $0xb0] sm:$0xff] }
 0x64d   : > { %16629 = vmatprep.mubr.msk.bf16.mxu1 %vm18544_vm0, %v22571_v1  ;;  %v5606_v45 = vpack.c.bf16 %v5569_v9, %v5568_v8 }
 0x64e   : > { %16270 = vmatmul.mubr.msk.bf16.gmra.mrb[64].mxu0 %vm542_vm1, %v5689_v46  ;;  %v18444_v46 = vld [vmem:[%s22564_s2 + $0xb0] sm:$0xff]  }
 0x64f   : > { %16273 = vmatprep.mubr.msk.bf16.mxu0 %vm18544_vm0, %v22571_v1 }
 0x654   : > { %16630 = vmatmul.mubr.msk.bf16.gmra.mrb[236].mxu1 %vm542_vm1, %v7283_v36  ;;  %v5559_v36 = vld [vmem:[#allocation3 + $0x68] sm:$0xff] }
 0x655   : > { %16633 = vmatprep.mubr.msk.bf16.mxu1 %vm18544_vm0, %v22571_v1  ;;  %v5601_v52 = vpack.c.bf16 %v5559_v36, %v5558_v3  ;;  %v5570_v3 = vld [vmem:[#allocation3 + $0xc0] sm:$0xff] }
 0x656   : > { %16274 = vmatmul.mubr.msk.bf16.gmra.mrb[68].mxu0 %vm542_vm1, %v5690_v50  ;;  %v7293_v50 = vpack.c.bf16 %v7257_v47, %v7256_v48  ;;  %v7268_v47 = vld [vmem:[#allocation3 + $0x137] sm:$0xff]  ;;  %v5571_v48 = vld [vmem:[#allocation3 + $0xc8] sm:$0xff] }
 0x657   : > { %16277 = vmatprep.mubr.msk.bf16.mxu0 %vm18544_vm0, %v22571_v1 }
 0x65c   : > { %16634 = vmatmul.mubr.msk.bf16.gmra.mrb[240].mxu1 %vm542_vm1, %v7284_v53  ;;  %v7258_v53 = vld [vmem:[#allocation3 + $0xe7] sm:$0xff] }
 0x65d   : > { %16637 = vmatprep.mubr.msk.bf16.mxu1 %vm18544_vm0, %v22571_v1 }
 0x65e   : > { %16278 = vmatmul.mubr.msk.bf16.gmra.mrb[72].mxu0 %vm542_vm1, %v5691_v54  ;;  %v7259_v54 = vld [vmem:[#allocation3 + $0xef] sm:$0xff] }
 0x65f   : > { %16281 = vmatprep.mubr.msk.bf16.mxu0 %vm18544_vm0, %v22571_v1 }
 0x664   : > { %16638 = vmatmul.mubr.msk.bf16.gmra.mrb[244].mxu1 %vm542_vm1, %v7285_v19  ;;  %v7294_v19 = vpack.c.bf16 %v7259_v54, %v7258_v53  ;;  %v7270_v53 = vld [vmem:[#allocation3 + $0x147] sm:$0xff]  ;;  %v7271_v54 = vld [vmem:[#allocation3 + $0x14f] sm:$0xff] }
 0x665   : > { %16641 = vmatprep.mubr.msk.bf16.mxu1 %vm18544_vm0, %v22571_v1 }
 0x666   : > { %16282 = vmatmul.mubr.msk.bf16.gmra.mrb[76].mxu0 %vm542_vm1, %v5692_v21  ;;  %v5560_v21 = vld [vmem:[#allocation3 + $0x70] sm:$0xff] }
 0x667   : > { %16285 = vmatprep.mubr.msk.bf16.mxu0 %vm18544_vm0, %v22571_v1  ;;  %v5602_v34 = vpack.c.bf16 %v5561_v11, %v5560_v21  ;;  %v7300_v21 = vpack.c.bf16 %v7271_v54, %v7270_v53 }
 0x66c   : > { %16642 = vmatmul.mubr.msk.bf16.gmra.mrb[248].mxu1 %vm542_vm1, %v7286_v31  ;;  %v7260_v31 = vld [vmem:[#allocation3 + $0xf7] sm:$0xff] }
 0x66d   : > { %16645 = vmatprep.mubr.msk.bf16.mxu1 %vm18544_vm0, %v22571_v1  ;;  %v7295_v35 = vpack.c.bf16 %v7261_v26, %v7260_v31 }
 0x66e   : > { %16286 = vmatmul.mubr.msk.bf16.gmra.mrb[80].mxu0 %vm542_vm1, %v5693_v55  ;;  %v5563_v55 = vld [vmem:[#allocation3 + $0x88] sm:$0xff] }
 0x66f   : > { %16309 = vmatprep.mubr.msk.bf16.mxu0 %vm18544_vm0, %v22571_v1 }
 0x674   : > { %16646 = vmatmul.mubr.msk.bf16.gmra.mrb[252].mxu1 %vm542_vm1, %v7287_v5  ;;  %v5562_v5 = vld [vmem:[#allocation3 + $0x80] sm:$0xff] }
 0x675   : > { %16649 = vmatprep.mubr.msk.bf16.mxu1 %vm18544_vm0, %v22571_v1 }
 0x676   : > { %16310 = vmatmul.mubr.msk.bf16.vlgmr.msra.gmra.mrb[84].mxu0 %vm542_vm1, %v5595_v25  ;;  %v5603_v25 = vpack.c.bf16 %v5563_v55, %v5562_v5  ;;  %v7273_v55 = vld [vmem:[#allocation3 + $0x15f] sm:$0xff]  ;;  %v5575_v5 = vld [vmem:[#allocation3 + $0xe8] sm:$0xff] }
 0x677   : > { %16313 = vmatprep.mubr.msk.bf16.mxu0 %vm18544_vm0, %v22571_v1  ;;  %16410 = vmatpush3.bf16.msra.mxu0 %v18444_v46 }
 0x678   : > { %16411 = vmatprep.subr.bf16.mxu0 %v22571_v1 }
 0x67b   : > { %16412 = vmatpush3.bf16.msra.mxu0 %v18445_v0 }
 0x67c   : > { %16650 = vmatmul.mubr.msk.bf16.gmra.mrb[0].mxu1 %vm542_vm1, %v7288_v23  ;;  %v5565_v23 = vld [vmem:[#allocation3 + $0x98] sm:$0xff]  ;;  %16513 = vmatprep.subr.bf16.mxu0 %v22571_v1 }
 0x67d   : > { %16653 = vmatprep.mubr.msk.bf16.mxu1 %vm18544_vm0, %v22571_v1  ;;  %v5604_v17 = vpack.c.bf16 %v5565_v23, %v5564_v63  ;;  %v7275_v63 = vld [vmem:[#allocation3 + $0x16f] sm:$0xff] }
 0x67e   : > { %16314 = vmatmul.mubr.msk.bf16.gmra.mrb[88].mxu0 %vm542_vm1, %v5596_v61  ;;  %v7296_v61 = vpack.c.bf16 %v7263_v59, %v7262_v42  ;;  %v5574_v59 = vld [vmem:[#allocation3 + $0xe0] sm:$0xff] }
 0x67f   : > { %16317 = vmatprep.mubr.msk.bf16.mxu0 %vm18544_vm0, %v22571_v1 }
 0x684   : > { %16654 = vmatmul.mubr.msk.bf16.gmra.mrb[4].mxu1 %vm542_vm1, %v7289_v2 }
 0x685   : > { %16657 = vmatprep.mubr.msk.bf16.mxu1 %vm18544_vm0, %v22571_v1 }
 0x686   : > { %16318 = vmatmul.mubr.msk.bf16.gmra.mrb[92].mxu0 %vm542_vm1, %v5597_v27  ;;  %v7265_v27 = vld [vmem:[#allocation3 + $0x11f] sm:$0xff] }
 0x687   : > { %16321 = vmatprep.mubr.msk.bf16.mxu0 %vm18544_vm0, %v22571_v1  ;;  %v7297_v16 = vpack.c.bf16 %v7265_v27, %v7264_v7 }
 0x68c   : > { %16658 = vmatmul.mubr.msk.bf16.gmra.mrb[8].mxu1 %vm542_vm1, %v7290_v24 }
 0x68d   : > { %16661 = vmatprep.mubr.msk.bf16.mxu1 %vm18544_vm0, %v22571_v1 }
 0x68e   : > { %16322 = vmatmul.mubr.msk.bf16.gmra.mrb[96].mxu0 %vm542_vm1, %v5598_v29 }
 0x68f   : > { %16325 = vmatprep.mubr.msk.bf16.mxu0 %vm18544_vm0, %v22571_v1 }
 0x694   : > { %16662 = vmatmul.mubr.msk.bf16.gmra.mrb[12].mxu1 %vm542_vm1, %v7291_v40 }
 0x695   : > { %16665 = vmatprep.mubr.msk.bf16.mxu1 %vm18544_vm0, %v22571_v1 }
 0x696   : > { %16326 = vmatmul.mubr.msk.bf16.gmra.mrb[100].mxu0 %vm542_vm1, %v5599_v41 }
 0x697   : > { %16329 = vmatprep.mubr.msk.bf16.mxu0 %vm18544_vm0, %v22571_v1 }
 0x69c   : > { %16666 = vmatmul.mubr.msk.bf16.gmra.mrb[16].mxu1 %vm542_vm1, %v7292_v44 }
 0x69d   : > { %16669 = vmatprep.mubr.msk.bf16.mxu1 %vm18544_vm0, %v22571_v1 }
 0x69e   : > { %16330 = vmatmul.mubr.msk.bf16.gmra.mrb[104].mxu0 %vm542_vm1, %v5600_v20  ;;  %v7269_v20 = vld [vmem:[#allocation3 + $0x13f] sm:$0xff] }
 0x69f   : > { %16333 = vmatprep.mubr.msk.bf16.mxu0 %vm18544_vm0, %v22571_v1 }
 0x6a1   : > { %v19593_v33 = vpop.f32.mrb[0].mxu0 }
 0x6a2   : > { %v16207_v49 = vpop.f32.mrb[1].mxu0 }
 0x6a3   : > { %v19596_v58 = vpop.f32.mrb[2].mxu0  ;;  %v7299_v49 = vpack.c.bf16 %v7269_v20, %v7268_v47  ;;  %v7278_v20 = vld [vmem:[#allocation3 + $0x187] sm:$0xff]  ;;  %v7279_v47 = vld [vmem:[#allocation3 + $0x18f] sm:$0xff] }
 0x6a4   : > { %v16208_v51 = vpop.f32.mrb[3].mxu0  ;;  %16670 = vmatmul.mubr.msk.bf16.gmra.mrb[20].mxu1 %vm542_vm1, %v7293_v50  ;;  %v7304_v53 = vpack.c.bf16 %v7279_v47, %v7278_v20  ;;  %v8127_v47 = vld [vmem:[#allocation3 + $0x44] sm:$0xff] }
 0x6a5   : > { %16673 = vmatprep.mubr.msk.bf16.mxu1 %vm18544_vm0, %v22571_v1 }
 0x6a6   : > { %16334 = vmatmul.mubr.msk.bf16.gmra.mrb[108].mxu0 %vm542_vm1, %v5601_v52  ;;  %v5607_v52 = vpack.c.bf16 %v5571_v48, %v5570_v3  ;;  %v5581_v3 = vld [vmem:[#allocation3 + $0x118] sm:$0xff] }
 0x6a7   : > { %16337 = vmatprep.mubr.msk.bf16.mxu0 %vm18544_vm0, %v22571_v1 }
 0x6a9   : > { %v19604_v6 = vpop.f32.mrb[4].mxu0 }
 0x6aa   : > { %v16211_v12 = vpop.f32.mrb[5].mxu0 }
 0x6ab   : > { %v19606_v18 = vpop.f32.mrb[6].mxu0  ;;  %v5573_v12 = vld [vmem:[#allocation3 + $0xd8] sm:$0xff] }
 0x6ac   : > { %v16212_v32 = vpop.f32.mrb[7].mxu0  ;;  %16674 = vmatmul.mubr.msk.bf16.gmra.mrb[24].mxu1 %vm542_vm1, %v7294_v19 }
 0x6ad   : > { %16677 = vmatprep.mubr.msk.bf16.mxu1 %vm18544_vm0, %v22571_v1 }
 0x6ae   : > { %16338 = vmatmul.mubr.msk.bf16.gmra.mrb[112].mxu0 %vm542_vm1, %v5602_v34  ;;  %v5572_v34 = vld [vmem:[#allocation3 + $0xd0] sm:$0xff] }
 0x6af   : > { %16341 = vmatprep.mubr.msk.bf16.mxu0 %vm18544_vm0, %v22571_v1  ;;  %v5608_v31 = vpack.c.bf16 %v5573_v12, %v5572_v34  ;;  %v5580_v12 = vld [vmem:[#allocation3 + $0x110] sm:$0xff] }
 0x6b1   : > { %v19614_v37 = vpop.f32.mrb[8].mxu0 }
 0x6b2   : > { %v16215_v56 = vpop.f32.mrb[9].mxu0 }
 0x6b3   : > { %v19616_v57 = vpop.f32.mrb[10].mxu0 }
 0x6b4   : > { %v16216_v13 = vpop.f32.mrb[11].mxu0  ;;  %16678 = vmatmul.mubr.msk.bf16.gmra.mrb[28].mxu1 %vm542_vm1, %v7295_v35  ;;  %v7272_v35 = vld [vmem:[#allocation3 + $0x157] sm:$0xff] }
 0x6b5   : > { %16681 = vmatprep.mubr.msk.bf16.mxu1 %vm18544_vm0, %v22571_v1 }
 0x6b6   : > { %16342 = vmatmul.mubr.msk.bf16.gmra.mrb[116].mxu0 %vm542_vm1, %v5603_v25  ;;  %v7301_v25 = vpack.c.bf16 %v7273_v55, %v7272_v35 }
 0x6b7   : > { %16345 = vmatprep.mubr.msk.bf16.mxu0 %vm18544_vm0, %v22571_v1 }
 0x6b9   : > { %v19624_v60 = vpop.f32.mrb[12].mxu0 }
 0x6ba   : > { %v16219_v43 = vpop.f32.mrb[13].mxu0 }
 0x6bb   : > { %v19626_v62 = vpop.f32.mrb[14].mxu0  ;;  %v5609_v43 = vpack.c.bf16 %v5575_v5, %v5574_v59  ;;  %v5583_v5 = vld [vmem:[#allocation3 + $0x128] sm:$0xff] }
 0x6bc   : > { %v16220_v2 = vpop.f32.mrb[15].mxu0  ;;  %16682 = vmatmul.mubr.msk.bf16.gmra.mrb[32].mxu1 %vm542_vm1, %v7296_v61  ;;  %v7274_v61 = vld [vmem:[#allocation3 + $0x167] sm:$0xff] }
 0x6bd   : > { %16685 = vmatprep.mubr.msk.bf16.mxu1 %vm18544_vm0, %v22571_v1  ;;  %v5577_v2 = vld [vmem:[#allocation3 + $0xf8] sm:$0xff]  ;;  %v7302_v27 = vpack.c.bf16 %v7275_v63, %v7274_v61 }
 0x6be   : > { %16346 = vmatmul.mubr.msk.bf16.gmra.mrb[120].mxu0 %vm542_vm1, %v5604_v17 }
 0x6bf   : > { %16349 = vmatprep.mubr.msk.bf16.mxu0 %vm18544_vm0, %v22571_v1 }
 0x6c1   : > { %v19638_v4 = vpop.f32.mrb[16].mxu0 }
 0x6c2   : > { %v16223_v14 = vpop.f32.mrb[17].mxu0 }
 0x6c3   : > { %v19640_v24 = vpop.f32.mrb[18].mxu0 }
 0x6c4   : > { %v16224_v29 = vpop.f32.mrb[19].mxu0  ;;  %16686 = vmatmul.mubr.msk.bf16.gmra.mrb[36].mxu1 %vm542_vm1, %v7297_v16  ;;  %v5610_v16 = vpack.c.bf16 %v5577_v2, %v5576_v10  ;;  %v8125_v2 = vld [vmem:[#allocation3 + $0x34] sm:$0xff] }
 0x6c5   : > { %16689 = vmatprep.mubr.msk.bf16.mxu1 %vm18544_vm0, %v22571_v1 }
 0x6c6   : > { %16350 = vmatmul.mubr.msk.bf16.gmra.mrb[124].mxu0 %vm542_vm1, %v5605_v30  ;;  %v7276_v30 = vld [vmem:[#allocation3 + $0x177] sm:$0xff] }
 0x6c7   : > { %16353 = vmatprep.mubr.msk.bf16.mxu0 %vm18544_vm0, %v22571_v1  ;;  %v7303_v9 = vpack.c.bf16 %v7277_v28, %v7276_v30  ;;  %v5585_v28 = vld [vmem:[#allocation3 + $0x138] sm:$0xff] }
 0x6c9   : > { %v19648_v40 = vpop.f32.mrb[20].mxu0 }
 0x6ca   : > { %v16227_v41 = vpop.f32.mrb[21].mxu0 }
 0x6cb   : > { %v19650_v22 = vpop.f32.mrb[22].mxu0 }
 0x6cc   : > { %v16228_v44 = vpop.f32.mrb[23].mxu0  ;;  %16690 = vmatmul.mubr.msk.bf16.gmra.mrb[40].mxu1 %vm542_vm1, %v7298_v15  ;;  %v5578_v15 = vld [vmem:[#allocation3 + $0x100] sm:$0xff] }
 0x6cd   : > { %16693 = vmatprep.mubr.msk.bf16.mxu1 %vm18544_vm0, %v22571_v1  ;;  %v5611_v44 = vpack.c.bf16 %v5579_v38, %v5578_v15  ;;  %v5584_v15 = vld [vmem:[#allocation3 + $0x130] sm:$0xff] }
 0x6ce   : > { %16354 = vmatmul.mubr.msk.bf16.gmra.mrb[128].mxu0 %vm542_vm1, %v5606_v45 }
 0x6cf   : > { %16357 = vmatprep.mubr.msk.bf16.mxu0 %vm18544_vm0, %v22571_v1 }
 0x6d1   : > { %v19658_v46 = vpop.f32.mrb[24].mxu0 }
 0x6d2   : > { %v16231_v36 = vpop.f32.mrb[25].mxu0 }
 0x6d3   : > { %v19660_v50 = vpop.f32.mrb[26].mxu0 }
 0x6d4   : > { %v16232_v51 = vpop.f32.mrb[27].mxu0  ;;  %16694 = vmatmul.mubr.msk.bf16.gmra.mrb[44].mxu1 %vm542_vm1, %v7299_v49 }
 0x6d5   : > { %16697 = vmatprep.mubr.msk.bf16.mxu1 %vm18544_vm0, %v22571_v1 }
 0x6d6   : > { %16358 = vmatmul.mubr.msk.bf16.gmra.mrb[132].mxu0 %vm542_vm1, %v5607_v52 }
 0x6d7   : > { %16361 = vmatprep.mubr.msk.bf16.mxu0 %vm18544_vm0, %v22571_v1 }
 0x6d9   : > { %v19668_v11 = vpop.f32.mrb[28].mxu0 }
 0x6da   : > { %v16235_v19 = vpop.f32.mrb[29].mxu0 }
 0x6db   : > { %v19670_v32 = vpop.f32.mrb[30].mxu0 }
 0x6dc   : > { %v16236_v26 = vpop.f32.mrb[31].mxu0  ;;  %16698 = vmatmul.mubr.msk.bf16.gmra.mrb[48].mxu1 %vm542_vm1, %v7300_v21  ;;  %v5612_v21 = vpack.c.bf16 %v5581_v3, %v5580_v12 }
 0x6dd   : > { %16701 = vmatprep.mubr.msk.bf16.mxu1 %vm18544_vm0, %v22571_v1  ;;  %v7280_v26 = vld [vmem:[#allocation3 + $0x197] sm:$0xff] }
 0x6de   : > { %16362 = vmatmul.mubr.msk.bf16.gmra.mrb[136].mxu0 %vm542_vm1, %v5608_v31  ;;  %v7305_v59 = vpack.c.bf16 %v7280_v26, %v7280_v26 }
 0x6df   : > { %16365 = vmatprep.mubr.msk.bf16.mxu0 %vm18544_vm0, %v22571_v1 }
 0x6e1   : > { %v19678_v56 = vpop.f32.mrb[32].mxu0 }
 0x6e2   : > { %v16239_v13 = vpop.f32.mrb[33].mxu0 }
 0x6e3   : > { %v19680_v42 = vpop.f32.mrb[34].mxu0 }
 0x6e4   : > { %v16240_v23 = vpop.f32.mrb[35].mxu0  ;;  %16702 = vmatmul.mubr.msk.bf16.gmra.mrb[52].mxu1 %vm542_vm1, %v7301_v25 }
 0x6e5   : > { %16705 = vmatprep.mubr.msk.bf16.mxu1 %vm18544_vm0, %v22571_v1 }
 0x6e6   : > { %16366 = vmatmul.mubr.msk.bf16.gmra.mrb[140].mxu0 %vm542_vm1, %v5609_v43  ;;  %v5582_v43 = vld [vmem:[#allocation3 + $0x120] sm:$0xff] }
 0x6e7   : > { %16369 = vmatprep.mubr.msk.bf16.mxu0 %vm18544_vm0, %v22571_v1  ;;  %v5613_v63 = vpack.c.bf16 %v5583_v5, %v5582_v43  ;;  %v8129_v43 = vld [vmem:[#allocation3 + $0x54] sm:$0xff] }
 0x6e9   : > { %v19688_v0 = vpop.f32.mrb[36].mxu0 }
 0x6ea   : > { %v16243_v17 = vpop.f32.mrb[37].mxu0 }
 0x6eb   : > { %v19690_v7 = vpop.f32.mrb[38].mxu0  ;;  %v8124_v17 = vld [vmem:[#allocation3 + $0x2c] sm:$0xff] }
 0x6ec   : > { %v16244_v14 = vpop.f32.mrb[39].mxu0  ;;  %16706 = vmatmul.mubr.msk.bf16.gmra.mrb[56].mxu1 %vm542_vm1, %v7302_v27  ;;  %v8173_v30 = vpack.c.bf16 %v8125_v2, %v8124_v17  ;;  %v5589_v17 = vld [vmem:[#allocation3 + $0x158] sm:$0xff] }
 0x6ed   : > { %16709 = vmatprep.mubr.msk.bf16.mxu1 %vm18544_vm0, %v22571_v1 }
 0x6ee   : > { %16370 = vmatmul.mubr.msk.bf16.gmra.mrb[144].mxu0 %vm542_vm1, %v5610_v16 }
 0x6ef   : > { %16373 = vmatprep.mubr.msk.bf16.mxu0 %vm18544_vm0, %v22571_v1 }
 0x6f1   : > { %v19698_v29 = vpop.f32.mrb[40].mxu0 }
 0x6f2   : > { %v16247_v39 = vpop.f32.mrb[41].mxu0 }
 0x6f3   : > { %v19700_v41 = vpop.f32.mrb[42].mxu0 }
 0x6f4   : > { %v16248_v8 = vpop.f32.mrb[43].mxu0  ;;  %16710 = vmatmul.mubr.msk.bf16.gmra.mrb[60].mxu1 %vm542_vm1, %v7303_v9 }
 0x6f5   : > { %16713 = vmatprep.mubr.msk.bf16.mxu1 %vm18544_vm0, %v22571_v1 }
 0x6f6   : > { %16374 = vmatmul.mubr.msk.bf16.gmra.mrb[148].mxu0 %vm542_vm1, %v5611_v44  ;;  %v5614_v44 = vpack.c.bf16 %v5585_v28, %v5584_v15 }
 0x6f7   : > { %v19706_v45 = vpop.f32.mrb[212].mxu1  ;;  %16377 = vmatprep.mubr.msk.bf16.mxu0 %vm18544_vm0, %v22571_v1 }
 0x6f8   : > { %v16291_v48 = vpop.f32.mrb[213].mxu1 }
 0x6f9   : > { %v19710_v36 = vpop.f32.mrb[44].mxu0  ;;  %v19712_v49 = vpop.f32.mrb[214].mxu1 }
 0x6fa   : > { %v16251_v51 = vpop.f32.mrb[45].mxu0  ;;  %v16292_v52 = vpop.f32.mrb[215].mxu1 }
 0x6fb   : > { %v19714_v54 = vpop.f32.mrb[46].mxu0  ;;  %v8126_v52 = vld [vmem:[#allocation3 + $0x3c] sm:$0xff] }
 0x6fc   : > { %v16252_v19 = vpop.f32.mrb[47].mxu0  ;;  %16714 = vmatmul.mubr.msk.bf16.gmra.mrb[64].mxu1 %vm542_vm1, %v7304_v53  ;;  %v5587_v53 = vld [vmem:[#allocation3 + $0x148] sm:$0xff] }
 0x6fd   : > { %16717 = vmatprep.mubr.msk.bf16.mxu1 %vm18544_vm0, %v22571_v1 }
 0x6fe   : > { %16378 = vmatmul.mubr.msk.bf16.gmra.mrb[152].mxu0 %vm542_vm1, %v5612_v21  ;;  %v8174_v21 = vpack.c.bf16 %v8127_v47, %v8126_v52  ;;  %v8131_v47 = vld [vmem:[#allocation3 + $0x64] sm:$0xff] }
 0x6ff   : > { %v19720_v34 = vpop.f32.mrb[216].mxu1  ;;  %16381 = vmatprep.mubr.msk.bf16.mxu0 %vm18544_vm0, %v22571_v1 }
 0x700   : > { %v16295_v31 = vpop.f32.mrb[217].mxu1 }
 0x701   : > { %v19724_v55 = vpop.f32.mrb[48].mxu0  ;;  %v19726_v35 = vpop.f32.mrb[218].mxu1  ;;  %v5586_v31 = vld [vmem:[#allocation3 + $0x140] sm:$0xff] }
 0x702   : > { %v16255_v13 = vpop.f32.mrb[49].mxu0  ;;  %v16296_v25 = vpop.f32.mrb[219].mxu1 }
 0x703   : > { %v19728_v23 = vpop.f32.mrb[50].mxu0  ;;  %v5615_v13 = vpack.c.bf16 %v5587_v53, %v5586_v31  ;;  %v8130_v53 = vld [vmem:[#allocation3 + $0x5c] sm:$0xff] }
 0x704   : > { %v16256_v61 = vpop.f32.mrb[51].mxu0  ;;  %16718 = vmatmul.mubr.msk.bf16.gmra.mrb[68].mxu1 %vm542_vm1, %v7305_v59  ;;  %v8128_v59 = vld [vmem:[#allocation3 + $0x4c] sm:$0xff]  ;;  %v8176_v31 = vpack.c.bf16 %v8131_v47, %v8130_v53 }
 0x705   : > { %16829 = vmatprep.mubr.msk.bf16.mxu1 %vm18544_vm0, %v22571_v1 }
 0x706   : > { %16382 = vmatmul.mubr.msk.bf16.gmra.mrb[156].mxu0 %vm542_vm1, %v5613_v63 }
 0x707   : > { %v19734_v27 = vpop.f32.mrb[220].mxu1  ;;  %16385 = vmatprep.mubr.msk.bf16.mxu0 %vm18544_vm0, %v22571_v1 }
 0x708   : > { %v16299_v10 = vpop.f32.mrb[221].mxu1 }
 0x709   : > { %v19738_v14 = vpop.f32.mrb[52].mxu0  ;;  %v19740_v16 = vpop.f32.mrb[222].mxu1 }
 0x70a   : > { %v16259_v38 = vpop.f32.mrb[53].mxu0  ;;  %v16300_v39 = vpop.f32.mrb[223].mxu1 }
 0x70b   : > { %v19742_v9 = vpop.f32.mrb[54].mxu0  ;;  %v5588_v39 = vld [vmem:[#allocation3 + $0x150] sm:$0xff] }
 0x70c   : > { %v16260_v8 = vpop.f32.mrb[55].mxu0  ;;  %16830 = vmatmul.mubr.msk.bf16.vlgmr.msra.gmra.mrb[72].mxu1 %vm542_vm1, %v8173_v30  ;;  %v8175_v30 = vpack.c.bf16 %v8129_v43, %v8128_v59 }
 0x70d   : > { %16833 = vmatprep.mubr.msk.bf16.mxu1 %vm18544_vm0, %v22571_v1  ;;  %v5616_v8 = vpack.c.bf16 %v5589_v17, %v5588_v39  ;;  %v8132_v17 = vld [vmem:[#allocation3 + $0x6c] sm:$0xff] }
 0x70e   : > { %16386 = vmatmul.mubr.msk.bf16.gmra.mrb[160].mxu0 %vm542_vm1, %v5614_v44 }
 0x70f   : > { %v19748_v20 = vpop.f32.mrb[224].mxu1  ;;  %16389 = vmatprep.mubr.msk.bf16.mxu0 %vm18544_vm0, %v22571_v1 }
 0x710   : > { %v16303_v48 = vpop.f32.mrb[225].mxu1 }
 0x711   : > { %v19752_v3 = vpop.f32.mrb[56].mxu0  ;;  %v6018_v51 = vpop.f32.mrb[226].mxu1 }
 0x712   : > { %v16263_v12 = vpop.f32.mrb[57].mxu0  ;;  %v16304_v19 = vpop.f32.mrb[227].mxu1 }
 0x713   : > { %v19754_v26 = vpop.f32.mrb[58].mxu0  ;;  %v5591_v12 = vld [vmem:[#allocation3 + $0x168] sm:$0xff] }
 0x714   : > { %v16264_v5 = vpop.f32.mrb[59].mxu0  ;;  %16834 = vmatmul.mubr.msk.bf16.gmra.mrb[76].mxu1 %vm542_vm1, %v8174_v21 }
 0x715   : > { %16837 = vmatprep.mubr.msk.bf16.mxu1 %vm18544_vm0, %v22571_v1 }
 0x716   : > { %16390 = vmatmul.mubr.msk.bf16.gmra.mrb[164].mxu0 %vm542_vm1, %v5615_v13  ;;  %v5590_v13 = vld [vmem:[#allocation3 + $0x160] sm:$0xff] }
 0x717   : > { %v19760_v25 = vpop.f32.mrb[228].mxu1  ;;  %16393 = vmatprep.mubr.msk.bf16.mxu0 %vm18544_vm0, %v22571_v1  ;;  %v5617_v43 = vpack.c.bf16 %v5591_v12, %v5590_v13  ;;  %v5592_v12 = vld [vmem:[#allocation3 + $0x170] sm:$0xff]  ;;  %v8135_v13 = vld [vmem:[#allocation3 + $0x84] sm:$0xff] }
 0x718   : > { %22637 = vst [vmem:[#allocation4_spill] sm:$0xff] %v19760_v25  ;;  %v16623_v61 = vpop.f32.mrb[229].mxu1 }
 0x719   : > { %v19764_v63 = vpop.f32.mrb[60].mxu0  ;;  %v19766_v2 = vpop.f32.mrb[230].mxu1 }
 0x71a   : > { %22638 = vst [vmem:[#allocation5_spill] sm:$0xff] %v19766_v2  ;;  %v16267_v10 = vpop.f32.mrb[61].mxu0  ;;  %v16624_v28 = vpop.f32.mrb[231].mxu1 }
 0x71b   : > { %v19768_v38 = vpop.f32.mrb[62].mxu0  ;;  %v8133_v10 = vld [vmem:[#allocation3 + $0x74] sm:$0xff] }
 0x71c   : > { %v16268_v15 = vpop.f32.mrb[63].mxu0  ;;  %16838 = vmatmul.mubr.msk.bf16.gmra.mrb[80].mxu1 %vm542_vm1, %v8175_v30 }
 0x71d   : > { %16841 = vmatprep.mubr.msk.bf16.mxu1 %vm18544_vm0, %v22571_v1  ;;  %v5593_v15 = vld [vmem:[#allocation3 + $0x178] sm:$0xff] }
 0x71e   : > { %16394 = vmatmul.mubr.msk.bf16.gmra.mrb[168].mxu0 %vm542_vm1, %v5616_v8 }
 0x71f   : > { %v19774_v44 = vpop.f32.mrb[232].mxu1  ;;  %16397 = vmatprep.mubr.msk.bf16.mxu0 %vm18544_vm0, %v22571_v1 }
 0x720   : > { %22639 = vst [vmem:[#allocation6_spill] sm:$0xff] %v19774_v44  ;;  %v16627_v48 = vpop.f32.mrb[233].mxu1  ;;  %v8141_v44 = vld [vmem:[#allocation3 + $0xb4] sm:$0xff] }
 0x721   : > { %v19778_v51 = vpop.f32.mrb[64].mxu0  ;;  %v19780_v52 = vpop.f32.mrb[234].mxu1  ;;  %v8177_v48 = vpack.c.bf16 %v8133_v10, %v8132_v17  ;;  %v8134_v10 = vld [vmem:[#allocation3 + $0x7c] sm:$0xff] }
 0x722   : > { %22640 = vst [vmem:[#allocation7_spill] sm:$0xff] %v19780_v52  ;;  %v16271_v19 = vpop.f32.mrb[65].mxu0  ;;  %v16628_v21 = vpop.f32.mrb[235].mxu1  ;;  %v6342_v52 = vld [vmem:[#allocation3 + $0x12] sm:$0xff] }
 0x723   : > { %v19782_v5 = vpop.f32.mrb[66].mxu0  ;;  %v5618_v21 = vpack.c.bf16 %v5593_v15, %v5592_v12 }
 0x724   : > { %v16272_v59 = vpop.f32.mrb[67].mxu0  ;;  %16842 = vmatmul.mubr.msk.bf16.gmra.mrb[84].mxu1 %vm542_vm1, %v8176_v31 }
 0x725   : > { %16845 = vmatprep.mubr.msk.bf16.mxu1 %vm18544_vm0, %v22571_v1 }
 0x726   : > { %16398 = vmatmul.mubr.msk.bf16.gmra.mrb[172].mxu0 %vm542_vm1, %v5617_v43 }
 0x727   : > { %v19788_v61 = vpop.f32.mrb[236].mxu1  ;;  %16401 = vmatprep.mubr.msk.bf16.mxu0 %vm18544_vm0, %v22571_v1 }
 0x728   : > { %22641 = vst [vmem:[#allocation8_spill] sm:$0xff] %v19788_v61  ;;  %v16631_v28 = vpop.f32.mrb[237].mxu1  ;;  %v8139_v61 = vld [vmem:[#allocation3 + $0xa4] sm:$0xff] }
 0x729   : > { %v19792_v30 = vpop.f32.mrb[68].mxu0  ;;  %v19794_v39 = vpop.f32.mrb[238].mxu1  ;;  %v5594_v28 = vld [vmem:[#allocation3 + $0x180] sm:$0xff] }
 0x72a   : > { %22642 = vst [vmem:[#allocation9_spill] sm:$0xff] %v19794_v39  ;;  %v16275_v8 = vpop.f32.mrb[69].mxu0  ;;  %v16632_v47 = vpop.f32.mrb[239].mxu1 }
 0x72b   : > { %v19796_v53 = vpop.f32.mrb[70].mxu0  ;;  %v8178_v47 = vpack.c.bf16 %v8135_v13, %v8134_v10 }
 0x72c   : > { %v16276_v19 = vpop.f32.mrb[71].mxu0  ;;  %16846 = vmatmul.mubr.msk.bf16.gmra.mrb[88].mxu1 %vm542_vm1, %v8177_v48 }
 0x72d   : > { %16849 = vmatprep.mubr.msk.bf16.mxu1 %vm18544_vm0, %v22571_v1  ;;  %v5619_v19 = vpack.c.bf16 %v5594_v28, %v5594_v28 }
 0x72e   : > { %16402 = vmatmul.mubr.msk.bf16.gmra.mrb[176].mxu0 %vm542_vm1, %v5618_v21 }
 0x72f   : > { %v19802_v31 = vpop.f32.mrb[240].mxu1  ;;  %16405 = vmatprep.mubr.msk.bf16.mxu0 %vm18544_vm0, %v22571_v1 }
 0x730   : > { %22643 = vst [vmem:[#allocation10_spill] sm:$0xff] %v19802_v31  ;;  %v16635_v59 = vpop.f32.mrb[241].mxu1 }
 0x731   : > { %v19806_v43 = vpop.f32.mrb[72].mxu0  ;;  %v19808_v17 = vpop.f32.mrb[242].mxu1  ;;  %v8136_v59 = vld [vmem:[#allocation3 + $0x8c] sm:$0xff] }
 0x732   : > { %22644 = vst [vmem:[#allocation11_spill] sm:$0xff] %v19808_v17  ;;  %v16279_v8 = vpop.f32.mrb[73].mxu0  ;;  %v16636_v15 = vpop.f32.mrb[243].mxu1  ;;  %v8137_v17 = vld [vmem:[#allocation3 + $0x94] sm:$0xff] }
 0x733   : > { %v19810_v48 = vpop.f32.mrb[74].mxu0  ;;  %v6340_v15 = vld [vmem:[#allocation3 + $0x2] sm:$0xff]  ;;  %v8179_v31 = vpack.c.bf16 %v8137_v17, %v8136_v59 }
 0x734   : > { %v16280_v12 = vpop.f32.mrb[75].mxu0  ;;  %16850 = vmatmul.mubr.msk.bf16.gmra.mrb[92].mxu1 %vm542_vm1, %v8178_v47  ;;  %v6341_v47 = vld [vmem:[#allocation3 + $0xa] sm:$0xff]  ;;  %v8138_v59 = vld [vmem:[#allocation3 + $0x9c] sm:$0xff] }
 0x735   : > { %16853 = vmatprep.mubr.msk.bf16.mxu1 %vm18544_vm0, %v22571_v1 }
 0x736   : > { %16406 = vmatmul.mubr.msk.bf16.gmra.mrb[180].mxu0 %vm542_vm1, %v5619_v19 }
 0x737   : > { %v19816_v21 = vpop.f32.mrb[244].mxu1  ;;  %16413 = vmatprep.mubr.msk.bf16.mxu0 %vm18544_vm0, %v22571_v1 }
 0x738   : > { %22645 = vst [vmem:[#allocation12_spill] sm:$0xff] %v19816_v21  ;;  %v16639_v8 = vpop.f32.mrb[245].mxu1  ;;  %v6389_v21 = vpack.c.bf16 %v6341_v47, %v6340_v15  ;;  %v8180_v47 = vpack.c.bf16 %v8139_v61, %v8138_v59 }
 0x739   : > { %v19820_v13 = vpop.f32.mrb[76].mxu0  ;;  %v19822_v10 = vpop.f32.mrb[246].mxu1 }
 0x73a   : > { %22646 = vst [vmem:[#allocation13_spill] sm:$0xff] %v19822_v10  ;;  %v16283_v28 = vpop.f32.mrb[77].mxu0  ;;  %v16640_v12 = vpop.f32.mrb[247].mxu1 }
 0x73b   : > { %v19824_v39 = vpop.f32.mrb[78].mxu0 }
 0x73c   : > { %v16284_v19 = vpop.f32.mrb[79].mxu0  ;;  %16854 = vmatmul.mubr.msk.bf16.gmra.mrb[96].mxu1 %vm542_vm1, %v8179_v31 }
 0x73d   : > { %16857 = vmatprep.mubr.msk.bf16.mxu1 %vm18544_vm0, %v22571_v1  ;;  %v6343_v19 = vld [vmem:[#allocation3 + $0x1a] sm:$0xff] }
 0x73e   : > { %16414 = vmatmul.mubr.msk.bf16.vlgmr.msra.gmra.mrb[184].mxu0 %vm542_vm1, %v6389_v21 }
 0x73f   : > { %v19830_v8 = vpop.f32.mrb[248].mxu1  ;;  %16417 = vmatprep.mubr.msk.bf16.mxu0 %vm18544_vm0, %v22571_v1 }
 0x740   : > { %22647 = vst [vmem:[#allocation14_spill] sm:$0xff] %v19830_v8  ;;  %v16643_v28 = vpop.f32.mrb[249].mxu1  ;;  %v6390_v8 = vpack.c.bf16 %v6343_v19, %v6342_v52 }
 0x741   : > { %v19834_v12 = vpop.f32.mrb[80].mxu0  ;;  %v19836_v17 = vpop.f32.mrb[250].mxu1 }
 0x742   : > { %22648 = vst [vmem:[#allocation15_spill] sm:$0xff] %v19836_v17  ;;  %v16287_v31 = vpop.f32.mrb[81].mxu0  ;;  %v16644_v15 = vpop.f32.mrb[251].mxu1  ;;  %v8140_v17 = vld [vmem:[#allocation3 + $0xac] sm:$0xff] }
 0x743   : > { %v19838_v10 = vpop.f32.mrb[82].mxu0  ;;  %v6344_v15 = vld [vmem:[#allocation3 + $0x22] sm:$0xff]  ;;  %v8181_v2 = vpack.c.bf16 %v8141_v44, %v8140_v17 }
 0x744   : > { %v16288_v21 = vpop.f32.mrb[83].mxu0  ;;  %16858 = vmatmul.mubr.msk.bf16.gmra.mrb[100].mxu1 %vm542_vm1, %v8180_v47  ;;  %v8143_v44 = vld [vmem:[#allocation3 + $0xc4] sm:$0xff]  ;;  %v8142_v17 = vld [vmem:[#allocation3 + $0xbc] sm:$0xff] }
 0x745   : > { %16861 = vmatprep.mubr.msk.bf16.mxu1 %vm18544_vm0, %v22571_v1  ;;  %v6345_v21 = vld [vmem:[#allocation3 + $0x2a] sm:$0xff] }
 0x746   : > { %16418 = vmatmul.mubr.msk.bf16.gmra.mrb[188].mxu0 %vm542_vm1, %v6390_v8 }
 0x747   : > { %v19844_v28 = vpop.f32.mrb[252].mxu1  ;;  %16421 = vmatprep.mubr.msk.bf16.mxu0 %vm18544_vm0, %v22571_v1  ;;  %v6391_v1 = vpack.c.bf16 %v6345_v21, %v6344_v15 }
 0x748   : > { %22649 = vst [vmem:[#allocation16_spill] sm:$0xff] %v19844_v28  ;;  %v16647_v61 = vpop.f32.mrb[253].mxu1 }
 0x749   : > { %v6142_v59 = vpop.f32.mrb[84].mxu0  ;;  %v19848_v31 = vpop.f32.mrb[254].mxu1  ;;  %v18446_v61 = vld [vmem:[%s22564_s2 + $0x110] sm:$0xff]  }
 0x74a   : > { %22650 = vst [vmem:[#allocation17_spill] sm:$0xff] %v19848_v31  ;;  %v19851_v52 = vadd.f32 %v6142_v59, %v19593_v33  ;;  %v16311_v19 = vpop.f32.mrb[85].mxu0  ;;  %v16648_v47 = vpop.f32.mrb[255].mxu1  ;;  %v22651_v31 = vmov 0.0   ;;  %17034 = vmatpush3.bf16.msra.mxu1 %v18446_v61  ;;  %v6347_v59 = vld [vmem:[#allocation3 + $0x3a] sm:$0xff]  ;;  %v6346_v61 = vld [vmem:[#allocation3 + $0x32] sm:$0xff] }
 0x74b   : > { %v6145_v8 = vpop.f32.mrb[86].mxu0  ;;  %17035 = vmatprep.subr.bf16.mxu1 %v22651_v31  ;;  %v8182_v19 = vpack.c.bf16 %v8143_v44, %v8142_v17  ;;  %v18447_v47 = vld [vmem:[%s22564_s2 + $0x118] sm:$0xff]  }
 0x74c   : > { %v19854_v28 = vadd.f32 %v6145_v8, %v19596_v58  ;;  %v16312_v25 = vpop.f32.mrb[87].mxu0  ;;  %16862 = vmatmul.mubr.msk.bf16.gmra.mrb[104].mxu1 %vm542_vm1, %v8181_v2  ;;  %v8144_v44 = vld [vmem:[#allocation3 + $0xcc] sm:$0xff] }
 0x74d   : > { %16865 = vmatprep.mubr.msk.bf16.mxu1 %vm18544_vm0, %v22651_v31 }
 0x74e   : > { %16422 = vmatmul.mubr.msk.bf16.gmra.mrb[192].mxu0 %vm542_vm1, %v6391_v1  ;;  %17036 = vmatpush3.bf16.msra.mxu1 %v18447_v47 }
 0x74f   : > { %v19863_v33 = vpop.f32.mrb[0].mxu1  ;;  %16425 = vmatprep.mubr.msk.bf16.mxu0 %vm18544_vm0, %v22651_v31 }
 0x750   : > { %22652 = vst [vmem:[#allocation18_spill] sm:$0xff] %v19863_v33  ;;  %v16651_v58 = vpop.f32.mrb[1].mxu1 }
 0x751   : > { %v6150_v25 = vpop.f32.mrb[88].mxu0  ;;  %v19868_v2 = vpop.f32.mrb[2].mxu1 }
 0x752   : > { %22653 = vst [vmem:[#allocation19_spill] sm:$0xff] %v19868_v2  ;;  %v19871_v15 = vadd.f32 %v6150_v25, %v19604_v6  ;;  %v16315_v21 = vpop.f32.mrb[89].mxu0  ;;  %v16652_v1 = vpop.f32.mrb[3].mxu1  ;;  %v6392_v2 = vpack.c.bf16 %v6347_v59, %v6346_v61  ;;  %v8145_v25 = vld [vmem:[#allocation3 + $0xd4] sm:$0xff] }
 0x753   : > { %v6153_v8 = vpop.f32.mrb[90].mxu0  ;;  %v6348_v1 = vld [vmem:[#allocation3 + $0x42] sm:$0xff]  ;;  %v8183_v61 = vpack.c.bf16 %v8145_v25, %v8144_v44 }
 0x754   : > { %v19877_v33 = vadd.f32 %v6153_v8, %v19606_v18  ;;  %v16316_v58 = vpop.f32.mrb[91].mxu0  ;;  %16866 = vmatmul.mubr.msk.bf16.gmra.mrb[108].mxu1 %vm542_vm1, %v8182_v19  ;;  %v6349_v19 = vld [vmem:[#allocation3 + $0x4a] sm:$0xff] }
 0x755   : > { %16869 = vmatprep.mubr.msk.bf16.mxu1 %vm18544_vm0, %v22651_v31 }
 0x756   : > { %22654 = vst [vmem:[#allocation20_spill] sm:$0xff] %v19877_v33  ;;  %16426 = vmatmul.mubr.msk.bf16.gmra.mrb[196].mxu0 %vm542_vm1, %v6392_v2  ;;  %v6393_v33 = vpack.c.bf16 %v6349_v19, %v6348_v1 }
 0x757   : > { %v19883_v6 = vpop.f32.mrb[4].mxu1  ;;  %16429 = vmatprep.mubr.msk.bf16.mxu0 %vm18544_vm0, %v22651_v31 }
 0x758   : > { %22655 = vst [vmem:[#allocation21_spill] sm:$0xff] %v19883_v6  ;;  %v16655_v17 = vpop.f32.mrb[5].mxu1 }
 0x759   : > { %v6158_v18 = vpop.f32.mrb[92].mxu0  ;;  %v19887_v21 = vpop.f32.mrb[6].mxu1 }
 0x75a   : > { %22656 = vst [vmem:[#allocation22_spill] sm:$0xff] %v19887_v21  ;;  %v19890_v59 = vadd.f32 %v6158_v18, %v19614_v37  ;;  %v16319_v8 = vpop.f32.mrb[93].mxu0  ;;  %v16656_v47 = vpop.f32.mrb[7].mxu1  ;;  %v8147_v37 = vld [vmem:[#allocation3 + $0xe4] sm:$0xff] }
 0x75b   : > { %v6161_v2 = vpop.f32.mrb[94].mxu0 }
 0x75c   : > { %v19893_v58 = vadd.f32 %v6161_v2, %v19616_v57  ;;  %v16320_v6 = vpop.f32.mrb[95].mxu0  ;;  %16870 = vmatmul.mubr.msk.bf16.gmra.mrb[112].mxu1 %vm542_vm1, %v8183_v61  ;;  %v8146_v57 = vld [vmem:[#allocation3 + $0xdc] sm:$0xff] }
 0x75d   : > { %16873 = vmatprep.mubr.msk.bf16.mxu1 %vm18544_vm0, %v22651_v31  ;;  %v6351_v6 = vld [vmem:[#allocation3 + $0x5a] sm:$0xff]  ;;  %v8184_v47 = vpack.c.bf16 %v8147_v37, %v8146_v57  ;;  %v8148_v37 = vld [vmem:[#allocation3 + $0xec] sm:$0xff] }
 0x75e   : > { %16430 = vmatmul.mubr.msk.bf16.gmra.mrb[200].mxu0 %vm542_vm1, %v6393_v33  ;;  %v6350_v33 = vld [vmem:[#allocation3 + $0x52] sm:$0xff] }
 0x75f   : > { %v19899_v17 = vpop.f32.mrb[8].mxu1  ;;  %16433 = vmatprep.mubr.msk.bf16.mxu0 %vm18544_vm0, %v22651_v31  ;;  %v8149_v57 = vld [vmem:[#allocation3 + $0xf4] sm:$0xff] }
 0x760   : > { %22657 = vst [vmem:[#allocation23_spill] sm:$0xff] %v19899_v17  ;;  %v16659_v44 = vpop.f32.mrb[9].mxu1 }
 0x761   : > { %v6166_v25 = vpop.f32.mrb[96].mxu0  ;;  %v19903_v18 = vpop.f32.mrb[10].mxu1  ;;  %v6394_v44 = vpack.c.bf16 %v6351_v6, %v6350_v33 }
 0x762   : > { %22658 = vst [vmem:[#allocation24_spill] sm:$0xff] %v19903_v18  ;;  %v19906_v8 = vadd.f32 %v6166_v25, %v19624_v60  ;;  %v16323_v1 = vpop.f32.mrb[97].mxu0  ;;  %v16660_v19 = vpop.f32.mrb[11].mxu1  ;;  %v18448_v60 = vld [vmem:[%s22564_s2 + $0xc0] sm:$0xff]  }
 0x763   : > { %v6169_v61 = vpop.f32.mrb[98].mxu0  ;;  %16514 = vmatpush3.bf16.msra.mxu0 %v18448_v60  ;;  %v6352_v1 = vld [vmem:[#allocation3 + $0x62] sm:$0xff]  ;;  %v6353_v19 = vld [vmem:[#allocation3 + $0x6a] sm:$0xff] }
 0x764   : > { %v19909_v2 = vadd.f32 %v6169_v61, %v19626_v62  ;;  %v16324_v17 = vpop.f32.mrb[99].mxu0  ;;  %16874 = vmatmul.mubr.msk.bf16.gmra.mrb[116].mxu1 %vm542_vm1, %v8184_v47  ;;  %16515 = vmatprep.subr.bf16.mxu0 %v22651_v31  ;;  %v6395_v60 = vpack.c.bf16 %v6353_v19, %v6352_v1 }
 0x765   : > { %16877 = vmatprep.mubr.msk.bf16.mxu1 %vm18544_vm0, %v22651_v31 }
 0x766   : > { %16434 = vmatmul.mubr.msk.bf16.gmra.mrb[204].mxu0 %vm542_vm1, %v6394_v44  ;;  %v8185_v44 = vpack.c.bf16 %v8149_v57, %v8148_v37 }
 0x767   : > { %v19918_v25 = vpop.f32.mrb[12].mxu1  ;;  %16437 = vmatprep.mubr.msk.bf16.mxu0 %vm18544_vm0, %v22651_v31 }
 0x768   : > { %22659 = vst [vmem:[#allocation25_spill] sm:$0xff] %v19918_v25  ;;  %v16663_v62 = vpop.f32.mrb[13].mxu1 }
 0x769   : > { %v6174_v17 = vpop.f32.mrb[100].mxu0  ;;  %v19922_v6 = vpop.f32.mrb[14].mxu1 }
 0x76a   : > { %22660 = vst [vmem:[#allocation26_spill] sm:$0xff] %v19922_v6  ;;  %v19926_v47 = vadd.f32 %v6174_v17, %v19638_v4  ;;  %v16327_v61 = vpop.f32.mrb[101].mxu0  ;;  %v16664_v33 = vpop.f32.mrb[15].mxu1  ;;  %v8151_v4 = vld [vmem:[#allocation3 + $0x104] sm:$0xff] }
 0x76b   : > { %v6177_v25 = vpop.f32.mrb[102].mxu0 }
 0x76c   : > { %v19929_v18 = vadd.f32 %v6177_v25, %v19640_v24  ;;  %v16328_v21 = vpop.f32.mrb[103].mxu0  ;;  %16878 = vmatmul.mubr.msk.bf16.gmra.mrb[120].mxu1 %vm542_vm1, %v8185_v44  ;;  %v8150_v24 = vld [vmem:[#allocation3 + $0xfc] sm:$0xff]  ;;  %v6354_v44 = vld [vmem:[#allocation3 + $0x72] sm:$0xff] }
 0x76d   : > { %16881 = vmatprep.mubr.msk.bf16.mxu1 %vm18544_vm0, %v22651_v31  ;;  %v6355_v21 = vld [vmem:[#allocation3 + $0x7a] sm:$0xff]  ;;  %v8186_v61 = vpack.c.bf16 %v8151_v4, %v8150_v24 }
 0x76e   : > { %16438 = vmatmul.mubr.msk.bf16.gmra.mrb[208].mxu0 %vm542_vm1, %v6395_v60 }
 0x76f   : > { %v19935_v62 = vpop.f32.mrb[16].mxu1  ;;  %16441 = vmatprep.mubr.msk.bf16.mxu0 %vm18544_vm0, %v22651_v31 }
 0x770   : > { %22661 = vst [vmem:[#allocation27_spill] sm:$0xff] %v19935_v62  ;;  %v16667_v37 = vpop.f32.mrb[17].mxu1 }
 0x771   : > { %v6182_v57 = vpop.f32.mrb[104].mxu0  ;;  %v19939_v17 = vpop.f32.mrb[18].mxu1  ;;  %v6396_v37 = vpack.c.bf16 %v6355_v21, %v6354_v44 }
 0x772   : > { %22662 = vst [vmem:[#allocation28_spill] sm:$0xff] %v19939_v17  ;;  %v19942_v25 = vadd.f32 %v6182_v57, %v19648_v40  ;;  %v16331_v1 = vpop.f32.mrb[105].mxu0  ;;  %v16668_v19 = vpop.f32.mrb[19].mxu1  ;;  %v8152_v40 = vld [vmem:[#allocation3 + $0x10c] sm:$0xff]  ;;  %v8153_v57 = vld [vmem:[#allocation3 + $0x114] sm:$0xff] }
 0x773   : > { %v6185_v33 = vpop.f32.mrb[106].mxu0  ;;  %v6357_v1 = vld [vmem:[#allocation3 + $0x8a] sm:$0xff] }
 0x774   : > { %v19945_v60 = vadd.f32 %v6185_v33, %v19650_v22  ;;  %v16332_v62 = vpop.f32.mrb[107].mxu0  ;;  %16882 = vmatmul.mubr.msk.bf16.gmra.mrb[176].mxu1 %vm542_vm1, %v8186_v61  ;;  %v8187_v33 = vpack.c.bf16 %v8153_v57, %v8152_v40 }
 0x775   : > { %16885 = vmatprep.mubr.msk.bf16.mxu1 %vm18544_vm0, %v22651_v31  ;;  %v6356_v62 = vld [vmem:[#allocation3 + $0x82] sm:$0xff] }
 0x776   : > { %16442 = vmatmul.mubr.msk.bf16.gmra.mrb[212].mxu0 %vm542_vm1, %v6396_v37  ;;  %v6397_v6 = vpack.c.bf16 %v6357_v1, %v6356_v62 }
 0x777   : > { %v19951_v17 = vpop.f32.mrb[20].mxu1  ;;  %16445 = vmatprep.mubr.msk.bf16.mxu0 %vm18544_vm0, %v22651_v31 }
 0x778   : > { %22663 = vst [vmem:[#allocation29_spill] sm:$0xff] %v19951_v17  ;;  %v16671_v4 = vpop.f32.mrb[21].mxu1 }
 0x779   : > { %v6190_v24 = vpop.f32.mrb[108].mxu0  ;;  %v19955_v22 = vpop.f32.mrb[22].mxu1 }
 0x77a   : > { %22664 = vst [vmem:[#allocation30_spill] sm:$0xff] %v19955_v22  ;;  %v19958_v21 = vadd.f32 %v6190_v24, %v19658_v46  ;;  %v16335_v19 = vpop.f32.mrb[109].mxu0  ;;  %v16672_v61 = vpop.f32.mrb[23].mxu1  ;;  %v8155_v46 = vld [vmem:[#allocation3 + $0x124] sm:$0xff] }
 0x77b   : > { %v6193_v44 = vpop.f32.mrb[110].mxu0 }
 0x77c   : > { %v19961_v37 = vadd.f32 %v6193_v44, %v19660_v50  ;;  %v16336_v17 = vpop.f32.mrb[111].mxu0  ;;  %16886 = vmatmul.mubr.msk.bf16.gmra.mrb[180].mxu1 %vm542_vm1, %v8187_v33  ;;  %v8154_v50 = vld [vmem:[#allocation3 + $0x11c] sm:$0xff] }
 0x77d   : > { %16889 = vmatprep.mubr.msk.bf16.mxu1 %vm18544_vm0, %v22651_v31  ;;  %v6359_v17 = vld [vmem:[#allocation3 + $0x9a] sm:$0xff]  ;;  %v8188_v61 = vpack.c.bf16 %v8155_v46, %v8154_v50  ;;  %v8156_v46 = vld [vmem:[#allocation3 + $0x12c] sm:$0xff] }
 0x77e   : > { %16446 = vmatmul.mubr.msk.bf16.gmra.mrb[216].mxu0 %vm542_vm1, %v6397_v6  ;;  %v6358_v6 = vld [vmem:[#allocation3 + $0x92] sm:$0xff] }
 0x77f   : > { %v19967_v4 = vpop.f32.mrb[24].mxu1  ;;  %16449 = vmatprep.mubr.msk.bf16.mxu0 %vm18544_vm0, %v22651_v31 }
 0x780   : > { %22665 = vst [vmem:[#allocation31_spill] sm:$0xff] %v19967_v4  ;;  %v16675_v40 = vpop.f32.mrb[25].mxu1 }
 0x781   : > { %v6198_v57 = vpop.f32.mrb[112].mxu0  ;;  %v19971_v24 = vpop.f32.mrb[26].mxu1  ;;  %v6398_v40 = vpack.c.bf16 %v6359_v17, %v6358_v6  ;;  %v6360_v17 = vld [vmem:[#allocation3 + $0xa2] sm:$0xff] }
 0x782   : > { %22666 = vst [vmem:[#allocation32_spill] sm:$0xff] %v19971_v24  ;;  %v19974_v19 = vadd.f32 %v6198_v57, %v19668_v11  ;;  %v16339_v62 = vpop.f32.mrb[113].mxu0  ;;  %v16676_v1 = vpop.f32.mrb[27].mxu1  ;;  %v18449_v24 = vld [vmem:[%s22564_s2 + $0xc8] sm:$0xff]   ;;  %v8157_v57 = vld [vmem:[#allocation3 + $0x134] sm:$0xff] }
 0x783   : > { %v6201_v33 = vpop.f32.mrb[114].mxu0  ;;  %16516 = vmatpush3.bf16.msra.mxu0 %v18449_v24  ;;  %v6361_v62 = vld [vmem:[#allocation3 + $0xaa] sm:$0xff]  ;;  %v8189_v6 = vpack.c.bf16 %v8157_v57, %v8156_v46 }
 0x784   : > { %v19977_v44 = vadd.f32 %v6201_v33, %v19670_v32  ;;  %v16340_v4 = vpop.f32.mrb[115].mxu0  ;;  %16890 = vmatmul.mubr.msk.bf16.gmra.mrb[184].mxu1 %vm542_vm1, %v8188_v61  ;;  %16721 = vmatprep.subr.bf16.mxu0 %v22651_v31  ;;  %v6399_v24 = vpack.c.bf16 %v6361_v62, %v6360_v17 }
 0x785   : > { %16893 = vmatprep.mubr.msk.bf16.mxu1 %vm18544_vm0, %v22651_v31 }
 0x786   : > { %16450 = vmatmul.mubr.msk.bf16.gmra.mrb[220].mxu0 %vm542_vm1, %v6398_v40 }
 0x787   : > { %v19986_v11 = vpop.f32.mrb[28].mxu1  ;;  %16453 = vmatprep.mubr.msk.bf16.mxu0 %vm18544_vm0, %v22651_v31 }
 0x788   : > { %22667 = vst [vmem:[#allocation33_spill] sm:$0xff] %v19986_v11  ;;  %v16679_v32 = vpop.f32.mrb[29].mxu1 }
 0x789   : > { %v6206_v4 = vpop.f32.mrb[116].mxu0  ;;  %v19991_v50 = vpop.f32.mrb[30].mxu1 }
 0x78a   : > { %22668 = vst [vmem:[#allocation34_spill] sm:$0xff] %v19991_v50  ;;  %v19994_v1 = vadd.f32 %v6206_v4, %v19678_v56  ;;  %v16343_v61 = vpop.f32.mrb[117].mxu0  ;;  %v16680_v33 = vpop.f32.mrb[31].mxu1  ;;  %v8159_v56 = vld [vmem:[#allocation3 + $0x144] sm:$0xff] }
 0x78b   : > { %v6209_v40 = vpop.f32.mrb[118].mxu0 }
 0x78c   : > { %v19997_v11 = vadd.f32 %v6209_v40, %v19680_v42  ;;  %v16344_v22 = vpop.f32.mrb[119].mxu0  ;;  %16894 = vmatmul.mubr.msk.bf16.gmra.mrb[188].mxu1 %vm542_vm1, %v8189_v6  ;;  %v8158_v42 = vld [vmem:[#allocation3 + $0x13c] sm:$0xff]  ;;  %v6362_v40 = vld [vmem:[#allocation3 + $0xb2] sm:$0xff] }
 0x78d   : > { %16897 = vmatprep.mubr.msk.bf16.mxu1 %vm18544_vm0, %v22651_v31  ;;  %v6363_v22 = vld [vmem:[#allocation3 + $0xba] sm:$0xff]  ;;  %v8190_v33 = vpack.c.bf16 %v8159_v56, %v8158_v42 }
 0x78e   : > { %16454 = vmatmul.mubr.msk.bf16.gmra.mrb[224].mxu0 %vm542_vm1, %v6399_v24 }
 0x78f   : > { %v20003_v32 = vpop.f32.mrb[32].mxu1  ;;  %16457 = vmatprep.mubr.msk.bf16.mxu0 %vm18544_vm0, %v22651_v31 }
 0x790   : > { %22669 = vst [vmem:[#allocation35_spill] sm:$0xff] %v20003_v32  ;;  %v16683_v46 = vpop.f32.mrb[33].mxu1 }
 0x791   : > { %v6214_v57 = vpop.f32.mrb[120].mxu0  ;;  %v20007_v4 = vpop.f32.mrb[34].mxu1  ;;  %v6400_v46 = vpack.c.bf16 %v6363_v22, %v6362_v40 }
 0x792   : > { %22670 = vst [vmem:[#allocation36_spill] sm:$0xff] %v20007_v4  ;;  %v20010_v61 = vadd.f32 %v6214_v57, %v19688_v0  ;;  %v16347_v17 = vpop.f32.mrb[121].mxu0  ;;  %v16684_v62 = vpop.f32.mrb[35].mxu1  ;;  %v8160_v0 = vld [vmem:[#allocation3 + $0x14c] sm:$0xff]  ;;  %v8161_v57 = vld [vmem:[#allocation3 + $0x154] sm:$0xff] }
 0x793   : > { %v6217_v6 = vpop.f32.mrb[122].mxu0  ;;  %v6365_v17 = vld [vmem:[#allocation3 + $0xca] sm:$0xff] }
 0x794   : > { %v20013_v24 = vadd.f32 %v6217_v6, %v19690_v7  ;;  %v16348_v32 = vpop.f32.mrb[123].mxu0  ;;  %16898 = vmatmul.mubr.msk.bf16.gmra.mrb[192].mxu1 %vm542_vm1, %v8190_v33  ;;  %v8191_v6 = vpack.c.bf16 %v8161_v57, %v8160_v0 }
 0x795   : > { %16901 = vmatprep.mubr.msk.bf16.mxu1 %vm18544_vm0, %v22651_v31  ;;  %v6364_v32 = vld [vmem:[#allocation3 + $0xc2] sm:$0xff] }
 0x796   : > { %16458 = vmatmul.mubr.msk.bf16.gmra.mrb[228].mxu0 %vm542_vm1, %v6400_v46  ;;  %v6401_v50 = vpack.c.bf16 %v6365_v17, %v6364_v32 }
 0x797   : > { %v20019_v4 = vpop.f32.mrb[36].mxu1  ;;  %16461 = vmatprep.mubr.msk.bf16.mxu0 %vm18544_vm0, %v22651_v31 }
 0x798   : > { %22671 = vst [vmem:[#allocation37_spill] sm:$0xff] %v20019_v4  ;;  %v16687_v56 = vpop.f32.mrb[37].mxu1 }
 0x799   : > { %v6222_v42 = vpop.f32.mrb[124].mxu0  ;;  %v20023_v7 = vpop.f32.mrb[38].mxu1 }
 0x79a   : > { %22672 = vst [vmem:[#allocation38_spill] sm:$0xff] %v20023_v7  ;;  %v20026_v22 = vadd.f32 %v6222_v42, %v19698_v29  ;;  %v16351_v62 = vpop.f32.mrb[125].mxu0  ;;  %v16688_v33 = vpop.f32.mrb[39].mxu1  ;;  %v8163_v29 = vld [vmem:[#allocation3 + $0x164] sm:$0xff] }
 0x79b   : > { %v6225_v40 = vpop.f32.mrb[126].mxu0 }
 0x79c   : > { %v20029_v46 = vadd.f32 %v6225_v40, %v19700_v41  ;;  %v16352_v4 = vpop.f32.mrb[127].mxu0  ;;  %16902 = vmatmul.mubr.msk.bf16.gmra.mrb[196].mxu1 %vm542_vm1, %v8191_v6  ;;  %v8162_v41 = vld [vmem:[#allocation3 + $0x15c] sm:$0xff] }
 0x79d   : > { %16905 = vmatprep.mubr.msk.bf16.mxu1 %vm18544_vm0, %v22651_v31  ;;  %v6367_v4 = vld [vmem:[#allocation3 + $0xda] sm:$0xff]  ;;  %v8192_v33 = vpack.c.bf16 %v8163_v29, %v8162_v41 }
 0x79e   : > { %16462 = vmatmul.mubr.msk.bf16.gmra.mrb[232].mxu0 %vm542_vm1, %v6401_v50  ;;  %v6366_v50 = vld [vmem:[#allocation3 + $0xd2] sm:$0xff] }
 0x79f   : > { %v20035_v56 = vpop.f32.mrb[40].mxu1  ;;  %16465 = vmatprep.mubr.msk.bf16.mxu0 %vm18544_vm0, %v22651_v31 }
 0x7a0   : > { %22673 = vst [vmem:[#allocation39_spill] sm:$0xff] %v20035_v56  ;;  %v16691_v0 = vpop.f32.mrb[41].mxu1 }
 0x7a1   : > { %v6230_v57 = vpop.f32.mrb[128].mxu0  ;;  %v20039_v42 = vpop.f32.mrb[42].mxu1  ;;  %v6402_v0 = vpack.c.bf16 %v6367_v4, %v6366_v50 }
 0x7a2   : > { %22674 = vst [vmem:[#allocation40_spill] sm:$0xff] %v20039_v42  ;;  %v20042_v62 = vadd.f32 %v6230_v57, %v19710_v36  ;;  %v16355_v32 = vpop.f32.mrb[129].mxu0  ;;  %v16692_v17 = vpop.f32.mrb[43].mxu1  ;;  %v8164_v36 = vld [vmem:[#allocation3 + $0x16c] sm:$0xff]  ;;  %v8165_v57 = vld [vmem:[#allocation3 + $0x174] sm:$0xff] }
 0x7a3   : > { %v6233_v6 = vpop.f32.mrb[130].mxu0  ;;  %v6369_v32 = vld [vmem:[#allocation3 + $0xea] sm:$0xff] }
 0x7a4   : > { %v20045_v40 = vadd.f32 %v6233_v6, %v19714_v54  ;;  %v16356_v56 = vpop.f32.mrb[131].mxu0  ;;  %16906 = vmatmul.mubr.msk.bf16.gmra.mrb[200].mxu1 %vm542_vm1, %v8192_v33  ;;  %v8193_v6 = vpack.c.bf16 %v8165_v57, %v8164_v36 }
 0x7a5   : > { %16909 = vmatprep.mubr.msk.bf16.mxu1 %vm18544_vm0, %v22651_v31  ;;  %v6368_v56 = vld [vmem:[#allocation3 + $0xe2] sm:$0xff] }
 0x7a6   : > { %16466 = vmatmul.mubr.msk.bf16.gmra.mrb[236].mxu0 %vm542_vm1, %v6402_v0  ;;  %v6403_v7 = vpack.c.bf16 %v6369_v32, %v6368_v56 }
 0x7a7   : > { %v20051_v42 = vpop.f32.mrb[44].mxu1  ;;  %16469 = vmatprep.mubr.msk.bf16.mxu0 %vm18544_vm0, %v22651_v31 }
 0x7a8   : > { %22675 = vst [vmem:[#allocation41_spill] sm:$0xff] %v20051_v42  ;;  %v16695_v29 = vpop.f32.mrb[45].mxu1 }
 0x7a9   : > { %v6238_v41 = vpop.f32.mrb[132].mxu0  ;;  %v20055_v54 = vpop.f32.mrb[46].mxu1 }
 0x7aa   : > { %22676 = vst [vmem:[#allocation42_spill] sm:$0xff] %v20055_v54  ;;  %v20058_v4 = vadd.f32 %v6238_v41, %v19724_v55  ;;  %v16359_v17 = vpop.f32.mrb[133].mxu0  ;;  %v16696_v33 = vpop.f32.mrb[47].mxu1  ;;  %v8167_v55 = vld [vmem:[#allocation3 + $0x184] sm:$0xff] }
 0x7ab   : > { %v6241_v50 = vpop.f32.mrb[134].mxu0 }
 0x7ac   : > { %v20061_v0 = vadd.f32 %v6241_v50, %v19728_v23  ;;  %v16360_v42 = vpop.f32.mrb[135].mxu0  ;;  %16910 = vmatmul.mubr.msk.bf16.gmra.mrb[204].mxu1 %vm542_vm1, %v8193_v6  ;;  %v8166_v23 = vld [vmem:[#allocation3 + $0x17c] sm:$0xff] }
 0x7ad   : > { %16913 = vmatprep.mubr.msk.bf16.mxu1 %vm18544_vm0, %v22651_v31  ;;  %v6371_v42 = vld [vmem:[#allocation3 + $0xfa] sm:$0xff]  ;;  %v8194_v33 = vpack.c.bf16 %v8167_v55, %v8166_v23 }
 0x7ae   : > { %16470 = vmatmul.mubr.msk.bf16.gmra.mrb[240].mxu0 %vm542_vm1, %v6403_v7  ;;  %v6370_v7 = vld [vmem:[#allocation3 + $0xf2] sm:$0xff] }
 0x7af   : > { %v20067_v29 = vpop.f32.mrb[48].mxu1  ;;  %16473 = vmatprep.mubr.msk.bf16.mxu0 %vm18544_vm0, %v22651_v31 }
 0x7b0   : > { %22677 = vst [vmem:[#allocation43_spill] sm:$0xff] %v20067_v29  ;;  %v16699_v36 = vpop.f32.mrb[49].mxu1 }
 0x7b1   : > { %v6246_v57 = vpop.f32.mrb[136].mxu0  ;;  %v20071_v41 = vpop.f32.mrb[50].mxu1  ;;  %v6404_v36 = vpack.c.bf16 %v6371_v42, %v6370_v7 }
 0x7b2   : > { %22678 = vst [vmem:[#allocation44_spill] sm:$0xff] %v20071_v41  ;;  %v20074_v17 = vadd.f32 %v6246_v57, %v19738_v14  ;;  %v16363_v56 = vpop.f32.mrb[137].mxu0  ;;  %v16700_v32 = vpop.f32.mrb[51].mxu1  ;;  %v8168_v14 = vld [vmem:[#allocation3 + $0x18c] sm:$0xff]  ;;  %v8169_v57 = vld [vmem:[#allocation3 + $0x194] sm:$0xff] }
 0x7b3   : > { %v6249_v6 = vpop.f32.mrb[138].mxu0  ;;  %v6373_v56 = vld [vmem:[#allocation3 + $0x10a] sm:$0xff] }
 0x7b4   : > { %v20077_v50 = vadd.f32 %v6249_v6, %v19742_v9  ;;  %v16364_v29 = vpop.f32.mrb[139].mxu0  ;;  %16914 = vmatmul.mubr.msk.bf16.gmra.mrb[124].mxu1 %vm542_vm1, %v8194_v33  ;;  %v8195_v6 = vpack.c.bf16 %v8169_v57, %v8168_v14 }
 0x7b5   : > { %16917 = vmatprep.mubr.msk.bf16.mxu1 %vm18544_vm0, %v22651_v31  ;;  %v6372_v29 = vld [vmem:[#allocation3 + $0x102] sm:$0xff] }
 0x7b6   : > { %16474 = vmatmul.mubr.msk.bf16.gmra.mrb[244].mxu0 %vm542_vm1, %v6404_v36  ;;  %v6405_v54 = vpack.c.bf16 %v6373_v56, %v6372_v29 }
 0x7b7   : > { %v20083_v41 = vpop.f32.mrb[52].mxu1  ;;  %16477 = vmatprep.mubr.msk.bf16.mxu0 %vm18544_vm0, %v22651_v31 }
 0x7b8   : > { %22679 = vst [vmem:[#allocation45_spill] sm:$0xff] %v20083_v41  ;;  %v16703_v55 = vpop.f32.mrb[53].mxu1 }
 0x7b9   : > { %v6254_v23 = vpop.f32.mrb[140].mxu0  ;;  %v20087_v9 = vpop.f32.mrb[54].mxu1 }
 0x7ba   : > { %22680 = vst [vmem:[#allocation46_spill] sm:$0xff] %v20087_v9  ;;  %v20090_v42 = vadd.f32 %v6254_v23, %v19752_v3  ;;  %v16367_v32 = vpop.f32.mrb[141].mxu0  ;;  %v16704_v33 = vpop.f32.mrb[55].mxu1  ;;  %v8171_v3 = vld [vmem:[#allocation3 + $0x1a4] sm:$0xff] }
 0x7bb   : > { %v6257_v7 = vpop.f32.mrb[142].mxu0 }
 0x7bc   : > { %v20093_v36 = vadd.f32 %v6257_v7, %v19754_v26  ;;  %v16368_v41 = vpop.f32.mrb[143].mxu0  ;;  %16918 = vmatmul.mubr.msk.bf16.gmra.mrb[128].mxu1 %vm542_vm1, %v8195_v6  ;;  %v8170_v26 = vld [vmem:[#allocation3 + $0x19c] sm:$0xff] }
 0x7bd   : > { %16921 = vmatprep.mubr.msk.bf16.mxu1 %vm18544_vm0, %v22651_v31  ;;  %v6375_v41 = vld [vmem:[#allocation3 + $0x11a] sm:$0xff]  ;;  %v8196_v33 = vpack.c.bf16 %v8171_v3, %v8170_v26 }
 0x7be   : > { %16478 = vmatmul.mubr.msk.bf16.gmra.mrb[248].mxu0 %vm542_vm1, %v6405_v54  ;;  %v6374_v54 = vld [vmem:[#allocation3 + $0x112] sm:$0xff] }
 0x7bf   : > { %v20099_v55 = vpop.f32.mrb[56].mxu1  ;;  %16481 = vmatprep.mubr.msk.bf16.mxu0 %vm18544_vm0, %v22651_v31 }
 0x7c0   : > { %22681 = vst [vmem:[#allocation47_spill] sm:$0xff] %v20099_v55  ;;  %v16707_v14 = vpop.f32.mrb[57].mxu1 }
 0x7c1   : > { %v6262_v57 = vpop.f32.mrb[144].mxu0  ;;  %v20103_v23 = vpop.f32.mrb[58].mxu1  ;;  %v6406_v14 = vpack.c.bf16 %v6375_v41, %v6374_v54 }
 0x7c2   : > { %22682 = vst [vmem:[#allocation48_spill] sm:$0xff] %v20103_v23  ;;  %v20106_v32 = vadd.f32 %v6262_v57, %v19764_v63  ;;  %v16371_v29 = vpop.f32.mrb[145].mxu0  ;;  %v16708_v56 = vpop.f32.mrb[59].mxu1  ;;  %v8172_v63 = vld [vmem:[#allocation3 + $0x1ac] sm:$0xff] }
 0x7c3   : > { %v6265_v6 = vpop.f32.mrb[146].mxu0 }
 0x7c4   : > { %v20109_v7 = vadd.f32 %v6265_v6, %v19768_v38  ;;  %v16372_v55 = vpop.f32.mrb[147].mxu0  ;;  %16922 = vmatmul.mubr.msk.bf16.gmra.mrb[132].mxu1 %vm542_vm1, %v8196_v33  ;;  %v6376_v38 = vld [vmem:[#allocation3 + $0x122] sm:$0xff]  ;;  %v8197_v33 = vpack.c.bf16 %v8172_v63, %v8172_v63 }
 0x7c5   : > { %16925 = vmatprep.mubr.msk.bf16.mxu1 %vm18544_vm0, %v22651_v31  ;;  %v6377_v55 = vld [vmem:[#allocation3 + $0x12a] sm:$0xff] }
 0x7c6   : > { %16482 = vmatmul.mubr.msk.bf16.gmra.mrb[252].mxu0 %vm542_vm1, %v6406_v14 }
 0x7c7   : > { %v20115_v23 = vpop.f32.mrb[60].mxu1  ;;  %16485 = vmatprep.mubr.msk.bf16.mxu0 %vm18544_vm0, %v22651_v31 }
 0x7c8   : > { %22683 = vst [vmem:[#allocation49_spill] sm:$0xff] %v20115_v23  ;;  %v16711_v3 = vpop.f32.mrb[61].mxu1  ;;  %v6407_v23 = vpack.c.bf16 %v6377_v55, %v6376_v38 }
 0x7c9   : > { %v6270_v57 = vpop.f32.mrb[148].mxu0  ;;  %v20119_v26 = vpop.f32.mrb[62].mxu1  ;;  %v9017_v3 = vld [vmem:[#allocation3 + $0x36] sm:$0xff] }
 0x7ca   : > { %22684 = vst [vmem:[#allocation50_spill] sm:$0xff] %v20119_v26  ;;  %v20122_v29 = vadd.f32 %v6270_v57, %v19778_v51  ;;  %v16375_v41 = vpop.f32.mrb[149].mxu0  ;;  %v16712_v56 = vpop.f32.mrb[63].mxu1  ;;  %v9016_v26 = vld [vmem:[#allocation3 + $0x2e] sm:$0xff] }
 0x7cb   : > { %v6273_v6 = vpop.f32.mrb[150].mxu0  ;;  %v6379_v41 = vld [vmem:[#allocation3 + $0x13a] sm:$0xff]  ;;  %v9065_v56 = vpack.c.bf16 %v9017_v3, %v9016_v26 }
 0x7cc   : > { %v20125_v54 = vadd.f32 %v6273_v6, %v19782_v5  ;;  %v16376_v14 = vpop.f32.mrb[151].mxu0  ;;  %16926 = vmatmul.mubr.msk.bf16.gmra.mrb[136].mxu1 %vm542_vm1, %v8197_v33 }
 0x7cd   : > { %17037 = vmatprep.mubr.msk.bf16.mxu1 %vm18544_vm0, %v22651_v31 }
 0x7ce   : > { %16486 = vmatmul.mubr.msk.bf16.gmra.mrb[0].mxu0 %vm542_vm1, %v6407_v23  ;;  %v6378_v23 = vld [vmem:[#allocation3 + $0x132] sm:$0xff] }
 0x7cf   : > { %v20131_v51 = vpop.f32.mrb[64].mxu1  ;;  %16489 = vmatprep.mubr.msk.bf16.mxu0 %vm18544_vm0, %v22651_v31  ;;  %v6408_v9 = vpack.c.bf16 %v6379_v41, %v6378_v23 }
 0x7d0   : > { %22685 = vst [vmem:[#allocation51_spill] sm:$0xff] %v20131_v51  ;;  %v16715_v63 = vpop.f32.mrb[65].mxu1 }
 0x7d1   : > { %v6278_v57 = vpop.f32.mrb[152].mxu0  ;;  %v20135_v5 = vpop.f32.mrb[66].mxu1 }
 0x7d2   : > { %22686 = vst [vmem:[#allocation52_spill] sm:$0xff] %v20135_v5  ;;  %v20138_v38 = vadd.f32 %v6278_v57, %v19792_v30  ;;  %v16379_v55 = vpop.f32.mrb[153].mxu0  ;;  %v16716_v33 = vpop.f32.mrb[67].mxu1  ;;  %v20149_v30 = vld [vmem:[#allocation3 + $0x46] sm:$0xff]  ;;  %v20153_v57 = vld [vmem:[#allocation3 + $0x3e] sm:$0xff] }
 0x7d3   : > { %v6281_v6 = vpop.f32.mrb[154].mxu0 }
 0x7d4   : > { %v20141_v14 = vadd.f32 %v6281_v6, %v19796_v53  ;;  %v16380_v51 = vpop.f32.mrb[155].mxu0  ;;  %17038 = vmatmul.mubr.msk.bf16.vlgmr.msra.gmra.mrb[140].mxu1 %vm542_vm1, %v9065_v56  ;;  %v6381_v56 = vld [vmem:[#allocation3 + $0x14a] sm:$0xff] }
 0x7d5   : > { %17041 = vmatprep.mubr.msk.bf16.mxu1 %vm18544_vm0, %v22651_v31  ;;  %v6380_v51 = vld [vmem:[#allocation3 + $0x142] sm:$0xff] }
 0x7d6   : > { %16490 = vmatmul.mubr.msk.bf16.gmra.mrb[4].mxu0 %vm542_vm1, %v6408_v9  ;;  %v9066_v9 = vpack.c.bf16 %v20149_v30, %v20153_v57 }
 0x7d7   : > { %v20147_v26 = vpop.f32.mrb[68].mxu1  ;;  %16493 = vmatprep.mubr.msk.bf16.mxu0 %vm18544_vm0, %v22651_v31 }
 0x7d8   : > { %22687 = vst [vmem:[#allocation53_spill] sm:$0xff] %v20147_v26  ;;  %v16719_v3 = vpop.f32.mrb[69].mxu1 }
 0x7d9   : > { %v6286_v63 = vpop.f32.mrb[156].mxu0  ;;  %v7626_v53 = vpop.f32.mrb[70].mxu1  ;;  %v6409_v3 = vpack.c.bf16 %v6381_v56, %v6380_v51 }
 0x7da   : > { %v20156_v41 = vadd.f32 %v6286_v63, %v19806_v43  ;;  %v16383_v55 = vpop.f32.mrb[157].mxu0  ;;  %v16720_v33 = vpop.f32.mrb[71].mxu1  ;;  %v20169_v63 = vld [vmem:[#allocation3 + $0x4e] sm:$0xff]  ;;  %v20171_v53 = vld [vmem:[#allocation3 + $0x56] sm:$0xff] }
 0x7db   : > { %v6289_v6 = vpop.f32.mrb[158].mxu0  ;;  %v6383_v33 = vld [vmem:[#allocation3 + $0x15a] sm:$0xff] }
 0x7dc   : > { %22688 = vst [vmem:[#allocation54_spill] sm:$0xff] %v20156_v41  ;;  %v20161_v23 = vadd.f32 %v6289_v6, %v19810_v48  ;;  %v16384_v26 = vpop.f32.mrb[159].mxu0  ;;  %17042 = vmatmul.mubr.msk.bf16.gmra.mrb[144].mxu1 %vm542_vm1, %v9066_v9  ;;  %v9067_v6 = vpack.c.bf16 %v20171_v53, %v20169_v63 }
 0x7dd   : > { %17045 = vmatprep.mubr.msk.bf16.mxu1 %vm18544_vm0, %v22651_v31 }
 0x7de   : > { %22689 = vst [vmem:[#allocation55_spill] sm:$0xff] %v20161_v23  ;;  %16494 = vmatmul.mubr.msk.bf16.gmra.mrb[8].mxu0 %vm542_vm1, %v6409_v3 }
 0x7df   : > { %v20167_v43 = vpop.f32.mrb[72].mxu1  ;;  %16497 = vmatprep.mubr.msk.bf16.mxu0 %vm18544_vm0, %v22651_v31 }
 0x7e0   : > { %22690 = vst [vmem:[#allocation56_spill] sm:$0xff] %v20167_v43  ;;  %v16831_v48 = vpop.f32.mrb[73].mxu1  ;;  %v6382_v43 = vld [vmem:[#allocation3 + $0x152] sm:$0xff] }
 0x7e1   : > { %v6294_v55 = vpop.f32.mrb[160].mxu0  ;;  %v20175_v26 = vpop.f32.mrb[74].mxu1  ;;  %v6410_v48 = vpack.c.bf16 %v6383_v33, %v6382_v43  ;;  %v6385_v43 = vld [vmem:[#allocation3 + $0x16a] sm:$0xff] }
 0x7e2   : > { %22691 = vst [vmem:[#allocation57_spill] sm:$0xff] %v20175_v26  ;;  %v20178_v51 = vadd.f32 %v6294_v55, %v19820_v13  ;;  %v16387_v56 = vpop.f32.mrb[161].mxu0  ;;  %v16832_v9 = vpop.f32.mrb[75].mxu1  ;;  %v20191_v55 = vld [vmem:[#allocation3 + $0x66] sm:$0xff] }
 0x7e3   : > { %v6297_v3 = vpop.f32.mrb[162].mxu0 }
 0x7e4   : > { %22692 = vst [vmem:[#allocation58_spill] sm:$0xff] %v20178_v51  ;;  %v20183_v5 = vadd.f32 %v6297_v3, %v19824_v39  ;;  %v16388_v23 = vpop.f32.mrb[163].mxu0  ;;  %17046 = vmatmul.mubr.msk.bf16.gmra.mrb[148].mxu1 %vm542_vm1, %v9067_v6  ;;  %v6384_v6 = vld [vmem:[#allocation3 + $0x162] sm:$0xff] }
 0x7e5   : > { %17049 = vmatprep.mubr.msk.bf16.mxu1 %vm18544_vm0, %v22651_v31  ;;  %v20197_v23 = vld [vmem:[#allocation3 + $0x5e] sm:$0xff] }
 0x7e6   : > { %22693 = vst [vmem:[#allocation59_spill] sm:$0xff] %v20183_v5  ;;  %16498 = vmatmul.mubr.msk.bf16.gmra.mrb[12].mxu0 %vm542_vm1, %v6410_v48 }
 0x7e7   : > { %v20189_v13 = vpop.f32.mrb[76].mxu1  ;;  %16501 = vmatprep.mubr.msk.bf16.mxu0 %vm18544_vm0, %v22651_v31 }
 0x7e8   : > { %22694 = vst [vmem:[#allocation60_spill] sm:$0xff] %v20189_v13  ;;  %v16835_v56 = vpop.f32.mrb[77].mxu1  ;;  %v9068_v13 = vpack.c.bf16 %v20191_v55, %v20197_v23 }
 0x7e9   : > { %v6302_v9 = vpop.f32.mrb[164].mxu0  ;;  %v20195_v39 = vpop.f32.mrb[78].mxu1 }
 0x7ea   : > { %22695 = vst [vmem:[#allocation61_spill] sm:$0xff] %v20195_v39  ;;  %v20200_v33 = vadd.f32 %v6302_v9, %v19834_v12  ;;  %v16391_v3 = vpop.f32.mrb[165].mxu0  ;;  %v16836_v48 = vpop.f32.mrb[79].mxu1  ;;  %v6411_v39 = vpack.c.bf16 %v6385_v43, %v6384_v6  ;;  %v20213_v9 = vld [vmem:[#allocation3 + $0x6e] sm:$0xff] }
 0x7eb   : > { %v6305_v26 = vpop.f32.mrb[166].mxu0  ;;  %v20215_v3 = vld [vmem:[#allocation3 + $0x76] sm:$0xff] }
 0x7ec   : > { %22696 = vst [vmem:[#allocation62_spill] sm:$0xff] %v20200_v33  ;;  %v20205_v5 = vadd.f32 %v6305_v26, %v19838_v10  ;;  %v16392_v56 = vpop.f32.mrb[167].mxu0  ;;  %17050 = vmatmul.mubr.msk.bf16.gmra.mrb[152].mxu1 %vm542_vm1, %v9068_v13  ;;  %v6387_v13 = vld [vmem:[#allocation3 + $0x17a] sm:$0xff] }
 0x7ed   : > { %17053 = vmatprep.mubr.msk.bf16.mxu1 %vm18544_vm0, %v22651_v31 }
 0x7ee   : > { %22697 = vst [vmem:[#allocation63_spill] sm:$0xff] %v20205_v5  ;;  %16502 = vmatmul.mubr.msk.bf16.gmra.mrb[16].mxu0 %vm542_vm1, %v6411_v39  ;;  %v9069_v39 = vpack.c.bf16 %v20215_v3, %v20213_v9  ;;  %v6386_v5 = vld [vmem:[#allocation3 + $0x172] sm:$0xff] }
 0x7ef   : > { %v20211_v12 = vpop.f32.mrb[80].mxu1  ;;  %16505 = vmatprep.mubr.msk.bf16.mxu0 %vm18544_vm0, %v22651_v31 }
 0x7f0   : > { %22698 = vst [vmem:[#allocation64_spill] sm:$0xff] %v20211_v12  ;;  %v16839_v10 = vpop.f32.mrb[81].mxu1 }
 0x7f1   : > { %v6310_v26 = vpop.f32.mrb[168].mxu0  ;;  %v20219_v48 = vpop.f32.mrb[82].mxu1  ;;  %v6412_v10 = vpack.c.bf16 %v6387_v13, %v6386_v5 }
 0x7f2   : > { %22699 = vst [vmem:[#allocation65_spill] sm:$0xff] %v20219_v48  ;;  %v20222_v6 = vadd.f32 %v6310_v26, %v19706_v45  ;;  %v16395_v43 = vpop.f32.mrb[169].mxu0  ;;  %v16840_v56 = vpop.f32.mrb[83].mxu1  ;;  %v20235_v26 = vld [vmem:[#allocation3 + $0x86] sm:$0xff] }
 0x7f3   : > { %v6313_v12 = vpop.f32.mrb[170].mxu0 }
 0x7f4   : > { %22700 = vst [vmem:[#allocation66_spill] sm:$0xff] %v20222_v6  ;;  %v20227_v33 = vadd.f32 %v6313_v12, %v19712_v49  ;;  %v16396_v51 = vpop.f32.mrb[171].mxu0  ;;  %17054 = vmatmul.mubr.msk.bf16.gmra.mrb[156].mxu1 %vm542_vm1, %v9069_v39  ;;  %v6388_v12 = vld [vmem:[#allocation3 + $0x182] sm:$0xff] }
 0x7f5   : > { %17057 = vmatprep.mubr.msk.bf16.mxu1 %vm18544_vm0, %v22651_v31  ;;  %v20241_v51 = vld [vmem:[#allocation3 + $0x7e] sm:$0xff] }
 0x7f6   : > { %22701 = vst [vmem:[#allocation67_spill] sm:$0xff] %v20227_v33  ;;  %16506 = vmatmul.mubr.msk.bf16.gmra.mrb[20].mxu0 %vm542_vm1, %v6412_v10  ;;  %v9070_v10 = vpack.c.bf16 %v20235_v26, %v20241_v51 }
 0x7f7   : > { %v20233_v45 = vpop.f32.mrb[84].mxu1  ;;  %16509 = vmatprep.mubr.msk.bf16.mxu0 %vm18544_vm0, %v22651_v31 }
 0x7f8   : > { %22702 = vst [vmem:[#allocation68_spill] sm:$0xff] %v20233_v45  ;;  %v16843_v43 = vpop.f32.mrb[85].mxu1 }
 0x7f9   : > { %v6318_v56 = vpop.f32.mrb[172].mxu0  ;;  %v20239_v49 = vpop.f32.mrb[86].mxu1  ;;  %v6413_v43 = vpack.c.bf16 %v6388_v12, %v6388_v12 }
 0x7fa   : > { %22703 = vst [vmem:[#allocation69_spill] sm:$0xff] %v20239_v49  ;;  %v20244_v5 = vadd.f32 %v6318_v56, %v19720_v34  ;;  %v16399_v13 = vpop.f32.mrb[173].mxu0  ;;  %v16844_v39 = vpop.f32.mrb[87].mxu1  ;;  %v20257_v56 = vld [vmem:[#allocation3 + $0x8e] sm:$0xff] }
 0x7fb   : > { %v6321_v45 = vpop.f32.mrb[174].mxu0  ;;  %v20259_v13 = vld [vmem:[#allocation3 + $0x96] sm:$0xff] }
 0x7fc   : > { %22704 = vst [vmem:[#allocation70_spill] sm:$0xff] %v20244_v5  ;;  %v20249_v48 = vadd.f32 %v6321_v45, %v19726_v35  ;;  %v16400_v33 = vpop.f32.mrb[175].mxu0  ;;  %17058 = vmatmul.mubr.msk.bf16.gmra.mrb[160].mxu1 %vm542_vm1, %v9070_v10  ;;  %v6787_v45 = vld [vmem:[#allocation3 + $0x1e] sm:$0xff] }
 0x7fd   : > { %17061 = vmatprep.mubr.msk.bf16.mxu1 %vm18544_vm0, %v22651_v31 }
 0x7fe   : > { %22705 = vst [vmem:[#allocation71_spill] sm:$0xff] %v20249_v48  ;;  %16510 = vmatmul.mubr.msk.bf16.gmra.mrb[24].mxu0 %vm542_vm1, %v6413_v43  ;;  %v9071_v43 = vpack.c.bf16 %v20259_v13, %v20257_v56 }
 0x7ff   : > { %v20255_v34 = vpop.f32.mrb[88].mxu1  ;;  %16517 = vmatprep.mubr.msk.bf16.mxu0 %vm18544_vm0, %v22651_v31 }
 0x800   : > { %22706 = vst [vmem:[#allocation72_spill] sm:$0xff] %v20255_v34  ;;  %v16847_v35 = vpop.f32.mrb[89].mxu1  ;;  %v6786_v34 = vld [vmem:[#allocation3 + $0x16] sm:$0xff] }
 0x801   : > { %v6326_v33 = vpop.f32.mrb[176].mxu0  ;;  %v20263_v39 = vpop.f32.mrb[90].mxu1  ;;  %v6835_v5 = vpack.c.bf16 %v6787_v45, %v6786_v34 }
 0x802   : > { %22707 = vst [vmem:[#allocation73_spill] sm:$0xff] %v20263_v39  ;;  %v20266_v12 = vadd.f32 %v6326_v33, %v19734_v27  ;;  %v16403_v10 = vpop.f32.mrb[177].mxu0  ;;  %v16848_v49 = vpop.f32.mrb[91].mxu1 }
 0x803   : > { %v6329_v48 = vpop.f32.mrb[178].mxu0  ;;  %v20279_v49 = vld [vmem:[#allocation3 + $0xa6] sm:$0xff] }
 0x804   : > { %v20271_v6 = vadd.f32 %v6329_v48, %v19740_v16  ;;  %v16404_v41 = vpop.f32.mrb[179].mxu0  ;;  %17062 = vmatmul.mubr.msk.bf16.gmra.mrb[164].mxu1 %vm542_vm1, %v9071_v43  ;;  %v20285_v16 = vld [vmem:[#allocation3 + $0x9e] sm:$0xff]  ;;  %v6789_v48 = vld [vmem:[#allocation3 + $0x2e] sm:$0xff] }
 0x805   : > { %17065 = vmatprep.mubr.msk.bf16.mxu1 %vm18544_vm0, %v22651_v31  ;;  %v6788_v41 = vld [vmem:[#allocation3 + $0x26] sm:$0xff]  ;;  %v9072_v43 = vpack.c.bf16 %v20279_v49, %v20285_v16 }
 0x806   : > { %22708 = vst [vmem:[#allocation74_spill] sm:$0xff] %v20271_v6  ;;  %16518 = vmatmul.mubr.msk.bf16.vlgmr.msra.gmra.mrb[28].mxu0 %vm542_vm1, %v6835_v5  ;;  %v20298_v6 = vld [vmem:[#allocation3 + $0xae] sm:$0xff] }
 0x807   : > { %v20277_v27 = vpop.f32.mrb[92].mxu1  ;;  %16521 = vmatprep.mubr.msk.bf16.mxu0 %vm18544_vm0, %v22651_v31 }
 0x808   : > { %22709 = vst [vmem:[#allocation75_spill] sm:$0xff] %v20277_v27  ;;  %v16851_v35 = vpop.f32.mrb[93].mxu1 }
 0x809   : > { %v6334_v34 = vpop.f32.mrb[180].mxu0  ;;  %v20283_v45 = vpop.f32.mrb[94].mxu1  ;;  %v6836_v35 = vpack.c.bf16 %v6789_v48, %v6788_v41 }
 0x80a   : > { %22710 = vst [vmem:[#allocation76_spill] sm:$0xff] %v20283_v45  ;;  %v20288_v33 = vadd.f32 %v6334_v34, %v19748_v20  ;;  %v16407_v10 = vpop.f32.mrb[181].mxu0  ;;  %v16852_v5 = vpop.f32.mrb[95].mxu1  ;;  %v20300_v20 = vld [vmem:[#allocation3 + $0xb6] sm:$0xff] }
 0x80b   : > { %v6337_v27 = vpop.f32.mrb[182].mxu0  ;;  %v9073_v5 = vpack.c.bf16 %v20300_v20, %v20298_v6 }
 0x80c   : > { %22711 = vst [vmem:[#allocation77_spill] sm:$0xff] %v20288_v33  ;;  %v16408_v39 = vpop.f32.mrb[183].mxu0  ;;  %17066 = vmatmul.mubr.msk.bf16.gmra.mrb[168].mxu1 %vm542_vm1, %v9072_v43 }
 0x80d   : > { %17069 = vmatprep.mubr.msk.bf16.mxu1 %vm18544_vm0, %v22651_v31 }
 0x80e   : > { %16522 = vmatmul.mubr.msk.bf16.gmra.mrb[32].mxu0 %vm542_vm1, %v6836_v35  ;;  %v6790_v35 = vld [vmem:[#allocation3 + $0x36] sm:$0xff] }
 0x80f   : > { %v20296_v45 = vpop.f32.mrb[96].mxu1  ;;  %16525 = vmatprep.mubr.msk.bf16.mxu0 %vm18544_vm0, %v22651_v31 }
 0x810   : > { %22712 = vst [vmem:[#allocation78_spill] sm:$0xff] %v20296_v45  ;;  %v16855_v34 = vpop.f32.mrb[97].mxu1 }
 0x811   : > { %v6539_v27 = vpop.f32.mrb[184].mxu0  ;;  %v20304_v39 = vpop.f32.mrb[98].mxu1  ;;  %v6837_v34 = vpack.c.bf16 %v20153_v57, %v6790_v35 }
 0x812   : > { %22713 = vst [vmem:[#allocation79_spill] sm:$0xff] %v20304_v39  ;;  %v20307_v41 = vadd.f32 %v6539_v27, %v19851_v52  ;;  %v16415_v48 = vpop.f32.mrb[185].mxu0  ;;  %v16856_v10 = vpop.f32.mrb[99].mxu1  ;;  %v20321_v27 = vld [vmem:[#allocation3 + $0xc6] sm:$0xff] }
 0x813   : > { %v6542_v43 = vpop.f32.mrb[186].mxu0 }
 0x814   : > { %v20312_v45 = vadd.f32 %v6542_v43, %v19854_v28  ;;  %v16416_v33 = vpop.f32.mrb[187].mxu0  ;;  %17070 = vmatmul.mubr.msk.bf16.gmra.mrb[172].mxu1 %vm542_vm1, %v9073_v5 }
 0x815   : > { %17073 = vmatprep.mubr.msk.bf16.mxu1 %vm18544_vm0, %v22651_v31  ;;  %v20327_v33 = vld [vmem:[#allocation3 + $0xbe] sm:$0xff] }
 0x816   : > { %22714 = vst [vmem:[#allocation80_spill] sm:$0xff] %v20312_v45  ;;  %16526 = vmatmul.mubr.msk.bf16.gmra.mrb[36].mxu0 %vm542_vm1, %v6837_v34  ;;  %v9074_v35 = vpack.c.bf16 %v20321_v27, %v20327_v33 }
 0x817   : > { %v20319_v52 = vpop.f32.mrb[100].mxu1  ;;  %16529 = vmatprep.mubr.msk.bf16.mxu0 %vm18544_vm0, %v22651_v31 }
 0x818   : > { %22715 = vst [vmem:[#allocation81_spill] sm:$0xff] %v20319_v52  ;;  %v16859_v48 = vpop.f32.mrb[101].mxu1  ;;  %v22717_v52 = vld [vmem:[#allocation20_spill] sm:$0xff] }
 0x819   : > { %v6547_v28 = vpop.f32.mrb[188].mxu0  ;;  %v20325_v10 = vpop.f32.mrb[102].mxu1  ;;  %v6838_v48 = vpack.c.bf16 %v20169_v63, %v20149_v30 }
 0x81a   : > { %22716 = vst [vmem:[#allocation82_spill] sm:$0xff] %v20325_v10  ;;  %v20330_v57 = vadd.f32 %v6547_v28, %v19871_v15  ;;  %v16419_v5 = vpop.f32.mrb[189].mxu0  ;;  %v16860_v43 = vpop.f32.mrb[103].mxu1  ;;  %v20345_v28 = vld [vmem:[#allocation3 + $0xce] sm:$0xff] }
 0x81b   : > { %v6550_v34 = vpop.f32.mrb[190].mxu0  ;;  %v20347_v5 = vld [vmem:[#allocation3 + $0xd6] sm:$0xff] }
 0x81c   : > { %v20335_v39 = vadd.f32 %v6550_v34, %v22717_v52  ;;  %v16420_v45 = vpop.f32.mrb[191].mxu0  ;;  %17074 = vmatmul.mubr.msk.bf16.gmra.mrb[208].mxu1 %vm542_vm1, %v9074_v35  ;;  %v9075_v34 = vpack.c.bf16 %v20347_v5, %v20345_v28 }
 0x81d   : > { %17077 = vmatprep.mubr.msk.bf16.mxu1 %vm18544_vm0, %v22651_v31 }
 0x81e   : > { %16530 = vmatmul.mubr.msk.bf16.gmra.mrb[40].mxu0 %vm542_vm1, %v6838_v48 }
 0x81f   : > { %v20343_v15 = vpop.f32.mrb[104].mxu1  ;;  %16533 = vmatprep.mubr.msk.bf16.mxu0 %vm18544_vm0, %v22651_v31 }
 0x820   : > { %22718 = vst [vmem:[#allocation20_spill] sm:$0xff] %v20343_v15  ;;  %v16863_v45 = vpop.f32.mrb[105].mxu1 }
 0x821   : > { %v6555_v52 = vpop.f32.mrb[192].mxu0  ;;  %v20351_v43 = vpop.f32.mrb[106].mxu1  ;;  %v6839_v45 = vpack.c.bf16 %v20197_v23, %v20171_v53 }
 0x822   : > { %22719 = vst [vmem:[#allocation83_spill] sm:$0xff] %v20351_v43  ;;  %v20354_v30 = vadd.f32 %v6555_v52, %v19890_v59  ;;  %v16423_v63 = vpop.f32.mrb[193].mxu0  ;;  %v16864_v35 = vpop.f32.mrb[107].mxu1  ;;  %v20369_v52 = vld [vmem:[#allocation3 + $0xe6] sm:$0xff] }
 0x823   : > { %v6558_v48 = vpop.f32.mrb[194].mxu0  ;;  %v20375_v35 = vld [vmem:[#allocation3 + $0xde] sm:$0xff] }
 0x824   : > { %v20359_v15 = vadd.f32 %v6558_v48, %v19893_v58  ;;  %v16424_v10 = vpop.f32.mrb[195].mxu0  ;;  %17078 = vmatmul.mubr.msk.bf16.gmra.mrb[212].mxu1 %vm542_vm1, %v9075_v34  ;;  %v9076_v48 = vpack.c.bf16 %v20369_v52, %v20375_v35 }
 0x825   : > { %17081 = vmatprep.mubr.msk.bf16.mxu1 %vm18544_vm0, %v22651_v31 }
 0x826   : > { %16534 = vmatmul.mubr.msk.bf16.gmra.mrb[44].mxu0 %vm542_vm1, %v6839_v45 }
 0x827   : > { %v20367_v59 = vpop.f32.mrb[108].mxu1  ;;  %16537 = vmatprep.mubr.msk.bf16.mxu0 %vm18544_vm0, %v22651_v31 }
 0x828   : > { %22720 = vst [vmem:[#allocation84_spill] sm:$0xff] %v20367_v59  ;;  %v16867_v58 = vpop.f32.mrb[109].mxu1 }
 0x829   : > { %v6563_v63 = vpop.f32.mrb[196].mxu0  ;;  %v20373_v10 = vpop.f32.mrb[110].mxu1  ;;  %v6840_v58 = vpack.c.bf16 %v20213_v9, %v20191_v55 }
 0x82a   : > { %22721 = vst [vmem:[#allocation85_spill] sm:$0xff] %v20373_v10  ;;  %v20378_v53 = vadd.f32 %v6563_v63, %v19906_v8  ;;  %v16427_v23 = vpop.f32.mrb[197].mxu0  ;;  %v16868_v34 = vpop.f32.mrb[111].mxu1  ;;  %v18450_v8 = vld [vmem:[%s22564_s2 + $0xe0] sm:$0xff]  }
 0x82b   : > { %v6566_v45 = vpop.f32.mrb[198].mxu0  ;;  %v20396_v23 = vld [vmem:[#allocation3 + $0xee] sm:$0xff]  ;;  %16722 = vmatpush3.bf16.msra.mxu0 %v18450_v8  ;;  %v6841_v8 = vpack.c.bf16 %v20241_v51, %v20215_v3 }
 0x82c   : > { %v20383_v59 = vadd.f32 %v6566_v45, %v19909_v2  ;;  %v16428_v43 = vpop.f32.mrb[199].mxu0  ;;  %17082 = vmatmul.mubr.msk.bf16.gmra.mrb[216].mxu1 %vm542_vm1, %v9076_v48  ;;  %v20398_v2 = vld [vmem:[#allocation3 + $0xf6] sm:$0xff]  ;;  %16723 = vmatprep.subr.bf16.mxu0 %v22651_v31 }
 0x82d   : > { %17085 = vmatprep.mubr.msk.bf16.mxu1 %vm18544_vm0, %v22651_v31 }
 0x82e   : > { %22722 = vst [vmem:[#allocation86_spill] sm:$0xff] %v20383_v59  ;;  %16538 = vmatmul.mubr.msk.bf16.gmra.mrb[48].mxu0 %vm542_vm1, %v6840_v58  ;;  %v9077_v58 = vpack.c.bf16 %v20398_v2, %v20396_v23 }
 0x82f   : > { %v20394_v63 = vpop.f32.mrb[112].mxu1  ;;  %16541 = vmatprep.mubr.msk.bf16.mxu0 %vm18544_vm0, %v22651_v31 }
 0x830   : > { %22723 = vst [vmem:[#allocation87_spill] sm:$0xff] %v20394_v63  ;;  %v16871_v43 = vpop.f32.mrb[113].mxu1 }
 0x831   : > { %v6571_v55 = vpop.f32.mrb[200].mxu0  ;;  %v20402_v9 = vpop.f32.mrb[114].mxu1  ;;  %v20421_v43 = vld [vmem:[#allocation3 + $0x106] sm:$0xff] }
 0x832   : > { %22724 = vst [vmem:[#allocation88_spill] sm:$0xff] %v20402_v9  ;;  %v20406_v34 = vadd.f32 %v6571_v55, %v19926_v47  ;;  %v16431_v48 = vpop.f32.mrb[201].mxu0  ;;  %v16872_v45 = vpop.f32.mrb[115].mxu1  ;;  %v20427_v55 = vld [vmem:[#allocation3 + $0xfe] sm:$0xff] }
 0x833   : > { %v6574_v63 = vpop.f32.mrb[202].mxu0  ;;  %v9078_v45 = vpack.c.bf16 %v20421_v43, %v20427_v55 }
 0x834   : > { %v20411_v10 = vadd.f32 %v6574_v63, %v19929_v18  ;;  %v16432_v59 = vpop.f32.mrb[203].mxu0  ;;  %17086 = vmatmul.mubr.msk.bf16.gmra.mrb[220].mxu1 %vm542_vm1, %v9077_v58 }
 0x835   : > { %17089 = vmatprep.mubr.msk.bf16.mxu1 %vm18544_vm0, %v22651_v31 }
 0x836   : > { %16542 = vmatmul.mubr.msk.bf16.gmra.mrb[52].mxu0 %vm542_vm1, %v6841_v8 }
 0x837   : > { %v20419_v47 = vpop.f32.mrb[116].mxu1  ;;  %16545 = vmatprep.mubr.msk.bf16.mxu0 %vm18544_vm0, %v22651_v31 }
 0x838   : > { %22725 = vst [vmem:[#allocation89_spill] sm:$0xff] %v20419_v47  ;;  %v16875_v18 = vpop.f32.mrb[117].mxu1 }
 0x839   : > { %v6579_v63 = vpop.f32.mrb[204].mxu0  ;;  %v20425_v59 = vpop.f32.mrb[118].mxu1  ;;  %v6842_v18 = vpack.c.bf16 %v20257_v56, %v20235_v26 }
 0x83a   : > { %22726 = vst [vmem:[#allocation90_spill] sm:$0xff] %v20425_v59  ;;  %v20430_v3 = vadd.f32 %v6579_v63, %v19942_v25  ;;  %v16435_v51 = vpop.f32.mrb[205].mxu0  ;;  %v16876_v48 = vpop.f32.mrb[119].mxu1  ;;  %v20445_v63 = vld [vmem:[#allocation3 + $0x10e] sm:$0xff] }
 0x83b   : > { %v6582_v58 = vpop.f32.mrb[206].mxu0  ;;  %v20447_v51 = vld [vmem:[#allocation3 + $0x116] sm:$0xff] }
 0x83c   : > { %v20435_v8 = vadd.f32 %v6582_v58, %v19945_v60  ;;  %v16436_v47 = vpop.f32.mrb[207].mxu0  ;;  %17090 = vmatmul.mubr.msk.bf16.gmra.mrb[224].mxu1 %vm542_vm1, %v9078_v45  ;;  %v9079_v58 = vpack.c.bf16 %v20447_v51, %v20445_v63 }
 0x83d   : > { %17093 = vmatprep.mubr.msk.bf16.mxu1 %vm18544_vm0, %v22651_v31 }
 0x83e   : > { %16546 = vmatmul.mubr.msk.bf16.gmra.mrb[56].mxu0 %vm542_vm1, %v6842_v18 }
 0x83f   : > { %v20443_v25 = vpop.f32.mrb[120].mxu1  ;;  %16549 = vmatprep.mubr.msk.bf16.mxu0 %vm18544_vm0, %v22651_v31 }
 0x840   : > { %22727 = vst [vmem:[#allocation91_spill] sm:$0xff] %v20443_v25  ;;  %v16879_v60 = vpop.f32.mrb[121].mxu1 }
 0x841   : > { %v6587_v47 = vpop.f32.mrb[208].mxu0  ;;  %v20451_v48 = vpop.f32.mrb[122].mxu1  ;;  %v6843_v60 = vpack.c.bf16 %v20285_v16, %v20259_v13 }
 0x842   : > { %22728 = vst [vmem:[#allocation92_spill] sm:$0xff] %v20451_v48  ;;  %v20454_v26 = vadd.f32 %v6587_v47, %v19958_v21  ;;  %v16439_v56 = vpop.f32.mrb[209].mxu0  ;;  %v16880_v45 = vpop.f32.mrb[123].mxu1  ;;  %v20469_v47 = vld [vmem:[#allocation3 + $0x126] sm:$0xff] }
 0x843   : > { %v6590_v18 = vpop.f32.mrb[210].mxu0  ;;  %v20475_v45 = vld [vmem:[#allocation3 + $0x11e] sm:$0xff] }
 0x844   : > { %v20459_v25 = vadd.f32 %v6590_v18, %v19961_v37  ;;  %v16440_v59 = vpop.f32.mrb[211].mxu0  ;;  %17094 = vmatmul.mubr.msk.bf16.gmra.mrb[228].mxu1 %vm542_vm1, %v9079_v58  ;;  %v9080_v18 = vpack.c.bf16 %v20469_v47, %v20475_v45 }
 0x845   : > { %17097 = vmatprep.mubr.msk.bf16.mxu1 %vm18544_vm0, %v22651_v31 }
 0x846   : > { %16550 = vmatmul.mubr.msk.bf16.gmra.mrb[60].mxu0 %vm542_vm1, %v6843_v60 }
 0x847   : > { %v20467_v21 = vpop.f32.mrb[176].mxu1  ;;  %16553 = vmatprep.mubr.msk.bf16.mxu0 %vm18544_vm0, %v22651_v31 }
 0x848   : > { %22729 = vst [vmem:[#allocation93_spill] sm:$0xff] %v20467_v21  ;;  %v16883_v37 = vpop.f32.mrb[177].mxu1  ;;  %v18451_v21 = vld [vmem:[%s22564_s2 + $0xe8] sm:$0xff]  }
 0x849   : > { %v6595_v56 = vpop.f32.mrb[212].mxu0  ;;  %v20473_v59 = vpop.f32.mrb[178].mxu1  ;;  %16724 = vmatpush3.bf16.msra.mxu0 %v18451_v21 }
 0x84a   : > { %22730 = vst [vmem:[#allocation94_spill] sm:$0xff] %v20473_v59  ;;  %v20478_v13 = vadd.f32 %v6595_v56, %v19974_v19  ;;  %v16443_v16 = vpop.f32.mrb[213].mxu0  ;;  %v16884_v58 = vpop.f32.mrb[179].mxu1  ;;  %v6844_v19 = vpack.c.bf16 %v20298_v6, %v20279_v49  ;;  %16929 = vmatprep.subr.bf16.mxu0 %v22651_v31 }
 0x84b   : > { %v6598_v60 = vpop.f32.mrb[214].mxu0  ;;  %v20497_v16 = vld [vmem:[#allocation3 + $0x12e] sm:$0xff] }
 0x84c   : > { %v20486_v37 = vadd.f32 %v6598_v60, %v19977_v44  ;;  %v16444_v48 = vpop.f32.mrb[215].mxu0  ;;  %17098 = vmatmul.mubr.msk.bf16.gmra.mrb[232].mxu1 %vm542_vm1, %v9080_v18  ;;  %v20499_v44 = vld [vmem:[#allocation3 + $0x136] sm:$0xff] }
 0x84d   : > { %17101 = vmatprep.mubr.msk.bf16.mxu1 %vm18544_vm0, %v22651_v31  ;;  %v9081_v60 = vpack.c.bf16 %v20499_v44, %v20497_v16 }
 0x84e   : > { %16554 = vmatmul.mubr.msk.bf16.gmra.mrb[64].mxu0 %vm542_vm1, %v6844_v19 }
 0x84f   : > { %v20495_v56 = vpop.f32.mrb[180].mxu1  ;;  %16557 = vmatprep.mubr.msk.bf16.mxu0 %vm18544_vm0, %v22651_v31 }
 0x850   : > { %22731 = vst [vmem:[#allocation95_spill] sm:$0xff] %v20495_v56  ;;  %v16887_v48 = vpop.f32.mrb[181].mxu1 }
 0x851   : > { %v6603_v58 = vpop.f32.mrb[216].mxu0  ;;  %v20503_v6 = vpop.f32.mrb[182].mxu1  ;;  %v6845_v48 = vpack.c.bf16 %v20327_v33, %v20300_v20 }
 0x852   : > { %22732 = vst [vmem:[#allocation96_spill] sm:$0xff] %v20503_v6  ;;  %v20506_v49 = vadd.f32 %v6603_v58, %v19994_v1  ;;  %v16447_v21 = vpop.f32.mrb[217].mxu0  ;;  %v16888_v18 = vpop.f32.mrb[183].mxu1  ;;  %v20521_v58 = vld [vmem:[#allocation3 + $0x146] sm:$0xff] }
 0x853   : > { %v6606_v19 = vpop.f32.mrb[218].mxu0  ;;  %v20527_v18 = vld [vmem:[#allocation3 + $0x13e] sm:$0xff] }
 0x854   : > { %v20511_v56 = vadd.f32 %v6606_v19, %v19997_v11  ;;  %v16448_v59 = vpop.f32.mrb[219].mxu0  ;;  %17102 = vmatmul.mubr.msk.bf16.gmra.mrb[236].mxu1 %vm542_vm1, %v9081_v60  ;;  %v9082_v19 = vpack.c.bf16 %v20521_v58, %v20527_v18 }
 0x855   : > { %17105 = vmatprep.mubr.msk.bf16.mxu1 %vm18544_vm0, %v22651_v31 }
 0x856   : > { %16558 = vmatmul.mubr.msk.bf16.gmra.mrb[68].mxu0 %vm542_vm1, %v6845_v48 }
 0x857   : > { %v20519_v1 = vpop.f32.mrb[184].mxu1  ;;  %16561 = vmatprep.mubr.msk.bf16.mxu0 %vm18544_vm0, %v22651_v31 }
 0x858   : > { %22733 = vst [vmem:[#allocation97_spill] sm:$0xff] %v20519_v1  ;;  %v16891_v11 = vpop.f32.mrb[185].mxu1 }
 0x859   : > { %v6611_v21 = vpop.f32.mrb[220].mxu0  ;;  %v20525_v59 = vpop.f32.mrb[186].mxu1  ;;  %v6846_v11 = vpack.c.bf16 %v20345_v28, %v20321_v27 }
 0x85a   : > { %22734 = vst [vmem:[#allocation98_spill] sm:$0xff] %v20525_v59  ;;  %v20530_v20 = vadd.f32 %v6611_v21, %v20010_v61  ;;  %v16451_v33 = vpop.f32.mrb[221].mxu0  ;;  %v16892_v60 = vpop.f32.mrb[187].mxu1  ;;  %v20545_v21 = vld [vmem:[#allocation3 + $0x14e] sm:$0xff] }
 0x85b   : > { %v6614_v48 = vpop.f32.mrb[222].mxu0  ;;  %v20547_v33 = vld [vmem:[#allocation3 + $0x156] sm:$0xff] }
 0x85c   : > { %v20535_v1 = vadd.f32 %v6614_v48, %v20013_v24  ;;  %v16452_v6 = vpop.f32.mrb[223].mxu0  ;;  %17106 = vmatmul.mubr.msk.bf16.gmra.mrb[240].mxu1 %vm542_vm1, %v9082_v19  ;;  %v9083_v48 = vpack.c.bf16 %v20547_v33, %v20545_v21 }
 0x85d   : > { %17109 = vmatprep.mubr.msk.bf16.mxu1 %vm18544_vm0, %v22651_v31 }
 0x85e   : > { %16562 = vmatmul.mubr.msk.bf16.gmra.mrb[72].mxu0 %vm542_vm1, %v6846_v11 }
 0x85f   : > { %v20543_v61 = vpop.f32.mrb[188].mxu1  ;;  %16565 = vmatprep.mubr.msk.bf16.mxu0 %vm18544_vm0, %v22651_v31 }
 0x860   : > { %22735 = vst [vmem:[#allocation99_spill] sm:$0xff] %v20543_v61  ;;  %v16895_v24 = vpop.f32.mrb[189].mxu1 }
 0x861   : > { %v6619_v6 = vpop.f32.mrb[224].mxu0  ;;  %v20551_v60 = vpop.f32.mrb[190].mxu1  ;;  %v6847_v24 = vpack.c.bf16 %v20375_v35, %v20347_v5 }
 0x862   : > { %22736 = vst [vmem:[#allocation100_spill] sm:$0xff] %v20551_v60  ;;  %v20554_v27 = vadd.f32 %v6619_v6, %v20026_v22  ;;  %v16455_v28 = vpop.f32.mrb[225].mxu0  ;;  %v16896_v19 = vpop.f32.mrb[191].mxu1  ;;  %v20569_v6 = vld [vmem:[#allocation3 + $0x166] sm:$0xff] }
 0x863   : > { %v6622_v11 = vpop.f32.mrb[226].mxu0  ;;  %v20575_v19 = vld [vmem:[#allocation3 + $0x15e] sm:$0xff] }
 0x864   : > { %v20559_v61 = vadd.f32 %v6622_v11, %v20029_v46  ;;  %v16456_v59 = vpop.f32.mrb[227].mxu0  ;;  %17110 = vmatmul.mubr.msk.bf16.gmra.mrb[244].mxu1 %vm542_vm1, %v9083_v48  ;;  %v9084_v11 = vpack.c.bf16 %v20569_v6, %v20575_v19 }
 0x865   : > { %17113 = vmatprep.mubr.msk.bf16.mxu1 %vm18544_vm0, %v22651_v31 }
 0x866   : > { %16566 = vmatmul.mubr.msk.bf16.gmra.mrb[76].mxu0 %vm542_vm1, %v6847_v24 }
 0x867   : > { %v20567_v22 = vpop.f32.mrb[192].mxu1  ;;  %16569 = vmatprep.mubr.msk.bf16.mxu0 %vm18544_vm0, %v22651_v31 }
 0x868   : > { %22737 = vst [vmem:[#allocation101_spill] sm:$0xff] %v20567_v22  ;;  %v16899_v46 = vpop.f32.mrb[193].mxu1 }
 0x869   : > { %v6627_v28 = vpop.f32.mrb[228].mxu0  ;;  %v20573_v59 = vpop.f32.mrb[194].mxu1  ;;  %v6848_v46 = vpack.c.bf16 %v20396_v23, %v20369_v52 }
 0x86a   : > { %22738 = vst [vmem:[#allocation102_spill] sm:$0xff] %v20573_v59  ;;  %v20578_v5 = vadd.f32 %v6627_v28, %v20042_v62  ;;  %v16459_v35 = vpop.f32.mrb[229].mxu0  ;;  %v16900_v48 = vpop.f32.mrb[195].mxu1  ;;  %v20593_v28 = vld [vmem:[#allocation3 + $0x16e] sm:$0xff] }
 0x86b   : > { %v6630_v24 = vpop.f32.mrb[230].mxu0  ;;  %v20595_v35 = vld [vmem:[#allocation3 + $0x176] sm:$0xff] }
 0x86c   : > { %v20583_v22 = vadd.f32 %v6630_v24, %v20045_v40  ;;  %v16460_v60 = vpop.f32.mrb[231].mxu0  ;;  %17114 = vmatmul.mubr.msk.bf16.gmra.mrb[248].mxu1 %vm542_vm1, %v9084_v11  ;;  %v9085_v24 = vpack.c.bf16 %v20595_v35, %v20593_v28 }
 0x86d   : > { %17117 = vmatprep.mubr.msk.bf16.mxu1 %vm18544_vm0, %v22651_v31 }
 0x86e   : > { %16570 = vmatmul.mubr.msk.bf16.gmra.mrb[80].mxu0 %vm542_vm1, %v6848_v46 }
 0x86f   : > { %v20591_v62 = vpop.f32.mrb[196].mxu1  ;;  %16573 = vmatprep.mubr.msk.bf16.mxu0 %vm18544_vm0, %v22651_v31 }
 0x870   : > { %22739 = vst [vmem:[#allocation103_spill] sm:$0xff] %v20591_v62  ;;  %v16903_v40 = vpop.f32.mrb[197].mxu1 }
 0x871   : > { %v6635_v60 = vpop.f32.mrb[232].mxu0  ;;  %v20599_v48 = vpop.f32.mrb[198].mxu1  ;;  %v6849_v40 = vpack.c.bf16 %v20427_v55, %v20398_v2 }
 0x872   : > { %22740 = vst [vmem:[#allocation104_spill] sm:$0xff] %v20599_v48  ;;  %v20602_v52 = vadd.f32 %v6635_v60, %v20058_v4  ;;  %v16463_v23 = vpop.f32.mrb[233].mxu0  ;;  %v16904_v11 = vpop.f32.mrb[199].mxu1  ;;  %v20617_v60 = vld [vmem:[#allocation3 + $0x186] sm:$0xff] }
 0x873   : > { %v6638_v46 = vpop.f32.mrb[234].mxu0  ;;  %v20623_v11 = vld [vmem:[#allocation3 + $0x17e] sm:$0xff] }
 0x874   : > { %v20607_v62 = vadd.f32 %v6638_v46, %v20061_v0  ;;  %v16464_v59 = vpop.f32.mrb[235].mxu0  ;;  %17118 = vmatmul.mubr.msk.bf16.gmra.mrb[252].mxu1 %vm542_vm1, %v9085_v24  ;;  %v9086_v46 = vpack.c.bf16 %v20617_v60, %v20623_v11 }
 0x875   : > { %17121 = vmatprep.mubr.msk.bf16.mxu1 %vm18544_vm0, %v22651_v31 }
 0x876   : > { %16574 = vmatmul.mubr.msk.bf16.gmra.mrb[84].mxu0 %vm542_vm1, %v6849_v40 }
 0x877   : > { %v20615_v4 = vpop.f32.mrb[200].mxu1  ;;  %16577 = vmatprep.mubr.msk.bf16.mxu0 %vm18544_vm0, %v22651_v31 }
 0x878   : > { %22741 = vst [vmem:[#allocation105_spill] sm:$0xff] %v20615_v4  ;;  %v16907_v0 = vpop.f32.mrb[201].mxu1 }
 0x879   : > { %v6643_v23 = vpop.f32.mrb[236].mxu0  ;;  %v20621_v59 = vpop.f32.mrb[202].mxu1  ;;  %v6850_v0 = vpack.c.bf16 %v20445_v63, %v20421_v43 }
 0x87a   : > { %22742 = vst [vmem:[#allocation106_spill] sm:$0xff] %v20621_v59  ;;  %v20626_v2 = vadd.f32 %v6643_v23, %v20074_v17  ;;  %v16467_v55 = vpop.f32.mrb[237].mxu0  ;;  %v16908_v24 = vpop.f32.mrb[203].mxu1  ;;  %v20641_v23 = vld [vmem:[#allocation3 + $0x18e] sm:$0xff] }
 0x87b   : > { %v6646_v40 = vpop.f32.mrb[238].mxu0  ;;  %v20643_v55 = vld [vmem:[#allocation3 + $0x196] sm:$0xff] }
 0x87c   : > { %v20631_v4 = vadd.f32 %v6646_v40, %v20077_v50  ;;  %v16468_v48 = vpop.f32.mrb[239].mxu0  ;;  %17122 = vmatmul.mubr.msk.bf16.gmra.mrb[0].mxu1 %vm542_vm1, %v9086_v46  ;;  %v9087_v40 = vpack.c.bf16 %v20643_v55, %v20641_v23 }
 0x87d   : > { %17125 = vmatprep.mubr.msk.bf16.mxu1 %vm18544_vm0, %v22651_v31 }
 0x87e   : > { %16578 = vmatmul.mubr.msk.bf16.gmra.mrb[88].mxu0 %vm542_vm1, %v6850_v0 }
 0x87f   : > { %v20639_v17 = vpop.f32.mrb[204].mxu1  ;;  %16581 = vmatprep.mubr.msk.bf16.mxu0 %vm18544_vm0, %v22651_v31 }
 0x880   : > { %22743 = vst [vmem:[#allocation107_spill] sm:$0xff] %v20639_v17  ;;  %v16911_v50 = vpop.f32.mrb[205].mxu1 }
 0x881   : > { %v6651_v48 = vpop.f32.mrb[240].mxu0  ;;  %v20647_v24 = vpop.f32.mrb[206].mxu1  ;;  %v6851_v50 = vpack.c.bf16 %v20475_v45, %v20447_v51 }
 0x882   : > { %22744 = vst [vmem:[#allocation108_spill] sm:$0xff] %v20647_v24  ;;  %v20650_v43 = vadd.f32 %v6651_v48, %v20090_v42  ;;  %v16471_v63 = vpop.f32.mrb[241].mxu0  ;;  %v16912_v46 = vpop.f32.mrb[207].mxu1  ;;  %v9063_v48 = vld [vmem:[#allocation3 + $0x1a6] sm:$0xff] }
 0x883   : > { %v6654_v0 = vpop.f32.mrb[242].mxu0 }
 0x884   : > { %v20655_v17 = vadd.f32 %v6654_v0, %v20093_v36  ;;  %v16472_v59 = vpop.f32.mrb[243].mxu0  ;;  %17126 = vmatmul.mubr.msk.bf16.gmra.mrb[4].mxu1 %vm542_vm1, %v9087_v40 }
 0x885   : > { %17129 = vmatprep.mubr.msk.bf16.mxu1 %vm18544_vm0, %v22651_v31  ;;  %v9062_v59 = vld [vmem:[#allocation3 + $0x19e] sm:$0xff] }
 0x886   : > { %16582 = vmatmul.mubr.msk.bf16.gmra.mrb[92].mxu0 %vm542_vm1, %v6851_v50  ;;  %v9088_v0 = vpack.c.bf16 %v9063_v48, %v9062_v59 }
 0x887   : > { %v20663_v42 = vpop.f32.mrb[124].mxu1  ;;  %16585 = vmatprep.mubr.msk.bf16.mxu0 %vm18544_vm0, %v22651_v31 }
 0x888   : > { %22745 = vst [vmem:[#allocation109_spill] sm:$0xff] %v20663_v42  ;;  %v16915_v63 = vpop.f32.mrb[125].mxu1 }
 0x889   : > { %v6659_v36 = vpop.f32.mrb[244].mxu0  ;;  %v20667_v46 = vpop.f32.mrb[126].mxu1  ;;  %v6852_v63 = vpack.c.bf16 %v20497_v16, %v20469_v47 }
 0x88a   : > { %22746 = vst [vmem:[#allocation110_spill] sm:$0xff] %v20667_v46  ;;  %v20670_v40 = vadd.f32 %v6659_v36, %v20106_v32  ;;  %v16475_v51 = vpop.f32.mrb[245].mxu0  ;;  %v16916_v45 = vpop.f32.mrb[127].mxu1  ;;  %v9064_v36 = vld [vmem:[#allocation3 + $0x1ae] sm:$0xff] }
 0x88b   : > { %v6662_v24 = vpop.f32.mrb[246].mxu0  ;;  %v9089_v16 = vpack.c.bf16 %v9064_v36, %v9064_v36  ;;  %v22779_v46 = vld [vmem:[#allocation4_spill] sm:$0xff] }
 0x88c   : > { %v20673_v50 = vadd.f32 %v6662_v24, %v20109_v7  ;;  %v16476_v42 = vpop.f32.mrb[247].mxu0  ;;  %17130 = vmatmul.mubr.msk.bf16.gmra.mrb[8].mxu1 %vm542_vm1, %v9088_v0 }
 0x88d   : > { %17133 = vmatprep.mubr.msk.bf16.mxu1 %vm18544_vm0, %v22651_v31 }
 0x88e   : > { %16586 = vmatmul.mubr.msk.bf16.gmra.mrb[96].mxu0 %vm542_vm1, %v6852_v63  ;;  %v6853_v63 = vpack.c.bf16 %v20527_v18, %v20499_v44  ;;  %v6854_v18 = vpack.c.bf16 %v20545_v21, %v20521_v58  ;;  %v6855_v21 = vpack.c.bf16 %v20575_v19, %v20547_v33  ;;  %v6856_v19 = vpack.c.bf16 %v20593_v28, %v20569_v6 }
 0x88f   : > { %v20681_v32 = vpop.f32.mrb[128].mxu1  ;;  %16589 = vmatprep.mubr.msk.bf16.mxu0 %vm18544_vm0, %v22651_v31  ;;  %v6857_v28 = vpack.c.bf16 %v20623_v11, %v20595_v35  ;;  %v6858_v11 = vpack.c.bf16 %v20641_v23, %v20617_v60  ;;  %v6859_v60 = vpack.c.bf16 %v20643_v55, %v20643_v55  ;;  %v22769_v23 = vld [vmem:[#allocation71_spill] sm:$0xff] }
 0x890   : > { %22747 = vst [vmem:[#allocation111_spill] sm:$0xff] %v20681_v32  ;;  %v16919_v48 = vpop.f32.mrb[129].mxu1  ;;  %v7682_v32 = vld [vmem:[#allocation3 + $0x38] sm:$0xff] }
 0x891   : > { %v6667_v7 = vpop.f32.mrb[248].mxu0  ;;  %v20685_v24 = vpop.f32.mrb[130].mxu1 }
 0x892   : > { %22748 = vst [vmem:[#allocation112_spill] sm:$0xff] %v20685_v24  ;;  %v20688_v42 = vadd.f32 %v6667_v7, %v20122_v29  ;;  %v16479_v59 = vpop.f32.mrb[249].mxu0  ;;  %v16920_v47 = vpop.f32.mrb[131].mxu1  ;;  %v22775_v24 = vld [vmem:[#allocation77_spill] sm:$0xff] }
 0x893   : > { %v6670_v51 = vpop.f32.mrb[250].mxu0 }
 0x894   : > { %v20691_v45 = vadd.f32 %v6670_v51, %v20125_v54  ;;  %v16480_v0 = vpop.f32.mrb[251].mxu0  ;;  %17134 = vmatmul.mubr.msk.bf16.gmra.mrb[12].mxu1 %vm542_vm1, %v9089_v16 }
 0x896   : > { %16590 = vmatmul.mubr.msk.bf16.gmra.mrb[100].mxu0 %vm542_vm1, %v6853_v63 }
 0x897   : > { %v20697_v48 = vpop.f32.mrb[132].mxu1  ;;  %16593 = vmatprep.mubr.msk.bf16.mxu0 %vm18544_vm0, %v22651_v31 }
 0x898   : > { %22749 = vst [vmem:[#allocation113_spill] sm:$0xff] %v20697_v48  ;;  %v16923_v29 = vpop.f32.mrb[133].mxu1 }
 0x899   : > { %v6675_v7 = vpop.f32.mrb[252].mxu0  ;;  %v20701_v36 = vpop.f32.mrb[134].mxu1 }
 0x89a   : > { %22750 = vst [vmem:[#allocation114_spill] sm:$0xff] %v20701_v36  ;;  %v20704_v54 = vadd.f32 %v6675_v7, %v20138_v38  ;;  %v16483_v59 = vpop.f32.mrb[253].mxu0  ;;  %v16924_v47 = vpop.f32.mrb[135].mxu1  ;;  %v22752_v7 = vld [vmem:[#allocation54_spill] sm:$0xff] }
 0x89b   : > { %v6678_v16 = vpop.f32.mrb[254].mxu0 }
 0x89c   : > { %v20707_v51 = vadd.f32 %v6678_v16, %v20141_v14  ;;  %v16484_v44 = vpop.f32.mrb[255].mxu0 }
 0x89d   : > { %v22753_v44 = vld [vmem:[#allocation55_spill] sm:$0xff] }
 0x89e   : > { %16594 = vmatmul.mubr.msk.bf16.gmra.mrb[104].mxu0 %vm542_vm1, %v6854_v18 }
 0x89f   : > { %v20712_v0 = vpop.f32.mrb[136].mxu1  ;;  %16597 = vmatprep.mubr.msk.bf16.mxu0 %vm18544_vm0, %v22651_v31 }
 0x8a0   : > { %22751 = vst [vmem:[#allocation115_spill] sm:$0xff] %v20712_v0  ;;  %v16927_v63 = vpop.f32.mrb[137].mxu1 }
 0x8a1   : > { %v6683_v38 = vpop.f32.mrb[0].mxu0  ;;  %v8518_v29 = vpop.f32.mrb[138].mxu1 }
 0x8a2   : > { %v20717_v59 = vadd.f32 %v6683_v38, %v22752_v7  ;;  %v16487_v47 = vpop.f32.mrb[1].mxu0  ;;  %v16928_v14 = vpop.f32.mrb[139].mxu1  ;;  %v22756_v7 = vld [vmem:[#allocation58_spill] sm:$0xff] }
 0x8a3   : > { %v6686_v16 = vpop.f32.mrb[2].mxu0 }
 0x8a4   : > { %v20720_v36 = vadd.f32 %v6686_v16, %v22753_v44  ;;  %v16488_v58 = vpop.f32.mrb[3].mxu0 }
 0x8a5   : > { %v22757_v58 = vld [vmem:[#allocation59_spill] sm:$0xff] }
 0x8a6   : > { %16598 = vmatmul.mubr.msk.bf16.gmra.mrb[108].mxu0 %vm542_vm1, %v6855_v21 }
 0x8a7   : > { %v20725_v18 = vpop.f32.mrb[140].mxu1  ;;  %16601 = vmatprep.mubr.msk.bf16.mxu0 %vm18544_vm0, %v22651_v31 }
 0x8a8   : > { %22754 = vst [vmem:[#allocation54_spill] sm:$0xff] %v20725_v18  ;;  %v17039_v63 = vpop.f32.mrb[141].mxu1 }
 0x8a9   : > { %v6691_v38 = vpop.f32.mrb[4].mxu0  ;;  %v20729_v29 = vpop.f32.mrb[142].mxu1 }
 0x8aa   : > { %22755 = vst [vmem:[#allocation55_spill] sm:$0xff] %v20729_v29  ;;  %v20732_v47 = vadd.f32 %v6691_v38, %v22756_v7  ;;  %v16491_v14 = vpop.f32.mrb[5].mxu0  ;;  %v17040_v16 = vpop.f32.mrb[143].mxu1  ;;  %v22761_v29 = vld [vmem:[#allocation63_spill] sm:$0xff] }
 0x8ab   : > { %v6694_v44 = vpop.f32.mrb[6].mxu0  ;;  %v22760_v14 = vld [vmem:[#allocation62_spill] sm:$0xff] }
 0x8ac   : > { %v20735_v0 = vadd.f32 %v6694_v44, %v22757_v58  ;;  %v16492_v33 = vpop.f32.mrb[7].mxu0 }
 0x8ae   : > { %16602 = vmatmul.mubr.msk.bf16.gmra.mrb[112].mxu0 %vm542_vm1, %v6856_v19 }
 0x8af   : > { %v20740_v21 = vpop.f32.mrb[144].mxu1  ;;  %16605 = vmatprep.mubr.msk.bf16.mxu0 %vm18544_vm0, %v22651_v31 }
 0x8b0   : > { %22758 = vst [vmem:[#allocation58_spill] sm:$0xff] %v20740_v21  ;;  %v17043_v63 = vpop.f32.mrb[145].mxu1 }
 0x8b1   : > { %v6699_v38 = vpop.f32.mrb[8].mxu0  ;;  %v20744_v7 = vpop.f32.mrb[146].mxu1 }
 0x8b2   : > { %22759 = vst [vmem:[#allocation59_spill] sm:$0xff] %v20744_v7  ;;  %v20747_v16 = vadd.f32 %v6699_v38, %v22760_v14  ;;  %v16495_v44 = vpop.f32.mrb[9].mxu0  ;;  %v17044_v58 = vpop.f32.mrb[147].mxu1  ;;  %v22765_v7 = vld [vmem:[#allocation67_spill] sm:$0xff] }
 0x8b3   : > { %v6702_v33 = vpop.f32.mrb[10].mxu0  ;;  %v22764_v44 = vld [vmem:[#allocation66_spill] sm:$0xff] }
 0x8b4   : > { %v20750_v18 = vadd.f32 %v6702_v33, %v22761_v29  ;;  %v16496_v6 = vpop.f32.mrb[11].mxu0 }
 0x8b6   : > { %16606 = vmatmul.mubr.msk.bf16.gmra.mrb[116].mxu0 %vm542_vm1, %v6857_v28 }
 0x8b7   : > { %v20755_v19 = vpop.f32.mrb[148].mxu1  ;;  %16609 = vmatprep.mubr.msk.bf16.mxu0 %vm18544_vm0, %v22651_v31 }
 0x8b8   : > { %22762 = vst [vmem:[#allocation62_spill] sm:$0xff] %v20755_v19  ;;  %v17047_v63 = vpop.f32.mrb[149].mxu1 }
 0x8b9   : > { %v6707_v38 = vpop.f32.mrb[12].mxu0  ;;  %v20759_v14 = vpop.f32.mrb[150].mxu1 }
 0x8ba   : > { %22763 = vst [vmem:[#allocation63_spill] sm:$0xff] %v20759_v14  ;;  %v20762_v58 = vadd.f32 %v6707_v38, %v22764_v44  ;;  %v16499_v29 = vpop.f32.mrb[13].mxu0  ;;  %v17048_v33 = vpop.f32.mrb[151].mxu1  ;;  %v22768_v14 = vld [vmem:[#allocation70_spill] sm:$0xff] }
 0x8bb   : > { %v6710_v6 = vpop.f32.mrb[14].mxu0 }
 0x8bc   : > { %v20765_v21 = vadd.f32 %v6710_v6, %v22765_v7  ;;  %v16500_v35 = vpop.f32.mrb[15].mxu0 }
 0x8be   : > { %16610 = vmatmul.mubr.msk.bf16.gmra.mrb[120].mxu0 %vm542_vm1, %v6858_v11 }
 0x8bf   : > { %v20770_v28 = vpop.f32.mrb[152].mxu1  ;;  %16613 = vmatprep.mubr.msk.bf16.mxu0 %vm18544_vm0, %v22651_v31 }
 0x8c0   : > { %22766 = vst [vmem:[#allocation66_spill] sm:$0xff] %v20770_v28  ;;  %v17051_v63 = vpop.f32.mrb[153].mxu1 }
 0x8c1   : > { %v6715_v38 = vpop.f32.mrb[16].mxu0  ;;  %v20774_v44 = vpop.f32.mrb[154].mxu1 }
 0x8c2   : > { %22767 = vst [vmem:[#allocation67_spill] sm:$0xff] %v20774_v44  ;;  %v16503_v29 = vpop.f32.mrb[17].mxu0  ;;  %v17052_v33 = vpop.f32.mrb[155].mxu1  ;;  %v20777_v7 = vadd.f32 %v6715_v38, %v22768_v14  ;;  %v18522_v44 = vld [vmem:[#allocation3 + $0x18] sm:$0xff] }
 0x8c3   : > { %v6718_v6 = vpop.f32.mrb[18].mxu0 }
 0x8c4   : > { %v16504_v35 = vpop.f32.mrb[19].mxu0  ;;  %v20782_v11 = vadd.f32 %v6718_v6, %v22769_v23  ;;  %v18523_v6 = vld [vmem:[#allocation3 + $0x20] sm:$0xff] }
 0x8c5   : > { %v7727_v23 = vpack.c.bf16 %v18523_v6, %v18522_v44 }
 0x8c6   : > { %16614 = vmatmul.mubr.msk.bf16.gmra.mrb[124].mxu0 %vm542_vm1, %v6859_v60  ;;  %v22772_v60 = vld [vmem:[#allocation74_spill] sm:$0xff] }
 0x8c7   : > { %v20785_v28 = vpop.f32.mrb[156].mxu1  ;;  %16725 = vmatprep.mubr.msk.bf16.mxu0 %vm18544_vm0, %v22651_v31 }
 0x8c8   : > { %22770 = vst [vmem:[#allocation70_spill] sm:$0xff] %v20785_v28  ;;  %v17055_v63 = vpop.f32.mrb[157].mxu1 }
 0x8c9   : > { %v6723_v29 = vpop.f32.mrb[20].mxu0  ;;  %v20789_v33 = vpop.f32.mrb[158].mxu1 }
 0x8ca   : > { %22771 = vst [vmem:[#allocation71_spill] sm:$0xff] %v20789_v33  ;;  %v16507_v14 = vpop.f32.mrb[21].mxu0  ;;  %v17056_v38 = vpop.f32.mrb[159].mxu1  ;;  %v20792_v35 = vadd.f32 %v6723_v29, %v20266_v12  ;;  %v7680_v12 = vld [vmem:[#allocation3 + $0x28] sm:$0xff] }
 0x8cb   : > { %v6726_v55 = vpop.f32.mrb[22].mxu0 }
 0x8cc   : > { %v16508_v19 = vpop.f32.mrb[23].mxu0  ;;  %v20795_v48 = vadd.f32 %v6726_v55, %v22772_v60  ;;  %v7681_v55 = vld [vmem:[#allocation3 + $0x30] sm:$0xff] }
 0x8cd   : > { %v7728_v60 = vpack.c.bf16 %v7681_v55, %v7680_v12 }
 0x8ce   : > { %16726 = vmatmul.mubr.msk.bf16.vlgmr.msra.gmra.mrb[128].mxu0 %vm542_vm1, %v7727_v23 }
 0x8cf   : > { %v20798_v28 = vpop.f32.mrb[160].mxu1  ;;  %16729 = vmatprep.mubr.msk.bf16.mxu0 %vm18544_vm0, %v22651_v31 }
 0x8d0   : > { %22773 = vst [vmem:[#allocation74_spill] sm:$0xff] %v20798_v28  ;;  %v17059_v63 = vpop.f32.mrb[161].mxu1 }
 0x8d1   : > { %v6731_v14 = vpop.f32.mrb[24].mxu0  ;;  %v20802_v38 = vpop.f32.mrb[162].mxu1 }
 0x8d2   : > { %22774 = vst [vmem:[#allocation116_spill] sm:$0xff] %v20802_v38  ;;  %v16511_v29 = vpop.f32.mrb[25].mxu0  ;;  %v17060_v33 = vpop.f32.mrb[163].mxu1  ;;  %v20805_v44 = vadd.f32 %v6731_v14, %v22775_v24 }
 0x8d3   : > { %v6734_v19 = vpop.f32.mrb[26].mxu0  ;;  %v7683_v29 = vld [vmem:[#allocation3 + $0x40] sm:$0xff] }
 0x8d4   : > { %v16512_v6 = vpop.f32.mrb[27].mxu0 }
 0x8d5   : > { %v22778_v6 = vld [vmem:[#allocation80_spill] sm:$0xff] }
 0x8d6   : > { %16730 = vmatmul.mubr.msk.bf16.gmra.mrb[132].mxu0 %vm542_vm1, %v7728_v60  ;;  %v7729_v60 = vpack.c.bf16 %v7683_v29, %v7682_v32 }
 0x8d7   : > { %v20808_v23 = vpop.f32.mrb[164].mxu1  ;;  %16733 = vmatprep.mubr.msk.bf16.mxu0 %vm18544_vm0, %v22651_v31 }
 0x8d8   : > { %22776 = vst [vmem:[#allocation77_spill] sm:$0xff] %v20808_v23  ;;  %v17063_v63 = vpop.f32.mrb[165].mxu1 }
 0x8d9   : > { %v6985_v28 = vpop.f32.mrb[28].mxu0  ;;  %v20812_v38 = vpop.f32.mrb[166].mxu1  ;;  %v22780_v63 = vld [vmem:[#allocation5_spill] sm:$0xff] }
 0x8da   : > { %22777 = vst [vmem:[#allocation117_spill] sm:$0xff] %v20812_v38  ;;  %v7183_v33 = vadd.f32 %v6985_v28, %v20307_v41  ;;  %v16519_v24 = vpop.f32.mrb[29].mxu0  ;;  %v17064_v14 = vpop.f32.mrb[167].mxu1 }
 0x8db   : > { %v6988_v19 = vpop.f32.mrb[30].mxu0  ;;  %v7684_v14 = vld [vmem:[#allocation3 + $0x48] sm:$0xff] }
 0x8dc   : > { %v7184_v12 = vadd.f32 %v6988_v19, %v22778_v6  ;;  %v16520_v55 = vpop.f32.mrb[31].mxu0  ;;  %v20817_v23 = vadd.f32 %v22779_v46, %v7183_v33  ;;  %v7685_v19 = vld [vmem:[#allocation3 + $0x50] sm:$0xff] }
 0x8dd   : > { %v7730_v55 = vpack.c.bf16 %v7685_v19, %v7684_v14  ;;  %v7686_v19 = vld [vmem:[#allocation3 + $0x58] sm:$0xff] }
 0x8de   : > { %16734 = vmatmul.mubr.msk.bf16.gmra.mrb[136].mxu0 %vm542_vm1, %v7729_v60  ;;  %v20821_v9 = vadd.f32 %v22780_v63, %v7184_v12  ;;  %v22783_v60 = vld [vmem:[#allocation6_spill] sm:$0xff] }
 0x8df   : > { %v20823_v38 = vpop.f32.mrb[168].mxu1  ;;  %16737 = vmatprep.mubr.msk.bf16.mxu0 %vm18544_vm0, %v22651_v31 }
 0x8e0   : > { %22781 = vst [vmem:[#allocation80_spill] sm:$0xff] %v20823_v38  ;;  %v17067_v41 = vpop.f32.mrb[169].mxu1 }
 0x8e1   : > { %v6993_v28 = vpop.f32.mrb[32].mxu0  ;;  %v20827_v24 = vpop.f32.mrb[170].mxu1  ;;  %v22784_v41 = vld [vmem:[#allocation7_spill] sm:$0xff] }
 0x8e2   : > { %22782 = vst [vmem:[#allocation4_spill] sm:$0xff] %v20827_v24  ;;  %v7185_v32 = vadd.f32 %v6993_v28, %v20330_v57  ;;  %v16523_v29 = vpop.f32.mrb[33].mxu0  ;;  %v17068_v46 = vpop.f32.mrb[171].mxu1 }
 0x8e3   : > { %v6996_v33 = vpop.f32.mrb[34].mxu0 }
 0x8e4   : > { %v7186_v6 = vadd.f32 %v6996_v33, %v20335_v39  ;;  %v16524_v12 = vpop.f32.mrb[35].mxu0  ;;  %v20832_v63 = vadd.f32 %v22783_v60, %v7185_v32  ;;  %v7687_v39 = vld [vmem:[#allocation3 + $0x60] sm:$0xff]  ;;  %v22787_v60 = vld [vmem:[#allocation8_spill] sm:$0xff] }
 0x8e6   : > { %16738 = vmatmul.mubr.msk.bf16.gmra.mrb[140].mxu0 %vm542_vm1, %v7730_v55  ;;  %v20836_v38 = vadd.f32 %v22784_v41, %v7186_v6  ;;  %v7731_v55 = vpack.c.bf16 %v7687_v39, %v7686_v19  ;;  %v7689_v19 = vld [vmem:[#allocation3 + $0x70] sm:$0xff] }
 0x8e7   : > { %v20838_v24 = vpop.f32.mrb[172].mxu1  ;;  %16741 = vmatprep.mubr.msk.bf16.mxu0 %vm18544_vm0, %v22651_v31 }
 0x8e8   : > { %22785 = vst [vmem:[#allocation5_spill] sm:$0xff] %v20838_v24  ;;  %v17071_v57 = vpop.f32.mrb[173].mxu1 }
 0x8e9   : > { %v7001_v28 = vpop.f32.mrb[36].mxu0  ;;  %v20842_v29 = vpop.f32.mrb[174].mxu1  ;;  %v22788_v57 = vld [vmem:[#allocation9_spill] sm:$0xff] }
 0x8ea   : > { %22786 = vst [vmem:[#allocation6_spill] sm:$0xff] %v20842_v29  ;;  %v7187_v14 = vadd.f32 %v7001_v28, %v20354_v30  ;;  %v16527_v46 = vpop.f32.mrb[37].mxu0  ;;  %v17072_v32 = vpop.f32.mrb[175].mxu1 }
 0x8eb   : > { %v7004_v33 = vpop.f32.mrb[38].mxu0 }
 0x8ec   : > { %v7188_v12 = vadd.f32 %v7004_v33, %v20359_v15  ;;  %v16528_v6 = vpop.f32.mrb[39].mxu0  ;;  %v20847_v41 = vadd.f32 %v22787_v60, %v7187_v14  ;;  %v7688_v15 = vld [vmem:[#allocation3 + $0x68] sm:$0xff] }
 0x8ed   : > { %v22792_v6 = vld [vmem:[#allocation86_spill] sm:$0xff]  ;;  %v7732_v60 = vpack.c.bf16 %v7689_v19, %v7688_v15 }
 0x8ee   : > { %16742 = vmatmul.mubr.msk.bf16.gmra.mrb[144].mxu0 %vm542_vm1, %v7731_v55  ;;  %v20851_v24 = vadd.f32 %v22788_v57, %v7188_v12  ;;  %v22793_v57 = vld [vmem:[#allocation10_spill] sm:$0xff] }
 0x8ef   : > { %v20853_v29 = vpop.f32.mrb[208].mxu1  ;;  %16745 = vmatprep.mubr.msk.bf16.mxu0 %vm18544_vm0, %v22651_v31 }
 0x8f0   : > { %22789 = vst [vmem:[#allocation7_spill] sm:$0xff] %v20851_v24  ;;  %22790 = vst [vmem:[#allocation8_spill] sm:$0xff] %v20853_v29  ;;  %v17075_v30 = vpop.f32.mrb[209].mxu1 }
 0x8f1   : > { %v7009_v28 = vpop.f32.mrb[40].mxu0  ;;  %v20857_v46 = vpop.f32.mrb[210].mxu1  ;;  %v18452_v30 = vld [vmem:[%s22564_s2 + $0x100] sm:$0xff]  }
 0x8f2   : > { %22791 = vst [vmem:[#allocation9_spill] sm:$0xff] %v20857_v46  ;;  %v7189_v39 = vadd.f32 %v7009_v28, %v20378_v53  ;;  %v16531_v32 = vpop.f32.mrb[41].mxu0  ;;  %v17076_v14 = vpop.f32.mrb[211].mxu1  ;;  %v22794_v46 = vld [vmem:[#allocation11_spill] sm:$0xff]  ;;  %16930 = vmatpush3.bf16.msra.mxu0 %v18452_v30  ;;  %v22798_v30 = vld [vmem:[#allocation13_spill] sm:$0xff] }
 0x8f3   : > { %v7012_v33 = vpop.f32.mrb[42].mxu0  ;;  %16931 = vmatprep.subr.bf16.mxu0 %v22651_v31 }
 0x8f4   : > { %v7190_v55 = vadd.f32 %v7012_v33, %v22792_v6  ;;  %v16532_v12 = vpop.f32.mrb[43].mxu0  ;;  %v20862_v29 = vadd.f32 %v22793_v57, %v7189_v39  ;;  %v7691_v39 = vld [vmem:[#allocation3 + $0x80] sm:$0xff]  ;;  %v22797_v57 = vld [vmem:[#allocation12_spill] sm:$0xff] }
 0x8f6   : > { %16746 = vmatmul.mubr.msk.bf16.gmra.mrb[148].mxu0 %vm542_vm1, %v7732_v60  ;;  %v20869_v24 = vadd.f32 %v22794_v46, %v7190_v55  ;;  %v7690_v46 = vld [vmem:[#allocation3 + $0x78] sm:$0xff] }
 0x8f7   : > { %v20871_v53 = vpop.f32.mrb[212].mxu1  ;;  %16749 = vmatprep.mubr.msk.bf16.mxu0 %vm18544_vm0, %v22651_v31  ;;  %v7733_v60 = vpack.c.bf16 %v7691_v39, %v7690_v46  ;;  %v7693_v46 = vld [vmem:[#allocation3 + $0x90] sm:$0xff] }
 0x8f8   : > { %22795 = vst [vmem:[#allocation86_spill] sm:$0xff] %v20871_v53  ;;  %v17079_v28 = vpop.f32.mrb[213].mxu1 }
 0x8f9   : > { %v7017_v15 = vpop.f32.mrb[44].mxu0  ;;  %v20875_v32 = vpop.f32.mrb[214].mxu1 }
 0x8fa   : > { %22796 = vst [vmem:[#allocation10_spill] sm:$0xff] %v20875_v32  ;;  %v7191_v14 = vadd.f32 %v7017_v15, %v20406_v34  ;;  %v16535_v33 = vpop.f32.mrb[45].mxu0  ;;  %v17080_v19 = vpop.f32.mrb[215].mxu1 }
 0x8fb   : > { %v7020_v6 = vpop.f32.mrb[46].mxu0 }
 0x8fc   : > { %v7192_v55 = vadd.f32 %v7020_v6, %v20411_v10  ;;  %v16536_v12 = vpop.f32.mrb[47].mxu0  ;;  %v20881_v53 = vadd.f32 %v22797_v57, %v7191_v14  ;;  %v7692_v10 = vld [vmem:[#allocation3 + $0x88] sm:$0xff]  ;;  %v22801_v57 = vld [vmem:[#allocation14_spill] sm:$0xff] }
 0x8fe   : > { %16750 = vmatmul.mubr.msk.bf16.gmra.mrb[152].mxu0 %vm542_vm1, %v7733_v60  ;;  %v20885_v28 = vadd.f32 %v22798_v30, %v7192_v55  ;;  %v7734_v60 = vpack.c.bf16 %v7693_v46, %v7692_v10  ;;  %v7694_v46 = vld [vmem:[#allocation3 + $0x98] sm:$0xff] }
 0x8ff   : > { %v20887_v32 = vpop.f32.mrb[216].mxu1  ;;  %16753 = vmatprep.mubr.msk.bf16.mxu0 %vm18544_vm0, %v22651_v31 }
 0x900   : > { %22799 = vst [vmem:[#allocation11_spill] sm:$0xff] %v20887_v32  ;;  %v17083_v34 = vpop.f32.mrb[217].mxu1 }
 0x901   : > { %v7025_v15 = vpop.f32.mrb[48].mxu0  ;;  %v20891_v33 = vpop.f32.mrb[218].mxu1  ;;  %v22802_v34 = vld [vmem:[#allocation15_spill] sm:$0xff] }
 0x902   : > { %22800 = vst [vmem:[#allocation12_spill] sm:$0xff] %v20891_v33  ;;  %v7193_v39 = vadd.f32 %v7025_v15, %v20430_v3  ;;  %v16539_v19 = vpop.f32.mrb[49].mxu0  ;;  %v17084_v14 = vpop.f32.mrb[219].mxu1 }
 0x903   : > { %v7028_v6 = vpop.f32.mrb[50].mxu0 }
 0x904   : > { %v7194_v12 = vadd.f32 %v7028_v6, %v20435_v8  ;;  %v16540_v55 = vpop.f32.mrb[51].mxu0  ;;  %v20896_v30 = vadd.f32 %v22801_v57, %v7193_v39  ;;  %v7695_v8 = vld [vmem:[#allocation3 + $0xa0] sm:$0xff]  ;;  %v22805_v57 = vld [vmem:[#allocation16_spill] sm:$0xff] }
 0x906   : > { %16754 = vmatmul.mubr.msk.bf16.gmra.mrb[156].mxu0 %vm542_vm1, %v7734_v60  ;;  %v20900_v32 = vadd.f32 %v22802_v34, %v7194_v12  ;;  %v7735_v60 = vpack.c.bf16 %v7695_v8, %v7694_v46  ;;  %v7697_v46 = vld [vmem:[#allocation3 + $0xb0] sm:$0xff] }
 0x907   : > { %v20902_v33 = vpop.f32.mrb[220].mxu1  ;;  %16757 = vmatprep.mubr.msk.bf16.mxu0 %vm18544_vm0, %v22651_v31 }
 0x908   : > { %22803 = vst [vmem:[#allocation13_spill] sm:$0xff] %v20902_v33  ;;  %v17087_v3 = vpop.f32.mrb[221].mxu1 }
 0x909   : > { %v7033_v15 = vpop.f32.mrb[52].mxu0  ;;  %v20906_v19 = vpop.f32.mrb[222].mxu1  ;;  %v22806_v3 = vld [vmem:[#allocation17_spill] sm:$0xff] }
 0x90a   : > { %22804 = vst [vmem:[#allocation14_spill] sm:$0xff] %v20906_v19  ;;  %v7195_v10 = vadd.f32 %v7033_v15, %v20454_v26  ;;  %v16543_v14 = vpop.f32.mrb[53].mxu0  ;;  %v17088_v39 = vpop.f32.mrb[223].mxu1 }
 0x90b   : > { %v7036_v6 = vpop.f32.mrb[54].mxu0 }
 0x90c   : > { %v7196_v55 = vadd.f32 %v7036_v6, %v20459_v25  ;;  %v16544_v12 = vpop.f32.mrb[55].mxu0  ;;  %v20911_v34 = vadd.f32 %v22805_v57, %v7195_v10  ;;  %v7696_v25 = vld [vmem:[#allocation3 + $0xa8] sm:$0xff]  ;;  %v18453_v57 = vld [vmem:[%s22564_s2 + $0x108] sm:$0xff]  }
 0x90d   : > { %16932 = vmatpush3.bf16.msra.mxu0 %v18453_v57  ;;  %v22814_v57 = vld [vmem:[#allocation22_spill] sm:$0xff] }
 0x90e   : > { %16758 = vmatmul.mubr.msk.bf16.gmra.mrb[160].mxu0 %vm542_vm1, %v7735_v60  ;;  %v20915_v33 = vadd.f32 %v22806_v3, %v7196_v55  ;;  %v7736_v60 = vpack.c.bf16 %v7697_v46, %v7696_v25  ;;  %v22809_v3 = vld [vmem:[#allocation18_spill] sm:$0xff] }
 0x90f   : > { %v20917_v19 = vpop.f32.mrb[224].mxu1  ;;  %16761 = vmatprep.mubr.msk.bf16.mxu0 %vm18544_vm0, %v22651_v31 }
 0x910   : > { %22807 = vst [vmem:[#allocation15_spill] sm:$0xff] %v20917_v19  ;;  %v17091_v26 = vpop.f32.mrb[225].mxu1 }
 0x911   : > { %v7041_v15 = vpop.f32.mrb[56].mxu0  ;;  %v20921_v14 = vpop.f32.mrb[226].mxu1 }
 0x912   : > { %22808 = vst [vmem:[#allocation16_spill] sm:$0xff] %v20921_v14  ;;  %v7197_v8 = vadd.f32 %v7041_v15, %v20478_v13  ;;  %v16547_v39 = vpop.f32.mrb[57].mxu0  ;;  %v17092_v10 = vpop.f32.mrb[227].mxu1  ;;  %v22810_v14 = vld [vmem:[#allocation19_spill] sm:$0xff] }
 0x913   : > { %v7044_v6 = vpop.f32.mrb[58].mxu0  ;;  %v7699_v39 = vld [vmem:[#allocation3 + $0xc0] sm:$0xff] }
 0x914   : > { %v7198_v12 = vadd.f32 %v7044_v6, %v20486_v37  ;;  %v16548_v55 = vpop.f32.mrb[59].mxu0  ;;  %v20929_v26 = vadd.f32 %v22809_v3, %v7197_v8  ;;  %v22813_v3 = vld [vmem:[#allocation21_spill] sm:$0xff] }
 0x915   : > { %v7698_v55 = vld [vmem:[#allocation3 + $0xb8] sm:$0xff] }
 0x916   : > { %16762 = vmatmul.mubr.msk.bf16.gmra.mrb[164].mxu0 %vm542_vm1, %v7736_v60  ;;  %v20933_v19 = vadd.f32 %v22810_v14, %v7198_v12  ;;  %v7737_v60 = vpack.c.bf16 %v7699_v39, %v7698_v55  ;;  %v7701_v55 = vld [vmem:[#allocation3 + $0xd0] sm:$0xff] }
 0x917   : > { %v20935_v13 = vpop.f32.mrb[228].mxu1  ;;  %16765 = vmatprep.mubr.msk.bf16.mxu0 %vm18544_vm0, %v22651_v31 }
 0x918   : > { %22811 = vst [vmem:[#allocation17_spill] sm:$0xff] %v20935_v13  ;;  %v17095_v37 = vpop.f32.mrb[229].mxu1 }
 0x919   : > { %v7049_v15 = vpop.f32.mrb[60].mxu0  ;;  %v20939_v25 = vpop.f32.mrb[230].mxu1 }
 0x91a   : > { %22812 = vst [vmem:[#allocation18_spill] sm:$0xff] %v20939_v25  ;;  %v7199_v10 = vadd.f32 %v7049_v15, %v20506_v49  ;;  %v16551_v8 = vpop.f32.mrb[61].mxu0  ;;  %v17096_v6 = vpop.f32.mrb[231].mxu1 }
 0x91b   : > { %v7052_v46 = vpop.f32.mrb[62].mxu0 }
 0x91c   : > { %v7200_v14 = vadd.f32 %v7052_v46, %v20511_v56  ;;  %v16552_v12 = vpop.f32.mrb[63].mxu0  ;;  %v20944_v13 = vadd.f32 %v22813_v3, %v7199_v10  ;;  %v7700_v56 = vld [vmem:[#allocation3 + $0xc8] sm:$0xff]  ;;  %v22817_v3 = vld [vmem:[#allocation23_spill] sm:$0xff] }
 0x91e   : > { %16766 = vmatmul.mubr.msk.bf16.gmra.mrb[168].mxu0 %vm542_vm1, %v7737_v60  ;;  %v20948_v37 = vadd.f32 %v22814_v57, %v7200_v14  ;;  %v7738_v60 = vpack.c.bf16 %v7701_v55, %v7700_v56  ;;  %v7702_v55 = vld [vmem:[#allocation3 + $0xd8] sm:$0xff] }
 0x91f   : > { %v20950_v25 = vpop.f32.mrb[232].mxu1  ;;  %16769 = vmatprep.mubr.msk.bf16.mxu0 %vm18544_vm0, %v22651_v31 }
 0x920   : > { %22815 = vst [vmem:[#allocation19_spill] sm:$0xff] %v20950_v25  ;;  %v17099_v49 = vpop.f32.mrb[233].mxu1 }
 0x921   : > { %v7057_v15 = vpop.f32.mrb[64].mxu0  ;;  %v20954_v8 = vpop.f32.mrb[234].mxu1  ;;  %v22818_v49 = vld [vmem:[#allocation24_spill] sm:$0xff] }
 0x922   : > { %22816 = vst [vmem:[#allocation21_spill] sm:$0xff] %v20954_v8  ;;  %v7201_v39 = vadd.f32 %v7057_v15, %v20530_v20  ;;  %v16555_v6 = vpop.f32.mrb[65].mxu0  ;;  %v17100_v10 = vpop.f32.mrb[235].mxu1 }
 0x923   : > { %v7060_v46 = vpop.f32.mrb[66].mxu0 }
 0x924   : > { %v7202_v12 = vadd.f32 %v7060_v46, %v20535_v1  ;;  %v16556_v14 = vpop.f32.mrb[67].mxu0  ;;  %v20959_v57 = vadd.f32 %v22817_v3, %v7201_v39  ;;  %v7703_v1 = vld [vmem:[#allocation3 + $0xe0] sm:$0xff]  ;;  %v22821_v3 = vld [vmem:[#allocation25_spill] sm:$0xff] }
 0x926   : > { %16770 = vmatmul.mubr.msk.bf16.gmra.mrb[172].mxu0 %vm542_vm1, %v7738_v60  ;;  %v20963_v25 = vadd.f32 %v22818_v49, %v7202_v12  ;;  %v7739_v60 = vpack.c.bf16 %v7703_v1, %v7702_v55  ;;  %v7705_v55 = vld [vmem:[#allocation3 + $0xf0] sm:$0xff] }
 0x927   : > { %v20965_v8 = vpop.f32.mrb[236].mxu1  ;;  %16773 = vmatprep.mubr.msk.bf16.mxu0 %vm18544_vm0, %v22651_v31 }
 0x928   : > { %22819 = vst [vmem:[#allocation22_spill] sm:$0xff] %v20965_v8  ;;  %v17103_v20 = vpop.f32.mrb[237].mxu1 }
 0x929   : > { %v7065_v15 = vpop.f32.mrb[68].mxu0  ;;  %v20969_v6 = vpop.f32.mrb[238].mxu1  ;;  %v22822_v20 = vld [vmem:[#allocation26_spill] sm:$0xff] }
 0x92a   : > { %22820 = vst [vmem:[#allocation23_spill] sm:$0xff] %v20969_v6  ;;  %v7203_v56 = vadd.f32 %v7065_v15, %v20554_v27  ;;  %v16559_v10 = vpop.f32.mrb[69].mxu0  ;;  %v17104_v39 = vpop.f32.mrb[239].mxu1 }
 0x92b   : > { %v7068_v46 = vpop.f32.mrb[70].mxu0 }
 0x92c   : > { %v7204_v14 = vadd.f32 %v7068_v46, %v20559_v61  ;;  %v16560_v12 = vpop.f32.mrb[71].mxu0  ;;  %v20974_v49 = vadd.f32 %v22821_v3, %v7203_v56  ;;  %v7704_v61 = vld [vmem:[#allocation3 + $0xe8] sm:$0xff] }
 0x92e   : > { %16774 = vmatmul.mubr.msk.bf16.gmra.mrb[176].mxu0 %vm542_vm1, %v7739_v60  ;;  %v20978_v8 = vadd.f32 %v22822_v20, %v7204_v14  ;;  %v7740_v60 = vpack.c.bf16 %v7705_v55, %v7704_v61  ;;  %v22825_v14 = vld [vmem:[#allocation27_spill] sm:$0xff] }
 0x92f   : > { %v20980_v6 = vpop.f32.mrb[240].mxu1  ;;  %16777 = vmatprep.mubr.msk.bf16.mxu0 %vm18544_vm0, %v22651_v31  ;;  %v7707_v61 = vld [vmem:[#allocation3 + $0x100] sm:$0xff] }
 0x930   : > { %22823 = vst [vmem:[#allocation24_spill] sm:$0xff] %v20980_v6  ;;  %v17107_v27 = vpop.f32.mrb[241].mxu1 }
 0x931   : > { %v7073_v15 = vpop.f32.mrb[72].mxu0  ;;  %v20984_v10 = vpop.f32.mrb[242].mxu1  ;;  %v22826_v27 = vld [vmem:[#allocation28_spill] sm:$0xff] }
 0x932   : > { %22824 = vst [vmem:[#allocation25_spill] sm:$0xff] %v20984_v10  ;;  %v16563_v39 = vpop.f32.mrb[73].mxu0  ;;  %v17108_v1 = vpop.f32.mrb[243].mxu1  ;;  %v7205_v56 = vadd.f32 %v7073_v15, %v20578_v5 }
 0x933   : > { %v7076_v46 = vpop.f32.mrb[74].mxu0 }
 0x934   : > { %v16564_v12 = vpop.f32.mrb[75].mxu0  ;;  %v20988_v3 = vadd.f32 %v22825_v14, %v7205_v56  ;;  %v7206_v20 = vadd.f32 %v7076_v46, %v20583_v22  ;;  %v7706_v46 = vld [vmem:[#allocation3 + $0xf8] sm:$0xff]  ;;  %v22829_v14 = vld [vmem:[#allocation29_spill] sm:$0xff] }
 0x936   : > { %16778 = vmatmul.mubr.msk.bf16.gmra.mrb[180].mxu0 %vm542_vm1, %v7740_v60  ;;  %v20993_v6 = vadd.f32 %v22826_v27, %v7206_v20  ;;  %v7741_v60 = vpack.c.bf16 %v7707_v61, %v7706_v46  ;;  %v7708_v61 = vld [vmem:[#allocation3 + $0x108] sm:$0xff] }
 0x937   : > { %v20995_v10 = vpop.f32.mrb[244].mxu1  ;;  %16781 = vmatprep.mubr.msk.bf16.mxu0 %vm18544_vm0, %v22651_v31 }
 0x938   : > { %22827 = vst [vmem:[#allocation26_spill] sm:$0xff] %v20995_v10  ;;  %v17111_v5 = vpop.f32.mrb[245].mxu1 }
 0x939   : > { %v7081_v15 = vpop.f32.mrb[76].mxu0  ;;  %v20999_v39 = vpop.f32.mrb[246].mxu1  ;;  %v22830_v5 = vld [vmem:[#allocation30_spill] sm:$0xff] }
 0x93a   : > { %22828 = vst [vmem:[#allocation27_spill] sm:$0xff] %v20999_v39  ;;  %v16567_v1 = vpop.f32.mrb[77].mxu0  ;;  %v17112_v56 = vpop.f32.mrb[247].mxu1  ;;  %v7207_v55 = vadd.f32 %v7081_v15, %v20602_v52 }
 0x93b   : > { %v7084_v22 = vpop.f32.mrb[78].mxu0 }
 0x93c   : > { %v16568_v12 = vpop.f32.mrb[79].mxu0  ;;  %v21003_v20 = vadd.f32 %v22829_v14, %v7207_v55  ;;  %v7208_v27 = vadd.f32 %v7084_v22, %v20607_v62  ;;  %v7709_v22 = vld [vmem:[#allocation3 + $0x110] sm:$0xff]  ;;  %v22833_v14 = vld [vmem:[#allocation31_spill] sm:$0xff] }
 0x93e   : > { %16782 = vmatmul.mubr.msk.bf16.gmra.mrb[184].mxu0 %vm542_vm1, %v7741_v60  ;;  %v21008_v10 = vadd.f32 %v22830_v5, %v7208_v27  ;;  %v7742_v60 = vpack.c.bf16 %v7709_v22, %v7708_v61  ;;  %v7711_v61 = vld [vmem:[#allocation3 + $0x120] sm:$0xff] }
 0x93f   : > { %v21010_v39 = vpop.f32.mrb[248].mxu1  ;;  %16785 = vmatprep.mubr.msk.bf16.mxu0 %vm18544_vm0, %v22651_v31 }
 0x940   : > { %22831 = vst [vmem:[#allocation28_spill] sm:$0xff] %v21010_v39  ;;  %v17115_v52 = vpop.f32.mrb[249].mxu1 }
 0x941   : > { %v7089_v15 = vpop.f32.mrb[80].mxu0  ;;  %v21014_v1 = vpop.f32.mrb[250].mxu1  ;;  %v22834_v52 = vld [vmem:[#allocation32_spill] sm:$0xff] }
 0x942   : > { %22832 = vst [vmem:[#allocation29_spill] sm:$0xff] %v21014_v1  ;;  %v16571_v56 = vpop.f32.mrb[81].mxu0  ;;  %v17116_v55 = vpop.f32.mrb[251].mxu1  ;;  %v7209_v46 = vadd.f32 %v7089_v15, %v20626_v2 }
 0x943   : > { %v7092_v62 = vpop.f32.mrb[82].mxu0 }
 0x944   : > { %v16572_v12 = vpop.f32.mrb[83].mxu0  ;;  %v21018_v27 = vadd.f32 %v22833_v14, %v7209_v46  ;;  %v7210_v5 = vadd.f32 %v7092_v62, %v20631_v4  ;;  %v7710_v62 = vld [vmem:[#allocation3 + $0x118] sm:$0xff]  ;;  %v22837_v14 = vld [vmem:[#allocation33_spill] sm:$0xff] }
 0x946   : > { %16786 = vmatmul.mubr.msk.bf16.gmra.mrb[188].mxu0 %vm542_vm1, %v7742_v60  ;;  %v21023_v39 = vadd.f32 %v22834_v52, %v7210_v5  ;;  %v7743_v60 = vpack.c.bf16 %v7711_v61, %v7710_v62  ;;  %v7712_v61 = vld [vmem:[#allocation3 + $0x128] sm:$0xff] }
 0x947   : > { %v21025_v1 = vpop.f32.mrb[252].mxu1  ;;  %16789 = vmatprep.mubr.msk.bf16.mxu0 %vm18544_vm0, %v22651_v31 }
 0x948   : > { %22835 = vst [vmem:[#allocation30_spill] sm:$0xff] %v21025_v1  ;;  %v17119_v2 = vpop.f32.mrb[253].mxu1 }
 0x949   : > { %v7097_v15 = vpop.f32.mrb[84].mxu0  ;;  %v21029_v56 = vpop.f32.mrb[254].mxu1  ;;  %v22838_v2 = vld [vmem:[#allocation34_spill] sm:$0xff] }
 0x94a   : > { %22836 = vst [vmem:[#allocation31_spill] sm:$0xff] %v21029_v56  ;;  %v16575_v55 = vpop.f32.mrb[85].mxu0  ;;  %v17120_v46 = vpop.f32.mrb[255].mxu1  ;;  %v7211_v22 = vadd.f32 %v7097_v15, %v20650_v43 }
 0x94b   : > { %v7100_v4 = vpop.f32.mrb[86].mxu0 }
 0x94c   : > { %v16576_v12 = vpop.f32.mrb[87].mxu0  ;;  %v21033_v5 = vadd.f32 %v22837_v14, %v7211_v22  ;;  %v7212_v52 = vadd.f32 %v7100_v4, %v20655_v17  ;;  %v7713_v4 = vld [vmem:[#allocation3 + $0x130] sm:$0xff]  ;;  %v22841_v14 = vld [vmem:[#allocation35_spill] sm:$0xff] }
 0x94e   : > { %16790 = vmatmul.mubr.msk.bf16.gmra.mrb[192].mxu0 %vm542_vm1, %v7743_v60  ;;  %v21038_v1 = vadd.f32 %v22838_v2, %v7212_v52  ;;  %v7744_v60 = vpack.c.bf16 %v7713_v4, %v7712_v61  ;;  %v7715_v61 = vld [vmem:[#allocation3 + $0x140] sm:$0xff] }
 0x94f   : > { %v21040_v56 = vpop.f32.mrb[0].mxu1  ;;  %16793 = vmatprep.mubr.msk.bf16.mxu0 %vm18544_vm0, %v22651_v31 }
 0x950   : > { %22839 = vst [vmem:[#allocation32_spill] sm:$0xff] %v21040_v56  ;;  %v17123_v43 = vpop.f32.mrb[1].mxu1 }
 0x951   : > { %v7105_v15 = vpop.f32.mrb[88].mxu0  ;;  %v21044_v55 = vpop.f32.mrb[2].mxu1  ;;  %v22842_v43 = vld [vmem:[#allocation36_spill] sm:$0xff] }
 0x952   : > { %22840 = vst [vmem:[#allocation33_spill] sm:$0xff] %v21044_v55  ;;  %v16579_v46 = vpop.f32.mrb[89].mxu0  ;;  %v17124_v22 = vpop.f32.mrb[3].mxu1  ;;  %v7213_v62 = vadd.f32 %v7105_v15, %v20670_v40 }
 0x953   : > { %v7108_v17 = vpop.f32.mrb[90].mxu0 }
 0x954   : > { %v16580_v12 = vpop.f32.mrb[91].mxu0  ;;  %v21048_v52 = vadd.f32 %v22841_v14, %v7213_v62  ;;  %v7214_v2 = vadd.f32 %v7108_v17, %v20673_v50  ;;  %v7714_v17 = vld [vmem:[#allocation3 + $0x138] sm:$0xff]  ;;  %v22845_v14 = vld [vmem:[#allocation37_spill] sm:$0xff] }
 0x956   : > { %16794 = vmatmul.mubr.msk.bf16.gmra.mrb[196].mxu0 %vm542_vm1, %v7744_v60  ;;  %v21053_v56 = vadd.f32 %v22842_v43, %v7214_v2  ;;  %v7745_v60 = vpack.c.bf16 %v7715_v61, %v7714_v17  ;;  %v7716_v61 = vld [vmem:[#allocation3 + $0x148] sm:$0xff] }
 0x957   : > { %v21055_v55 = vpop.f32.mrb[4].mxu1  ;;  %16797 = vmatprep.mubr.msk.bf16.mxu0 %vm18544_vm0, %v22651_v31 }
 0x958   : > { %22843 = vst [vmem:[#allocation34_spill] sm:$0xff] %v21055_v55  ;;  %v17127_v40 = vpop.f32.mrb[5].mxu1 }
 0x959   : > { %v7113_v15 = vpop.f32.mrb[92].mxu0  ;;  %v21059_v46 = vpop.f32.mrb[6].mxu1  ;;  %v22846_v40 = vld [vmem:[#allocation38_spill] sm:$0xff] }
 0x95a   : > { %22844 = vst [vmem:[#allocation35_spill] sm:$0xff] %v21059_v46  ;;  %v16583_v22 = vpop.f32.mrb[93].mxu0  ;;  %v17128_v62 = vpop.f32.mrb[7].mxu1  ;;  %v7215_v4 = vadd.f32 %v7113_v15, %v20688_v42 }
 0x95b   : > { %v7116_v50 = vpop.f32.mrb[94].mxu0 }
 0x95c   : > { %v16584_v12 = vpop.f32.mrb[95].mxu0  ;;  %v21063_v2 = vadd.f32 %v22845_v14, %v7215_v4  ;;  %v7216_v43 = vadd.f32 %v7116_v50, %v20691_v45  ;;  %v7717_v50 = vld [vmem:[#allocation3 + $0x150] sm:$0xff]  ;;  %v22849_v14 = vld [vmem:[#allocation39_spill] sm:$0xff] }
 0x95e   : > { %16798 = vmatmul.mubr.msk.bf16.gmra.mrb[200].mxu0 %vm542_vm1, %v7745_v60  ;;  %v21068_v55 = vadd.f32 %v22846_v40, %v7216_v43  ;;  %v7746_v60 = vpack.c.bf16 %v7717_v50, %v7716_v61 }
 0x95f   : > { %v21070_v46 = vpop.f32.mrb[8].mxu1  ;;  %16801 = vmatprep.mubr.msk.bf16.mxu0 %vm18544_vm0, %v22651_v31 }
 0x960   : > { %22847 = vst [vmem:[#allocation36_spill] sm:$0xff] %v21070_v46  ;;  %v17131_v42 = vpop.f32.mrb[9].mxu1 }
 0x961   : > { %v7121_v15 = vpop.f32.mrb[96].mxu0  ;;  %v21074_v22 = vpop.f32.mrb[10].mxu1  ;;  %v22850_v42 = vld [vmem:[#allocation40_spill] sm:$0xff] }
 0x962   : > { %22848 = vst [vmem:[#allocation37_spill] sm:$0xff] %v21074_v22  ;;  %v16587_v62 = vpop.f32.mrb[97].mxu0  ;;  %v17132_v4 = vpop.f32.mrb[11].mxu1  ;;  %v7217_v17 = vadd.f32 %v7121_v15, %v20704_v54 }
 0x963   : > { %v7124_v45 = vpop.f32.mrb[98].mxu0  ;;  %v7719_v4 = vld [vmem:[#allocation3 + $0x160] sm:$0xff] }
 0x964   : > { %v16588_v12 = vpop.f32.mrb[99].mxu0  ;;  %v21078_v43 = vadd.f32 %v22849_v14, %v7217_v17  ;;  %v7218_v40 = vadd.f32 %v7124_v45, %v20707_v51  ;;  %v7718_v51 = vld [vmem:[#allocation3 + $0x158] sm:$0xff]  ;;  %v22852_v14 = vld [vmem:[#allocation41_spill] sm:$0xff] }
 0x966   : > { %16802 = vmatmul.mubr.msk.bf16.gmra.mrb[204].mxu0 %vm542_vm1, %v7746_v60  ;;  %v21083_v46 = vadd.f32 %v22850_v42, %v7218_v40  ;;  %v7747_v60 = vpack.c.bf16 %v7719_v4, %v7718_v51  ;;  %v7721_v4 = vld [vmem:[#allocation3 + $0x170] sm:$0xff] }
 0x967   : > { %v21085_v22 = vpop.f32.mrb[12].mxu1  ;;  %16805 = vmatprep.mubr.msk.bf16.mxu0 %vm18544_vm0, %v22651_v31 }
 0x968   : > { %22851 = vst [vmem:[#allocation38_spill] sm:$0xff] %v21085_v22  ;;  %v17135_v54 = vpop.f32.mrb[13].mxu1  ;;  %v22853_v22 = vld [vmem:[#allocation42_spill] sm:$0xff] }
 0x969   : > { %v7129_v15 = vpop.f32.mrb[100].mxu0  ;;  %v9410_v62 = vpop.f32.mrb[14].mxu1 }
 0x96a   : > { %v16591_v61 = vpop.f32.mrb[101].mxu0  ;;  %v17136_v50 = vpop.f32.mrb[15].mxu1  ;;  %v7219_v17 = vadd.f32 %v7129_v15, %v20717_v59 }
 0x96b   : > { %v7132_v12 = vpop.f32.mrb[102].mxu0  ;;  %v7720_v61 = vld [vmem:[#allocation3 + $0x168] sm:$0xff] }
 0x96c   : > { %v16592_v45 = vpop.f32.mrb[103].mxu0  ;;  %v21091_v40 = vadd.f32 %v22852_v14, %v7219_v17  ;;  %v7220_v42 = vadd.f32 %v7132_v12, %v20720_v36  ;;  %v7748_v17 = vpack.c.bf16 %v7721_v4, %v7720_v61  ;;  %v7722_v61 = vld [vmem:[#allocation3 + $0x178] sm:$0xff] }
 0x96d   : > { %v22854_v45 = vld [vmem:[#allocation43_spill] sm:$0xff] }
 0x96e   : > { %16806 = vmatmul.mubr.msk.bf16.gmra.mrb[208].mxu0 %vm542_vm1, %v7747_v60  ;;  %v21096_v54 = vadd.f32 %v22853_v22, %v7220_v42  ;;  %v22855_v22 = vld [vmem:[#allocation44_spill] sm:$0xff]  ;;  %v7723_v42 = vld [vmem:[#allocation3 + $0x180] sm:$0xff] }
 0x96f   : > { %16809 = vmatprep.mubr.msk.bf16.mxu0 %vm18544_vm0, %v22651_v31 }
 0x971   : > { %v7137_v62 = vpop.f32.mrb[104].mxu0 }
 0x972   : > { %v16595_v59 = vpop.f32.mrb[105].mxu0  ;;  %v7221_v15 = vadd.f32 %v7137_v62, %v20732_v47 }
 0x973   : > { %v7140_v50 = vpop.f32.mrb[106].mxu0 }
 0x974   : > { %v16596_v51 = vpop.f32.mrb[107].mxu0  ;;  %v21102_v14 = vadd.f32 %v22854_v45, %v7221_v15  ;;  %v7222_v36 = vadd.f32 %v7140_v50, %v20735_v0  ;;  %v7749_v15 = vpack.c.bf16 %v7723_v42, %v7722_v61  ;;  %v22857_v50 = vld [vmem:[#allocation46_spill] sm:$0xff]  ;;  %v7725_v42 = vld [vmem:[#allocation3 + $0x190] sm:$0xff] }
 0x975   : > { %v22856_v51 = vld [vmem:[#allocation45_spill] sm:$0xff] }
 0x976   : > { %16810 = vmatmul.mubr.msk.bf16.gmra.mrb[212].mxu0 %vm542_vm1, %v7748_v17  ;;  %v21107_v12 = vadd.f32 %v22855_v22, %v7222_v36  ;;  %v7724_v22 = vld [vmem:[#allocation3 + $0x188] sm:$0xff] }
 0x977   : > { %16813 = vmatprep.mubr.msk.bf16.mxu0 %vm18544_vm0, %v22651_v31 }
 0x979   : > { %v7145_v60 = vpop.f32.mrb[108].mxu0 }
 0x97a   : > { %v16599_v47 = vpop.f32.mrb[109].mxu0  ;;  %v7223_v62 = vadd.f32 %v7145_v60, %v20747_v16 }
 0x97b   : > { %v7148_v59 = vpop.f32.mrb[110].mxu0 }
 0x97c   : > { %v16600_v4 = vpop.f32.mrb[111].mxu0  ;;  %v21113_v45 = vadd.f32 %v22856_v51, %v7223_v62  ;;  %v7224_v0 = vadd.f32 %v7148_v59, %v20750_v18  ;;  %v7750_v62 = vpack.c.bf16 %v7725_v42, %v7724_v22  ;;  %v22859_v59 = vld [vmem:[#allocation48_spill] sm:$0xff] }
 0x97d   : > { %v22858_v4 = vld [vmem:[#allocation47_spill] sm:$0xff] }
 0x97e   : > { %16814 = vmatmul.mubr.msk.bf16.gmra.mrb[216].mxu0 %vm542_vm1, %v7749_v15  ;;  %v21118_v17 = vadd.f32 %v22857_v50, %v7224_v0  ;;  %v7726_v50 = vld [vmem:[#allocation3 + $0x198] sm:$0xff] }
 0x97f   : > { %16817 = vmatprep.mubr.msk.bf16.mxu0 %vm18544_vm0, %v22651_v31  ;;  %v7751_v42 = vpack.c.bf16 %v7726_v50, %v7726_v50 }
 0x981   : > { %v7153_v36 = vpop.f32.mrb[112].mxu0 }
 0x982   : > { %v16603_v16 = vpop.f32.mrb[113].mxu0  ;;  %v7225_v60 = vadd.f32 %v7153_v36, %v20762_v58 }
 0x983   : > { %v7156_v47 = vpop.f32.mrb[114].mxu0 }
 0x984   : > { %v16604_v61 = vpop.f32.mrb[115].mxu0  ;;  %v21124_v51 = vadd.f32 %v22858_v4, %v7225_v60  ;;  %v7226_v18 = vadd.f32 %v7156_v47, %v20765_v21  ;;  %v22861_v47 = vld [vmem:[#allocation50_spill] sm:$0xff] }
 0x985   : > { %v22860_v61 = vld [vmem:[#allocation49_spill] sm:$0xff] }
 0x986   : > { %16818 = vmatmul.mubr.msk.bf16.gmra.mrb[220].mxu0 %vm542_vm1, %v7750_v62  ;;  %v21129_v15 = vadd.f32 %v22859_v59, %v7226_v18  ;;  %v8571_v4 = vld [vmem:[#allocation3 + $0x35] sm:$0xff]  ;;  %v8570_v18 = vld [vmem:[#allocation3 + $0x2d] sm:$0xff] }
 0x987   : > { %16821 = vmatprep.mubr.msk.bf16.mxu0 %vm18544_vm0, %v22651_v31 }
 0x989   : > { %v7161_v0 = vpop.f32.mrb[116].mxu0 }
 0x98a   : > { %v7227_v58 = vadd.f32 %v7161_v0, %v20777_v7  ;;  %v16607_v36 = vpop.f32.mrb[117].mxu0 }
 0x98b   : > { %v7164_v16 = vpop.f32.mrb[118].mxu0  ;;  %v8619_v36 = vpack.c.bf16 %v8571_v4, %v8570_v18  ;;  %v8572_v18 = vld [vmem:[#allocation3 + $0x3d] sm:$0xff] }
 0x98c   : > { %v7228_v22 = vadd.f32 %v7164_v16, %v20782_v11  ;;  %v16608_v60 = vpop.f32.mrb[119].mxu0  ;;  %v21136_v21 = vadd.f32 %v22860_v61, %v7227_v58  ;;  %v22862_v16 = vld [vmem:[#allocation51_spill] sm:$0xff] }
 0x98e   : > { %16822 = vmatmul.mubr.msk.bf16.gmra.mrb[224].mxu0 %vm542_vm1, %v7751_v42  ;;  %v21140_v62 = vadd.f32 %v22861_v47, %v7228_v22  ;;  %v22863_v22 = vld [vmem:[#allocation52_spill] sm:$0xff] }
 0x98f   : > { %16933 = vmatprep.mubr.msk.bf16.mxu0 %vm18544_vm0, %v22651_v31  ;;  %v8573_v47 = vld [vmem:[#allocation3 + $0x45] sm:$0xff] }
 0x991   : > { %v7169_v7 = vpop.f32.mrb[120].mxu0 }
 0x992   : > { %v7229_v59 = vadd.f32 %v7169_v7, %v20792_v35  ;;  %v16611_v0 = vpop.f32.mrb[121].mxu0 }
 0x993   : > { %v7172_v11 = vpop.f32.mrb[122].mxu0  ;;  %v8620_v0 = vpack.c.bf16 %v8573_v47, %v8572_v18  ;;  %v22865_v47 = vld [vmem:[#allocation56_spill] sm:$0xff] }
 0x994   : > { %v7230_v50 = vadd.f32 %v7172_v11, %v20795_v48  ;;  %v16612_v58 = vpop.f32.mrb[123].mxu0  ;;  %v21147_v60 = vadd.f32 %v22862_v16, %v7229_v59  ;;  %v22864_v11 = vld [vmem:[#allocation53_spill] sm:$0xff] }
 0x995   : > { %v8575_v58 = vld [vmem:[#allocation3 + $0x55] sm:$0xff] }
 0x996   : > { %16934 = vmatmul.mubr.msk.bf16.vlgmr.msra.gmra.mrb[228].mxu0 %vm542_vm1, %v8619_v36  ;;  %v21151_v42 = vadd.f32 %v22863_v22, %v7230_v50  ;;  %v8574_v50 = vld [vmem:[#allocation3 + $0x4d] sm:$0xff] }
 0x997   : > { %16937 = vmatprep.mubr.msk.bf16.mxu0 %vm18544_vm0, %v22651_v31 }
 0x999   : > { %v7177_v61 = vpop.f32.mrb[124].mxu0 }
 0x99a   : > { %v7231_v35 = vadd.f32 %v7177_v61, %v20805_v44  ;;  %v16615_v7 = vpop.f32.mrb[125].mxu0 }
 0x99b   : > { %v7180_v4 = vpop.f32.mrb[126].mxu0 }
 0x99c   : > { %v16616_v48 = vpop.f32.mrb[127].mxu0  ;;  %v21157_v59 = vadd.f32 %v22864_v11, %v7231_v35  ;;  %v8621_v4 = vpack.c.bf16 %v8575_v58, %v8574_v50  ;;  %v22866_v35 = vld [vmem:[#allocation57_spill] sm:$0xff]  ;;  %v8577_v11 = vld [vmem:[#allocation3 + $0x65] sm:$0xff] }
 0x99e   : > { %16938 = vmatmul.mubr.msk.bf16.gmra.mrb[232].mxu0 %vm542_vm1, %v8620_v0 }
 0x99f   : > { %16941 = vmatprep.mubr.msk.bf16.mxu0 %vm18544_vm0, %v22651_v31 }
 0x9a1   : > { %v7877_v36 = vpop.f32.mrb[128].mxu0 }
 0x9a2   : > { %v8075_v16 = vadd.f32 %v7877_v36, %v20817_v23  ;;  %v16727_v22 = vpop.f32.mrb[129].mxu0 }
 0x9a3   : > { %v7880_v44 = vpop.f32.mrb[130].mxu0 }
 0x9a4   : > { %v8076_v61 = vadd.f32 %v7880_v44, %v20821_v9  ;;  %v16728_v7 = vpop.f32.mrb[131].mxu0  ;;  %v21165_v18 = vadd.f32 %v22865_v47, %v8075_v16  ;;  %v8576_v9 = vld [vmem:[#allocation3 + $0x5d] sm:$0xff]  ;;  %v22867_v44 = vld [vmem:[#allocation60_spill] sm:$0xff] }
 0x9a5   : > { %v8622_v16 = vpack.c.bf16 %v8577_v11, %v8576_v9 }
 0x9a6   : > { %16942 = vmatmul.mubr.msk.bf16.gmra.mrb[236].mxu0 %vm542_vm1, %v8621_v4  ;;  %v21169_v48 = vadd.f32 %v22866_v35, %v8076_v61  ;;  %v22868_v61 = vld [vmem:[#allocation61_spill] sm:$0xff] }
 0x9a7   : > { %16945 = vmatprep.mubr.msk.bf16.mxu0 %vm18544_vm0, %v22651_v31  ;;  %v8579_v35 = vld [vmem:[#allocation3 + $0x75] sm:$0xff] }
 0x9a9   : > { %v7885_v0 = vpop.f32.mrb[132].mxu0 }
 0x9aa   : > { %v8077_v23 = vadd.f32 %v7885_v0, %v20832_v63  ;;  %v16731_v36 = vpop.f32.mrb[133].mxu0  ;;  %v8578_v63 = vld [vmem:[#allocation3 + $0x6d] sm:$0xff] }
 0x9ab   : > { %v7888_v22 = vpop.f32.mrb[134].mxu0 }
 0x9ac   : > { %v8078_v50 = vadd.f32 %v7888_v22, %v20836_v38  ;;  %v16732_v58 = vpop.f32.mrb[135].mxu0  ;;  %v21176_v7 = vadd.f32 %v22867_v44, %v8077_v23  ;;  %v22870_v22 = vld [vmem:[#allocation7_spill] sm:$0xff]  ;;  %v8623_v23 = vpack.c.bf16 %v8579_v35, %v8578_v63 }
 0x9ad   : > { %v22871_v58 = vld [vmem:[#allocation64_spill] sm:$0xff] }
 0x9ae   : > { %16946 = vmatmul.mubr.msk.bf16.gmra.mrb[240].mxu0 %vm542_vm1, %v8622_v16  ;;  %v21180_v4 = vadd.f32 %v22868_v61, %v8078_v50  ;;  %v22872_v50 = vld [vmem:[#allocation65_spill] sm:$0xff] }
 0x9af   : > { %16949 = vmatprep.mubr.msk.bf16.mxu0 %vm18544_vm0, %v22651_v31 }
 0x9b0   : > { %22869 = vst [vmem:[#allocation39_spill] sm:$0xff] %v21180_v4  ;;  %v8581_v4 = vld [vmem:[#allocation3 + $0x85] sm:$0xff] }
 0x9b1   : > { %v7893_v47 = vpop.f32.mrb[136].mxu0 }
 0x9b2   : > { %v8079_v0 = vadd.f32 %v7893_v47, %v20847_v41  ;;  %v16735_v36 = vpop.f32.mrb[137].mxu0 }
 0x9b3   : > { %v7896_v38 = vpop.f32.mrb[138].mxu0 }
 0x9b4   : > { %v8080_v11 = vadd.f32 %v7896_v38, %v22870_v22  ;;  %v16736_v9 = vpop.f32.mrb[139].mxu0  ;;  %v21187_v44 = vadd.f32 %v22871_v58, %v8079_v0  ;;  %v8580_v38 = vld [vmem:[#allocation3 + $0x7d] sm:$0xff]  ;;  %v22873_v22 = vld [vmem:[#allocation68_spill] sm:$0xff] }
 0x9b5   : > { %v8624_v0 = vpack.c.bf16 %v8581_v4, %v8580_v38  ;;  %v22875_v38 = vld [vmem:[#allocation72_spill] sm:$0xff] }
 0x9b6   : > { %16950 = vmatmul.mubr.msk.bf16.gmra.mrb[244].mxu0 %vm542_vm1, %v8623_v23  ;;  %v21191_v16 = vadd.f32 %v22872_v50, %v8080_v11  ;;  %v22874_v11 = vld [vmem:[#allocation69_spill] sm:$0xff] }
 0x9b7   : > { %16953 = vmatprep.mubr.msk.bf16.mxu0 %vm18544_vm0, %v22651_v31  ;;  %v8583_v50 = vld [vmem:[#allocation3 + $0x95] sm:$0xff] }
 0x9b9   : > { %v7901_v61 = vpop.f32.mrb[140].mxu0 }
 0x9ba   : > { %v8081_v41 = vadd.f32 %v7901_v61, %v20862_v29  ;;  %v16739_v47 = vpop.f32.mrb[141].mxu0  ;;  %v8582_v29 = vld [vmem:[#allocation3 + $0x8d] sm:$0xff] }
 0x9bb   : > { %v7904_v36 = vpop.f32.mrb[142].mxu0 }
 0x9bc   : > { %v8082_v63 = vadd.f32 %v7904_v36, %v20869_v24  ;;  %v16740_v35 = vpop.f32.mrb[143].mxu0  ;;  %v21198_v9 = vadd.f32 %v22873_v22, %v8081_v41  ;;  %v8625_v41 = vpack.c.bf16 %v8583_v50, %v8582_v29 }
 0x9be   : > { %16954 = vmatmul.mubr.msk.bf16.gmra.mrb[248].mxu0 %vm542_vm1, %v8624_v0  ;;  %v21202_v23 = vadd.f32 %v22874_v11, %v8082_v63  ;;  %v22876_v63 = vld [vmem:[#allocation73_spill] sm:$0xff]  ;;  %v8585_v11 = vld [vmem:[#allocation3 + $0xa5] sm:$0xff] }
 0x9bf   : > { %16957 = vmatprep.mubr.msk.bf16.mxu0 %vm18544_vm0, %v22651_v31 }
 0x9c1   : > { %v7909_v58 = vpop.f32.mrb[144].mxu0 }
 0x9c2   : > { %v8083_v61 = vadd.f32 %v7909_v58, %v20881_v53  ;;  %v16743_v47 = vpop.f32.mrb[145].mxu0 }
 0x9c3   : > { %v7912_v24 = vpop.f32.mrb[146].mxu0 }
 0x9c4   : > { %v8084_v4 = vadd.f32 %v7912_v24, %v20885_v28  ;;  %v16744_v36 = vpop.f32.mrb[147].mxu0  ;;  %v21209_v35 = vadd.f32 %v22875_v38, %v8083_v61  ;;  %v8584_v28 = vld [vmem:[#allocation3 + $0x9d] sm:$0xff] }
 0x9c5   : > { %v8626_v61 = vpack.c.bf16 %v8585_v11, %v8584_v28  ;;  %v22877_v24 = vld [vmem:[#allocation75_spill] sm:$0xff]  ;;  %v22879_v28 = vld [vmem:[#allocation78_spill] sm:$0xff] }
 0x9c6   : > { %16958 = vmatmul.mubr.msk.bf16.gmra.mrb[252].mxu0 %vm542_vm1, %v8625_v41  ;;  %v21213_v0 = vadd.f32 %v22876_v63, %v8084_v4  ;;  %v22878_v4 = vld [vmem:[#allocation76_spill] sm:$0xff]  ;;  %v8587_v63 = vld [vmem:[#allocation3 + $0xb5] sm:$0xff] }
 0x9c7   : > { %16961 = vmatprep.mubr.msk.bf16.mxu0 %vm18544_vm0, %v22651_v31 }
 0x9c9   : > { %v7917_v22 = vpop.f32.mrb[148].mxu0 }
 0x9ca   : > { %v8085_v53 = vadd.f32 %v7917_v22, %v20896_v30  ;;  %v16747_v58 = vpop.f32.mrb[149].mxu0  ;;  %v8586_v30 = vld [vmem:[#allocation3 + $0xad] sm:$0xff] }
 0x9cb   : > { %v7920_v47 = vpop.f32.mrb[150].mxu0 }
 0x9cc   : > { %v8086_v29 = vadd.f32 %v7920_v47, %v20900_v32  ;;  %v16748_v50 = vpop.f32.mrb[151].mxu0  ;;  %v21220_v36 = vadd.f32 %v22877_v24, %v8085_v53  ;;  %v8627_v53 = vpack.c.bf16 %v8587_v63, %v8586_v30 }
 0x9ce   : > { %16962 = vmatmul.mubr.msk.bf16.gmra.mrb[0].mxu0 %vm542_vm1, %v8626_v61  ;;  %v21224_v41 = vadd.f32 %v22878_v4, %v8086_v29  ;;  %v22880_v29 = vld [vmem:[#allocation79_spill] sm:$0xff] }
 0x9cf   : > { %16965 = vmatprep.mubr.msk.bf16.mxu0 %vm18544_vm0, %v22651_v31  ;;  %v8589_v4 = vld [vmem:[#allocation3 + $0xc5] sm:$0xff] }
 0x9d1   : > { %v7925_v38 = vpop.f32.mrb[152].mxu0 }
 0x9d2   : > { %v8087_v22 = vadd.f32 %v7925_v38, %v20911_v34  ;;  %v16751_v58 = vpop.f32.mrb[153].mxu0 }
 0x9d3   : > { %v7928_v32 = vpop.f32.mrb[154].mxu0 }
 0x9d4   : > { %v8088_v11 = vadd.f32 %v7928_v32, %v20915_v33  ;;  %v16752_v47 = vpop.f32.mrb[155].mxu0  ;;  %v21231_v50 = vadd.f32 %v22879_v28, %v8087_v22  ;;  %v8588_v33 = vld [vmem:[#allocation3 + $0xbd] sm:$0xff]  ;;  %v22881_v32 = vld [vmem:[#allocation81_spill] sm:$0xff] }
 0x9d5   : > { %v8628_v22 = vpack.c.bf16 %v8589_v4, %v8588_v33  ;;  %v22883_v33 = vld [vmem:[#allocation20_spill] sm:$0xff] }
 0x9d6   : > { %16966 = vmatmul.mubr.msk.bf16.gmra.mrb[4].mxu0 %vm542_vm1, %v8627_v53  ;;  %v21235_v61 = vadd.f32 %v22880_v29, %v8088_v11  ;;  %v22882_v11 = vld [vmem:[#allocation82_spill] sm:$0xff] }
 0x9d7   : > { %16969 = vmatprep.mubr.msk.bf16.mxu0 %vm18544_vm0, %v22651_v31  ;;  %v8591_v29 = vld [vmem:[#allocation3 + $0xd5] sm:$0xff] }
 0x9d9   : > { %v7933_v24 = vpop.f32.mrb[156].mxu0 }
 0x9da   : > { %v8089_v34 = vadd.f32 %v7933_v24, %v20929_v26  ;;  %v16755_v38 = vpop.f32.mrb[157].mxu0  ;;  %v8590_v26 = vld [vmem:[#allocation3 + $0xcd] sm:$0xff] }
 0x9db   : > { %v7936_v58 = vpop.f32.mrb[158].mxu0 }
 0x9dc   : > { %v8090_v30 = vadd.f32 %v7936_v58, %v20933_v19  ;;  %v16756_v63 = vpop.f32.mrb[159].mxu0  ;;  %v21242_v47 = vadd.f32 %v22881_v32, %v8089_v34  ;;  %v8629_v34 = vpack.c.bf16 %v8591_v29, %v8590_v26 }
 0x9de   : > { %16970 = vmatmul.mubr.msk.bf16.gmra.mrb[8].mxu0 %vm542_vm1, %v8628_v22  ;;  %v21246_v53 = vadd.f32 %v22882_v11, %v8090_v30  ;;  %v22884_v30 = vld [vmem:[#allocation83_spill] sm:$0xff] }
 0x9df   : > { %16973 = vmatprep.mubr.msk.bf16.mxu0 %vm18544_vm0, %v22651_v31  ;;  %v8593_v11 = vld [vmem:[#allocation3 + $0xe5] sm:$0xff] }
 0x9e1   : > { %v7941_v28 = vpop.f32.mrb[160].mxu0 }
 0x9e2   : > { %v8091_v24 = vadd.f32 %v7941_v28, %v20944_v13  ;;  %v16759_v38 = vpop.f32.mrb[161].mxu0 }
 0x9e3   : > { %v7944_v19 = vpop.f32.mrb[162].mxu0 }
 0x9e4   : > { %v8092_v4 = vadd.f32 %v7944_v19, %v20948_v37  ;;  %v16760_v58 = vpop.f32.mrb[163].mxu0  ;;  %v21253_v63 = vadd.f32 %v22883_v33, %v8091_v24  ;;  %v8592_v37 = vld [vmem:[#allocation3 + $0xdd] sm:$0xff]  ;;  %v22885_v19 = vld [vmem:[#allocation84_spill] sm:$0xff] }
 0x9e5   : > { %v8630_v24 = vpack.c.bf16 %v8593_v11, %v8592_v37  ;;  %v22887_v37 = vld [vmem:[#allocation87_spill] sm:$0xff] }
 0x9e6   : > { %16974 = vmatmul.mubr.msk.bf16.gmra.mrb[12].mxu0 %vm542_vm1, %v8629_v34  ;;  %v21257_v22 = vadd.f32 %v22884_v30, %v8092_v4  ;;  %v22886_v4 = vld [vmem:[#allocation85_spill] sm:$0xff] }
 0x9e7   : > { %16977 = vmatprep.mubr.msk.bf16.mxu0 %vm18544_vm0, %v22651_v31  ;;  %v8595_v30 = vld [vmem:[#allocation3 + $0xf5] sm:$0xff] }
 0x9e9   : > { %v7949_v32 = vpop.f32.mrb[164].mxu0 }
 0x9ea   : > { %v8093_v13 = vadd.f32 %v7949_v32, %v20959_v57  ;;  %v16763_v28 = vpop.f32.mrb[165].mxu0  ;;  %v8594_v57 = vld [vmem:[#allocation3 + $0xed] sm:$0xff] }
 0x9eb   : > { %v7952_v38 = vpop.f32.mrb[166].mxu0 }
 0x9ec   : > { %v8094_v26 = vadd.f32 %v7952_v38, %v20963_v25  ;;  %v16764_v29 = vpop.f32.mrb[167].mxu0  ;;  %v21264_v58 = vadd.f32 %v22885_v19, %v8093_v13  ;;  %v8631_v13 = vpack.c.bf16 %v8595_v30, %v8594_v57 }
 0x9ee   : > { %16978 = vmatmul.mubr.msk.bf16.gmra.mrb[16].mxu0 %vm542_vm1, %v8630_v24  ;;  %v21268_v34 = vadd.f32 %v22886_v4, %v8094_v26  ;;  %v22888_v26 = vld [vmem:[#allocation88_spill] sm:$0xff] }
 0x9ef   : > { %16981 = vmatprep.mubr.msk.bf16.mxu0 %vm18544_vm0, %v22651_v31  ;;  %v8597_v4 = vld [vmem:[#allocation3 + $0x105] sm:$0xff] }
 0x9f1   : > { %v7957_v33 = vpop.f32.mrb[168].mxu0 }
 0x9f2   : > { %v8095_v32 = vadd.f32 %v7957_v33, %v20974_v49  ;;  %v16767_v28 = vpop.f32.mrb[169].mxu0 }
 0x9f3   : > { %v7960_v25 = vpop.f32.mrb[170].mxu0 }
 0x9f4   : > { %v8096_v11 = vadd.f32 %v7960_v25, %v20978_v8  ;;  %v16768_v38 = vpop.f32.mrb[171].mxu0  ;;  %v21275_v29 = vadd.f32 %v22887_v37, %v8095_v32  ;;  %v8596_v8 = vld [vmem:[#allocation3 + $0xfd] sm:$0xff]  ;;  %v22889_v25 = vld [vmem:[#allocation89_spill] sm:$0xff] }
 0x9f5   : > { %v8632_v32 = vpack.c.bf16 %v8597_v4, %v8596_v8  ;;  %v22891_v8 = vld [vmem:[#allocation91_spill] sm:$0xff] }
 0x9f6   : > { %16982 = vmatmul.mubr.msk.bf16.gmra.mrb[20].mxu0 %vm542_vm1, %v8631_v13  ;;  %v21279_v24 = vadd.f32 %v22888_v26, %v8096_v11  ;;  %v22890_v11 = vld [vmem:[#allocation90_spill] sm:$0xff] }
 0x9f7   : > { %16985 = vmatprep.mubr.msk.bf16.mxu0 %vm18544_vm0, %v22651_v31  ;;  %v8599_v26 = vld [vmem:[#allocation3 + $0x115] sm:$0xff] }
 0x9f9   : > { %v7965_v19 = vpop.f32.mrb[172].mxu0 }
 0x9fa   : > { %v8097_v49 = vadd.f32 %v7965_v19, %v20988_v3  ;;  %v16771_v33 = vpop.f32.mrb[173].mxu0  ;;  %v8598_v3 = vld [vmem:[#allocation3 + $0x10d] sm:$0xff] }
 0x9fb   : > { %v7968_v28 = vpop.f32.mrb[174].mxu0 }
 0x9fc   : > { %v8098_v57 = vadd.f32 %v7968_v28, %v20993_v6  ;;  %v16772_v30 = vpop.f32.mrb[175].mxu0  ;;  %v21286_v38 = vadd.f32 %v22889_v25, %v8097_v49  ;;  %v8633_v49 = vpack.c.bf16 %v8599_v26, %v8598_v3 }
 0x9fe   : > { %16986 = vmatmul.mubr.msk.bf16.gmra.mrb[24].mxu0 %vm542_vm1, %v8632_v32  ;;  %v21290_v13 = vadd.f32 %v22890_v11, %v8098_v57  ;;  %v22892_v57 = vld [vmem:[#allocation92_spill] sm:$0xff] }
 0x9ff   : > { %16989 = vmatprep.mubr.msk.bf16.mxu0 %vm18544_vm0, %v22651_v31  ;;  %v8601_v11 = vld [vmem:[#allocation3 + $0x125] sm:$0xff] }
 0xa01   : > { %v7973_v37 = vpop.f32.mrb[176].mxu0 }
 0xa02   : > { %v8099_v19 = vadd.f32 %v7973_v37, %v21003_v20  ;;  %v16775_v33 = vpop.f32.mrb[177].mxu0 }
 0xa03   : > { %v7976_v6 = vpop.f32.mrb[178].mxu0 }
 0xa04   : > { %v8100_v4 = vadd.f32 %v7976_v6, %v21008_v10  ;;  %v16776_v28 = vpop.f32.mrb[179].mxu0  ;;  %v21297_v30 = vadd.f32 %v22891_v8, %v8099_v19  ;;  %v8600_v10 = vld [vmem:[#allocation3 + $0x11d] sm:$0xff]  ;;  %v18454_v6 = vld [vmem:[%s22564_s2 + $0x130] sm:$0xff]  }
 0xa05   : > { %v8634_v19 = vpack.c.bf16 %v8601_v11, %v8600_v10  ;;  %v22893_v28 = vld [vmem:[#allocation93_spill] sm:$0xff]  ;;  %17137 = vmatprep.subr.bf16.mxu0 %v18454_v6 }
 0xa06   : > { %16990 = vmatmul.mubr.msk.bf16.gmra.mrb[28].mxu0 %vm542_vm1, %v8633_v49  ;;  %v21301_v32 = vadd.f32 %v22892_v57, %v8100_v4  ;;  %v18455_v4 = vld [vmem:[%s22564_s2 + $0x138] sm:$0xff]  }
 0xa07   : > { %16993 = vmatprep.mubr.msk.bf16.mxu0 %vm18544_vm0, %v22651_v31  ;;  %17138 = vmatpush3.bf16.msra.mxu0 %v18454_v6  ;;  %v8602_v57 = vld [vmem:[#allocation3 + $0x12d] sm:$0xff] }
 0xa08   : > { %17139 = vmatprep.subr.bf16.mxu0 %v18455_v4 }
 0xa09   : > { %v7981_v25 = vpop.f32.mrb[180].mxu0 }
 0xa0a   : > { %v8101_v20 = vadd.f32 %v7981_v25, %v21018_v27  ;;  %v16779_v37 = vpop.f32.mrb[181].mxu0  ;;  %v22894_v27 = vld [vmem:[#allocation94_spill] sm:$0xff] }
 0xa0b   : > { %v7984_v33 = vpop.f32.mrb[182].mxu0  ;;  %v8603_v25 = vld [vmem:[#allocation3 + $0x135] sm:$0xff]  ;;  %17140 = vmatpush3.bf16.msra.mxu0 %v18455_v4 }
 0xa0c   : > { %v8102_v3 = vadd.f32 %v7984_v33, %v21023_v39  ;;  %v16780_v26 = vpop.f32.mrb[183].mxu0  ;;  %v21314_v49 = vadd.f32 %v22893_v28, %v8101_v20  ;;  %v22896_v28 = vld [vmem:[#allocation96_spill] sm:$0xff] }
 0xa0d   : > { %v8635_v26 = vpack.c.bf16 %v8603_v25, %v8602_v57 }
 0xa0e   : > { %16994 = vmatmul.mubr.msk.bf16.gmra.mrb[32].mxu0 %vm542_vm1, %v8634_v19  ;;  %v21318_v8 = vadd.f32 %v22894_v27, %v8102_v3  ;;  %v22895_v19 = vld [vmem:[#allocation95_spill] sm:$0xff] }
 0xa0f   : > { %16997 = vmatprep.mubr.msk.bf16.mxu0 %vm18544_vm0, %v22651_v31 }
 0xa11   : > { %v7989_v39 = vpop.f32.mrb[184].mxu0 }
 0xa12   : > { %v8103_v11 = vadd.f32 %v7989_v39, %v21033_v5  ;;  %v16783_v37 = vpop.f32.mrb[185].mxu0  ;;  %v8605_v5 = vld [vmem:[#allocation3 + $0x145] sm:$0xff] }
 0xa13   : > { %v7992_v33 = vpop.f32.mrb[186].mxu0 }
 0xa14   : > { %v8104_v20 = vadd.f32 %v7992_v33, %v21038_v1  ;;  %v16784_v10 = vpop.f32.mrb[187].mxu0  ;;  %v21325_v3 = vadd.f32 %v22895_v19, %v8103_v11  ;;  %v8604_v1 = vld [vmem:[#allocation3 + $0x13d] sm:$0xff]  ;;  %v22897_v33 = vld [vmem:[#allocation97_spill] sm:$0xff] }
 0xa15   : > { %v8636_v11 = vpack.c.bf16 %v8605_v5, %v8604_v1  ;;  %v22899_v1 = vld [vmem:[#allocation99_spill] sm:$0xff] }
 0xa16   : > { %16998 = vmatmul.mubr.msk.bf16.gmra.mrb[36].mxu0 %vm542_vm1, %v8635_v26  ;;  %v21329_v6 = vadd.f32 %v22896_v28, %v8104_v20  ;;  %v22898_v20 = vld [vmem:[#allocation98_spill] sm:$0xff] }
 0xa17   : > { %17001 = vmatprep.mubr.msk.bf16.mxu0 %vm18544_vm0, %v22651_v31  ;;  %v8607_v28 = vld [vmem:[#allocation3 + $0x155] sm:$0xff] }
 0xa19   : > { %v7997_v27 = vpop.f32.mrb[188].mxu0 }
 0xa1a   : > { %v8105_v39 = vadd.f32 %v7997_v27, %v21048_v52  ;;  %v16787_v4 = vpop.f32.mrb[189].mxu0  ;;  %v8606_v52 = vld [vmem:[#allocation3 + $0x14d] sm:$0xff] }
 0xa1b   : > { %v8000_v37 = vpop.f32.mrb[190].mxu0 }
 0xa1c   : > { %v8106_v57 = vadd.f32 %v8000_v37, %v21053_v56  ;;  %v16788_v25 = vpop.f32.mrb[191].mxu0  ;;  %v21336_v10 = vadd.f32 %v22897_v33, %v8105_v39  ;;  %v8637_v39 = vpack.c.bf16 %v8607_v28, %v8606_v52 }
 0xa1e   : > { %17002 = vmatmul.mubr.msk.bf16.gmra.mrb[40].mxu0 %vm542_vm1, %v8636_v11  ;;  %v21340_v26 = vadd.f32 %v22898_v20, %v8106_v57  ;;  %v22900_v57 = vld [vmem:[#allocation100_spill] sm:$0xff] }
 0xa1f   : > { %17005 = vmatprep.mubr.msk.bf16.mxu0 %vm18544_vm0, %v22651_v31  ;;  %v8609_v20 = vld [vmem:[#allocation3 + $0x165] sm:$0xff] }
 0xa21   : > { %v8005_v19 = vpop.f32.mrb[192].mxu0 }
 0xa22   : > { %v8107_v27 = vadd.f32 %v8005_v19, %v21063_v2  ;;  %v16791_v4 = vpop.f32.mrb[193].mxu0 }
 0xa23   : > { %v8008_v56 = vpop.f32.mrb[194].mxu0 }
 0xa24   : > { %v8108_v5 = vadd.f32 %v8008_v56, %v21068_v55  ;;  %v16792_v37 = vpop.f32.mrb[195].mxu0  ;;  %v21347_v25 = vadd.f32 %v22899_v1, %v8107_v27  ;;  %v8608_v55 = vld [vmem:[#allocation3 + $0x15d] sm:$0xff]  ;;  %v22901_v56 = vld [vmem:[#allocation101_spill] sm:$0xff] }
 0xa25   : > { %v8638_v27 = vpack.c.bf16 %v8609_v20, %v8608_v55  ;;  %v22903_v55 = vld [vmem:[#allocation103_spill] sm:$0xff] }
 0xa26   : > { %17006 = vmatmul.mubr.msk.bf16.gmra.mrb[44].mxu0 %vm542_vm1, %v8637_v39  ;;  %v21351_v11 = vadd.f32 %v22900_v57, %v8108_v5  ;;  %v22902_v5 = vld [vmem:[#allocation102_spill] sm:$0xff] }
 0xa27   : > { %17009 = vmatprep.mubr.msk.bf16.mxu0 %vm18544_vm0, %v22651_v31  ;;  %v8611_v57 = vld [vmem:[#allocation3 + $0x175] sm:$0xff] }
 0xa29   : > { %v8013_v33 = vpop.f32.mrb[196].mxu0 }
 0xa2a   : > { %v8109_v2 = vadd.f32 %v8013_v33, %v21078_v43  ;;  %v16795_v19 = vpop.f32.mrb[197].mxu0  ;;  %v8610_v43 = vld [vmem:[#allocation3 + $0x16d] sm:$0xff] }
 0xa2b   : > { %v8016_v4 = vpop.f32.mrb[198].mxu0 }
 0xa2c   : > { %v8110_v52 = vadd.f32 %v8016_v4, %v21083_v46  ;;  %v16796_v28 = vpop.f32.mrb[199].mxu0  ;;  %v21358_v37 = vadd.f32 %v22901_v56, %v8109_v2  ;;  %v8639_v2 = vpack.c.bf16 %v8611_v57, %v8610_v43 }
 0xa2e   : > { %17010 = vmatmul.mubr.msk.bf16.gmra.mrb[48].mxu0 %vm542_vm1, %v8638_v27  ;;  %v21362_v39 = vadd.f32 %v22902_v5, %v8110_v52  ;;  %v22904_v52 = vld [vmem:[#allocation104_spill] sm:$0xff] }
 0xa2f   : > { %17013 = vmatprep.mubr.msk.bf16.mxu0 %vm18544_vm0, %v22651_v31  ;;  %v8613_v5 = vld [vmem:[#allocation3 + $0x185] sm:$0xff] }
 0xa31   : > { %v8021_v1 = vpop.f32.mrb[200].mxu0 }
 0xa32   : > { %v8111_v33 = vadd.f32 %v8021_v1, %v21091_v40  ;;  %v16799_v19 = vpop.f32.mrb[201].mxu0 }
 0xa33   : > { %v8024_v46 = vpop.f32.mrb[202].mxu0 }
 0xa34   : > { %v8112_v20 = vadd.f32 %v8024_v46, %v21096_v54  ;;  %v16800_v4 = vpop.f32.mrb[203].mxu0  ;;  %v21369_v28 = vadd.f32 %v22903_v55, %v8111_v33  ;;  %v8612_v54 = vld [vmem:[#allocation3 + $0x17d] sm:$0xff]  ;;  %v22905_v46 = vld [vmem:[#allocation105_spill] sm:$0xff] }
 0xa35   : > { %v8640_v33 = vpack.c.bf16 %v8613_v5, %v8612_v54  ;;  %v22907_v54 = vld [vmem:[#allocation107_spill] sm:$0xff] }
 0xa36   : > { %17014 = vmatmul.mubr.msk.bf16.gmra.mrb[52].mxu0 %vm542_vm1, %v8639_v2  ;;  %v21373_v27 = vadd.f32 %v22904_v52, %v8112_v20  ;;  %v22906_v20 = vld [vmem:[#allocation106_spill] sm:$0xff] }
 0xa37   : > { %17017 = vmatprep.mubr.msk.bf16.mxu0 %vm18544_vm0, %v22651_v31  ;;  %v8615_v52 = vld [vmem:[#allocation3 + $0x195] sm:$0xff] }
 0xa39   : > { %v8029_v56 = vpop.f32.mrb[204].mxu0 }
 0xa3a   : > { %v8113_v40 = vadd.f32 %v8029_v56, %v21102_v14  ;;  %v16803_v1 = vpop.f32.mrb[205].mxu0  ;;  %v8614_v14 = vld [vmem:[#allocation3 + $0x18d] sm:$0xff] }
 0xa3b   : > { %v8032_v19 = vpop.f32.mrb[206].mxu0 }
 0xa3c   : > { %v8114_v43 = vadd.f32 %v8032_v19, %v21107_v12  ;;  %v16804_v57 = vpop.f32.mrb[207].mxu0  ;;  %v21380_v4 = vadd.f32 %v22905_v46, %v8113_v40  ;;  %v8641_v40 = vpack.c.bf16 %v8615_v52, %v8614_v14 }
 0xa3e   : > { %17018 = vmatmul.mubr.msk.bf16.gmra.mrb[56].mxu0 %vm542_vm1, %v8640_v33  ;;  %v21384_v2 = vadd.f32 %v22906_v20, %v8114_v43  ;;  %v22908_v43 = vld [vmem:[#allocation108_spill] sm:$0xff] }
 0xa3f   : > { %17021 = vmatprep.mubr.msk.bf16.mxu0 %vm18544_vm0, %v22651_v31  ;;  %v8617_v20 = vld [vmem:[#allocation3 + $0x1a5] sm:$0xff] }
 0xa41   : > { %v8037_v55 = vpop.f32.mrb[208].mxu0 }
 0xa42   : > { %v8115_v56 = vadd.f32 %v8037_v55, %v21113_v45  ;;  %v16807_v1 = vpop.f32.mrb[209].mxu0 }
 0xa43   : > { %v8040_v12 = vpop.f32.mrb[210].mxu0 }
 0xa44   : > { %v8116_v5 = vadd.f32 %v8040_v12, %v21118_v17  ;;  %v16808_v19 = vpop.f32.mrb[211].mxu0  ;;  %v21391_v57 = vadd.f32 %v22907_v54, %v8115_v56  ;;  %v8616_v17 = vld [vmem:[#allocation3 + $0x19d] sm:$0xff]  ;;  %v22909_v12 = vld [vmem:[#allocation109_spill] sm:$0xff] }
 0xa45   : > { %v8642_v56 = vpack.c.bf16 %v8617_v20, %v8616_v17 }
 0xa46   : > { %17022 = vmatmul.mubr.msk.bf16.gmra.mrb[60].mxu0 %vm542_vm1, %v8641_v40  ;;  %v21395_v33 = vadd.f32 %v22908_v43, %v8116_v5  ;;  %v22910_v5 = vld [vmem:[#allocation110_spill] sm:$0xff] }
 0xa47   : > { %17025 = vmatprep.mubr.msk.bf16.mxu0 %vm18544_vm0, %v22651_v31 }
 0xa49   : > { %v8045_v46 = vpop.f32.mrb[212].mxu0 }
 0xa4a   : > { %v8117_v45 = vadd.f32 %v8045_v46, %v21124_v51  ;;  %v16811_v55 = vpop.f32.mrb[213].mxu0  ;;  %v8618_v51 = vld [vmem:[#allocation3 + $0x1ad] sm:$0xff] }
 0xa4b   : > { %v8048_v1 = vpop.f32.mrb[214].mxu0 }
 0xa4c   : > { %v8118_v14 = vadd.f32 %v8048_v1, %v21129_v15  ;;  %v16812_v52 = vpop.f32.mrb[215].mxu0  ;;  %v21402_v19 = vadd.f32 %v22909_v12, %v8117_v45  ;;  %v8643_v1 = vpack.c.bf16 %v8618_v51, %v8618_v51  ;;  %v22911_v45 = vld [vmem:[#allocation111_spill] sm:$0xff]  ;;  %v22915_v51 = vld [vmem:[#allocation114_spill] sm:$0xff] }
 0xa4e   : > { %17026 = vmatmul.mubr.msk.bf16.gmra.mrb[64].mxu0 %vm542_vm1, %v8642_v56  ;;  %v21406_v40 = vadd.f32 %v22910_v5, %v8118_v14  ;;  %v22912_v14 = vld [vmem:[#allocation112_spill] sm:$0xff] }
 0xa4f   : > { %17029 = vmatprep.mubr.msk.bf16.mxu0 %vm18544_vm0, %v22651_v31 }
 0xa51   : > { %v8053_v54 = vpop.f32.mrb[216].mxu0 }
 0xa52   : > { %v8119_v43 = vadd.f32 %v8053_v54, %v21136_v21  ;;  %v16815_v46 = vpop.f32.mrb[217].mxu0 }
 0xa53   : > { %v8056_v55 = vpop.f32.mrb[218].mxu0  ;;  %v22914_v46 = vld [vmem:[#allocation113_spill] sm:$0xff] }
 0xa54   : > { %v8120_v15 = vadd.f32 %v8056_v55, %v21140_v62  ;;  %v16816_v20 = vpop.f32.mrb[219].mxu0  ;;  %v21413_v17 = vadd.f32 %v22911_v45, %v8119_v43 }
 0xa56   : > { %17030 = vmatmul.mubr.msk.bf16.gmra.mrb[68].mxu0 %vm542_vm1, %v8643_v1  ;;  %v21417_v52 = vadd.f32 %v22912_v14, %v8120_v15  ;;  %v22916_v14 = vld [vmem:[#allocation115_spill] sm:$0xff] }
 0xa58   : > { %22913 = vst [vmem:[#allocation40_spill] sm:$0xff] %v21417_v52 }
 0xa59   : > { %v8061_v56 = vpop.f32.mrb[220].mxu0 }
 0xa5a   : > { %v8121_v31 = vadd.f32 %v8061_v56, %v21147_v60  ;;  %v16819_v12 = vpop.f32.mrb[221].mxu0 }
 0xa5b   : > { %v8064_v5 = vpop.f32.mrb[222].mxu0 }
 0xa5c   : > { %v8122_v21 = vadd.f32 %v8064_v5, %v21151_v42  ;;  %v16820_v54 = vpop.f32.mrb[223].mxu0  ;;  %v21422_v62 = vadd.f32 %v22914_v46, %v8121_v31  ;;  %v21435_v31 = vld [vmem:[%s22565_s3 + $0x2] ss:$0 sm:$0xff] }
 0xa5d   : > { %v22917_v5 = vld [vmem:[#allocation54_spill] sm:$0xff] }
 0xa5e   : > { %v21425_v55 = vadd.f32 %v22915_v51, %v8122_v21  ;;  %v22918_v51 = vld [vmem:[#allocation55_spill] sm:$0xff] }
 0xa61   : > { %v8069_v43 = vpop.f32.mrb[224].mxu0 }
 0xa62   : > { %v8123_v20 = vadd.f32 %v8069_v43, %v21157_v59  ;;  %v16823_v1 = vpop.f32.mrb[225].mxu0 }
 0xa63   : > { %v8072_v15 = vpop.f32.mrb[226].mxu0 }
 0xa64   : > { %v16824_v45 = vpop.f32.mrb[227].mxu0  ;;  %v21429_v52 = vadd.f32 %v22916_v14, %v8123_v20 }
 0xa69   : > { %v8769_v60 = vpop.f32.mrb[228].mxu0 }
 0xa6a   : > { %v8967_v56 = vadd.f32 %v8769_v60, %v21165_v18  ;;  %v16935_v42 = vpop.f32.mrb[229].mxu0 }
 0xa6b   : > { %v8772_v12 = vpop.f32.mrb[230].mxu0  ;;  %v22920_v42 = vld [vmem:[#allocation39_spill] sm:$0xff] }
 0xa6c   : > { %v9413_v21 = vadd.f32 %v22917_v5, %v8967_v56  ;;  %v8968_v59 = vadd.f32 %v8772_v12, %v21169_v48  ;;  %v16936_v54 = vpop.f32.mrb[231].mxu0  ;;  %v22919_v56 = vld [vmem:[#allocation58_spill] sm:$0xff] }
 0xa6e   : > { %v9467_v46 = vadd.f32 %v21435_v31, %v9413_v21  ;;  %v9414_v43 = vadd.f32 %v22918_v51, %v8968_v59  ;;  %v22921_v59 = vld [vmem:[#allocation59_spill] sm:$0xff] }
 0xa70   : > { %v9516_v20 = vmax.f32 %v9467_v46, 0.0  ;;  %v9468_v1 = vadd.f32 %v21435_v31, %v9414_v43 }
 0xa71   : > { %v8777_v18 = vpop.f32.mrb[232].mxu0 }
 0xa72   : > { %9565 = vst.msk [vmem:[#allocation2] sm:$0xff] %vm542_vm1, %v9516_v20  ;;  %v9517_v15 = vmax.f32 %v9468_v1, 0.0  ;;  %v8969_v45 = vadd.f32 %v8777_v18, %v21176_v7  ;;  %v16939_v14 = vpop.f32.mrb[233].mxu0 }
 0xa73   : > { %v8780_v60 = vpop.f32.mrb[234].mxu0 }
 0xa74   : > { %9566 = vst.msk [vmem:[#allocation2 + $0x8] sm:$0xff] %vm542_vm1, %v9517_v15  ;;  %v9415_v48 = vadd.f32 %v22919_v56, %v8969_v45  ;;  %v8970_v12 = vadd.f32 %v8780_v60, %v22920_v42  ;;  %v16940_v5 = vpop.f32.mrb[235].mxu0  ;;  %v22922_v15 = vld [vmem:[#allocation62_spill] sm:$0xff] }
 0xa76   : > { %v9469_v21 = vadd.f32 %v21435_v31, %v9415_v48  ;;  %v9416_v54 = vadd.f32 %v22921_v59, %v8970_v12  ;;  %v22923_v48 = vld [vmem:[#allocation63_spill] sm:$0xff] }
 0xa78   : > { %v9518_v46 = vmax.f32 %v9469_v21, 0.0  ;;  %v9470_v51 = vadd.f32 %v21435_v31, %v9416_v54 }
 0xa79   : > { %v8785_v43 = vpop.f32.mrb[236].mxu0 }
 0xa7a   : > { %9567 = vst.msk [vmem:[#allocation2 + $0x10] sm:$0xff] %vm542_vm1, %v9518_v46  ;;  %v9519_v7 = vmax.f32 %v9470_v51, 0.0  ;;  %v8971_v20 = vadd.f32 %v8785_v43, %v21187_v44  ;;  %v16943_v1 = vpop.f32.mrb[237].mxu0 }
 0xa7b   : > { %v8788_v18 = vpop.f32.mrb[238].mxu0  ;;  %v9684_v59 = vld [vmem:[#allocation2 + $0x1] sm:$0xff] }
 0xa7c   : > { %9568 = vst.msk [vmem:[#allocation2 + $0x18] sm:$0xff] %vm542_vm1, %v9519_v7  ;;  %v9417_v45 = vadd.f32 %v22922_v15, %v8971_v20  ;;  %v8972_v14 = vadd.f32 %v8788_v18, %v21191_v16  ;;  %v16944_v60 = vpop.f32.mrb[239].mxu0  ;;  %v22924_v16 = vld [vmem:[#allocation66_spill] sm:$0xff] }
 0xa7e   : > { %v9471_v56 = vadd.f32 %v21435_v31, %v9417_v45  ;;  %v9418_v42 = vadd.f32 %v22923_v48, %v8972_v14  ;;  %v22925_v45 = vld [vmem:[#allocation67_spill] sm:$0xff] }
 0xa80   : > { %v9520_v12 = vmax.f32 %v9471_v56, 0.0  ;;  %v9472_v5 = vadd.f32 %v21435_v31, %v9418_v42 }
 0xa81   : > { %v8793_v21 = vpop.f32.mrb[240].mxu0  ;;  %v9685_v54 = vld [vmem:[#allocation2 + $0x9] sm:$0xff] }
 0xa82   : > { %9569 = vst.msk [vmem:[#allocation2 + $0x20] sm:$0xff] %vm542_vm1, %v9520_v12  ;;  %v9521_v44 = vmax.f32 %v9472_v5, 0.0  ;;  %v8973_v46 = vadd.f32 %v8793_v21, %v21198_v9  ;;  %v16947_v51 = vpop.f32.mrb[241].mxu0  ;;  %v9728_v43 = vpack.c.bf16 %v9685_v54, %v9684_v59 }
 0xa83   : > { %v8796_v7 = vpop.f32.mrb[242].mxu0  ;;  %v9686_v48 = vld [vmem:[#allocation2 + $0x11] sm:$0xff]  ;;  %v22926_v51 = vld [vmem:[#allocation70_spill] sm:$0xff] }
 0xa84   : > { %9570 = vst.msk [vmem:[#allocation2 + $0x28] sm:$0xff] %vm542_vm1, %v9521_v44  ;;  %v9419_v20 = vadd.f32 %v22924_v16, %v8973_v46  ;;  %v8974_v1 = vadd.f32 %v8796_v7, %v21202_v23  ;;  %v16948_v18 = vpop.f32.mrb[243].mxu0  ;;  %17141 = vmatprep.mubr.msk.bf16.mxu0 %vm542_vm1, %v9728_v43  ;;  %v21471_v54 = vld [vmem:[#allocation2 + $0x18] sm:$0xff] }
 0xa86   : > { %v9473_v15 = vadd.f32 %v21435_v31, %v9419_v20  ;;  %v9420_v14 = vadd.f32 %v22925_v45, %v8974_v1 }
 0xa88   : > { %v9522_v60 = vmax.f32 %v9473_v15, 0.0  ;;  %v9474_v56 = vadd.f32 %v21435_v31, %v9420_v14 }
 0xa89   : > { %v8801_v9 = vpop.f32.mrb[244].mxu0  ;;  %v9687_v42 = vld [vmem:[#allocation2 + $0x19] sm:$0xff] }
 0xa8a   : > { %v21467_v12 = vld [vmem:[#allocation2 + $0x20] sm:$0xff]  ;;  %9571 = vst.msk [vmem:[#allocation2 + $0x30] sm:$0xff] %vm542_vm1, %v9522_v60  ;;  %v9523_v5 = vmax.f32 %v9474_v56, 0.0  ;;  %v8975_v23 = vadd.f32 %v8801_v9, %v21209_v35  ;;  %v16951_v21 = vpop.f32.mrb[245].mxu0  ;;  %v9729_v59 = vpack.c.bf16 %v9687_v42, %v9686_v48  ;;  %v22927_v35 = vld [vmem:[#allocation71_spill] sm:$0xff] }
 0xa8b   : > { %v8804_v44 = vpop.f32.mrb[246].mxu0  ;;  %v9688_v14 = vld [vmem:[#allocation2 + $0x21] sm:$0xff] }
 0xa8c   : > { %9572 = vst.msk [vmem:[#allocation2 + $0x38] sm:$0xff] %vm542_vm1, %v9523_v5  ;;  %v9421_v43 = vadd.f32 %v22926_v51, %v8975_v23  ;;  %v8976_v7 = vadd.f32 %v8804_v44, %v21213_v0  ;;  %v16952_v16 = vpop.f32.mrb[247].mxu0  ;;  %17142 = vmatmul.mubr.msk.bf16.vlgmr.msra.gmra.mrb[72].mxu0 %vm542_vm1, %v9729_v59  ;;  %v21486_v5 = vld [vmem:[#allocation2 + $0x28] sm:$0xff]  ;;  %v22928_v59 = vld [vmem:[#allocation74_spill] sm:$0xff] }
 0xa8e   : > { %v9475_v20 = vadd.f32 %v21435_v31, %v9421_v43  ;;  %v9422_v1 = vadd.f32 %v22927_v35, %v8976_v7  ;;  %v22931_v35 = vld [vmem:[#allocation116_spill] sm:$0xff] }
 0xa90   : > { %v9524_v18 = vmax.f32 %v9475_v20, 0.0  ;;  %v9476_v15 = vadd.f32 %v21435_v31, %v9422_v1 }
 0xa91   : > { %v8809_v45 = vpop.f32.mrb[248].mxu0  ;;  %v9689_v60 = vld [vmem:[#allocation2 + $0x29] sm:$0xff] }
 0xa92   : > { %v21482_v56 = vld [vmem:[#allocation2 + $0x30] sm:$0xff]  ;;  %9573 = vst.msk [vmem:[#allocation2 + $0x40] sm:$0xff] %vm542_vm1, %v9524_v18  ;;  %v9525_v9 = vmax.f32 %v9476_v15, 0.0  ;;  %v8977_v0 = vadd.f32 %v8809_v45, %v21220_v36  ;;  %v16955_v48 = vpop.f32.mrb[249].mxu0  ;;  %v9730_v42 = vpack.c.bf16 %v9689_v60, %v9688_v14 }
 0xa93   : > { %v8812_v23 = vpop.f32.mrb[250].mxu0  ;;  %v21494_v7 = vld [vmem:[#allocation2 + $0x2e] sm:$0xff]  ;;  %v21496_v36 = vld [vmem:[#allocation2 + $0x36] sm:$0xff] }
 0xa94   : > { %9574 = vst.msk [vmem:[#allocation2 + $0x48] sm:$0xff] %vm542_vm1, %v9525_v9  ;;  %v9423_v44 = vadd.f32 %v22928_v59, %v8977_v0  ;;  %v8978_v51 = vadd.f32 %v8812_v23, %v21224_v41  ;;  %v16956_v43 = vpop.f32.mrb[251].mxu0  ;;  %17145 = vmatprep.mubr.msk.bf16.mxu0 %vm542_vm1, %v9730_v42  ;;  %22929 = vst [vmem:[#allocation41_spill] sm:$0xff] %v21494_v7  ;;  %v9690_v14 = vld [vmem:[#allocation2 + $0x31] sm:$0xff] }
 0xa95   : > { %22930 = vst [vmem:[#allocation42_spill] sm:$0xff] %v21496_v36  ;;  %v21507_v23 = vld [vmem:[#allocation2 + $0x38] sm:$0xff] }
 0xa96   : > { %v9477_v20 = vadd.f32 %v21435_v31, %v9423_v44  ;;  %v9424_v1 = vadd.f32 %v22931_v35, %v8978_v51  ;;  %v22932_v51 = vld [vmem:[#allocation77_spill] sm:$0xff] }
 0xa98   : > { %v9526_v18 = vmax.f32 %v9477_v20, 0.0  ;;  %v9478_v15 = vadd.f32 %v21435_v31, %v9424_v1 }
 0xa99   : > { %v8817_v45 = vpop.f32.mrb[252].mxu0  ;;  %v9691_v41 = vld [vmem:[#allocation2 + $0x39] sm:$0xff] }
 0xa9a   : > { %v21503_v60 = vld [vmem:[#allocation2 + $0x40] sm:$0xff]  ;;  %9575 = vst.msk [vmem:[#allocation2 + $0x50] sm:$0xff] %vm542_vm1, %v9526_v18  ;;  %v9527_v9 = vmax.f32 %v9478_v15, 0.0  ;;  %v8979_v0 = vadd.f32 %v8817_v45, %v21231_v50  ;;  %v16959_v48 = vpop.f32.mrb[253].mxu0  ;;  %v9731_v42 = vpack.c.bf16 %v9691_v41, %v9690_v14  ;;  %v22935_v45 = vld [vmem:[#allocation117_spill] sm:$0xff] }
 0xa9b   : > { %v8820_v59 = vpop.f32.mrb[254].mxu0  ;;  %v21515_v1 = vld [vmem:[#allocation2 + $0x3e] sm:$0xff]  ;;  %v21517_v50 = vld [vmem:[#allocation2 + $0x46] sm:$0xff] }
 0xa9c   : > { %9576 = vst.msk [vmem:[#allocation2 + $0x58] sm:$0xff] %vm542_vm1, %v9527_v9  ;;  %v9425_v43 = vadd.f32 %v22932_v51, %v8979_v0  ;;  %v8980_v20 = vadd.f32 %v8820_v59, %v21235_v61  ;;  %v16960_v35 = vpop.f32.mrb[255].mxu0  ;;  %17146 = vmatmul.mubr.msk.bf16.gmra.mrb[76].mxu0 %vm542_vm1, %v9731_v42  ;;  %22933 = vst [vmem:[#allocation43_spill] sm:$0xff] %v21515_v1  ;;  %v9692_v48 = vld [vmem:[#allocation2 + $0x41] sm:$0xff] }
 0xa9d   : > { %22934 = vst [vmem:[#allocation44_spill] sm:$0xff] %v21517_v50  ;;  %v21528_v18 = vld [vmem:[#allocation2 + $0x48] sm:$0xff] }
 0xa9e   : > { %v9479_v15 = vadd.f32 %v21435_v31, %v9425_v43  ;;  %v9426_v14 = vadd.f32 %v22935_v45, %v8980_v20 }
 0xaa0   : > { %v9528_v41 = vmax.f32 %v9479_v15, 0.0  ;;  %v9480_v9 = vadd.f32 %v21435_v31, %v9426_v14  ;;  %v22936_v15 = vld [vmem:[#allocation80_spill] sm:$0xff] }
 0xaa1   : > { %v8825_v0 = vpop.f32.mrb[0].mxu0  ;;  %v9693_v61 = vld [vmem:[#allocation2 + $0x49] sm:$0xff] }
 0xaa2   : > { %v21524_v59 = vld [vmem:[#allocation2 + $0x50] sm:$0xff]  ;;  %9577 = vst.msk [vmem:[#allocation2 + $0x60] sm:$0xff] %vm542_vm1, %v9528_v41  ;;  %v9529_v42 = vmax.f32 %v9480_v9, 0.0  ;;  %v8981_v51 = vadd.f32 %v8825_v0, %v21242_v47  ;;  %v16963_v35 = vpop.f32.mrb[1].mxu0  ;;  %v9732_v16 = vpack.c.bf16 %v9693_v61, %v9692_v48 }
 0xaa3   : > { %v8828_v43 = vpop.f32.mrb[2].mxu0  ;;  %v21536_v41 = vld [vmem:[#allocation2 + $0x4e] sm:$0xff]  ;;  %v21538_v47 = vld [vmem:[#allocation2 + $0x56] sm:$0xff] }
 0xaa4   : > { %9578 = vst.msk [vmem:[#allocation2 + $0x68] sm:$0xff] %vm542_vm1, %v9529_v42  ;;  %v9427_v45 = vadd.f32 %v22936_v15, %v8981_v51  ;;  %v8982_v14 = vadd.f32 %v8828_v43, %v21246_v53  ;;  %v16964_v44 = vpop.f32.mrb[3].mxu0  ;;  %17149 = vmatprep.mubr.msk.bf16.mxu0 %vm542_vm1, %v9732_v16  ;;  %22937 = vst [vmem:[#allocation45_spill] sm:$0xff] %v21536_v41  ;;  %v22939_v48 = vld [vmem:[#allocation4_spill] sm:$0xff]  ;;  %v21549_v9 = vld [vmem:[#allocation2 + $0x58] sm:$0xff] }
 0xaa5   : > { %22938 = vst [vmem:[#allocation46_spill] sm:$0xff] %v21538_v47  ;;  %v9694_v15 = vld [vmem:[#allocation2 + $0x51] sm:$0xff] }
 0xaa6   : > { %v9481_v0 = vadd.f32 %v21435_v31, %v9427_v45  ;;  %v9428_v61 = vadd.f32 %v22939_v48, %v8982_v14 }
 0xaa8   : > { %v9530_v35 = vmax.f32 %v9481_v0, 0.0  ;;  %v9482_v42 = vadd.f32 %v21435_v31, %v9428_v61  ;;  %v22940_v0 = vld [vmem:[#allocation5_spill] sm:$0xff] }
 0xaa9   : > { %v8833_v51 = vpop.f32.mrb[4].mxu0  ;;  %v9695_v53 = vld [vmem:[#allocation2 + $0x59] sm:$0xff] }
 0xaaa   : > { %v21545_v44 = vld [vmem:[#allocation2 + $0x60] sm:$0xff]  ;;  %9579 = vst.msk [vmem:[#allocation2 + $0x70] sm:$0xff] %vm542_vm1, %v9530_v35  ;;  %v9531_v16 = vmax.f32 %v9482_v42, 0.0  ;;  %v8983_v43 = vadd.f32 %v8833_v51, %v21253_v63  ;;  %v16967_v20 = vpop.f32.mrb[5].mxu0  ;;  %v9733_v21 = vpack.c.bf16 %v9695_v53, %v9694_v15 }
 0xaab   : > { %v8836_v45 = vpop.f32.mrb[6].mxu0  ;;  %v18456_v63 = vld [vmem:[%s22564_s2 + $0x120] sm:$0xff]  }
 0xaac   : > { %9580 = vst.msk [vmem:[#allocation2 + $0x78] sm:$0xff] %vm542_vm1, %v9531_v16  ;;  %v9429_v48 = vadd.f32 %v22940_v0, %v8983_v43  ;;  %v8984_v61 = vadd.f32 %v8836_v45, %v21257_v22  ;;  %v16968_v46 = vpop.f32.mrb[7].mxu0  ;;  %17150 = vmatmul.mubr.msk.bf16.gmra.mrb[80].mxu0 %vm542_vm1, %v9733_v21  ;;  %v21560_v20 = vld [vmem:[#allocation2 + $0x5e] sm:$0xff]  ;;  %v21562_v35 = vld [vmem:[#allocation2 + $0x66] sm:$0xff]  ;;  %17185 = vmatprep.subr.bf16.mxu0 %v18456_v63 }
 0xaad   : > { %22941 = vst [vmem:[#allocation47_spill] sm:$0xff] %v21560_v20  ;;  %22942 = vst [vmem:[#allocation48_spill] sm:$0xff] %v21562_v35  ;;  %v22943_v15 = vld [vmem:[#allocation6_spill] sm:$0xff]  ;;  %17186 = vmatpush3.bf16.msra.mxu0 %v18456_v63 }
 0xaae   : > { %v9483_v51 = vadd.f32 %v21435_v31, %v9429_v48  ;;  %v9430_v53 = vadd.f32 %v22943_v15, %v8984_v61  ;;  %v9696_v16 = vld [vmem:[#allocation2 + $0x61] sm:$0xff]  ;;  %v22944_v15 = vld [vmem:[#allocation8_spill] sm:$0xff] }
 0xaaf   : > { %v18457_v48 = vld [vmem:[%s22564_s2 + $0x128] sm:$0xff]  }
 0xab0   : > { %v9532_v22 = vmax.f32 %v9483_v51, 0.0  ;;  %v9484_v46 = vadd.f32 %v21435_v31, %v9430_v53  ;;  %v21576_v61 = vld [vmem:[#allocation2 + $0x68] sm:$0xff]  ;;  %17187 = vmatprep.subr.bf16.mxu0 %v18457_v48 }
 0xab1   : > { %v8841_v21 = vpop.f32.mrb[8].mxu0  ;;  %v9697_v43 = vld [vmem:[#allocation2 + $0x69] sm:$0xff]  ;;  %17188 = vmatpush3.bf16.msra.mxu0 %v18457_v48 }
 0xab2   : > { %v21569_v45 = vld [vmem:[#allocation2 + $0x70] sm:$0xff]  ;;  %9581 = vst.msk [vmem:[#allocation2 + $0x80] sm:$0xff] %vm542_vm1, %v9532_v22  ;;  %v9533_v0 = vmax.f32 %v9484_v46, 0.0  ;;  %v8985_v14 = vadd.f32 %v8841_v21, %v21264_v58  ;;  %v16971_v42 = vpop.f32.mrb[9].mxu0  ;;  %v9734_v20 = vpack.c.bf16 %v9697_v43, %v9696_v16  ;;  %v22947_v43 = vld [vmem:[#allocation9_spill] sm:$0xff] }
 0xab3   : > { %v8844_v63 = vpop.f32.mrb[10].mxu0  ;;  %v21584_v58 = vld [vmem:[#allocation2 + $0x6e] sm:$0xff]  ;;  %v21586_v42 = vld [vmem:[#allocation2 + $0x76] sm:$0xff] }
 0xab4   : > { %9582 = vst.msk [vmem:[#allocation2 + $0x88] sm:$0xff] %vm542_vm1, %v9533_v0  ;;  %v9431_v53 = vadd.f32 %v22944_v15, %v8985_v14  ;;  %v8986_v22 = vadd.f32 %v8844_v63, %v21268_v34  ;;  %v16972_v46 = vpop.f32.mrb[11].mxu0  ;;  %17153 = vmatprep.mubr.msk.bf16.mxu0 %vm542_vm1, %v9734_v20  ;;  %22945 = vst [vmem:[#allocation49_spill] sm:$0xff] %v21584_v58  ;;  %v9698_v63 = vld [vmem:[#allocation2 + $0x71] sm:$0xff] }
 0xab5   : > { %22946 = vst [vmem:[#allocation50_spill] sm:$0xff] %v21586_v42  ;;  %v21597_v21 = vld [vmem:[#allocation2 + $0x78] sm:$0xff] }
 0xab6   : > { %v9485_v16 = vadd.f32 %v21435_v31, %v9431_v53  ;;  %v9432_v0 = vadd.f32 %v22947_v43, %v8986_v22 }
 0xab8   : > { %v9534_v51 = vmax.f32 %v9485_v16, 0.0  ;;  %v9486_v14 = vadd.f32 %v21435_v31, %v9432_v0  ;;  %v22948_v16 = vld [vmem:[#allocation86_spill] sm:$0xff] }
 0xab9   : > { %v8849_v34 = vpop.f32.mrb[12].mxu0  ;;  %v9699_v15 = vld [vmem:[#allocation2 + $0x79] sm:$0xff] }
 0xaba   : > { %v21593_v20 = vld [vmem:[#allocation2 + $0x80] sm:$0xff]  ;;  %9583 = vst.msk [vmem:[#allocation2 + $0x90] sm:$0xff] %vm542_vm1, %v9534_v51  ;;  %v9535_v46 = vmax.f32 %v9486_v14, 0.0  ;;  %v8987_v48 = vadd.f32 %v8849_v34, %v21275_v29  ;;  %v16975_v35 = vpop.f32.mrb[13].mxu0  ;;  %v9735_v41 = vpack.c.bf16 %v9699_v15, %v9698_v63 }
 0xabb   : > { %v8852_v53 = vpop.f32.mrb[14].mxu0  ;;  %v21605_v51 = vld [vmem:[#allocation2 + $0x7e] sm:$0xff]  ;;  %v21607_v29 = vld [vmem:[#allocation2 + $0x86] sm:$0xff] }
 0xabc   : > { %9584 = vst.msk [vmem:[#allocation2 + $0x98] sm:$0xff] %vm542_vm1, %v9535_v46  ;;  %v9433_v43 = vadd.f32 %v22948_v16, %v8987_v48  ;;  %v8988_v0 = vadd.f32 %v8852_v53, %v21279_v24  ;;  %v16976_v58 = vpop.f32.mrb[15].mxu0  ;;  %17154 = vmatmul.mubr.msk.bf16.gmra.mrb[84].mxu0 %vm542_vm1, %v9735_v41  ;;  %22949 = vst [vmem:[#allocation51_spill] sm:$0xff] %v21607_v29  ;;  %v22950_v34 = vld [vmem:[#allocation10_spill] sm:$0xff]  ;;  %v21618_v35 = vld [vmem:[#allocation2 + $0x88] sm:$0xff] }
 0xabd   : > { %v9700_v16 = vld [vmem:[#allocation2 + $0x81] sm:$0xff]  ;;  %v23003_v29 = vld [vmem:[#allocation37_spill] sm:$0xff] }
 0xabe   : > { %v9487_v14 = vadd.f32 %v21435_v31, %v9433_v43  ;;  %v9434_v63 = vadd.f32 %v22950_v34, %v8988_v0 }
 0xac0   : > { %v9536_v15 = vmax.f32 %v9487_v14, 0.0  ;;  %v9488_v46 = vadd.f32 %v21435_v31, %v9434_v63  ;;  %v22951_v14 = vld [vmem:[#allocation11_spill] sm:$0xff] }
 0xac1   : > { %v8857_v48 = vpop.f32.mrb[16].mxu0  ;;  %v9701_v24 = vld [vmem:[#allocation2 + $0x89] sm:$0xff] }
 0xac2   : > { %v21614_v58 = vld [vmem:[#allocation2 + $0x90] sm:$0xff]  ;;  %9585 = vst.msk [vmem:[#allocation2 + $0xa0] sm:$0xff] %vm542_vm1, %v9536_v15  ;;  %v9537_v41 = vmax.f32 %v9488_v46, 0.0  ;;  %v8989_v53 = vadd.f32 %v8857_v48, %v21286_v38  ;;  %v16979_v22 = vpop.f32.mrb[17].mxu0  ;;  %v9736_v42 = vpack.c.bf16 %v9701_v24, %v9700_v16 }
 0xac3   : > { %v8860_v43 = vpop.f32.mrb[18].mxu0  ;;  %v21626_v15 = vld [vmem:[#allocation2 + $0x8e] sm:$0xff]  ;;  %v21628_v38 = vld [vmem:[#allocation2 + $0x96] sm:$0xff] }
 0xac4   : > { %9586 = vst.msk [vmem:[#allocation2 + $0xa8] sm:$0xff] %vm542_vm1, %v9537_v41  ;;  %v9435_v34 = vadd.f32 %v22951_v14, %v8989_v53  ;;  %v8990_v63 = vadd.f32 %v8860_v43, %v21290_v13  ;;  %v16980_v47 = vpop.f32.mrb[19].mxu0  ;;  %17157 = vmatprep.mubr.msk.bf16.mxu0 %vm542_vm1, %v9736_v42  ;;  %22952 = vst [vmem:[#allocation52_spill] sm:$0xff] %v21626_v15  ;;  %v22954_v48 = vld [vmem:[#allocation12_spill] sm:$0xff]  ;;  %v21639_v22 = vld [vmem:[#allocation2 + $0x98] sm:$0xff] }
 0xac5   : > { %22953 = vst [vmem:[#allocation53_spill] sm:$0xff] %v21628_v38  ;;  %v9702_v14 = vld [vmem:[#allocation2 + $0x91] sm:$0xff] }
 0xac6   : > { %v9489_v46 = vadd.f32 %v21435_v31, %v9435_v34  ;;  %v9436_v16 = vadd.f32 %v22954_v48, %v8990_v63 }
 0xac8   : > { %v9538_v24 = vmax.f32 %v9489_v46, 0.0  ;;  %v9490_v41 = vadd.f32 %v21435_v31, %v9436_v16  ;;  %v22955_v46 = vld [vmem:[#allocation13_spill] sm:$0xff] }
 0xac9   : > { %v8865_v53 = vpop.f32.mrb[20].mxu0  ;;  %v9703_v13 = vld [vmem:[#allocation2 + $0x99] sm:$0xff] }
 0xaca   : > { %v21635_v47 = vld [vmem:[#allocation2 + $0xa0] sm:$0xff]  ;;  %9587 = vst.msk [vmem:[#allocation2 + $0xb0] sm:$0xff] %vm542_vm1, %v9538_v24  ;;  %v9539_v42 = vmax.f32 %v9490_v41, 0.0  ;;  %v8991_v43 = vadd.f32 %v8865_v53, %v21297_v30  ;;  %v16983_v0 = vpop.f32.mrb[21].mxu0  ;;  %v9737_v1 = vpack.c.bf16 %v9703_v13, %v9702_v14 }
 0xacb   : > { %v8868_v34 = vpop.f32.mrb[22].mxu0  ;;  %v21647_v24 = vld [vmem:[#allocation2 + $0x9e] sm:$0xff]  ;;  %v21649_v30 = vld [vmem:[#allocation2 + $0xa6] sm:$0xff] }
 0xacc   : > { %9588 = vst.msk [vmem:[#allocation2 + $0xb8] sm:$0xff] %vm542_vm1, %v9539_v42  ;;  %v9437_v48 = vadd.f32 %v22955_v46, %v8991_v43  ;;  %v8992_v16 = vadd.f32 %v8868_v34, %v21301_v32  ;;  %v16984_v50 = vpop.f32.mrb[23].mxu0  ;;  %17158 = vmatmul.mubr.msk.bf16.gmra.mrb[88].mxu0 %vm542_vm1, %v9737_v1  ;;  %22956 = vst [vmem:[#allocation56_spill] sm:$0xff] %v21647_v24  ;;  %v22958_v53 = vld [vmem:[#allocation14_spill] sm:$0xff]  ;;  %v21660_v0 = vld [vmem:[#allocation2 + $0xa8] sm:$0xff] }
 0xacd   : > { %22957 = vst [vmem:[#allocation57_spill] sm:$0xff] %v21649_v30  ;;  %v9704_v46 = vld [vmem:[#allocation2 + $0xa1] sm:$0xff] }
 0xace   : > { %v9491_v41 = vadd.f32 %v21435_v31, %v9437_v48  ;;  %v9438_v14 = vadd.f32 %v22958_v53, %v8992_v16 }
 0xad0   : > { %v9540_v13 = vmax.f32 %v9491_v41, 0.0  ;;  %v9492_v42 = vadd.f32 %v21435_v31, %v9438_v14  ;;  %v22959_v41 = vld [vmem:[#allocation15_spill] sm:$0xff] }
 0xad1   : > { %v8873_v43 = vpop.f32.mrb[24].mxu0  ;;  %v9705_v32 = vld [vmem:[#allocation2 + $0xa9] sm:$0xff] }
 0xad2   : > { %v21656_v50 = vld [vmem:[#allocation2 + $0xb0] sm:$0xff]  ;;  %9589 = vst.msk [vmem:[#allocation2 + $0xc0] sm:$0xff] %vm542_vm1, %v9540_v13  ;;  %v9541_v1 = vmax.f32 %v9492_v42, 0.0  ;;  %v8993_v34 = vadd.f32 %v8873_v43, %v21314_v49  ;;  %v16987_v63 = vpop.f32.mrb[25].mxu0  ;;  %v9738_v7 = vpack.c.bf16 %v9705_v32, %v9704_v46 }
 0xad3   : > { %v8876_v48 = vpop.f32.mrb[26].mxu0  ;;  %v21668_v13 = vld [vmem:[#allocation2 + $0xae] sm:$0xff]  ;;  %v21670_v49 = vld [vmem:[#allocation2 + $0xb6] sm:$0xff] }
 0xad4   : > { %9590 = vst.msk [vmem:[#allocation2 + $0xc8] sm:$0xff] %vm542_vm1, %v9541_v1  ;;  %v9439_v53 = vadd.f32 %v22959_v41, %v8993_v34  ;;  %v8994_v14 = vadd.f32 %v8876_v48, %v21318_v8  ;;  %v16988_v36 = vpop.f32.mrb[27].mxu0  ;;  %17161 = vmatprep.mubr.msk.bf16.mxu0 %vm542_vm1, %v9738_v7  ;;  %22960 = vst [vmem:[#allocation60_spill] sm:$0xff] %v21668_v13  ;;  %v22962_v43 = vld [vmem:[#allocation16_spill] sm:$0xff]  ;;  %v21681_v63 = vld [vmem:[#allocation2 + $0xb8] sm:$0xff] }
 0xad5   : > { %22961 = vst [vmem:[#allocation61_spill] sm:$0xff] %v21670_v49  ;;  %v9706_v41 = vld [vmem:[#allocation2 + $0xb1] sm:$0xff] }
 0xad6   : > { %v9493_v42 = vadd.f32 %v21435_v31, %v9439_v53  ;;  %v9440_v46 = vadd.f32 %v22962_v43, %v8994_v14 }
 0xad8   : > { %v9542_v32 = vmax.f32 %v9493_v42, 0.0  ;;  %v9494_v1 = vadd.f32 %v21435_v31, %v9440_v46  ;;  %v22963_v42 = vld [vmem:[#allocation17_spill] sm:$0xff] }
 0xad9   : > { %v8881_v34 = vpop.f32.mrb[28].mxu0  ;;  %v9707_v8 = vld [vmem:[#allocation2 + $0xb9] sm:$0xff] }
 0xada   : > { %v21677_v36 = vld [vmem:[#allocation2 + $0xc0] sm:$0xff]  ;;  %9591 = vst.msk [vmem:[#allocation2 + $0xd0] sm:$0xff] %vm542_vm1, %v9542_v32  ;;  %v9543_v7 = vmax.f32 %v9494_v1, 0.0  ;;  %v8995_v48 = vadd.f32 %v8881_v34, %v21325_v3  ;;  %v16991_v16 = vpop.f32.mrb[29].mxu0  ;;  %v9739_v30 = vpack.c.bf16 %v9707_v8, %v9706_v41 }
 0xadb   : > { %v8884_v53 = vpop.f32.mrb[30].mxu0  ;;  %v21689_v32 = vld [vmem:[#allocation2 + $0xbe] sm:$0xff]  ;;  %v21691_v3 = vld [vmem:[#allocation2 + $0xc6] sm:$0xff] }
 0xadc   : > { %9592 = vst.msk [vmem:[#allocation2 + $0xd8] sm:$0xff] %vm542_vm1, %v9543_v7  ;;  %v9441_v43 = vadd.f32 %v22963_v42, %v8995_v48  ;;  %v8996_v46 = vadd.f32 %v8884_v53, %v21329_v6  ;;  %v16992_v49 = vpop.f32.mrb[31].mxu0  ;;  %17162 = vmatmul.mubr.msk.bf16.gmra.mrb[92].mxu0 %vm542_vm1, %v9739_v30  ;;  %22964 = vst [vmem:[#allocation7_spill] sm:$0xff] %v21689_v32  ;;  %v22966_v34 = vld [vmem:[#allocation18_spill] sm:$0xff]  ;;  %v21702_v16 = vld [vmem:[#allocation2 + $0xc8] sm:$0xff] }
 0xadd   : > { %22965 = vst [vmem:[#allocation64_spill] sm:$0xff] %v21691_v3  ;;  %v9708_v42 = vld [vmem:[#allocation2 + $0xc1] sm:$0xff] }
 0xade   : > { %v9495_v1 = vadd.f32 %v21435_v31, %v9441_v43  ;;  %v9442_v41 = vadd.f32 %v22966_v34, %v8996_v46 }
 0xae0   : > { %v9544_v8 = vmax.f32 %v9495_v1, 0.0  ;;  %v9496_v7 = vadd.f32 %v21435_v31, %v9442_v41  ;;  %v22967_v1 = vld [vmem:[#allocation19_spill] sm:$0xff] }
 0xae1   : > { %v8889_v48 = vpop.f32.mrb[32].mxu0  ;;  %v9709_v6 = vld [vmem:[#allocation2 + $0xc9] sm:$0xff] }
 0xae2   : > { %v21698_v49 = vld [vmem:[#allocation2 + $0xd0] sm:$0xff]  ;;  %9593 = vst.msk [vmem:[#allocation2 + $0xe0] sm:$0xff] %vm542_vm1, %v9544_v8  ;;  %v9545_v30 = vmax.f32 %v9496_v7, 0.0  ;;  %v8997_v53 = vadd.f32 %v8889_v48, %v21336_v10  ;;  %v16995_v14 = vpop.f32.mrb[33].mxu0  ;;  %v9740_v13 = vpack.c.bf16 %v9709_v6, %v9708_v42  ;;  %v22970_v48 = vld [vmem:[#allocation21_spill] sm:$0xff] }
 0xae3   : > { %v8892_v43 = vpop.f32.mrb[34].mxu0  ;;  %v21710_v8 = vld [vmem:[#allocation2 + $0xce] sm:$0xff]  ;;  %v21712_v10 = vld [vmem:[#allocation2 + $0xd6] sm:$0xff] }
 0xae4   : > { %9594 = vst.msk [vmem:[#allocation2 + $0xe8] sm:$0xff] %vm542_vm1, %v9545_v30  ;;  %v9443_v34 = vadd.f32 %v22967_v1, %v8997_v53  ;;  %v8998_v41 = vadd.f32 %v8892_v43, %v21340_v26  ;;  %v16996_v3 = vpop.f32.mrb[35].mxu0  ;;  %17165 = vmatprep.mubr.msk.bf16.mxu0 %vm542_vm1, %v9740_v13  ;;  %22968 = vst [vmem:[#allocation65_spill] sm:$0xff] %v21710_v8  ;;  %v9710_v1 = vld [vmem:[#allocation2 + $0xd1] sm:$0xff] }
 0xae5   : > { %22969 = vst [vmem:[#allocation68_spill] sm:$0xff] %v21712_v10  ;;  %v21723_v14 = vld [vmem:[#allocation2 + $0xd8] sm:$0xff] }
 0xae6   : > { %v9497_v7 = vadd.f32 %v21435_v31, %v9443_v34  ;;  %v9444_v42 = vadd.f32 %v22970_v48, %v8998_v41 }
 0xae8   : > { %v9546_v6 = vmax.f32 %v9497_v7, 0.0  ;;  %v9498_v30 = vadd.f32 %v21435_v31, %v9444_v42  ;;  %v22971_v7 = vld [vmem:[#allocation22_spill] sm:$0xff] }
 0xae9   : > { %v8897_v53 = vpop.f32.mrb[36].mxu0  ;;  %v9711_v26 = vld [vmem:[#allocation2 + $0xd9] sm:$0xff] }
 0xaea   : > { %v21719_v3 = vld [vmem:[#allocation2 + $0xe0] sm:$0xff]  ;;  %9595 = vst.msk [vmem:[#allocation2 + $0xf0] sm:$0xff] %vm542_vm1, %v9546_v6  ;;  %v9547_v13 = vmax.f32 %v9498_v30, 0.0  ;;  %v8999_v43 = vadd.f32 %v8897_v53, %v21347_v25  ;;  %v16999_v46 = vpop.f32.mrb[37].mxu0  ;;  %v9741_v32 = vpack.c.bf16 %v9711_v26, %v9710_v1  ;;  %v22974_v53 = vld [vmem:[#allocation23_spill] sm:$0xff] }
 0xaeb   : > { %v8900_v34 = vpop.f32.mrb[38].mxu0  ;;  %v21731_v6 = vld [vmem:[#allocation2 + $0xde] sm:$0xff]  ;;  %v21733_v25 = vld [vmem:[#allocation2 + $0xe6] sm:$0xff] }
 0xaec   : > { %9596 = vst.msk [vmem:[#allocation2 + $0xf8] sm:$0xff] %vm542_vm1, %v9547_v13  ;;  %v9445_v48 = vadd.f32 %v22971_v7, %v8999_v43  ;;  %v9000_v42 = vadd.f32 %v8900_v34, %v21351_v11  ;;  %v17000_v10 = vpop.f32.mrb[39].mxu0  ;;  %17166 = vmatmul.mubr.msk.bf16.gmra.mrb[96].mxu0 %vm542_vm1, %v9741_v32  ;;  %22972 = vst [vmem:[#allocation69_spill] sm:$0xff] %v21731_v6  ;;  %v9712_v7 = vld [vmem:[#allocation2 + $0xe1] sm:$0xff] }
 0xaed   : > { %22973 = vst [vmem:[#allocation72_spill] sm:$0xff] %v21733_v25  ;;  %v21744_v46 = vld [vmem:[#allocation2 + $0xe8] sm:$0xff] }
 0xaee   : > { %v9499_v30 = vadd.f32 %v21435_v31, %v9445_v48  ;;  %v9446_v1 = vadd.f32 %v22974_v53, %v9000_v42 }
 0xaf0   : > { %v9548_v26 = vmax.f32 %v9499_v30, 0.0  ;;  %v9500_v13 = vadd.f32 %v21435_v31, %v9446_v1  ;;  %v22975_v30 = vld [vmem:[#allocation24_spill] sm:$0xff] }
 0xaf1   : > { %v8905_v43 = vpop.f32.mrb[40].mxu0  ;;  %v9713_v11 = vld [vmem:[#allocation2 + $0xe9] sm:$0xff] }
 0xaf2   : > { %v21740_v10 = vld [vmem:[#allocation2 + $0xf0] sm:$0xff]  ;;  %9597 = vst.msk [vmem:[#allocation2 + $0x100] sm:$0xff] %vm542_vm1, %v9548_v26  ;;  %v9549_v32 = vmax.f32 %v9500_v13, 0.0  ;;  %v9001_v34 = vadd.f32 %v8905_v43, %v21358_v37  ;;  %v17003_v41 = vpop.f32.mrb[41].mxu0  ;;  %v9742_v8 = vpack.c.bf16 %v9713_v11, %v9712_v7  ;;  %v22978_v43 = vld [vmem:[#allocation25_spill] sm:$0xff] }
 0xaf3   : > { %v8908_v48 = vpop.f32.mrb[42].mxu0  ;;  %v21752_v26 = vld [vmem:[#allocation2 + $0xee] sm:$0xff]  ;;  %v21754_v37 = vld [vmem:[#allocation2 + $0xf6] sm:$0xff] }
 0xaf4   : > { %9598 = vst.msk [vmem:[#allocation2 + $0x108] sm:$0xff] %vm542_vm1, %v9549_v32  ;;  %v9447_v53 = vadd.f32 %v22975_v30, %v9001_v34  ;;  %v9002_v1 = vadd.f32 %v8908_v48, %v21362_v39  ;;  %v17004_v25 = vpop.f32.mrb[43].mxu0  ;;  %17169 = vmatprep.mubr.msk.bf16.mxu0 %vm542_vm1, %v9742_v8  ;;  %22976 = vst [vmem:[#allocation73_spill] sm:$0xff] %v21752_v26  ;;  %v9714_v30 = vld [vmem:[#allocation2 + $0xf1] sm:$0xff] }
 0xaf5   : > { %22977 = vst [vmem:[#allocation75_spill] sm:$0xff] %v21754_v37  ;;  %v21765_v41 = vld [vmem:[#allocation2 + $0xf8] sm:$0xff] }
 0xaf6   : > { %v9501_v13 = vadd.f32 %v21435_v31, %v9447_v53  ;;  %v9448_v7 = vadd.f32 %v22978_v43, %v9002_v1 }
 0xaf8   : > { %v9550_v11 = vmax.f32 %v9501_v13, 0.0  ;;  %v9502_v32 = vadd.f32 %v21435_v31, %v9448_v7  ;;  %v22979_v13 = vld [vmem:[#allocation26_spill] sm:$0xff] }
 0xaf9   : > { %v8913_v34 = vpop.f32.mrb[44].mxu0  ;;  %v9715_v39 = vld [vmem:[#allocation2 + $0xf9] sm:$0xff] }
 0xafa   : > { %v21761_v25 = vld [vmem:[#allocation2 + $0x100] sm:$0xff]  ;;  %9599 = vst.msk [vmem:[#allocation2 + $0x110] sm:$0xff] %vm542_vm1, %v9550_v11  ;;  %v9551_v8 = vmax.f32 %v9502_v32, 0.0  ;;  %v9003_v48 = vadd.f32 %v8913_v34, %v21369_v28  ;;  %v17007_v42 = vpop.f32.mrb[45].mxu0  ;;  %v9743_v6 = vpack.c.bf16 %v9715_v39, %v9714_v30  ;;  %v22982_v34 = vld [vmem:[#allocation27_spill] sm:$0xff] }
 0xafb   : > { %v8916_v53 = vpop.f32.mrb[46].mxu0  ;;  %v21773_v11 = vld [vmem:[#allocation2 + $0xfe] sm:$0xff]  ;;  %v21775_v28 = vld [vmem:[#allocation2 + $0x106] sm:$0xff] }
 0xafc   : > { %9600 = vst.msk [vmem:[#allocation2 + $0x118] sm:$0xff] %vm542_vm1, %v9551_v8  ;;  %v9449_v43 = vadd.f32 %v22979_v13, %v9003_v48  ;;  %v9004_v7 = vadd.f32 %v8916_v53, %v21373_v27  ;;  %v17008_v37 = vpop.f32.mrb[47].mxu0  ;;  %17170 = vmatmul.mubr.msk.bf16.gmra.mrb[100].mxu0 %vm542_vm1, %v9743_v6  ;;  %22980 = vst [vmem:[#allocation76_spill] sm:$0xff] %v21773_v11  ;;  %v21784_v39 = vld [vmem:[%s22564_s2 + $0x140] sm:$0xff]   ;;  %v21792_v42 = vld [vmem:[#allocation2 + $0x108] sm:$0xff] }
 0xafd   : > { %22981 = vst [vmem:[#allocation78_spill] sm:$0xff] %v21775_v28  ;;  %17233 = vmatprep.subr.bf16.mxu0 %v21784_v39  ;;  %v9716_v8 = vld [vmem:[#allocation2 + $0x101] sm:$0xff] }
 0xafe   : > { %v9503_v32 = vadd.f32 %v21435_v31, %v9449_v43  ;;  %v9450_v30 = vadd.f32 %v22982_v34, %v9004_v7 }
 0xb00   : > { %v9552_v27 = vmax.f32 %v9503_v32, 0.0  ;;  %v9504_v37 = vadd.f32 %v21435_v31, %v9450_v30  ;;  %v22983_v30 = vld [vmem:[#allocation28_spill] sm:$0xff] }
 0xb01   : > { %v8921_v6 = vpop.f32.mrb[48].mxu0  ;;  %v9717_v48 = vld [vmem:[#allocation2 + $0x109] sm:$0xff] }
 0xb02   : > { %v21788_v53 = vld [vmem:[#allocation2 + $0x110] sm:$0xff]  ;;  %9601 = vst.msk [vmem:[#allocation2 + $0x120] sm:$0xff] %vm542_vm1, %v9552_v27  ;;  %v9553_v13 = vmax.f32 %v9504_v37, 0.0  ;;  %v9005_v43 = vadd.f32 %v8921_v6, %v21380_v4  ;;  %v17011_v7 = vpop.f32.mrb[49].mxu0  ;;  %v9744_v34 = vpack.c.bf16 %v9717_v48, %v9716_v8  ;;  %v22986_v8 = vld [vmem:[#allocation29_spill] sm:$0xff] }
 0xb03   : > { %v8924_v1 = vpop.f32.mrb[50].mxu0  ;;  %v21800_v27 = vld [vmem:[#allocation2 + $0x10e] sm:$0xff]  ;;  %v21802_v4 = vld [vmem:[#allocation2 + $0x116] sm:$0xff] }
 0xb04   : > { %9602 = vst.msk [vmem:[#allocation2 + $0x128] sm:$0xff] %vm542_vm1, %v9553_v13  ;;  %v9451_v28 = vadd.f32 %v22983_v30, %v9005_v43  ;;  %v9006_v11 = vadd.f32 %v8924_v1, %v21384_v2  ;;  %v17012_v26 = vpop.f32.mrb[51].mxu0  ;;  %17173 = vmatprep.mubr.msk.bf16.mxu0 %vm542_vm1, %v9744_v34  ;;  %22984 = vst [vmem:[#allocation79_spill] sm:$0xff] %v21800_v27  ;;  %v9718_v30 = vld [vmem:[#allocation2 + $0x111] sm:$0xff] }
 0xb05   : > { %22985 = vst [vmem:[#allocation81_spill] sm:$0xff] %v21802_v4  ;;  %v21813_v37 = vld [vmem:[#allocation2 + $0x118] sm:$0xff] }
 0xb06   : > { %v9505_v6 = vadd.f32 %v21435_v31, %v9451_v28  ;;  %v9452_v48 = vadd.f32 %v22986_v8, %v9006_v11 }
 0xb08   : > { %v9554_v7 = vmax.f32 %v9505_v6, 0.0  ;;  %v9506_v13 = vadd.f32 %v21435_v31, %v9452_v48  ;;  %v22987_v6 = vld [vmem:[#allocation30_spill] sm:$0xff] }
 0xb09   : > { %v8929_v43 = vpop.f32.mrb[52].mxu0  ;;  %v9719_v2 = vld [vmem:[#allocation2 + $0x119] sm:$0xff] }
 0xb0a   : > { %v21809_v26 = vld [vmem:[#allocation2 + $0x120] sm:$0xff]  ;;  %9603 = vst.msk [vmem:[#allocation2 + $0x130] sm:$0xff] %vm542_vm1, %v9554_v7  ;;  %v9555_v1 = vmax.f32 %v9506_v13, 0.0  ;;  %v9007_v34 = vadd.f32 %v8929_v43, %v21391_v57  ;;  %v17015_v32 = vpop.f32.mrb[53].mxu0  ;;  %v9745_v24 = vpack.c.bf16 %v9719_v2, %v9718_v30  ;;  %v22990_v43 = vld [vmem:[#allocation31_spill] sm:$0xff] }
 0xb0b   : > { %v8932_v28 = vpop.f32.mrb[54].mxu0  ;;  %v21821_v7 = vld [vmem:[#allocation2 + $0x11e] sm:$0xff]  ;;  %v21823_v57 = vld [vmem:[#allocation2 + $0x126] sm:$0xff] }
 0xb0c   : > { %9604 = vst.msk [vmem:[#allocation2 + $0x138] sm:$0xff] %vm542_vm1, %v9555_v1  ;;  %v9453_v8 = vadd.f32 %v22987_v6, %v9007_v34  ;;  %v9008_v48 = vadd.f32 %v8932_v28, %v21395_v33  ;;  %v17016_v4 = vpop.f32.mrb[55].mxu0  ;;  %17174 = vmatmul.mubr.msk.bf16.gmra.mrb[104].mxu0 %vm542_vm1, %v9745_v24  ;;  %22988 = vst [vmem:[#allocation82_spill] sm:$0xff] %v21821_v7  ;;  %v9720_v6 = vld [vmem:[#allocation2 + $0x121] sm:$0xff] }
 0xb0d   : > { %22989 = vst [vmem:[#allocation20_spill] sm:$0xff] %v21823_v57  ;;  %v21834_v32 = vld [vmem:[#allocation2 + $0x128] sm:$0xff] }
 0xb0e   : > { %v9507_v13 = vadd.f32 %v21435_v31, %v9453_v8  ;;  %v9454_v30 = vadd.f32 %v22990_v43, %v9008_v48 }
 0xb10   : > { %v9556_v2 = vmax.f32 %v9507_v13, 0.0  ;;  %v9508_v1 = vadd.f32 %v21435_v31, %v9454_v30  ;;  %v22991_v13 = vld [vmem:[#allocation32_spill] sm:$0xff] }
 0xb11   : > { %v8937_v34 = vpop.f32.mrb[56].mxu0  ;;  %v9721_v33 = vld [vmem:[#allocation2 + $0x129] sm:$0xff] }
 0xb12   : > { %v21830_v4 = vld [vmem:[#allocation2 + $0x130] sm:$0xff]  ;;  %9605 = vst.msk [vmem:[#allocation2 + $0x140] sm:$0xff] %vm542_vm1, %v9556_v2  ;;  %v9557_v24 = vmax.f32 %v9508_v1, 0.0  ;;  %v9009_v28 = vadd.f32 %v8937_v34, %v21402_v19  ;;  %v17019_v11 = vpop.f32.mrb[57].mxu0  ;;  %v9746_v27 = vpack.c.bf16 %v9721_v33, %v9720_v6  ;;  %v22994_v34 = vld [vmem:[#allocation33_spill] sm:$0xff] }
 0xb13   : > { %v8940_v8 = vpop.f32.mrb[58].mxu0  ;;  %v21842_v2 = vld [vmem:[#allocation2 + $0x12e] sm:$0xff]  ;;  %v21844_v19 = vld [vmem:[#allocation2 + $0x136] sm:$0xff] }
 0xb14   : > { %9606 = vst.msk [vmem:[#allocation2 + $0x148] sm:$0xff] %vm542_vm1, %v9557_v24  ;;  %v9455_v43 = vadd.f32 %v22991_v13, %v9009_v28  ;;  %v9010_v30 = vadd.f32 %v8940_v8, %v21406_v40  ;;  %v17020_v57 = vpop.f32.mrb[59].mxu0  ;;  %17177 = vmatprep.mubr.msk.bf16.mxu0 %vm542_vm1, %v9746_v27  ;;  %22992 = vst [vmem:[#allocation83_spill] sm:$0xff] %v21842_v2  ;;  %v9722_v13 = vld [vmem:[#allocation2 + $0x131] sm:$0xff] }
 0xb15   : > { %22993 = vst [vmem:[#allocation84_spill] sm:$0xff] %v21844_v19  ;;  %v21855_v11 = vld [vmem:[#allocation2 + $0x138] sm:$0xff] }
 0xb16   : > { %v9509_v1 = vadd.f32 %v21435_v31, %v9455_v43  ;;  %v9456_v6 = vadd.f32 %v22994_v34, %v9010_v30  ;;  %v22996_v34 = vld [vmem:[#allocation40_spill] sm:$0xff] }
 0xb18   : > { %v9558_v33 = vmax.f32 %v9509_v1, 0.0  ;;  %v9510_v24 = vadd.f32 %v21435_v31, %v9456_v6  ;;  %v22995_v31 = vld [vmem:[#allocation34_spill] sm:$0xff] }
 0xb19   : > { %v8945_v28 = vpop.f32.mrb[60].mxu0  ;;  %v9723_v40 = vld [vmem:[#allocation2 + $0x139] sm:$0xff] }
 0xb1a   : > { %v21851_v57 = vld [vmem:[#allocation2 + $0x140] sm:$0xff]  ;;  %9607 = vst.msk [vmem:[#allocation2 + $0x150] sm:$0xff] %vm542_vm1, %v9558_v33  ;;  %v9559_v27 = vmax.f32 %v9510_v24, 0.0  ;;  %v9011_v8 = vadd.f32 %v8945_v28, %v21413_v17  ;;  %v17023_v48 = vpop.f32.mrb[61].mxu0  ;;  %v9747_v7 = vpack.c.bf16 %v9723_v40, %v9722_v13  ;;  %v22999_v13 = vld [vmem:[#allocation35_spill] sm:$0xff] }
 0xb1b   : > { %v8948_v43 = vpop.f32.mrb[62].mxu0  ;;  %v21863_v33 = vld [vmem:[#allocation2 + $0x13e] sm:$0xff]  ;;  %v21865_v17 = vld [vmem:[#allocation2 + $0x146] sm:$0xff] }
 0xb1c   : > { %9608 = vst.msk [vmem:[#allocation2 + $0x158] sm:$0xff] %vm542_vm1, %v9559_v27  ;;  %v9457_v1 = vadd.f32 %v22995_v31, %v9011_v8  ;;  %v9012_v6 = vadd.f32 %v8948_v43, %v22996_v34  ;;  %v17024_v19 = vpop.f32.mrb[63].mxu0  ;;  %17178 = vmatmul.mubr.msk.bf16.gmra.mrb[108].mxu0 %vm542_vm1, %v9747_v7  ;;  %22997 = vst [vmem:[#allocation85_spill] sm:$0xff] %v21863_v33  ;;  %v18524_v24 = vld [vmem:[%s22565_s3 + $0x2] ss:$0 sm:$0xff]  ;;  %v9615_v33 = vld [vmem:[#allocation2 + $0x8] sm:$0xff] }
 0xb1d   : > { %22998 = vst [vmem:[#allocation87_spill] sm:$0xff] %v21865_v17  ;;  %v9724_v19 = vld [vmem:[#allocation2 + $0x141] sm:$0xff] }
 0xb1e   : > { %v9511_v28 = vadd.f32 %v18524_v24, %v9457_v1  ;;  %v9458_v40 = vadd.f32 %v22999_v13, %v9012_v6  ;;  %v21877_v2 = vld [vmem:[#allocation2 + $0x148] sm:$0xff]  ;;  %v23000_v13 = vld [vmem:[#allocation36_spill] sm:$0xff] }
 0xb20   : > { %v9560_v27 = vmax.f32 %v9511_v28, 0.0  ;;  %v9512_v8 = vadd.f32 %v18524_v24, %v9458_v40 }
 0xb21   : > { %v8953_v43 = vpop.f32.mrb[64].mxu0  ;;  %v9725_v31 = vld [vmem:[#allocation2 + $0x149] sm:$0xff] }
 0xb22   : > { %v21873_v7 = vld [vmem:[#allocation2 + $0x150] sm:$0xff]  ;;  %9609 = vst.msk [vmem:[#allocation2 + $0x160] sm:$0xff] %vm542_vm1, %v9560_v27  ;;  %v9561_v34 = vmax.f32 %v9512_v8, 0.0  ;;  %v9013_v30 = vadd.f32 %v8953_v43, %v21422_v62  ;;  %v17027_v48 = vpop.f32.mrb[65].mxu0  ;;  %v9748_v17 = vpack.c.bf16 %v9725_v31, %v9724_v19 }
 0xb23   : > { %v8956_v1 = vpop.f32.mrb[66].mxu0  ;;  %v9726_v38 = vld [vmem:[#allocation2 + $0x151] sm:$0xff]  ;;  %v9727_v6 = vld [vmem:[#allocation2 + $0x159] sm:$0x3]  ;;  %v9614_v48 = vld [vmem:[#allocation2] sm:$0xff] }
 0xb24   : > { %9610 = vst.msk [vmem:[#allocation2 + $0x168] sm:$0xff] %vm542_vm1, %v9561_v34  ;;  %v9459_v40 = vadd.f32 %v23000_v13, %v9013_v30  ;;  %v9014_v27 = vadd.f32 %v8956_v1, %v21425_v55  ;;  %v17028_v8 = vpop.f32.mrb[67].mxu0  ;;  %17181 = vmatprep.mubr.msk.bf16.mxu0 %vm542_vm1, %v9748_v17  ;;  %v9749_v62 = vpack.c.bf16 %v9727_v6, %v9726_v38  ;;  %v21885_v43 = vld [vmem:[#allocation2 + $0x14e] sm:$0xff]  ;;  %v21887_v19 = vld [vmem:[#allocation2 + $0x156] sm:$0xff] }
 0xb25   : > { %23001 = vst [vmem:[#allocation88_spill] sm:$0xff] %v21885_v43  ;;  %23002 = vst [vmem:[#allocation89_spill] sm:$0xff] %v21887_v19  ;;  %v9658_v31 = vpack.c.bf16 %v9615_v33, %v9614_v48  ;;  %v9616_v13 = vld [vmem:[#allocation2 + $0x10] sm:$0xff]  ;;  %v18459_v48 = vld [vmem:[%s22564_s2 + $0x148] sm:$0xff]  }
 0xb26   : > { %v9513_v28 = vadd.f32 %v18524_v24, %v9459_v40  ;;  %v9460_v34 = vadd.f32 %v23003_v29, %v9014_v27  ;;  %17182 = vmatmul.mubr.msk.bf16.gmra.mrb[112].mxu0 %vm542_vm1, %v9749_v62  ;;  %v23006_v29 = vld [vmem:[#allocation38_spill] sm:$0xff] }
 0xb27   : > { %17189 = vmatprep.mubr.msk.bf16.mxu0 %vm542_vm1, %v9658_v31  ;;  %v9660_v31 = vpack.c.bf16 %v21486_v5, %v21467_v12 }
 0xb28   : > { %v9562_v55 = vmax.f32 %v9513_v28, 0.0  ;;  %v9514_v30 = vadd.f32 %v18524_v24, %v9460_v34  ;;  %v9659_v28 = vpack.c.bf16 %v21471_v54, %v9616_v13  ;;  %v9669_v13 = vpack.c.bf16 %v21681_v63, %v21656_v50 }
 0xb29   : > { %v8961_v17 = vpop.f32.mrb[68].mxu0  ;;  %v21896_v8 = vld [vmem:[#allocation2 + $0x15e] sm:$0xff] }
 0xb2a   : > { %9611 = vst.msk [vmem:[#allocation2 + $0x170] sm:$0xff] %vm542_vm1, %v9562_v55  ;;  %v9563_v38 = vmax.f32 %v9514_v30, 0.0  ;;  %v9015_v1 = vadd.f32 %v8961_v17, %v21429_v52  ;;  %v17031_v6 = vpop.f32.mrb[69].mxu0  ;;  %23004 = vst [vmem:[#allocation90_spill] sm:$0xff] %v21896_v8  ;;  %v9661_v30 = vpack.c.bf16 %v21507_v23, %v21482_v56  ;;  %v9662_v17 = vpack.c.bf16 %v21528_v18, %v21503_v60 }
 0xb2b   : > { %v8964_v33 = vpop.f32.mrb[70].mxu0  ;;  %v21898_v40 = vld [vmem:[#allocation2 + $0x166] sm:$0xff]  ;;  %v9667_v6 = vpack.c.bf16 %v21639_v22, %v21614_v58 }
 0xb2c   : > { %23005 = vst [vmem:[#allocation91_spill] sm:$0xff] %v21898_v40  ;;  %9612 = vst.msk [vmem:[#allocation2 + $0x178] sm:$0xff] %vm542_vm1, %v9563_v38  ;;  %v9461_v27 = vadd.f32 %v23006_v29, %v9015_v1  ;;  %v17032_v62 = vpop.f32.mrb[71].mxu0  ;;  %v9665_v38 = vpack.c.bf16 %v21597_v21, %v21569_v45  ;;  %v9666_v1 = vpack.c.bf16 %v21618_v35, %v21593_v20 }
 0xb2d   : > { %v9668_v33 = vpack.c.bf16 %v21660_v0, %v21635_v47  ;;  %v9670_v29 = vpack.c.bf16 %v21702_v16, %v21677_v36  ;;  %v9671_v62 = vpack.c.bf16 %v21723_v14, %v21698_v49 }
 0xb2e   : > { %v9515_v34 = vadd.f32 %v18524_v24, %v9461_v27  ;;  %17190 = vmatmul.mubr.msk.bf16.vlgmr.msra.gmra.mrb[72].mxu0 %vm542_vm1, %v9659_v28  ;;  %v9663_v24 = vpack.c.bf16 %v21549_v9, %v21524_v59  ;;  %v18460_v27 = vld [vmem:[%s22564_s2 + $0x150] sm:$0xff]   ;;  %v9672_v28 = vpack.c.bf16 %v21744_v46, %v21719_v3 }
 0xb2f   : > { %17193 = vmatprep.mubr.msk.bf16.mxu0 %vm542_vm1, %v9660_v31  ;;  %17234 = vmatpush3.bf16.msra.mxu0 %v21784_v39  ;;  %v9664_v39 = vpack.c.bf16 %v21576_v61, %v21545_v44  ;;  %v9674_v31 = vpack.c.bf16 %v21792_v42, %v21761_v25 }
 0xb30   : > { %v9564_v55 = vmax.f32 %v9515_v34, 0.0  ;;  %17235 = vmatprep.subr.bf16.mxu0 %v18459_v48  ;;  %v9675_v34 = vpack.c.bf16 %v21813_v37, %v21788_v53 }
 0xb32   : > { %9613 = vst.msk [vmem:[#allocation2 + $0x180] sm:$0xff] %vm542_vm1, %v9564_v55  ;;  %v9676_v55 = vpack.c.bf16 %v21834_v32, %v21809_v26 }
 0xb33   : > { %17236 = vmatpush3.bf16.msra.mxu0 %v18459_v48  ;;  %v9673_v48 = vpack.c.bf16 %v21765_v41, %v21740_v10 }
 0xb34   : > { %17281 = vmatprep.subr.bf16.mxu0 %v18460_v27 }
 0xb36   : > { %17194 = vmatmul.mubr.msk.bf16.gmra.mrb[76].mxu0 %vm542_vm1, %v9661_v30  ;;  %v9677_v30 = vpack.c.bf16 %v21855_v11, %v21830_v4 }
 0xb37   : > { %17197 = vmatprep.mubr.msk.bf16.mxu0 %vm542_vm1, %v9662_v17  ;;  %v9678_v17 = vpack.c.bf16 %v21877_v2, %v21851_v57 }
 0xb3e   : > { %17198 = vmatmul.mubr.msk.bf16.gmra.mrb[80].mxu0 %vm542_vm1, %v9663_v24  ;;  %v9657_v24 = vld [vmem:[#allocation2 + $0x158] sm:$0x3] }
 0xb3f   : > { %17201 = vmatprep.mubr.msk.bf16.mxu0 %vm542_vm1, %v9664_v39  ;;  %v10329_v39 = vld [vmem:[#allocation2 + $0xa] sm:$0xff] }
 0xb46   : > { %17202 = vmatmul.mubr.msk.bf16.gmra.mrb[84].mxu0 %vm542_vm1, %v9665_v38  ;;  %v9679_v38 = vpack.c.bf16 %v9657_v24, %v21873_v7  ;;  %v10336_v24 = vld [vmem:[#allocation2 + $0x42] sm:$0xff] }
 0xb47   : > { %17205 = vmatprep.mubr.msk.bf16.mxu0 %vm542_vm1, %v9666_v1  ;;  %v10328_v1 = vld [vmem:[#allocation2 + $0x2] sm:$0xff] }
 0xb4e   : > { %17206 = vmatmul.mubr.msk.bf16.gmra.mrb[88].mxu0 %vm542_vm1, %v9667_v6  ;;  %v10372_v6 = vpack.c.bf16 %v10329_v39, %v10328_v1  ;;  %v10341_v1 = vld [vmem:[#allocation2 + $0x6a] sm:$0xff] }
 0xb4f   : > { %17209 = vmatprep.mubr.msk.bf16.mxu0 %vm542_vm1, %v9668_v33  ;;  %v10331_v33 = vld [vmem:[#allocation2 + $0x1a] sm:$0xff] }
 0xb56   : > { %17210 = vmatmul.mubr.msk.bf16.gmra.mrb[92].mxu0 %vm542_vm1, %v9669_v13  ;;  %v10333_v13 = vld [vmem:[#allocation2 + $0x2a] sm:$0xff] }
 0xb57   : > { %17213 = vmatprep.mubr.msk.bf16.mxu0 %vm542_vm1, %v9670_v29  ;;  %v10330_v29 = vld [vmem:[#allocation2 + $0x12] sm:$0xff] }
 0xb5e   : > { %17214 = vmatmul.mubr.msk.bf16.gmra.mrb[96].mxu0 %vm542_vm1, %v9671_v62  ;;  %v10373_v62 = vpack.c.bf16 %v10331_v33, %v10330_v29 }
 0xb5f   : > { %17217 = vmatprep.mubr.msk.bf16.mxu0 %vm542_vm1, %v9672_v28  ;;  %v10332_v28 = vld [vmem:[#allocation2 + $0x22] sm:$0xff] }
 0xb66   : > { %17218 = vmatmul.mubr.msk.bf16.gmra.mrb[100].mxu0 %vm542_vm1, %v9673_v48  ;;  %v18461_v48 = vld [vmem:[%s22564_s2 + $0x158] sm:$0xff]  }
 0xb67   : > { %17221 = vmatprep.mubr.msk.bf16.mxu0 %vm542_vm1, %v9674_v31  ;;  %v10374_v31 = vpack.c.bf16 %v10333_v13, %v10332_v28  ;;  %v10340_v13 = vld [vmem:[#allocation2 + $0x62] sm:$0xff]  ;;  %v10342_v28 = vld [vmem:[#allocation2 + $0x72] sm:$0xff] }
 0xb68   : > { %v10378_v29 = vpack.c.bf16 %v10341_v1, %v10340_v13  ;;  %v10351_v1 = vld [vmem:[#allocation2 + $0xba] sm:$0xff] }
 0xb6e   : > { %17222 = vmatmul.mubr.msk.bf16.gmra.mrb[104].mxu0 %vm542_vm1, %v9675_v34  ;;  %v10335_v34 = vld [vmem:[#allocation2 + $0x3a] sm:$0xff] }
 0xb6f   : > { %17225 = vmatprep.mubr.msk.bf16.mxu0 %vm542_vm1, %v9676_v55  ;;  %v10337_v55 = vld [vmem:[#allocation2 + $0x4a] sm:$0xff] }
 0xb70   : > { %v10376_v39 = vpack.c.bf16 %v10337_v55, %v10336_v24  ;;  %v10347_v55 = vld [vmem:[#allocation2 + $0x9a] sm:$0xff] }
 0xb76   : > { %17226 = vmatmul.mubr.msk.bf16.gmra.mrb[108].mxu0 %vm542_vm1, %v9677_v30  ;;  %v10334_v30 = vld [vmem:[#allocation2 + $0x32] sm:$0xff] }
 0xb77   : > { %17229 = vmatprep.mubr.msk.bf16.mxu0 %vm542_vm1, %v9678_v17  ;;  %v10375_v17 = vpack.c.bf16 %v10335_v34, %v10334_v30  ;;  %v10349_v30 = vld [vmem:[#allocation2 + $0xaa] sm:$0xff] }
 0xb7e   : > { %17230 = vmatmul.mubr.msk.bf16.gmra.mrb[112].mxu0 %vm542_vm1, %v9679_v38  ;;  %v10339_v38 = vld [vmem:[#allocation2 + $0x5a] sm:$0xff] }
 0xb7f   : > { %17237 = vmatprep.mubr.msk.bf16.mxu0 %vm542_vm1, %v10372_v6  ;;  %v10338_v6 = vld [vmem:[#allocation2 + $0x52] sm:$0xff] }
 0xb80   : > { %v10377_v33 = vpack.c.bf16 %v10339_v38, %v10338_v6  ;;  %v10353_v6 = vld [vmem:[#allocation2 + $0xca] sm:$0xff] }
 0xb86   : > { %17238 = vmatmul.mubr.msk.bf16.vlgmr.msra.gmra.mrb[72].mxu0 %vm542_vm1, %v10373_v62  ;;  %v10345_v62 = vld [vmem:[#allocation2 + $0x8a] sm:$0xff] }
 0xb87   : > { %17241 = vmatprep.mubr.msk.bf16.mxu0 %vm542_vm1, %v10374_v31  ;;  %17282 = vmatpush3.bf16.msra.mxu0 %v18460_v27  ;;  %v10343_v27 = vld [vmem:[#allocation2 + $0x7a] sm:$0xff]  ;;  %v10344_v31 = vld [vmem:[#allocation2 + $0x82] sm:$0xff] }
 0xb88   : > { %17283 = vmatprep.subr.bf16.mxu0 %v18461_v48  ;;  %v10380_v34 = vpack.c.bf16 %v10345_v62, %v10344_v31  ;;  %v18462_v62 = vld [vmem:[%s22564_s2 + $0x160] sm:$0xff]   ;;  %v10354_v31 = vld [vmem:[#allocation2 + $0xd2] sm:$0xff] }
 0xb8b   : > { %17284 = vmatpush3.bf16.msra.mxu0 %v18461_v48  ;;  %v10379_v48 = vpack.c.bf16 %v10343_v27, %v10342_v28  ;;  %v10355_v28 = vld [vmem:[#allocation2 + $0xda] sm:$0xff] }
 0xb8c   : > { %17329 = vmatprep.subr.bf16.mxu0 %v18462_v62 }
 0xb8e   : > { %17242 = vmatmul.mubr.msk.bf16.gmra.mrb[76].mxu0 %vm542_vm1, %v10375_v17  ;;  %v10346_v17 = vld [vmem:[#allocation2 + $0x92] sm:$0xff] }
 0xb8f   : > { %17245 = vmatprep.mubr.msk.bf16.mxu0 %vm542_vm1, %v10376_v39  ;;  %v10381_v24 = vpack.c.bf16 %v10347_v55, %v10346_v17  ;;  %v10348_v39 = vld [vmem:[#allocation2 + $0xa2] sm:$0xff]  ;;  %v10359_v17 = vld [vmem:[#allocation2 + $0xfa] sm:$0xff] }
 0xb90   : > { %v10382_v38 = vpack.c.bf16 %v10349_v30, %v10348_v39  ;;  %v10356_v55 = vld [vmem:[#allocation2 + $0xe2] sm:$0xff]  ;;  %v10358_v39 = vld [vmem:[#allocation2 + $0xf2] sm:$0xff] }
 0xb96   : > { %17246 = vmatmul.mubr.msk.bf16.gmra.mrb[80].mxu0 %vm542_vm1, %v10377_v33  ;;  %v10350_v33 = vld [vmem:[#allocation2 + $0xb2] sm:$0xff] }
 0xb97   : > { %17249 = vmatprep.mubr.msk.bf16.mxu0 %vm542_vm1, %v10378_v29  ;;  %v10383_v13 = vpack.c.bf16 %v10351_v1, %v10350_v33  ;;  %v10352_v29 = vld [vmem:[#allocation2 + $0xc2] sm:$0xff]  ;;  %v10363_v33 = vld [vmem:[#allocation2 + $0x11a] sm:$0xff] }
 0xb98   : > { %v10384_v27 = vpack.c.bf16 %v10353_v6, %v10352_v29  ;;  %v10360_v1 = vld [vmem:[#allocation2 + $0x102] sm:$0xff]  ;;  %v10362_v29 = vld [vmem:[#allocation2 + $0x112] sm:$0xff] }
 0xb9e   : > { %17250 = vmatmul.mubr.msk.bf16.gmra.mrb[84].mxu0 %vm542_vm1, %v10379_v48  ;;  %v10357_v48 = vld [vmem:[#allocation2 + $0xea] sm:$0xff] }
 0xb9f   : > { %17253 = vmatprep.mubr.msk.bf16.mxu0 %vm542_vm1, %v10380_v34  ;;  %v10385_v34 = vpack.c.bf16 %v10355_v28, %v10354_v31  ;;  %v10386_v30 = vpack.c.bf16 %v10357_v48, %v10356_v55  ;;  %v10364_v28 = vld [vmem:[#allocation2 + $0x122] sm:$0xff]  ;;  %v10367_v31 = vld [vmem:[#allocation2 + $0x13a] sm:$0xff]  ;;  %v10366_v55 = vld [vmem:[#allocation2 + $0x132] sm:$0xff] }
 0xba6   : > { %17254 = vmatmul.mubr.msk.bf16.gmra.mrb[88].mxu0 %vm542_vm1, %v10381_v24  ;;  %v10361_v24 = vld [vmem:[#allocation2 + $0x10a] sm:$0xff] }
 0xba7   : > { %17257 = vmatprep.mubr.msk.bf16.mxu0 %vm542_vm1, %v10382_v38  ;;  %v10387_v38 = vpack.c.bf16 %v10359_v17, %v10358_v39  ;;  %v10388_v6 = vpack.c.bf16 %v10361_v24, %v10360_v1  ;;  %v10368_v17 = vld [vmem:[#allocation2 + $0x142] sm:$0xff]  ;;  %v10370_v39 = vld [vmem:[#allocation2 + $0x152] sm:$0xff] }
 0xba8   : > { %v10730_v1 = vld [vmem:[#allocation2 + $0x1e] sm:$0xff] }
 0xbae   : > { %17258 = vmatmul.mubr.msk.bf16.gmra.mrb[92].mxu0 %vm542_vm1, %v10383_v13  ;;  %v10365_v13 = vld [vmem:[#allocation2 + $0x12a] sm:$0xff] }
 0xbaf   : > { %17261 = vmatprep.mubr.msk.bf16.mxu0 %vm542_vm1, %v10384_v27  ;;  %v10389_v27 = vpack.c.bf16 %v10363_v33, %v10362_v29  ;;  %v10390_v48 = vpack.c.bf16 %v10365_v13, %v10364_v28  ;;  %v10729_v33 = vld [vmem:[#allocation2 + $0x16] sm:$0xff]  ;;  %v10731_v29 = vld [vmem:[#allocation2 + $0x26] sm:$0xff] }
 0xbb0   : > { %v10773_v13 = vpack.c.bf16 %v10730_v1, %v10729_v33  ;;  %v18533_v33 = vld [vmem:[#allocation2 + $0x6e] sm:$0xff] }
 0xbb6   : > { %17262 = vmatmul.mubr.msk.bf16.gmra.mrb[96].mxu0 %vm542_vm1, %v10385_v34  ;;  %v10369_v34 = vld [vmem:[#allocation2 + $0x14a] sm:$0xff] }
 0xbb7   : > { %17265 = vmatprep.mubr.msk.bf16.mxu0 %vm542_vm1, %v10386_v30  ;;  %v10391_v30 = vpack.c.bf16 %v10367_v31, %v10366_v55  ;;  %v10392_v24 = vpack.c.bf16 %v10369_v34, %v10368_v17  ;;  %v18526_v31 = vld [vmem:[#allocation2 + $0x36] sm:$0xff]  ;;  %v18527_v34 = vld [vmem:[#allocation2 + $0x3e] sm:$0xff]  ;;  %v18529_v17 = vld [vmem:[#allocation2 + $0x4e] sm:$0xff] }
 0xbb8   : > { %v10775_v55 = vpack.c.bf16 %v18527_v34, %v18526_v31  ;;  %v23009_v31 = vld [vmem:[#allocation53_spill] sm:$0xff]  ;;  %v23010_v34 = vld [vmem:[#allocation56_spill] sm:$0xff] }
 0xbbe   : > { %17266 = vmatmul.mubr.msk.bf16.gmra.mrb[100].mxu0 %vm542_vm1, %v10387_v38  ;;  %v10371_v38 = vld [vmem:[#allocation2 + $0x15a] sm:$0x3] }
 0xbbf   : > { %17269 = vmatprep.mubr.msk.bf16.mxu0 %vm542_vm1, %v10388_v6  ;;  %v10393_v6 = vpack.c.bf16 %v10371_v38, %v10370_v39  ;;  %v18530_v39 = vld [vmem:[#allocation2 + $0x56] sm:$0xff]  ;;  %v18531_v38 = vld [vmem:[#allocation2 + $0x5e] sm:$0xff] }
 0xbc0   : > { %v10777_v1 = vpack.c.bf16 %v18531_v38, %v18530_v39  ;;  %v23013_v39 = vld [vmem:[#allocation61_spill] sm:$0xff]  ;;  %v23014_v38 = vld [vmem:[#allocation7_spill] sm:$0xff] }
 0xbc6   : > { %17270 = vmatmul.mubr.msk.bf16.gmra.mrb[104].mxu0 %vm542_vm1, %v10389_v27  ;;  %v18525_v27 = vld [vmem:[#allocation2 + $0x2e] sm:$0xff] }
 0xbc7   : > { %17273 = vmatprep.mubr.msk.bf16.mxu0 %vm542_vm1, %v10390_v48  ;;  %v10774_v28 = vpack.c.bf16 %v18525_v27, %v10731_v29  ;;  %v18463_v48 = vld [vmem:[%s22564_s2 + $0x168] sm:$0xff]   ;;  %v18534_v29 = vld [vmem:[#allocation2 + $0x76] sm:$0xff] }
 0xbc8   : > { %v10779_v27 = vpack.c.bf16 %v21605_v51, %v18534_v29  ;;  %v23017_v29 = vld [vmem:[#allocation68_spill] sm:$0xff] }
 0xbce   : > { %17274 = vmatmul.mubr.msk.bf16.gmra.mrb[108].mxu0 %vm542_vm1, %v10391_v30  ;;  %v18528_v30 = vld [vmem:[#allocation2 + $0x46] sm:$0xff] }
 0xbcf   : > { %17277 = vmatprep.mubr.msk.bf16.mxu0 %vm542_vm1, %v10392_v24  ;;  %v10776_v24 = vpack.c.bf16 %v18529_v17, %v18528_v30  ;;  %v23011_v30 = vld [vmem:[#allocation57_spill] sm:$0xff]  ;;  %v23012_v17 = vld [vmem:[#allocation60_spill] sm:$0xff] }
 0xbd6   : > { %17278 = vmatmul.mubr.msk.bf16.gmra.mrb[112].mxu0 %vm542_vm1, %v10393_v6  ;;  %v18532_v6 = vld [vmem:[#allocation2 + $0x66] sm:$0xff] }
 0xbd7   : > { %17285 = vmatprep.mubr.msk.bf16.mxu0 %vm542_vm1, %v10773_v13  ;;  %v10778_v13 = vpack.c.bf16 %v18533_v33, %v18532_v6  ;;  %v23015_v6 = vld [vmem:[#allocation64_spill] sm:$0xff]  ;;  %v23016_v33 = vld [vmem:[#allocation65_spill] sm:$0xff] }
 0xbde   : > { %17286 = vmatmul.mubr.msk.bf16.vlgmr.msra.gmra.mrb[72].mxu0 %vm542_vm1, %v10774_v28  ;;  %v23008_v28 = vmov %v21626_v15  ;;  %v23020_v15 = vld [vmem:[#allocation73_spill] sm:$0xff] }
 0xbdf   : > { %17289 = vmatprep.mubr.msk.bf16.mxu0 %vm542_vm1, %v10775_v55  ;;  %17330 = vmatpush3.bf16.msra.mxu0 %v18462_v62  ;;  %v23007_v62 = vld [vmem:[#allocation51_spill] sm:$0xff]  ;;  %v10781_v55 = vpack.c.bf16 %v23010_v34, %v23009_v31 }
 0xbe0   : > { %17331 = vmatprep.subr.bf16.mxu0 %v18463_v48  ;;  %v23028_v34 = vld [vmem:[#allocation83_spill] sm:$0xff] }
 0xbe3   : > { %17332 = vmatpush3.bf16.msra.mxu0 %v18463_v48  ;;  %v10780_v48 = vpack.c.bf16 %v23008_v28, %v23007_v62 }
 0xbe6   : > { %17290 = vmatmul.mubr.msk.bf16.gmra.mrb[76].mxu0 %vm542_vm1, %v10776_v24  ;;  %v10782_v24 = vpack.c.bf16 %v23012_v17, %v23011_v30  ;;  %v23030_v30 = vld [vmem:[#allocation85_spill] sm:$0xff] }
 0xbe7   : > { %17293 = vmatprep.mubr.msk.bf16.mxu0 %vm542_vm1, %v10777_v1  ;;  %v10783_v1 = vpack.c.bf16 %v23014_v38, %v23013_v39  ;;  %v23021_v38 = vld [vmem:[#allocation75_spill] sm:$0xff] }
 0xbee   : > { %17294 = vmatmul.mubr.msk.bf16.gmra.mrb[80].mxu0 %vm542_vm1, %v10778_v13  ;;  %v10784_v13 = vpack.c.bf16 %v23016_v33, %v23015_v6  ;;  %v23024_v33 = vld [vmem:[#allocation79_spill] sm:$0xff]  ;;  %v23026_v6 = vld [vmem:[#allocation82_spill] sm:$0xff] }
 0xbef   : > { %17297 = vmatprep.mubr.msk.bf16.mxu0 %vm542_vm1, %v10779_v27  ;;  %v23018_v27 = vld [vmem:[#allocation69_spill] sm:$0xff] }
 0xbf0   : > { %v10785_v52 = vpack.c.bf16 %v23018_v27, %v23017_v29  ;;  %v23023_v27 = vld [vmem:[#allocation78_spill] sm:$0xff]  ;;  %v23025_v29 = vld [vmem:[#allocation81_spill] sm:$0xff] }
 0xbf1   : > { %v10789_v39 = vpack.c.bf16 %v23026_v6, %v23025_v29  ;;  %v10793_v6 = vpack.c.bf16 %v21896_v8, %v21887_v19  ;;  %v11164_v19 = vld [vmem:[#allocation2 + $0x127] sm:$0xff] }
 0xbf6   : > { %17298 = vmatmul.mubr.msk.bf16.gmra.mrb[84].mxu0 %vm542_vm1, %v10780_v48  ;;  %v18464_v48 = vld [vmem:[%s22564_s2 + $0x170] sm:$0xff]  }
 0xbf7   : > { %17301 = vmatprep.mubr.msk.bf16.mxu0 %vm542_vm1, %v10781_v55  ;;  %17377 = vmatprep.subr.bf16.mxu0 %v18464_v48  ;;  %v23019_v55 = vld [vmem:[#allocation72_spill] sm:$0xff] }
 0xbfe   : > { %17302 = vmatmul.mubr.msk.bf16.gmra.mrb[88].mxu0 %vm542_vm1, %v10782_v24  ;;  %v10786_v24 = vpack.c.bf16 %v23020_v15, %v23019_v55  ;;  %v23029_v55 = vld [vmem:[#allocation84_spill] sm:$0xff] }
 0xbff   : > { %17305 = vmatprep.mubr.msk.bf16.mxu0 %vm542_vm1, %v10783_v1  ;;  %v23022_v1 = vld [vmem:[#allocation76_spill] sm:$0xff] }
 0xc00   : > { %v10787_v17 = vpack.c.bf16 %v23022_v1, %v23021_v38  ;;  %v10791_v1 = vpack.c.bf16 %v23030_v30, %v23029_v55  ;;  %v11134_v55 = vld [vmem:[#allocation2 + $0x37] sm:$0xff] }
 0xc06   : > { %17306 = vmatmul.mubr.msk.bf16.gmra.mrb[92].mxu0 %vm542_vm1, %v10784_v13  ;;  %v10788_v13 = vpack.c.bf16 %v23024_v33, %v23023_v27 }
 0xc07   : > { %17309 = vmatprep.mubr.msk.bf16.mxu0 %vm542_vm1, %v10785_v52  ;;  %v23027_v52 = vld [vmem:[#allocation20_spill] sm:$0xff] }
 0xc08   : > { %v10790_v15 = vpack.c.bf16 %v23028_v34, %v23027_v52  ;;  %v11130_v52 = vld [vmem:[#allocation2 + $0x17] sm:$0xff] }
 0xc0e   : > { %17310 = vmatmul.mubr.msk.bf16.gmra.mrb[96].mxu0 %vm542_vm1, %v10786_v24 }
 0xc0f   : > { %17313 = vmatprep.mubr.msk.bf16.mxu0 %vm542_vm1, %v10787_v17  ;;  %v23031_v17 = vld [vmem:[#allocation87_spill] sm:$0xff] }
 0xc10   : > { %v10792_v24 = vpack.c.bf16 %v21885_v43, %v23031_v17  ;;  %v11132_v43 = vld [vmem:[#allocation2 + $0x27] sm:$0xff] }
 0xc16   : > { %17314 = vmatmul.mubr.msk.bf16.gmra.mrb[100].mxu0 %vm542_vm1, %v10788_v13  ;;  %v11131_v13 = vld [vmem:[#allocation2 + $0x1f] sm:$0xff] }
 0xc17   : > { %17317 = vmatprep.mubr.msk.bf16.mxu0 %vm542_vm1, %v10789_v39  ;;  %v10772_v39 = vld [vmem:[#allocation2 + $0x16e] sm:$0x3]  ;;  %v11174_v30 = vpack.c.bf16 %v11131_v13, %v11130_v52  ;;  %v11138_v13 = vld [vmem:[#allocation2 + $0x57] sm:$0xff] }
 0xc18   : > { %v10794_v34 = vpack.c.bf16 %v10772_v39, %v21898_v40  ;;  %v11137_v52 = vld [vmem:[#allocation2 + $0x4f] sm:$0xff]  ;;  %v11136_v39 = vld [vmem:[#allocation2 + $0x47] sm:$0xff] }
 0xc1e   : > { %17318 = vmatmul.mubr.msk.bf16.gmra.mrb[104].mxu0 %vm542_vm1, %v10790_v15  ;;  %v11133_v15 = vld [vmem:[#allocation2 + $0x2f] sm:$0xff] }
 0xc1f   : > { %17321 = vmatprep.mubr.msk.bf16.mxu0 %vm542_vm1, %v10791_v1  ;;  %v11135_v1 = vld [vmem:[#allocation2 + $0x3f] sm:$0xff]  ;;  %v11175_v17 = vpack.c.bf16 %v11133_v15, %v11132_v43  ;;  %v11141_v43 = vld [vmem:[#allocation2 + $0x6f] sm:$0xff] }
 0xc20   : > { %v11143_v15 = vld [vmem:[#allocation2 + $0x7f] sm:$0xff] }
 0xc26   : > { %17322 = vmatmul.mubr.msk.bf16.gmra.mrb[108].mxu0 %vm542_vm1, %v10792_v24  ;;  %v18465_v24 = vld [vmem:[%s22564_s2 + $0x178] sm:$0xff]  }
 0xc27   : > { %17325 = vmatprep.mubr.msk.bf16.mxu0 %vm542_vm1, %v10793_v6  ;;  %v11176_v6 = vpack.c.bf16 %v11135_v1, %v11134_v55  ;;  %v11140_v55 = vld [vmem:[#allocation2 + $0x67] sm:$0xff] }
 0xc28   : > { %v11179_v1 = vpack.c.bf16 %v11141_v43, %v11140_v55  ;;  %v11150_v55 = vld [vmem:[#allocation2 + $0xb7] sm:$0xff] }
 0xc2e   : > { %17326 = vmatmul.mubr.msk.bf16.gmra.mrb[112].mxu0 %vm542_vm1, %v10794_v34  ;;  %v11139_v34 = vld [vmem:[#allocation2 + $0x5f] sm:$0xff] }
 0xc2f   : > { %17333 = vmatprep.mubr.msk.bf16.mxu0 %vm542_vm1, %v11174_v30  ;;  %v11177_v30 = vpack.c.bf16 %v11137_v52, %v11136_v39  ;;  %v11178_v8 = vpack.c.bf16 %v11139_v34, %v11138_v13  ;;  %v11146_v39 = vld [vmem:[#allocation2 + $0x97] sm:$0xff]  ;;  %v11148_v13 = vld [vmem:[#allocation2 + $0xa7] sm:$0xff] }
 0xc36   : > { %17334 = vmatmul.mubr.msk.bf16.vlgmr.msra.gmra.mrb[72].mxu0 %vm542_vm1, %v11175_v17  ;;  %v11142_v17 = vld [vmem:[#allocation2 + $0x77] sm:$0xff] }
 0xc37   : > { %17337 = vmatprep.mubr.msk.bf16.mxu0 %vm542_vm1, %v11176_v6  ;;  %17378 = vmatpush3.bf16.msra.mxu0 %v18464_v48  ;;  %v11180_v40 = vpack.c.bf16 %v11143_v15, %v11142_v17  ;;  %v11145_v48 = vld [vmem:[#allocation2 + $0x8f] sm:$0xff]  ;;  %v11147_v6 = vld [vmem:[#allocation2 + $0x9f] sm:$0xff]  ;;  %v11152_v17 = vld [vmem:[#allocation2 + $0xc7] sm:$0xff] }
 0xc38   : > { %17379 = vmatprep.subr.bf16.mxu0 %v18465_v24  ;;  %v11182_v34 = vpack.c.bf16 %v11147_v6, %v11146_v39  ;;  %v11157_v39 = vld [vmem:[#allocation2 + $0xef] sm:$0xff] }
 0xc3b   : > { %17380 = vmatpush3.bf16.msra.mxu0 %v18465_v24  ;;  %v11144_v24 = vld [vmem:[#allocation2 + $0x87] sm:$0xff] }
 0xc3c   : > { %v11181_v52 = vpack.c.bf16 %v11145_v48, %v11144_v24  ;;  %v11154_v24 = vld [vmem:[#allocation2 + $0xd7] sm:$0xff] }
 0xc3e   : > { %17338 = vmatmul.mubr.msk.bf16.gmra.mrb[76].mxu0 %vm542_vm1, %v11177_v30  ;;  %v11151_v30 = vld [vmem:[#allocation2 + $0xbf] sm:$0xff] }
 0xc3f   : > { %17341 = vmatprep.mubr.msk.bf16.mxu0 %vm542_vm1, %v11178_v8  ;;  %v11149_v8 = vld [vmem:[#allocation2 + $0xaf] sm:$0xff]  ;;  %v11184_v15 = vpack.c.bf16 %v11151_v30, %v11150_v55 }
 0xc40   : > { %v11183_v43 = vpack.c.bf16 %v11149_v8, %v11148_v13  ;;  %v11156_v8 = vld [vmem:[#allocation2 + $0xe7] sm:$0xff]  ;;  %v11158_v13 = vld [vmem:[#allocation2 + $0xf7] sm:$0xff]  ;;  %v11161_v55 = vld [vmem:[#allocation2 + $0x10f] sm:$0xff] }
 0xc41   : > { %v11187_v30 = vpack.c.bf16 %v11157_v39, %v11156_v8  ;;  %v11166_v8 = vld [vmem:[#allocation2 + $0x137] sm:$0xff] }
 0xc46   : > { %17342 = vmatmul.mubr.msk.bf16.gmra.mrb[80].mxu0 %vm542_vm1, %v11179_v1  ;;  %v11155_v1 = vld [vmem:[#allocation2 + $0xdf] sm:$0xff] }
 0xc47   : > { %17345 = vmatprep.mubr.msk.bf16.mxu0 %vm542_vm1, %v11180_v40  ;;  %v11153_v40 = vld [vmem:[#allocation2 + $0xcf] sm:$0xff]  ;;  %v11186_v6 = vpack.c.bf16 %v11155_v1, %v11154_v24 }
 0xc48   : > { %v11185_v48 = vpack.c.bf16 %v11153_v40, %v11152_v17  ;;  %v11160_v40 = vld [vmem:[#allocation2 + $0x107] sm:$0xff]  ;;  %v11162_v17 = vld [vmem:[#allocation2 + $0x117] sm:$0xff]  ;;  %v11165_v24 = vld [vmem:[#allocation2 + $0x12f] sm:$0xff] }
 0xc49   : > { %v11189_v1 = vpack.c.bf16 %v11161_v55, %v11160_v40  ;;  %v11191_v39 = vpack.c.bf16 %v11165_v24, %v11164_v19  ;;  %v11170_v40 = vld [vmem:[#allocation2 + $0x157] sm:$0xff]  ;;  %v23032_v19 = vpack.c.bf16 %v21467_v12, %v21471_v54  ;;  %v18467_v24 = vld [vmem:[%s22564_s2 + $0x188] sm:$0xff]   ;;  %v23035_v12 = vpack.c.bf16 %v21524_v59, %v21528_v18 }
 0xc4a   : > { %v23036_v54 = vpack.c.bf16 %v21545_v44, %v21549_v9  ;;  %v23041_v18 = vpack.c.bf16 %v21656_v50, %v21660_v0  ;;  %v23042_v59 = vpack.c.bf16 %v21677_v36, %v21681_v63  ;;  %v23043_v9 = vpack.c.bf16 %v21698_v49, %v21702_v16  ;;  %v18468_v44 = vld [vmem:[%s22564_s2 + $0x190] sm:$0xff]   ;;  %v11571_v0 = vld [vmem:[#allocation2 + $0x158] sm:$0xff]  ;;  %v11573_v49 = vld [vmem:[#allocation2 + $0x168] sm:$0xff] }
 0xc4b   : > { %v23051_v63 = vpack.c.bf16 %v21873_v7, %v21877_v2  ;;  %v11574_v36 = vld [vmem:[#allocation2 + $0x170] sm:$0x3]  ;;  %v11933_v16 = vld [vmem:[#allocation2 + $0x34] sm:$0xff]  ;;  %v11938_v2 = vld [vmem:[#allocation2 + $0x5c] sm:$0xff] }
 0xc4e   : > { %17346 = vmatmul.mubr.msk.bf16.gmra.mrb[84].mxu0 %vm542_vm1, %v11181_v52  ;;  %v18466_v52 = vld [vmem:[%s22564_s2 + $0x180] sm:$0xff]  }
 0xc4f   : > { %17349 = vmatprep.mubr.msk.bf16.mxu0 %vm542_vm1, %v11182_v34  ;;  %17425 = vmatprep.subr.bf16.mxu0 %v18466_v52  ;;  %v11159_v34 = vld [vmem:[#allocation2 + $0xff] sm:$0xff] }
 0xc56   : > { %17350 = vmatmul.mubr.msk.bf16.gmra.mrb[88].mxu0 %vm542_vm1, %v11183_v43  ;;  %v11188_v43 = vpack.c.bf16 %v11159_v34, %v11158_v13  ;;  %v11171_v13 = vld [vmem:[#allocation2 + $0x15f] sm:$0xff] }
 0xc57   : > { %17353 = vmatprep.mubr.msk.bf16.mxu0 %vm542_vm1, %v11184_v15  ;;  %v11163_v15 = vld [vmem:[#allocation2 + $0x11f] sm:$0xff] }
 0xc5e   : > { %17354 = vmatmul.mubr.msk.bf16.gmra.mrb[92].mxu0 %vm542_vm1, %v11185_v48  ;;  %v11190_v48 = vpack.c.bf16 %v11163_v15, %v11162_v17  ;;  %v11194_v15 = vpack.c.bf16 %v11171_v13, %v11170_v40  ;;  %v11172_v17 = vld [vmem:[#allocation2 + $0x167] sm:$0xff]  ;;  %v11949_v40 = vld [vmem:[#allocation2 + $0xb4] sm:$0xff] }
 0xc5f   : > { %17357 = vmatprep.mubr.msk.bf16.mxu0 %vm542_vm1, %v11186_v6  ;;  %v11167_v6 = vld [vmem:[#allocation2 + $0x13f] sm:$0xff]  ;;  %v11944_v13 = vld [vmem:[#allocation2 + $0x8c] sm:$0xff] }
 0xc60   : > { %v11192_v34 = vpack.c.bf16 %v11167_v6, %v11166_v8  ;;  %v23033_v6 = vpack.c.bf16 %v21482_v56, %v21486_v5  ;;  %v23037_v56 = vpack.c.bf16 %v21569_v45, %v21576_v61  ;;  %v23038_v5 = vpack.c.bf16 %v21593_v20, %v21597_v21  ;;  %v11945_v8 = vld [vmem:[#allocation2 + $0x94] sm:$0xff] }
 0xc61   : > { %v23044_v45 = vpack.c.bf16 %v21719_v3, %v21723_v14  ;;  %v23045_v61 = vpack.c.bf16 %v21740_v10, %v21744_v46  ;;  %v23046_v21 = vpack.c.bf16 %v21761_v25, %v21765_v41  ;;  %v23047_v20 = vpack.c.bf16 %v21788_v53, %v21792_v42  ;;  %v11932_v3 = vld [vmem:[#allocation2 + $0x2c] sm:$0xff]  ;;  %v11935_v10 = vld [vmem:[#allocation2 + $0x44] sm:$0xff]  ;;  %v11937_v41 = vld [vmem:[#allocation2 + $0x54] sm:$0xff] }
 0xc62   : > { %v11596_v14 = vpack.c.bf16 %v11574_v36, %v11573_v49  ;;  %v11976_v46 = vpack.c.bf16 %v11933_v16, %v11932_v3  ;;  %v11934_v25 = vld [vmem:[#allocation2 + $0x3c] sm:$0xff]  ;;  %v11936_v53 = vld [vmem:[#allocation2 + $0x4c] sm:$0xff]  ;;  %v11967_v36 = vld [vmem:[#allocation2 + $0x144] sm:$0xff] }
 0xc63   : > { %v11977_v42 = vpack.c.bf16 %v11935_v10, %v11934_v25  ;;  %v11969_v16 = vld [vmem:[#allocation2 + $0x154] sm:$0xff]  ;;  %v11966_v49 = vld [vmem:[#allocation2 + $0x13c] sm:$0xff]  ;;  %v11968_v3 = vld [vmem:[#allocation2 + $0x14c] sm:$0xff] }
 0xc64   : > { %v11971_v10 = vld [vmem:[#allocation2 + $0x164] sm:$0xff]  ;;  %v11970_v25 = vld [vmem:[#allocation2 + $0x15c] sm:$0xff] }
 0xc66   : > { %17358 = vmatmul.mubr.msk.bf16.gmra.mrb[96].mxu0 %vm542_vm1, %v11187_v30  ;;  %v11169_v30 = vld [vmem:[#allocation2 + $0x14f] sm:$0xff] }
 0xc67   : > { %17361 = vmatprep.mubr.msk.bf16.mxu0 %vm542_vm1, %v11188_v43  ;;  %v11168_v43 = vld [vmem:[#allocation2 + $0x147] sm:$0xff] }
 0xc68   : > { %v11193_v55 = vpack.c.bf16 %v11169_v30, %v11168_v43  ;;  %v11982_v43 = vpack.c.bf16 %v11945_v8, %v11944_v13  ;;  %v12335_v8 = vld [vmem:[#allocation2 + $0x3d] sm:$0xff]  ;;  %v18471_v13 = vld [vmem:[%s22564_s2 + $0x1a8] sm:$0xff]  }
 0xc6e   : > { %17362 = vmatmul.mubr.msk.bf16.gmra.mrb[100].mxu0 %vm542_vm1, %v11189_v1  ;;  %v11173_v1 = vld [vmem:[#allocation2 + $0x16f] sm:$0x3] }
 0xc6f   : > { %17365 = vmatprep.mubr.msk.bf16.mxu0 %vm542_vm1, %v11190_v48  ;;  %v11195_v48 = vpack.c.bf16 %v11173_v1, %v11172_v17  ;;  %v11948_v17 = vld [vmem:[#allocation2 + $0xac] sm:$0xff] }
 0xc76   : > { %17366 = vmatmul.mubr.msk.bf16.gmra.mrb[104].mxu0 %vm542_vm1, %v11191_v39  ;;  %v23034_v39 = vpack.c.bf16 %v21503_v60, %v21507_v23  ;;  %v23039_v60 = vpack.c.bf16 %v21614_v58, %v21618_v35  ;;  %v23040_v23 = vpack.c.bf16 %v21635_v47, %v21639_v22  ;;  %v23048_v35 = vpack.c.bf16 %v21809_v26, %v21813_v37  ;;  %v11572_v47 = vld [vmem:[#allocation2 + $0x160] sm:$0xff]  ;;  %v18469_v37 = vld [vmem:[%s22564_s2 + $0x198] sm:$0xff]  }
 0xc77   : > { %17369 = vmatprep.mubr.msk.bf16.mxu0 %vm542_vm1, %v11192_v34  ;;  %v23049_v58 = vpack.c.bf16 %v21830_v4, %v21834_v32  ;;  %v23050_v22 = vpack.c.bf16 %v21851_v57, %v21855_v11  ;;  %v11595_v50 = vpack.c.bf16 %v11572_v47, %v11571_v0  ;;  %v11978_v26 = vpack.c.bf16 %v11937_v41, %v11936_v53  ;;  %v11939_v32 = vld [vmem:[#allocation2 + $0x64] sm:$0xff]  ;;  %v11941_v4 = vld [vmem:[#allocation2 + $0x74] sm:$0xff]  ;;  %v11940_v57 = vld [vmem:[#allocation2 + $0x6c] sm:$0xff] }
 0xc78   : > { %v11979_v11 = vpack.c.bf16 %v11939_v32, %v11938_v2  ;;  %v11980_v7 = vpack.c.bf16 %v11941_v4, %v11940_v57  ;;  %v11942_v34 = vld [vmem:[#allocation2 + $0x7c] sm:$0xff]  ;;  %v11973_v41 = vld [vmem:[#allocation2 + $0x174] sm:$0xff]  ;;  %v11972_v53 = vld [vmem:[#allocation2 + $0x16c] sm:$0xff] }
 0xc79   : > { %v11962_v47 = vld [vmem:[#allocation2 + $0x11c] sm:$0xff]  ;;  %v11975_v32 = vld [vmem:[#allocation2 + $0x184] sm:$0x3] }
 0xc7a   : > { %v12334_v4 = vld [vmem:[#allocation2 + $0x35] sm:$0xff] }
 0xc7e   : > { %17370 = vmatmul.mubr.msk.bf16.gmra.mrb[108].mxu0 %vm542_vm1, %v11193_v55  ;;  %v11947_v55 = vld [vmem:[#allocation2 + $0xa4] sm:$0xff] }
 0xc7f   : > { %17373 = vmatprep.mubr.msk.bf16.mxu0 %vm542_vm1, %v11194_v15  ;;  %v11946_v15 = vld [vmem:[#allocation2 + $0x9c] sm:$0xff] }
 0xc80   : > { %v11983_v1 = vpack.c.bf16 %v11947_v55, %v11946_v15  ;;  %v12340_v55 = vld [vmem:[#allocation2 + $0x65] sm:$0xff]  ;;  %v12339_v15 = vld [vmem:[#allocation2 + $0x5d] sm:$0xff] }
 0xc86   : > { %17374 = vmatmul.mubr.msk.bf16.gmra.mrb[112].mxu0 %vm542_vm1, %v11195_v48  ;;  %v11984_v48 = vpack.c.bf16 %v11949_v40, %v11948_v17  ;;  %v12342_v40 = vld [vmem:[#allocation2 + $0x75] sm:$0xff]  ;;  %v12341_v17 = vld [vmem:[#allocation2 + $0x6d] sm:$0xff] }
 0xc87   : > { %17381 = vmatprep.mubr.msk.bf16.mxu0 %vm542_vm1, %v23032_v19  ;;  %v11951_v19 = vld [vmem:[#allocation2 + $0xc4] sm:$0xff] }
 0xc8e   : > { %17382 = vmatmul.mubr.msk.bf16.vlgmr.msra.gmra.mrb[72].mxu0 %vm542_vm1, %v23033_v6  ;;  %v11950_v6 = vld [vmem:[#allocation2 + $0xbc] sm:$0xff] }
 0xc8f   : > { %17385 = vmatprep.mubr.msk.bf16.mxu0 %vm542_vm1, %v23034_v39  ;;  %17426 = vmatpush3.bf16.msra.mxu0 %v18466_v52  ;;  %v11943_v52 = vld [vmem:[#allocation2 + $0x84] sm:$0xff]  ;;  %v11985_v39 = vpack.c.bf16 %v11951_v19, %v11950_v6 }
 0xc90   : > { %17427 = vmatprep.subr.bf16.mxu0 %v18467_v24  ;;  %v11981_v30 = vpack.c.bf16 %v11943_v52, %v11942_v34  ;;  %v12338_v52 = vld [vmem:[#allocation2 + $0x55] sm:$0xff]  ;;  %v12344_v19 = vld [vmem:[#allocation2 + $0x85] sm:$0xff]  ;;  %v12343_v6 = vld [vmem:[#allocation2 + $0x7d] sm:$0xff] }
 0xc93   : > { %17428 = vmatpush3.bf16.msra.mxu0 %v18467_v24  ;;  %v11953_v24 = vld [vmem:[#allocation2 + $0xd4] sm:$0xff] }
 0xc94   : > { %17473 = vmatprep.subr.bf16.mxu0 %v18468_v44 }
 0xc96   : > { %17386 = vmatmul.mubr.msk.bf16.gmra.mrb[76].mxu0 %vm542_vm1, %v23035_v12  ;;  %v11952_v12 = vld [vmem:[#allocation2 + $0xcc] sm:$0xff] }
 0xc97   : > { %17389 = vmatprep.mubr.msk.bf16.mxu0 %vm542_vm1, %v23036_v54  ;;  %v11986_v54 = vpack.c.bf16 %v11953_v24, %v11952_v12  ;;  %v12346_v24 = vld [vmem:[#allocation2 + $0x95] sm:$0xff]  ;;  %v12345_v12 = vld [vmem:[#allocation2 + $0x8d] sm:$0xff] }
 0xc9e   : > { %17390 = vmatmul.mubr.msk.bf16.gmra.mrb[80].mxu0 %vm542_vm1, %v23037_v56  ;;  %v11955_v56 = vld [vmem:[#allocation2 + $0xe4] sm:$0xff] }
 0xc9f   : > { %17393 = vmatprep.mubr.msk.bf16.mxu0 %vm542_vm1, %v23038_v5  ;;  %v11957_v5 = vld [vmem:[#allocation2 + $0xf4] sm:$0xff] }
 0xca6   : > { %17394 = vmatmul.mubr.msk.bf16.gmra.mrb[84].mxu0 %vm542_vm1, %v23039_v60  ;;  %v11954_v60 = vld [vmem:[#allocation2 + $0xdc] sm:$0xff] }
 0xca7   : > { %17397 = vmatprep.mubr.msk.bf16.mxu0 %vm542_vm1, %v23040_v23  ;;  %v11987_v23 = vpack.c.bf16 %v11955_v56, %v11954_v60  ;;  %v12348_v56 = vld [vmem:[#allocation2 + $0xa5] sm:$0xff]  ;;  %v12347_v60 = vld [vmem:[#allocation2 + $0x9d] sm:$0xff] }
 0xcae   : > { %17398 = vmatmul.mubr.msk.bf16.gmra.mrb[88].mxu0 %vm542_vm1, %v23041_v18  ;;  %v11956_v18 = vld [vmem:[#allocation2 + $0xec] sm:$0xff] }
 0xcaf   : > { %17401 = vmatprep.mubr.msk.bf16.mxu0 %vm542_vm1, %v23042_v59  ;;  %v11988_v59 = vpack.c.bf16 %v11957_v5, %v11956_v18  ;;  %v12350_v5 = vld [vmem:[#allocation2 + $0xb5] sm:$0xff]  ;;  %v12349_v18 = vld [vmem:[#allocation2 + $0xad] sm:$0xff] }
 0xcb6   : > { %17402 = vmatmul.mubr.msk.bf16.gmra.mrb[92].mxu0 %vm542_vm1, %v23043_v9  ;;  %v18470_v9 = vld [vmem:[%s22564_s2 + $0x1a0] sm:$0xff]  }
 0xcb7   : > { %17405 = vmatprep.mubr.msk.bf16.mxu0 %vm542_vm1, %v23044_v45  ;;  %v11961_v45 = vld [vmem:[#allocation2 + $0x114] sm:$0xff] }
 0xcbe   : > { %17406 = vmatmul.mubr.msk.bf16.gmra.mrb[96].mxu0 %vm542_vm1, %v23045_v61  ;;  %v11958_v61 = vld [vmem:[#allocation2 + $0xfc] sm:$0xff] }
 0xcbf   : > { %17409 = vmatprep.mubr.msk.bf16.mxu0 %vm542_vm1, %v23046_v21 }
 0xcc6   : > { %17410 = vmatmul.mubr.msk.bf16.gmra.mrb[100].mxu0 %vm542_vm1, %v23047_v20  ;;  %v11960_v20 = vld [vmem:[#allocation2 + $0x10c] sm:$0xff] }
 0xcc7   : > { %17413 = vmatprep.mubr.msk.bf16.mxu0 %vm542_vm1, %v23048_v35  ;;  %v11990_v35 = vpack.c.bf16 %v11961_v45, %v11960_v20  ;;  %v12351_v45 = vld [vmem:[#allocation2 + $0xbd] sm:$0xff] }
 0xcce   : > { %17414 = vmatmul.mubr.msk.bf16.gmra.mrb[104].mxu0 %vm542_vm1, %v23049_v58  ;;  %v11963_v58 = vld [vmem:[#allocation2 + $0x124] sm:$0xff] }
 0xccf   : > { %17417 = vmatprep.mubr.msk.bf16.mxu0 %vm542_vm1, %v23050_v22  ;;  %v11965_v22 = vld [vmem:[#allocation2 + $0x134] sm:$0xff]  ;;  %v11991_v0 = vpack.c.bf16 %v11963_v58, %v11962_v47 }
 0xcd0   : > { %v12358_v58 = vld [vmem:[#allocation2 + $0xf5] sm:$0xff] }
 0xcd6   : > { %17418 = vmatmul.mubr.msk.bf16.gmra.mrb[108].mxu0 %vm542_vm1, %v23051_v63 }
 0xcd7   : > { %17421 = vmatprep.mubr.msk.bf16.mxu0 %vm542_vm1, %v11595_v50  ;;  %v11964_v50 = vld [vmem:[#allocation2 + $0x12c] sm:$0xff] }
 0xcd8   : > { %v11992_v63 = vpack.c.bf16 %v11965_v22, %v11964_v50  ;;  %v12355_v22 = vld [vmem:[#allocation2 + $0xdd] sm:$0xff] }
 0xcde   : > { %17422 = vmatmul.mubr.msk.bf16.gmra.mrb[112].mxu0 %vm542_vm1, %v11596_v14  ;;  %v11993_v14 = vpack.c.bf16 %v11967_v36, %v11966_v49  ;;  %v12362_v36 = vld [vmem:[#allocation2 + $0x115] sm:$0xff] }
 0xcdf   : > { %17429 = vmatprep.mubr.msk.bf16.mxu0 %vm542_vm1, %v11976_v46  ;;  %v11994_v46 = vpack.c.bf16 %v11969_v16, %v11968_v3  ;;  %v12359_v16 = vld [vmem:[#allocation2 + $0xfd] sm:$0xff] }
 0xce6   : > { %17430 = vmatmul.mubr.msk.bf16.vlgmr.msra.gmra.mrb[72].mxu0 %vm542_vm1, %v11977_v42  ;;  %v11995_v42 = vpack.c.bf16 %v11971_v10, %v11970_v25  ;;  %v12366_v10 = vld [vmem:[#allocation2 + $0x135] sm:$0xff] }
 0xce7   : > { %17433 = vmatprep.mubr.msk.bf16.mxu0 %vm542_vm1, %v11978_v26  ;;  %17474 = vmatpush3.bf16.msra.mxu0 %v18468_v44  ;;  %v11959_v44 = vld [vmem:[#allocation2 + $0x104] sm:$0xff]  ;;  %v11974_v26 = vld [vmem:[#allocation2 + $0x17c] sm:$0xff] }
 0xce8   : > { %17475 = vmatprep.subr.bf16.mxu0 %v18469_v37  ;;  %v11989_v21 = vpack.c.bf16 %v11959_v44, %v11958_v61  ;;  %v11997_v2 = vpack.c.bf16 %v11975_v32, %v11974_v26  ;;  %v12354_v44 = vld [vmem:[#allocation2 + $0xd5] sm:$0xff]  ;;  %v12367_v32 = vld [vmem:[#allocation2 + $0x13d] sm:$0xff] }
 0xce9   : > { %v12370_v26 = vld [vmem:[#allocation2 + $0x155] sm:$0xff] }
 0xceb   : > { %17476 = vmatpush3.bf16.msra.mxu0 %v18469_v37  ;;  %v11996_v37 = vpack.c.bf16 %v11973_v41, %v11972_v53  ;;  %v12363_v41 = vld [vmem:[#allocation2 + $0x11d] sm:$0xff] }
 0xcec   : > { %17521 = vmatprep.subr.bf16.mxu0 %v18470_v9 }
 0xcee   : > { %17434 = vmatmul.mubr.msk.bf16.gmra.mrb[76].mxu0 %vm542_vm1, %v11979_v11  ;;  %v12333_v11 = vld [vmem:[#allocation2 + $0x2d] sm:$0xff] }
 0xcef   : > { %17437 = vmatprep.mubr.msk.bf16.mxu0 %vm542_vm1, %v11980_v7  ;;  %v12377_v57 = vpack.c.bf16 %v12334_v4, %v12333_v11  ;;  %v12336_v7 = vld [vmem:[#allocation2 + $0x45] sm:$0xff] }
 0xcf0   : > { %v12378_v34 = vpack.c.bf16 %v12336_v7, %v12335_v8  ;;  %v12374_v7 = vld [vmem:[#allocation2 + $0x175] sm:$0xff] }
 0xcf6   : > { %17438 = vmatmul.mubr.msk.bf16.gmra.mrb[80].mxu0 %vm542_vm1, %v11981_v30  ;;  %v12337_v30 = vld [vmem:[#allocation2 + $0x4d] sm:$0xff] }
 0xcf7   : > { %17441 = vmatprep.mubr.msk.bf16.mxu0 %vm542_vm1, %v11982_v43  ;;  %v12379_v43 = vpack.c.bf16 %v12338_v52, %v12337_v30  ;;  %v12371_v52 = vld [vmem:[#allocation2 + $0x15d] sm:$0xff] }
 0xcfe   : > { %17442 = vmatmul.mubr.msk.bf16.gmra.mrb[84].mxu0 %vm542_vm1, %v11983_v1  ;;  %v12380_v1 = vpack.c.bf16 %v12340_v55, %v12339_v15  ;;  %v23053_v15 = vld [vmem:[#allocation41_spill] sm:$0xff] }
 0xcff   : > { %17445 = vmatprep.mubr.msk.bf16.mxu0 %vm542_vm1, %v11984_v48  ;;  %v12381_v48 = vpack.c.bf16 %v12342_v40, %v12341_v17  ;;  %v23052_v40 = vld [vmem:[#allocation42_spill] sm:$0xff]  ;;  %v23055_v17 = vld [vmem:[#allocation44_spill] sm:$0xff] }
 0xd06   : > { %17446 = vmatmul.mubr.msk.bf16.gmra.mrb[88].mxu0 %vm542_vm1, %v11985_v39  ;;  %v12382_v39 = vpack.c.bf16 %v12344_v19, %v12343_v6  ;;  %v23059_v6 = vld [vmem:[#allocation45_spill] sm:$0xff] }
 0xd07   : > { %17449 = vmatprep.mubr.msk.bf16.mxu0 %vm542_vm1, %v11986_v54  ;;  %v12383_v54 = vpack.c.bf16 %v12346_v24, %v12345_v12  ;;  %v23058_v24 = vld [vmem:[#allocation46_spill] sm:$0xff]  ;;  %v23061_v12 = vld [vmem:[#allocation48_spill] sm:$0xff] }
 0xd0e   : > { %17450 = vmatmul.mubr.msk.bf16.gmra.mrb[92].mxu0 %vm542_vm1, %v11987_v23  ;;  %v12384_v23 = vpack.c.bf16 %v12348_v56, %v12347_v60  ;;  %v23065_v60 = vld [vmem:[#allocation49_spill] sm:$0xff] }
 0xd0f   : > { %17453 = vmatprep.mubr.msk.bf16.mxu0 %vm542_vm1, %v11988_v59  ;;  %v12385_v59 = vpack.c.bf16 %v12350_v5, %v12349_v18  ;;  %v23064_v5 = vld [vmem:[#allocation50_spill] sm:$0xff]  ;;  %v23067_v18 = vpack.c.bf16 %v23007_v62, %v21605_v51  ;;  %v23078_v62 = vld [vmem:[#allocation68_spill] sm:$0xff] }
 0xd16   : > { %17454 = vmatmul.mubr.msk.bf16.gmra.mrb[96].mxu0 %vm542_vm1, %v11989_v21  ;;  %v12353_v21 = vld [vmem:[#allocation2 + $0xcd] sm:$0xff] }
 0xd17   : > { %17457 = vmatprep.mubr.msk.bf16.mxu0 %vm542_vm1, %v11990_v35  ;;  %v12387_v20 = vpack.c.bf16 %v12354_v44, %v12353_v21  ;;  %v12356_v35 = vld [vmem:[#allocation2 + $0xe5] sm:$0xff]  ;;  %v23070_v44 = vld [vmem:[#allocation56_spill] sm:$0xff] }
 0xd18   : > { %v12388_v47 = vpack.c.bf16 %v12356_v35, %v12355_v22  ;;  %v23073_v21 = vld [vmem:[#allocation60_spill] sm:$0xff]  ;;  %v23079_v22 = vld [vmem:[#allocation65_spill] sm:$0xff] }
 0xd19   : > { %v23075_v35 = vld [vmem:[#allocation64_spill] sm:$0xff] }
 0xd1e   : > { %17458 = vmatmul.mubr.msk.bf16.gmra.mrb[100].mxu0 %vm542_vm1, %v11991_v0  ;;  %v12357_v0 = vld [vmem:[#allocation2 + $0xed] sm:$0xff] }
 0xd1f   : > { %17461 = vmatprep.mubr.msk.bf16.mxu0 %vm542_vm1, %v11992_v63  ;;  %v12389_v50 = vpack.c.bf16 %v12358_v58, %v12357_v0  ;;  %v12360_v63 = vld [vmem:[#allocation2 + $0x105] sm:$0xff] }
 0xd20   : > { %v12390_v49 = vpack.c.bf16 %v12360_v63, %v12359_v16  ;;  %v23076_v58 = vld [vmem:[#allocation7_spill] sm:$0xff] }
 0xd21   : > { %v23077_v51 = vpack.c.bf16 %v23075_v35, %v23076_v58 }
 0xd26   : > { %17462 = vmatmul.mubr.msk.bf16.gmra.mrb[104].mxu0 %vm542_vm1, %v11993_v14  ;;  %v12361_v14 = vld [vmem:[#allocation2 + $0x10d] sm:$0xff] }
 0xd27   : > { %17465 = vmatprep.mubr.msk.bf16.mxu0 %vm542_vm1, %v11994_v46  ;;  %v12391_v3 = vpack.c.bf16 %v12362_v36, %v12361_v14  ;;  %v12364_v46 = vld [vmem:[#allocation2 + $0x125] sm:$0xff]  ;;  %v23086_v36 = vld [vmem:[#allocation76_spill] sm:$0xff] }
 0xd28   : > { %v12392_v25 = vpack.c.bf16 %v12364_v46, %v12363_v41  ;;  %v23087_v16 = vpack.c.bf16 %v23023_v27, %v23086_v36  ;;  %v23089_v14 = vld [vmem:[#allocation20_spill] sm:$0xff]  ;;  %v23093_v41 = vld [vmem:[#allocation83_spill] sm:$0xff] }
 0xd2e   : > { %17466 = vmatmul.mubr.msk.bf16.gmra.mrb[108].mxu0 %vm542_vm1, %v11995_v42  ;;  %v12365_v42 = vld [vmem:[#allocation2 + $0x12d] sm:$0xff] }
 0xd2f   : > { %17469 = vmatprep.mubr.msk.bf16.mxu0 %vm542_vm1, %v11996_v37  ;;  %v12393_v53 = vpack.c.bf16 %v12366_v10, %v12365_v42  ;;  %v12368_v37 = vld [vmem:[#allocation2 + $0x145] sm:$0xff]  ;;  %v23092_v10 = vld [vmem:[#allocation84_spill] sm:$0xff]  ;;  %v23096_v42 = vld [vmem:[#allocation85_spill] sm:$0xff] }
 0xd30   : > { %v12394_v4 = vpack.c.bf16 %v12368_v37, %v12367_v32  ;;  %v23099_v37 = vld [vmem:[#allocation88_spill] sm:$0xff] }
 0xd36   : > { %17470 = vmatmul.mubr.msk.bf16.gmra.mrb[112].mxu0 %vm542_vm1, %v11997_v2  ;;  %v12369_v2 = vld [vmem:[#allocation2 + $0x14d] sm:$0xff] }
 0xd37   : > { %17477 = vmatprep.mubr.msk.bf16.mxu0 %vm542_vm1, %v12377_v57  ;;  %v12395_v11 = vpack.c.bf16 %v12370_v26, %v12369_v2  ;;  %v12372_v57 = vld [vmem:[#allocation2 + $0x165] sm:$0xff]  ;;  %v12774_v26 = vld [vmem:[#allocation2 + $0x16e] sm:$0xff] }
 0xd38   : > { %v12396_v8 = vpack.c.bf16 %v12372_v57, %v12371_v52  ;;  %v23102_v2 = vld [vmem:[#allocation90_spill] sm:$0xff] }
 0xd39   : > { %v12776_v57 = vld [vmem:[#allocation2 + $0x17e] sm:$0xff] }
 0xd3e   : > { %17478 = vmatmul.mubr.msk.bf16.vlgmr.msra.gmra.mrb[72].mxu0 %vm542_vm1, %v12378_v34  ;;  %v12373_v34 = vld [vmem:[#allocation2 + $0x16d] sm:$0xff] }
 0xd3f   : > { %17481 = vmatprep.mubr.msk.bf16.mxu0 %vm542_vm1, %v12379_v43  ;;  %17522 = vmatpush3.bf16.msra.mxu0 %v18470_v9  ;;  %v12352_v9 = vld [vmem:[#allocation2 + $0xc5] sm:$0xff]  ;;  %v12397_v30 = vpack.c.bf16 %v12374_v7, %v12373_v34  ;;  %v22316_v34 = vld [vmem:[%s22565_s3 + $0x3] ss:$0 sm:$0xff] }
 0xd40   : > { %17523 = vmatprep.subr.bf16.mxu0 %v18471_v13  ;;  %v12386_v61 = vpack.c.bf16 %v12352_v9, %v12351_v45  ;;  %v12376_v43 = vld [vmem:[#allocation2 + $0x185] sm:$0x3]  ;;  %v23069_v9 = vld [vmem:[#allocation57_spill] sm:$0xff] }
 0xd41   : > { %v23071_v45 = vpack.c.bf16 %v23069_v9, %v23070_v44  ;;  %v12777_v7 = vld [vmem:[#allocation2 + $0x186] sm:$0x3] }
 0xd42   : > { %v12799_v52 = vpack.c.bf16 %v12777_v7, %v12776_v57 }
 0xd43   : > { %17524 = vmatpush3.bf16.msra.mxu0 %v18471_v13  ;;  %v12375_v13 = vld [vmem:[#allocation2 + $0x17d] sm:$0xff] }
 0xd44   : > { %v12398_v55 = vpack.c.bf16 %v12376_v43, %v12375_v13 }
 0xd46   : > { %17482 = vmatmul.mubr.msk.bf16.gmra.mrb[76].mxu0 %vm542_vm1, %v12380_v1  ;;  %v23054_v1 = vpack.c.bf16 %v23052_v40, %v23053_v15 }
 0xd47   : > { %17485 = vmatprep.mubr.msk.bf16.mxu0 %vm542_vm1, %v12381_v48  ;;  %v23056_v48 = vld [vmem:[#allocation43_spill] sm:$0xff] }
 0xd48   : > { %v23057_v19 = vpack.c.bf16 %v23055_v17, %v23056_v48 }
 0xd4e   : > { %17486 = vmatmul.mubr.msk.bf16.gmra.mrb[80].mxu0 %vm542_vm1, %v12382_v39  ;;  %v23060_v39 = vpack.c.bf16 %v23058_v24, %v23059_v6 }
 0xd4f   : > { %17489 = vmatprep.mubr.msk.bf16.mxu0 %vm542_vm1, %v12383_v54  ;;  %v23062_v54 = vld [vmem:[#allocation47_spill] sm:$0xff] }
 0xd50   : > { %v23063_v56 = vpack.c.bf16 %v23061_v12, %v23062_v54 }
 0xd56   : > { %17490 = vmatmul.mubr.msk.bf16.gmra.mrb[84].mxu0 %vm542_vm1, %v12384_v23  ;;  %v23066_v23 = vpack.c.bf16 %v23064_v5, %v23065_v60 }
 0xd57   : > { %17493 = vmatprep.mubr.msk.bf16.mxu0 %vm542_vm1, %v12385_v59  ;;  %v23068_v59 = vpack.c.bf16 %v23009_v31, %v23008_v28  ;;  %v23080_v28 = vpack.c.bf16 %v23078_v62, %v23079_v22  ;;  %v23081_v31 = vld [vmem:[#allocation72_spill] sm:$0xff] }
 0xd5e   : > { %17494 = vmatmul.mubr.msk.bf16.gmra.mrb[88].mxu0 %vm542_vm1, %v12386_v61  ;;  %v23072_v61 = vld [vmem:[#allocation61_spill] sm:$0xff] }
 0xd5f   : > { %17497 = vmatprep.mubr.msk.bf16.mxu0 %vm542_vm1, %v12387_v20  ;;  %v23074_v20 = vpack.c.bf16 %v23072_v61, %v23073_v21 }
 0xd66   : > { %17498 = vmatmul.mubr.msk.bf16.gmra.mrb[92].mxu0 %vm542_vm1, %v12388_v47  ;;  %v23082_v47 = vld [vmem:[#allocation69_spill] sm:$0xff] }
 0xd67   : > { %17501 = vmatprep.mubr.msk.bf16.mxu0 %vm542_vm1, %v12389_v50  ;;  %v23083_v0 = vpack.c.bf16 %v23081_v31, %v23082_v47  ;;  %v23084_v50 = vld [vmem:[#allocation73_spill] sm:$0xff] }
 0xd68   : > { %v23085_v63 = vpack.c.bf16 %v23021_v38, %v23084_v50  ;;  %v23094_v38 = vpack.c.bf16 %v23092_v10, %v23093_v41 }
 0xd6e   : > { %17502 = vmatmul.mubr.msk.bf16.gmra.mrb[96].mxu0 %vm542_vm1, %v12390_v49  ;;  %v23088_v49 = vpack.c.bf16 %v23025_v29, %v23024_v33  ;;  %v12775_v29 = vld [vmem:[#allocation2 + $0x176] sm:$0xff] }
 0xd6f   : > { %17505 = vmatprep.mubr.msk.bf16.mxu0 %vm542_vm1, %v12391_v3  ;;  %v23090_v3 = vld [vmem:[#allocation82_spill] sm:$0xff]  ;;  %v12798_v32 = vpack.c.bf16 %v12775_v29, %v12774_v26 }
 0xd70   : > { %v23091_v46 = vpack.c.bf16 %v23089_v14, %v23090_v3 }
 0xd76   : > { %17506 = vmatmul.mubr.msk.bf16.gmra.mrb[100].mxu0 %vm542_vm1, %v12392_v25  ;;  %v23095_v25 = vld [vmem:[#allocation87_spill] sm:$0xff] }
 0xd77   : > { %17509 = vmatprep.mubr.msk.bf16.mxu0 %vm542_vm1, %v12393_v53  ;;  %v23097_v27 = vpack.c.bf16 %v23095_v25, %v23096_v42  ;;  %v23098_v53 = vld [vmem:[#allocation89_spill] sm:$0xff] }
 0xd78   : > { %v23100_v33 = vpack.c.bf16 %v23098_v53, %v23099_v37 }
 0xd7e   : > { %17510 = vmatmul.mubr.msk.bf16.gmra.mrb[104].mxu0 %vm542_vm1, %v12394_v4  ;;  %v23101_v4 = vld [vmem:[#allocation91_spill] sm:$0xff] }
 0xd7f   : > { %17513 = vmatprep.mubr.msk.bf16.mxu0 %vm542_vm1, %v12395_v11  ;;  %v23103_v11 = vpack.c.bf16 %v23101_v4, %v23102_v2 }
 0xd86   : > { %17514 = vmatmul.mubr.msk.bf16.gmra.mrb[108].mxu0 %vm542_vm1, %v12396_v8  ;;  %v18474_v8 = vld [vmem:[%s22566_s4 + $0x4] ss:$12 sps:$4 sm:$0xff]  }
 0xd87   : > { %17517 = vmatprep.mubr.msk.bf16.mxu0 %vm542_vm1, %v12397_v30  ;;  %13464 = vmatprep.mubr.bf16.mxu1 %v18474_v8 }
 0xd8e   : > { %17518 = vmatmul.mubr.msk.bf16.gmra.mrb[112].mxu0 %vm542_vm1, %v12398_v55 }
 0xd8f   : > { %17525 = vmatprep.mubr.msk.bf16.mxu0 %vm542_vm1, %v23054_v1 }
 0xd96   : > { %17526 = vmatmul.mubr.msk.bf16.vlgmr.msra.gmra.mrb[72].mxu0 %vm542_vm1, %v23057_v19 }
 0xd97   : > { %17529 = vmatprep.mubr.msk.bf16.mxu0 %vm542_vm1, %v23060_v39 }
 0xd9e   : > { %17530 = vmatmul.mubr.msk.bf16.gmra.mrb[76].mxu0 %vm542_vm1, %v23063_v56 }
 0xd9f   : > { %17533 = vmatprep.mubr.msk.bf16.mxu0 %vm542_vm1, %v23066_v23 }
 0xda6   : > { %17534 = vmatmul.mubr.msk.bf16.gmra.mrb[80].mxu0 %vm542_vm1, %v23067_v18 }
 0xda7   : > { %17537 = vmatprep.mubr.msk.bf16.mxu0 %vm542_vm1, %v23068_v59 }
 0xdae   : > { %17538 = vmatmul.mubr.msk.bf16.gmra.mrb[84].mxu0 %vm542_vm1, %v23071_v45 }
 0xdaf   : > { %17541 = vmatprep.mubr.msk.bf16.mxu0 %vm542_vm1, %v23074_v20 }
 0xdb6   : > { %17542 = vmatmul.mubr.msk.bf16.gmra.mrb[88].mxu0 %vm542_vm1, %v23077_v51 }
 0xdb7   : > { %17545 = vmatprep.mubr.msk.bf16.mxu0 %vm542_vm1, %v23080_v28 }
 0xdbe   : > { %17546 = vmatmul.mubr.msk.bf16.gmra.mrb[92].mxu0 %vm542_vm1, %v23083_v0 }
 0xdbf   : > { %17549 = vmatprep.mubr.msk.bf16.mxu0 %vm542_vm1, %v23085_v63 }
 0xdc6   : > { %17550 = vmatmul.mubr.msk.bf16.gmra.mrb[96].mxu0 %vm542_vm1, %v23087_v16 }
 0xdc7   : > { %17553 = vmatprep.mubr.msk.bf16.mxu0 %vm542_vm1, %v23088_v49 }
 0xdce   : > { %17554 = vmatmul.mubr.msk.bf16.gmra.mrb[100].mxu0 %vm542_vm1, %v23091_v46 }
 0xdcf   : > { %17557 = vmatprep.mubr.msk.bf16.mxu0 %vm542_vm1, %v23094_v38 }
 0xdd6   : > { %17558 = vmatmul.mubr.msk.bf16.gmra.mrb[104].mxu0 %vm542_vm1, %v23097_v27 }
 0xdd7   : > { %17561 = vmatprep.mubr.msk.bf16.mxu0 %vm542_vm1, %v23100_v33 }
 0xdde   : > { %17562 = vmatmul.mubr.msk.bf16.gmra.mrb[108].mxu0 %vm542_vm1, %v23103_v11 }
 0xddf   : > { %17565 = vmatprep.mubr.msk.bf16.mxu0 %vm542_vm1, %v12798_v32 }
 0xde6   : > { %17566 = vmatmul.mubr.msk.bf16.gmra.mrb[112].mxu0 %vm542_vm1, %v12799_v52 }
 0xe69   : > { %v17527_v30 = vpop.f32.mrb[72].mxu0 }
 0xe6a   : > { %v13142_v13 = vadd.f32 %v17527_v30, %v22316_v34  ;;  %v12916_v43 = vpop.f32.mrb[73].mxu0 }
 0xe6b   : > { %v13140_v55 = vadd.f32 %v22316_v34, %v12916_v43  ;;  %v17528_v40 = vpop.f32.mrb[74].mxu0 }
 0xe6c   : > { %v13186_v15 = vmax.f32 %v13142_v13, 0.0  ;;  %v13143_v1 = vadd.f32 %v17528_v40, %v22316_v34  ;;  %v12919_v17 = vpop.f32.mrb[75].mxu0 }
 0xe6d   : > { %v13184_v48 = vmax.f32 %v13140_v55, 0.0  ;;  %v13141_v19 = vadd.f32 %v22316_v34, %v12919_v17 }
 0xe6e   : > { %13230 = vst.msk [vmem:[#allocation3 + $0x10] sm:$0xff] %vm542_vm1, %v13186_v15  ;;  %v13187_v24 = vmax.f32 %v13143_v1, 0.0 }
 0xe6f   : > { %13228 = vst.msk [vmem:[#allocation3] sm:$0xff] %vm542_vm1, %v13184_v48  ;;  %v13185_v6 = vmax.f32 %v13141_v19, 0.0 }
 0xe70   : > { %13231 = vst.msk [vmem:[#allocation3 + $0x18] sm:$0xff] %vm542_vm1, %v13187_v24 }
 0xe71   : > { %13229 = vst.msk [vmem:[#allocation3 + $0x8] sm:$0xff] %vm542_vm1, %v13185_v6  ;;  %v17531_v39 = vpop.f32.mrb[76].mxu0 }
 0xe72   : > { %v13146_v12 = vadd.f32 %v17531_v39, %v22316_v34  ;;  %v12932_v54 = vpop.f32.mrb[77].mxu0 }
 0xe73   : > { %v13144_v56 = vadd.f32 %v22316_v34, %v12932_v54  ;;  %v17532_v5 = vpop.f32.mrb[78].mxu0 }
 0xe74   : > { %v13190_v60 = vmax.f32 %v13146_v12, 0.0  ;;  %v13147_v23 = vadd.f32 %v17532_v5, %v22316_v34  ;;  %v12935_v18 = vpop.f32.mrb[79].mxu0 }
 0xe75   : > { %v13188_v59 = vmax.f32 %v13144_v56, 0.0  ;;  %v13145_v9 = vadd.f32 %v22316_v34, %v12935_v18 }
 0xe76   : > { %13234 = vst.msk [vmem:[#allocation3 + $0x30] sm:$0xff] %vm542_vm1, %v13190_v60  ;;  %v13191_v44 = vmax.f32 %v13147_v23, 0.0  ;;  %v13273_v56 = vld [vmem:[#allocation3] sm:$0xff] }
 0xe77   : > { %13232 = vst.msk [vmem:[#allocation3 + $0x20] sm:$0xff] %vm542_vm1, %v13188_v59  ;;  %v13189_v45 = vmax.f32 %v13145_v9, 0.0 }
 0xe78   : > { %13235 = vst.msk [vmem:[#allocation3 + $0x38] sm:$0xff] %vm542_vm1, %v13191_v44  ;;  %v13274_v19 = vld [vmem:[#allocation3 + $0x8] sm:$0xff] }
 0xe79   : > { %13233 = vst.msk [vmem:[#allocation3 + $0x28] sm:$0xff] %vm542_vm1, %v13189_v45  ;;  %v17535_v61 = vpop.f32.mrb[80].mxu0  ;;  %v13317_v23 = vpack.c.bf16 %v13274_v19, %v13273_v56  ;;  %v13276_v45 = vld [vmem:[#allocation3 + $0x18] sm:$0xff] }
 0xe7a   : > { %v13150_v21 = vadd.f32 %v17535_v61, %v22316_v34  ;;  %v12948_v20 = vpop.f32.mrb[81].mxu0 }
 0xe7b   : > { %v13148_v35 = vadd.f32 %v22316_v34, %v12948_v20  ;;  %v17536_v58 = vpop.f32.mrb[82].mxu0 }
 0xe7c   : > { %v13194_v51 = vmax.f32 %v13150_v21, 0.0  ;;  %v13151_v62 = vadd.f32 %v17536_v58, %v22316_v34  ;;  %v12951_v22 = vpop.f32.mrb[83].mxu0 }
 0xe7d   : > { %v13192_v28 = vmax.f32 %v13148_v35, 0.0  ;;  %v13149_v31 = vadd.f32 %v22316_v34, %v12951_v22 }
 0xe7e   : > { %13238 = vst.msk [vmem:[#allocation3 + $0x50] sm:$0xff] %vm542_vm1, %v13194_v51  ;;  %v13195_v47 = vmax.f32 %v13151_v62, 0.0  ;;  %v13275_v51 = vld [vmem:[#allocation3 + $0x10] sm:$0xff] }
 0xe7f   : > { %13236 = vst.msk [vmem:[#allocation3 + $0x40] sm:$0xff] %vm542_vm1, %v13192_v28  ;;  %v13193_v0 = vmax.f32 %v13149_v31, 0.0  ;;  %v13318_v22 = vpack.c.bf16 %v13276_v45, %v13275_v51 }
 0xe80   : > { %13239 = vst.msk [vmem:[#allocation3 + $0x58] sm:$0xff] %vm542_vm1, %v13195_v47  ;;  %v13278_v31 = vld [vmem:[#allocation3 + $0x28] sm:$0xff] }
 0xe81   : > { %13237 = vst.msk [vmem:[#allocation3 + $0x48] sm:$0xff] %vm542_vm1, %v13193_v0  ;;  %v17539_v50 = vpop.f32.mrb[84].mxu0 }
 0xe82   : > { %v13154_v63 = vadd.f32 %v17539_v50, %v22316_v34  ;;  %v12964_v36 = vpop.f32.mrb[85].mxu0 }
 0xe83   : > { %v13152_v16 = vadd.f32 %v22316_v34, %v12964_v36  ;;  %v17540_v49 = vpop.f32.mrb[86].mxu0 }
 0xe84   : > { %v13198_v14 = vmax.f32 %v13154_v63, 0.0  ;;  %v13155_v3 = vadd.f32 %v17540_v49, %v22316_v34  ;;  %v12967_v46 = vpop.f32.mrb[87].mxu0 }
 0xe85   : > { %v13196_v10 = vmax.f32 %v13152_v16, 0.0  ;;  %v13153_v41 = vadd.f32 %v22316_v34, %v12967_v46  ;;  %v13277_v16 = vld [vmem:[#allocation3 + $0x20] sm:$0xff] }
 0xe86   : > { %13242 = vst.msk [vmem:[#allocation3 + $0x70] sm:$0xff] %vm542_vm1, %v13198_v14  ;;  %v13199_v38 = vmax.f32 %v13155_v3, 0.0  ;;  %v13319_v3 = vpack.c.bf16 %v13278_v31, %v13277_v16 }
 0xe87   : > { %13240 = vst.msk [vmem:[#allocation3 + $0x60] sm:$0xff] %vm542_vm1, %v13196_v10  ;;  %v13197_v25 = vmax.f32 %v13153_v41, 0.0 }
 0xe88   : > { %13243 = vst.msk [vmem:[#allocation3 + $0x78] sm:$0xff] %vm542_vm1, %v13199_v38 }
 0xe89   : > { %13241 = vst.msk [vmem:[#allocation3 + $0x68] sm:$0xff] %vm542_vm1, %v13197_v25  ;;  %v17543_v42 = vpop.f32.mrb[88].mxu0  ;;  %v13280_v25 = vld [vmem:[#allocation3 + $0x38] sm:$0xff] }
 0xe8a   : > { %v13158_v27 = vadd.f32 %v17543_v42, %v22316_v34  ;;  %v12980_v53 = vpop.f32.mrb[89].mxu0 }
 0xe8b   : > { %v13156_v37 = vadd.f32 %v22316_v34, %v12980_v53  ;;  %v17544_v33 = vpop.f32.mrb[90].mxu0 }
 0xe8c   : > { %v13202_v29 = vmax.f32 %v13158_v27, 0.0  ;;  %v13159_v26 = vadd.f32 %v17544_v33, %v22316_v34  ;;  %v12983_v32 = vpop.f32.mrb[91].mxu0 }
 0xe8d   : > { %v13200_v4 = vmax.f32 %v13156_v37, 0.0  ;;  %v13157_v2 = vadd.f32 %v22316_v34, %v12983_v32 }
 0xe8e   : > { %13246 = vst.msk [vmem:[#allocation3 + $0x90] sm:$0xff] %vm542_vm1, %v13202_v29  ;;  %v13203_v11 = vmax.f32 %v13159_v26, 0.0  ;;  %v13279_v29 = vld [vmem:[#allocation3 + $0x30] sm:$0xff] }
 0xe8f   : > { %13244 = vst.msk [vmem:[#allocation3 + $0x80] sm:$0xff] %vm542_vm1, %v13200_v4  ;;  %v13201_v57 = vmax.f32 %v13157_v2, 0.0  ;;  %v13320_v32 = vpack.c.bf16 %v13280_v25, %v13279_v29  ;;  %v13282_v2 = vld [vmem:[#allocation3 + $0x48] sm:$0xff] }
 0xe90   : > { %13247 = vst.msk [vmem:[#allocation3 + $0x98] sm:$0xff] %vm542_vm1, %v13203_v11 }
 0xe91   : > { %13245 = vst.msk [vmem:[#allocation3 + $0x88] sm:$0xff] %vm542_vm1, %v13201_v57  ;;  %v17547_v7 = vpop.f32.mrb[92].mxu0 }
 0xe92   : > { %v13162_v52 = vadd.f32 %v17547_v7, %v22316_v34  ;;  %v12996_v8 = vpop.f32.mrb[93].mxu0 }
 0xe93   : > { %v13160_v30 = vadd.f32 %v22316_v34, %v12996_v8  ;;  %v17548_v13 = vpop.f32.mrb[94].mxu0 }
 0xe94   : > { %v13206_v43 = vmax.f32 %v13162_v52, 0.0  ;;  %v13163_v55 = vadd.f32 %v17548_v13, %v22316_v34  ;;  %v12999_v40 = vpop.f32.mrb[95].mxu0 }
 0xe95   : > { %v13204_v15 = vmax.f32 %v13160_v30, 0.0  ;;  %v13161_v1 = vadd.f32 %v22316_v34, %v12999_v40  ;;  %v13291_v18 = vld [vmem:[#allocation3 + $0x90] sm:$0xff]  ;;  %v13281_v30 = vld [vmem:[#allocation3 + $0x40] sm:$0xff] }
 0xe96   : > { %13250 = vst.msk [vmem:[#allocation3 + $0xb0] sm:$0xff] %vm542_vm1, %v13206_v43  ;;  %v13207_v17 = vmax.f32 %v13163_v55, 0.0  ;;  %v13289_v24 = vld [vmem:[#allocation3 + $0x80] sm:$0xff]  ;;  %v13321_v55 = vpack.c.bf16 %v13282_v2, %v13281_v30  ;;  %v18480_v30 = vld [vmem:[%s22566_s4 + $0x34] ss:$12 sps:$4 sm:$0xff]  }
 0xe97   : > { %13248 = vst.msk [vmem:[#allocation3 + $0xa0] sm:$0xff] %vm542_vm1, %v13204_v15  ;;  %v13205_v48 = vmax.f32 %v13161_v1, 0.0  ;;  %v13292_v39 = vld [vmem:[#allocation3 + $0x98] sm:$0xff] }
 0xe98   : > { %13251 = vst.msk [vmem:[#allocation3 + $0xb8] sm:$0xff] %vm542_vm1, %v13207_v17  ;;  %v13290_v6 = vld [vmem:[#allocation3 + $0x88] sm:$0xff]  ;;  %v13326_v44 = vpack.c.bf16 %v13292_v39, %v13291_v18 }
 0xe99   : > { %13249 = vst.msk [vmem:[#allocation3 + $0xa8] sm:$0xff] %vm542_vm1, %v13205_v48  ;;  %v17551_v12 = vpop.f32.mrb[96].mxu0  ;;  %v13325_v54 = vpack.c.bf16 %v13290_v6, %v13289_v24  ;;  %v13284_v48 = vld [vmem:[#allocation3 + $0x58] sm:$0xff] }
 0xe9a   : > { %v13166_v5 = vadd.f32 %v17551_v12, %v22316_v34  ;;  %v13012_v60 = vpop.f32.mrb[97].mxu0 }
 0xe9b   : > { %v13164_v59 = vadd.f32 %v22316_v34, %v13012_v60  ;;  %v17552_v9 = vpop.f32.mrb[98].mxu0  ;;  %15477 = vmatprep.subr.bf16.mxu1 %v13325_v54  ;;  %v13283_v54 = vld [vmem:[#allocation3 + $0x50] sm:$0xff] }
 0xe9c   : > { %v13210_v61 = vmax.f32 %v13166_v5, 0.0  ;;  %v13167_v21 = vadd.f32 %v17552_v9, %v22316_v34  ;;  %v13015_v20 = vpop.f32.mrb[99].mxu0  ;;  %15478 = vmatpush3.bf16.msra.mxu1 %v13317_v23  ;;  %v13322_v5 = vpack.c.bf16 %v13284_v48, %v13283_v54  ;;  %v13286_v23 = vld [vmem:[#allocation3 + $0x68] sm:$0xff] }
 0xe9d   : > { %v13208_v35 = vmax.f32 %v13164_v59, 0.0  ;;  %v13165_v58 = vadd.f32 %v22316_v34, %v13015_v20  ;;  %15479 = vmatprep.subr.bf16.mxu1 %v13326_v44  ;;  %v13295_v46 = vld [vmem:[#allocation3 + $0xb0] sm:$0xff] }
 0xe9e   : > { %13254 = vst.msk [vmem:[#allocation3 + $0xd0] sm:$0xff] %vm542_vm1, %v13210_v61  ;;  %v13211_v62 = vmax.f32 %v13167_v21, 0.0  ;;  %v13293_v47 = vld [vmem:[#allocation3 + $0xa0] sm:$0xff] }
 0xe9f   : > { %13252 = vst.msk [vmem:[#allocation3 + $0xc0] sm:$0xff] %vm542_vm1, %v13208_v35  ;;  %v13209_v28 = vmax.f32 %v13165_v58, 0.0  ;;  %v13296_v50 = vld [vmem:[#allocation3 + $0xb8] sm:$0xff]  ;;  %v13285_v61 = vld [vmem:[#allocation3 + $0x60] sm:$0xff] }
 0xea0   : > { %13255 = vst.msk [vmem:[#allocation3 + $0xd8] sm:$0xff] %vm542_vm1, %v13211_v62  ;;  %15480 = vmatpush3.bf16.msra.mxu1 %v13318_v22  ;;  %v13294_v0 = vld [vmem:[#allocation3 + $0xa8] sm:$0xff]  ;;  %v13328_v38 = vpack.c.bf16 %v13296_v50, %v13295_v46  ;;  %v13323_v35 = vpack.c.bf16 %v13286_v23, %v13285_v61  ;;  %v18477_v46 = vld [vmem:[%s22566_s4 + $0x1c] ss:$12 sps:$4 sm:$0xff]   ;;  %v18486_v23 = vld [vmem:[%s22566_s4 + $0x38] ss:$12 sps:$4 sm:$0xff]  }
 0xea1   : > { %13253 = vst.msk [vmem:[#allocation3 + $0xc8] sm:$0xff] %vm542_vm1, %v13209_v28  ;;  %v17555_v63 = vpop.f32.mrb[100].mxu0  ;;  %v13327_v36 = vpack.c.bf16 %v13294_v0, %v13293_v47  ;;  %v13288_v28 = vld [vmem:[#allocation3 + $0x78] sm:$0xff] }
 0xea2   : > { %v13170_v49 = vadd.f32 %v17555_v63, %v22316_v34  ;;  %v13028_v14 = vpop.f32.mrb[101].mxu0 }
 0xea3   : > { %v13168_v10 = vadd.f32 %v22316_v34, %v13028_v14  ;;  %v17556_v41 = vpop.f32.mrb[102].mxu0  ;;  %15481 = vmatprep.subr.bf16.mxu1 %v13327_v36  ;;  %v13287_v36 = vld [vmem:[#allocation3 + $0x70] sm:$0xff] }
 0xea4   : > { %v13214_v42 = vmax.f32 %v13170_v49, 0.0  ;;  %v13171_v27 = vadd.f32 %v17556_v41, %v22316_v34  ;;  %v13031_v53 = vpop.f32.mrb[103].mxu0  ;;  %15482 = vmatpush3.bf16.msra.mxu1 %v13319_v3  ;;  %v13324_v49 = vpack.c.bf16 %v13288_v28, %v13287_v36  ;;  %v18472_v3 = vld [vmem:[%s22566_s4] ss:$12 sps:$4 sm:$0xff]  }
 0xea5   : > { %v13212_v37 = vmax.f32 %v13168_v10, 0.0  ;;  %v13169_v33 = vadd.f32 %v22316_v34, %v13031_v53  ;;  %15483 = vmatprep.subr.bf16.mxu1 %v13328_v38  ;;  %v13299_v40 = vld [vmem:[#allocation3 + $0xd0] sm:$0xff] }
 0xea6   : > { %13258 = vst.msk [vmem:[#allocation3 + $0xf0] sm:$0xff] %vm542_vm1, %v13214_v42  ;;  %v13215_v26 = vmax.f32 %v13171_v27, 0.0  ;;  %v13297_v11 = vld [vmem:[#allocation3 + $0xc0] sm:$0xff] }
 0xea7   : > { %13256 = vst.msk [vmem:[#allocation3 + $0xe0] sm:$0xff] %vm542_vm1, %v13212_v37  ;;  %v13213_v4 = vmax.f32 %v13169_v33, 0.0  ;;  %v13300_v7 = vld [vmem:[#allocation3 + $0xd8] sm:$0xff] }
 0xea8   : > { %13259 = vst.msk [vmem:[#allocation3 + $0xf8] sm:$0xff] %vm542_vm1, %v13215_v26  ;;  %15484 = vmatpush3.bf16.msra.mxu1 %v13320_v32  ;;  %v13298_v57 = vld [vmem:[#allocation3 + $0xc8] sm:$0xff]  ;;  %v13330_v17 = vpack.c.bf16 %v13300_v7, %v13299_v40 }
 0xea9   : > { %13257 = vst.msk [vmem:[#allocation3 + $0xe8] sm:$0xff] %vm542_vm1, %v13213_v4  ;;  %v17559_v52 = vpop.f32.mrb[104].mxu0  ;;  %v13329_v8 = vpack.c.bf16 %v13298_v57, %v13297_v11 }
 0xeaa   : > { %v13174_v13 = vadd.f32 %v17559_v52, %v22316_v34  ;;  %v13044_v43 = vpop.f32.mrb[105].mxu0 }
 0xeab   : > { %v13172_v15 = vadd.f32 %v22316_v34, %v13044_v43  ;;  %v17560_v1 = vpop.f32.mrb[106].mxu0  ;;  %15485 = vmatprep.subr.bf16.mxu1 %v13329_v8  ;;  %v18475_v8 = vld [vmem:[%s22566_s4 + $0x18] ss:$12 sps:$4 sm:$0xff]  }
 0xeac   : > { %v13218_v19 = vmax.f32 %v13174_v13, 0.0  ;;  %v13175_v24 = vadd.f32 %v17560_v1, %v22316_v34  ;;  %v13047_v6 = vpop.f32.mrb[107].mxu0  ;;  %15486 = vmatpush3.bf16.msra.mxu1 %v13321_v55  ;;  %v18478_v1 = vld [vmem:[%s22566_s4 + $0x30] ss:$12 sps:$4 sm:$0xff]  }
 0xead   : > { %v13216_v39 = vmax.f32 %v13172_v15, 0.0  ;;  %v13173_v12 = vadd.f32 %v22316_v34, %v13047_v6  ;;  %15487 = vmatprep.subr.bf16.mxu1 %v13330_v17  ;;  %v13303_v58 = vld [vmem:[#allocation3 + $0xf0] sm:$0xff] }
 0xeae   : > { %13262 = vst.msk [vmem:[#allocation3 + $0x110] sm:$0xff] %vm542_vm1, %v13218_v19  ;;  %v13219_v56 = vmax.f32 %v13175_v24, 0.0  ;;  %v13301_v18 = vld [vmem:[#allocation3 + $0xe0] sm:$0xff] }
 0xeaf   : > { %13260 = vst.msk [vmem:[#allocation3 + $0x100] sm:$0xff] %vm542_vm1, %v13216_v39  ;;  %v13217_v60 = vmax.f32 %v13173_v12, 0.0  ;;  %v13304_v9 = vld [vmem:[#allocation3 + $0xf8] sm:$0xff]  ;;  %v18483_v17 = vld [vmem:[%s22566_s4 + $0x4c] ss:$12 sps:$4 sm:$0xff]  }
 0xeb0   : > { %13263 = vst.msk [vmem:[#allocation3 + $0x118] sm:$0xff] %vm542_vm1, %v13219_v56  ;;  %15488 = vmatpush3.bf16.msra.mxu1 %v13322_v5  ;;  %v13302_v59 = vld [vmem:[#allocation3 + $0xe8] sm:$0xff]  ;;  %v13332_v22 = vpack.c.bf16 %v13304_v9, %v13303_v58  ;;  %v18489_v9 = vld [vmem:[%s22567_s5 + $0x8] sm:$0xff]  }
 0xeb1   : > { %13261 = vst.msk [vmem:[#allocation3 + $0x108] sm:$0xff] %vm542_vm1, %v13217_v60  ;;  %v17563_v44 = vpop.f32.mrb[108].mxu0  ;;  %v13331_v45 = vpack.c.bf16 %v13302_v59, %v13301_v18  ;;  %v18481_v56 = vld [vmem:[%s22566_s4 + $0x48] ss:$12 sps:$4 sm:$0xff]   ;;  %v18485_v60 = vld [vmem:[%s22566_s4 + $0x20] ss:$12 sps:$4 sm:$0xff]  }
 0xeb2   : > { %v13178_v21 = vadd.f32 %v17563_v44, %v22316_v34  ;;  %v13060_v20 = vpop.f32.mrb[109].mxu0  ;;  %v18484_v5 = vld [vmem:[%s22566_s4 + $0x8] ss:$12 sps:$4 sm:$0xff]   ;;  %v18487_v18 = vld [vmem:[%s22566_s4 + $0x50] ss:$12 sps:$4 sm:$0xff]   ;;  %v18488_v59 = vld [vmem:[%s22567_s5] sm:$0xff]  }
 0xeb3   : > { %v13176_v51 = vadd.f32 %v22316_v34, %v13060_v20  ;;  %v17564_v62 = vpop.f32.mrb[110].mxu0  ;;  %15489 = vmatprep.subr.bf16.mxu1 %v13331_v45 }
 0xeb4   : > { %v13222_v31 = vmax.f32 %v13178_v21, 0.0  ;;  %v13179_v47 = vadd.f32 %v17564_v62, %v22316_v34  ;;  %v13063_v0 = vpop.f32.mrb[111].mxu0  ;;  %15490 = vmatpush3.bf16.msra.mxu1 %v13323_v35 }
 0xeb5   : > { %v13220_v50 = vmax.f32 %v13176_v51, 0.0  ;;  %v13177_v63 = vadd.f32 %v22316_v34, %v13063_v0  ;;  %15491 = vmatprep.subr.bf16.mxu1 %v13332_v22  ;;  %v13307_v37 = vld [vmem:[#allocation3 + $0x110] sm:$0xff] }
 0xeb6   : > { %13266 = vst.msk [vmem:[#allocation3 + $0x130] sm:$0xff] %vm542_vm1, %v13222_v31  ;;  %v13223_v16 = vmax.f32 %v13179_v47, 0.0  ;;  %v13305_v10 = vld [vmem:[#allocation3 + $0x100] sm:$0xff] }
 0xeb7   : > { %13264 = vst.msk [vmem:[#allocation3 + $0x120] sm:$0xff] %vm542_vm1, %v13220_v50  ;;  %v13221_v14 = vmax.f32 %v13177_v63, 0.0  ;;  %v13308_v38 = vld [vmem:[#allocation3 + $0x118] sm:$0xff] }
 0xeb8   : > { %13267 = vst.msk [vmem:[#allocation3 + $0x138] sm:$0xff] %vm542_vm1, %v13223_v16  ;;  %15492 = vmatpush3.bf16.msra.mxu1 %v13324_v49  ;;  %v13306_v41 = vld [vmem:[#allocation3 + $0x108] sm:$0xff]  ;;  %v13334_v26 = vpack.c.bf16 %v13308_v38, %v13307_v37 }
 0xeb9   : > { %13265 = vst.msk [vmem:[#allocation3 + $0x128] sm:$0xff] %vm542_vm1, %v13221_v14  ;;  %v17567_v25 = vpop.f32.mrb[112].mxu0  ;;  %v13333_v42 = vpack.c.bf16 %v13306_v41, %v13305_v10 }
 0xeba   : > { %v13182_v27 = vadd.f32 %v17567_v25, %v22316_v34  ;;  %v13076_v53 = vpop.f32.mrb[113].mxu0 }
 0xebb   : > { %v13180_v33 = vadd.f32 %v22316_v34, %v13076_v53  ;;  %v17568_v29 = vpop.f32.mrb[114].mxu0  ;;  %13465 = vmatmul.mubr.bf16.vlgmr.msra.gmra.mrb[16].mxu1 %v18472_v3  ;;  %17569 = vmatprep.subr.bf16.mxu1 %v13333_v42 }
 0xebc   : > { %v13226_v32 = vmax.f32 %v13182_v27, 0.0  ;;  %v13183_v4 = vadd.f32 %v17568_v29, %v22316_v34  ;;  %v13079_v2 = vpop.f32.mrb[115].mxu0  ;;  %17570 = vmatpush3.bf16.msra.mxu1 %v13333_v42  ;;  %13472 = vmatprep.mubr.bf16.mxu1 %v18477_v46 }
 0xebd   : > { %v13224_v11 = vmax.f32 %v13180_v33, 0.0  ;;  %v13181_v57 = vadd.f32 %v22316_v34, %v13079_v2  ;;  %17571 = vmatprep.subr.bf16.mxu1 %v13334_v26  ;;  %v13311_v40 = vld [vmem:[#allocation3 + $0x130] sm:$0xff] }
 0xebe   : > { %13270 = vst.msk [vmem:[#allocation3 + $0x150] sm:$0xff] %vm542_vm1, %v13226_v32  ;;  %v13227_v7 = vmax.f32 %v13183_v4, 0.0  ;;  %v13309_v13 = vld [vmem:[#allocation3 + $0x120] sm:$0xff] }
 0xebf   : > { %13268 = vst.msk [vmem:[#allocation3 + $0x140] sm:$0xff] %vm542_vm1, %v13224_v11  ;;  %v13225_v52 = vmax.f32 %v13181_v57, 0.0  ;;  %v13312_v34 = vld [vmem:[#allocation3 + $0x138] sm:$0xff] }
 0xec0   : > { %17572 = vmatpush3.bf16.msra.mxu1 %v13334_v26  ;;  %v13310_v43 = vld [vmem:[#allocation3 + $0x128] sm:$0xff]  ;;  %13272 = vst.msk [vmem:[#allocation3 + $0x158] sm:$0x3] %vm13271_vm4, %v13227_v7  ;;  %v13336_v15 = vpack.c.bf16 %v13312_v34, %v13311_v40  ;;  %v14703_v34 = vld [vmem:[%s22568_s6] ss:$0 sm:$0xff] }
 0xec1   : > { %13269 = vst.msk [vmem:[#allocation3 + $0x148] sm:$0xff] %vm542_vm1, %v13225_v52  ;;  %v13335_v55 = vpack.c.bf16 %v13310_v43, %v13309_v13 }
 0xec3   : > { %13473 = vmatmul.mubr.bf16.gmra.mrb[20].mxu1 %v18475_v8  ;;  %17573 = vmatprep.subr.bf16.mxu1 %v13335_v55 }
 0xec4   : > { %17574 = vmatpush3.bf16.msra.mxu1 %v13335_v55  ;;  %13480 = vmatprep.mubr.bf16.mxu1 %v18480_v30 }
 0xec5   : > { %17575 = vmatprep.subr.bf16.mxu1 %v13336_v15  ;;  %v13315_v39 = vld [vmem:[#allocation3 + $0x150] sm:$0xff] }
 0xec6   : > { %v13313_v48 = vld [vmem:[#allocation3 + $0x140] sm:$0xff] }
 0xec7   : > { %v13316_v24 = vld [vmem:[#allocation3 + $0x158] sm:$0x3] }
 0xec8   : > { %17576 = vmatpush3.bf16.msra.mxu1 %v13336_v15  ;;  %v13314_v19 = vld [vmem:[#allocation3 + $0x148] sm:$0xff]  ;;  %v13338_v12 = vpack.c.bf16 %v13316_v24, %v13315_v39 }
 0xec9   : > { %v13337_v6 = vpack.c.bf16 %v13314_v19, %v13313_v48 }
 0xeca   : > { %v13430_v54 = vsel %vm13428_vm5, %v13338_v12, 0 }
 0xecb   : > { %13481 = vmatmul.mubr.bf16.gmra.mrb[24].mxu1 %v18478_v1  ;;  %17577 = vmatprep.subr.bf16.mxu1 %v13337_v6 }
 0xecc   : > { %17578 = vmatpush3.bf16.msra.mxu1 %v13337_v6  ;;  %13488 = vmatprep.mubr.bf16.mxu1 %v18483_v17 }
 0xecd   : > { %18373 = vmatprep.subr.msk.bf16.mxu1 %vm13428_vm5, %v13338_v12 }
 0xed0   : > { %17580 = vmatpush3.bf16.msra.mxu1 %v13430_v54 }
 0xed1   : > { %17589 = vmatprep.subr.bf16.mxu1 %v18488_v59 }
 0xed3   : > { %13489 = vmatmul.mubr.bf16.gmra.mrb[28].mxu1 %v18481_v56 }
 0xed4   : > { %17581 = vmatprep.mubr.msk.bf16.mxu1 %vm13415_vm6, %v18484_v5 }
 0xedb   : > { %17582 = vmatmul.mubr.msk.bf16.vlgmr.msra.gmra.mrb[32].mxu1 %vm13415_vm6, %v18485_v60 }
 0xedc   : > { %17585 = vmatprep.mubr.msk.bf16.mxu1 %vm13415_vm6, %v18486_v23  ;;  %17590 = vmatpush3.bf16.msra.mxu1 %v18488_v59 }
 0xedd   : > { %17591 = vmatprep.subr.bf16.mxu1 %v18489_v9 }
 0xee0   : > { %17592 = vmatpush3.bf16.msra.mxu1 %v18489_v9 }
 0xee3   : > { %17586 = vmatmul.mubr.msk.bf16.gmra.mrb[36].mxu1 %vm13415_vm6, %v18487_v18 }
 0xf8e   : > { %v15493_v44 = vpop.f32.mrb[16].mxu1 }
 0xf8f   : > { %v15494_v45 = vpop.f32.mrb[17].mxu1 }
 0xf90   : > { %v15495_v61 = vadd.f32 %v15494_v45, %v15493_v44  ;;  %v15496_v21 = vpop.f32.mrb[18].mxu1 }
 0xf91   : > { %v15497_v20 = vpop.f32.mrb[19].mxu1 }
 0xf92   : > { %v15498_v35 = vadd.f32 %v15497_v20, %v15496_v21 }
 0xf96   : > { %v15499_v58 = vpop.f32.mrb[20].mxu1 }
 0xf97   : > { %v15500_v51 = vpop.f32.mrb[21].mxu1 }
 0xf98   : > { %v15501_v62 = vadd.f32 %v15500_v51, %v15499_v58  ;;  %v15502_v22 = vpop.f32.mrb[22].mxu1 }
 0xf99   : > { %v15503_v28 = vpop.f32.mrb[23].mxu1 }
 0xf9a   : > { %v15504_v31 = vadd.f32 %v15503_v28, %v15502_v22 }
 0xf9e   : > { %v15505_v47 = vpop.f32.mrb[24].mxu1 }
 0xf9f   : > { %v15506_v0 = vpop.f32.mrb[25].mxu1 }
 0xfa0   : > { %v15507_v50 = vadd.f32 %v15506_v0, %v15505_v47  ;;  %v15508_v63 = vpop.f32.mrb[26].mxu1 }
 0xfa1   : > { %v15509_v36 = vpop.f32.mrb[27].mxu1 }
 0xfa2   : > { %v15510_v16 = vadd.f32 %v15509_v36, %v15508_v63 }
 0xfa6   : > { %v15511_v49 = vpop.f32.mrb[28].mxu1 }
 0xfa7   : > { %v15512_v14 = vpop.f32.mrb[29].mxu1 }
 0xfa8   : > { %v15513_v3 = vadd.f32 %v15512_v14, %v15511_v49  ;;  %v15514_v46 = vpop.f32.mrb[30].mxu1 }
 0xfa9   : > { %v15515_v10 = vpop.f32.mrb[31].mxu1 }
 0xfaa   : > { %v15516_v41 = vadd.f32 %v15515_v10, %v15514_v46 }
 0xfae   : > { %v17583_v38 = vpop.f32.mrb[32].mxu1 }
 0xfaf   : > { %v13540_v25 = vadd.f32 %v17583_v38, %v15501_v62  ;;  %v13531_v42 = vpop.f32.mrb[33].mxu1 }
 0xfb0   : > { %v13532_v27 = vadd.f32 %v15495_v61, %v13531_v42  ;;  %v17584_v53 = vpop.f32.mrb[34].mxu1 }
 0xfb1   : > { %v13543_v37 = vadd.f32 %v17584_v53, %v15504_v31  ;;  %v13534_v33 = vpop.f32.mrb[35].mxu1 }
 0xfb2   : > { %v13535_v29 = vadd.f32 %v15498_v35, %v13534_v33 }
 0xfb3   : > { %v13563_v26 = vpack.c.bf16 %v13543_v37, %v13540_v25 }
 0xfb4   : > { %v13562_v32 = vpack.c.bf16 %v13535_v29, %v13532_v27 }
 0xfb6   : > { %v17587_v4 = vpop.f32.mrb[36].mxu1  ;;  %17593 = vmatprep.mubr.msk.bf16.mxu1 %vm542_vm1, %v13562_v32 }
 0xfb7   : > { %v13556_v2 = vadd.f32 %v17587_v4, %v15513_v3  ;;  %v13547_v11 = vpop.f32.mrb[37].mxu1  ;;  %17594 = vmatmul.mubr.msk.bf16.vlgmr.msra.gmra.mrb[40].mxu1 %vm542_vm1, %v13563_v26 }
 0xfb8   : > { %v13548_v57 = vadd.f32 %v15507_v50, %v13547_v11  ;;  %v17588_v7 = vpop.f32.mrb[38].mxu1 }
 0xfb9   : > { %v13559_v52 = vadd.f32 %v17588_v7, %v15516_v41  ;;  %v13550_v8 = vpop.f32.mrb[39].mxu1 }
 0xfba   : > { %v13551_v30 = vadd.f32 %v15510_v16, %v13550_v8 }
 0xfbb   : > { %v13565_v13 = vpack.c.bf16 %v13559_v52, %v13556_v2 }
 0xfbc   : > { %v13564_v43 = vpack.c.bf16 %v13551_v30, %v13548_v57 }
 0xfbe   : > { %17597 = vmatprep.mubr.msk.bf16.mxu1 %vm542_vm1, %v13564_v43 }
 0xfbf   : > { %17598 = vmatmul.mubr.msk.bf16.gmra.mrb[44].mxu1 %vm542_vm1, %v13565_v13 }
0x108a   : > { %v17595_v55 = vpop.f32.mrb[40].mxu1 }
0x108b   : > { %v13642_v40 = vadd.f32 %v17595_v55, %v14703_v34  ;;  %v13633_v15 = vpop.f32.mrb[41].mxu1 }
0x108c   : > { %v13634_v1 = vadd.f32 %v14703_v34, %v13633_v15  ;;  %v17596_v17 = vpop.f32.mrb[42].mxu1 }
0x108d   : > { %v13670_v48 = vsel %vm542_vm1, %v13642_v40, 0.0  ;;  %v13645_v19 = vadd.f32 %v17596_v17, %v14703_v34  ;;  %v13636_v24 = vpop.f32.mrb[43].mxu1 }
0x108e   : > { %13671 = vadd.xlane.f32.xlu1 %v13670_v48  ;;  %v13637_v6 = vadd.f32 %v14703_v34, %v13636_v24  ;;  %v13664_v39 = vsel %vm542_vm1, %v13634_v1, 0.0 }
0x108f   : > { %13665 = vadd.xlane.f32.xlu0 %v13664_v39  ;;  %v13673_v12 = vsel %vm542_vm1, %v13645_v19, 0.0 }
0x1090   : > { %v13667_v56 = vsel %vm542_vm1, %v13637_v6, 0.0 }
0x1092   : > { %13674 = vadd.xlane.f32.xlu1 %v13673_v12  ;;  %v17599_v54 = vpop.f32.mrb[44].mxu1 }
0x1093   : > { %v13649_v5 = vpop.f32.mrb[45].mxu1  ;;  %13668 = vadd.xlane.f32.xlu0 %v13667_v56  ;;  %v13658_v59 = vadd.f32 %v17599_v54, %v14703_v34 }
0x1094   : > { %v13650_v60 = vadd.f32 %v14703_v34, %v13649_v5  ;;  %v17600_v23 = vpop.f32.mrb[46].mxu1 }
0x1095   : > { %v13652_v18 = vpop.f32.mrb[47].mxu1  ;;  %v13661_v45 = vadd.f32 %v17600_v23, %v14703_v34  ;;  %v13682_v21 = vsel %vm542_vm1, %v13658_v59, 0.0 }
0x1096   : > { %v13653_v9 = vadd.f32 %v14703_v34, %v13652_v18  ;;  %v13676_v44 = vsel %vm542_vm1, %v13650_v60, 0.0 }
0x1097   : > { %13677 = vadd.xlane.f32.xlu0 %v13676_v44  ;;  %v13685_v20 = vsel %vm542_vm1, %v13661_v45, 0.0 }
0x1098   : > { %v13679_v61 = vsel %vm542_vm1, %v13653_v9, 0.0 }
0x1099   : > { %13680 = vadd.xlane.f32.xlu1 %v13679_v61 }
0x109b   : > { %13683 = vadd.xlane.f32.xlu0 %v13682_v21 }
0x109d   : > { %13686 = vadd.xlane.f32.xlu1 %v13685_v20 }
0x111b   : > { %v13672_v35 = vpop.xlane.xlu1 %13671 }
0x111c   : > { %v13691_v58 = vmul.f32 0.03125, %v13672_v35  ;;  %v13666_v51 = vpop.xlane.xlu0 %13665 }
0x111d   : > { %v13689_v62 = vmul.f32 0.03125, %v13666_v51 }
0x111e   : > { %v22459_v22 = vsub.f32 %v13642_v40, %v13691_v58  ;;  %v14711_v58 = vld [vmem:[%s22568_s6 + $0x2] ss:$0 sm:$0xff] }
0x111f   : > { %v22461_v28 = vsub.f32 %v13634_v1, %v13689_v62  ;;  %v13675_v31 = vpop.xlane.xlu1 %13674 }
0x1120   : > { %v13692_v47 = vmul.f32 0.03125, %v13675_v31  ;;  %v13669_v0 = vpop.xlane.xlu0 %13668  ;;  %v13707_v50 = vmul.f32 %v22459_v22, %v22459_v22 }
0x1121   : > { %v13690_v63 = vmul.f32 0.03125, %v13669_v0  ;;  %v13705_v49 = vmul.f32 %v22461_v28, %v22461_v28 }
0x1122   : > { %v22465_v36 = vsub.f32 %v13645_v19, %v13692_v47  ;;  %v13719_v16 = vsel %vm542_vm1, %v13707_v50, 0.0 }
0x1123   : > { %v22470_v14 = vsub.f32 %v13637_v6, %v13690_v63  ;;  %13720 = vadd.xlane.f32.xlu0 %v13719_v16  ;;  %v13713_v25 = vsel %vm542_vm1, %v13705_v49, 0.0 }
0x1124   : > { %v13678_v3 = vpop.xlane.xlu0 %13677  ;;  %v13708_v46 = vmul.f32 %v22465_v36, %v22465_v36 }
0x1125   : > { %v13693_v10 = vmul.f32 0.03125, %v13678_v3  ;;  %v13706_v42 = vmul.f32 %v22470_v14, %v22470_v14 }
0x1126   : > { %v13681_v41 = vpop.xlane.xlu1 %13680  ;;  %v13722_v38 = vsel %vm542_vm1, %v13708_v46, 0.0 }
0x1127   : > { %v22478_v27 = vsub.f32 %v13650_v60, %v13693_v10  ;;  %v13694_v53 = vmul.f32 0.03125, %v13681_v41  ;;  %13723 = vadd.xlane.f32.xlu1 %v13722_v38  ;;  %13714 = vadd.xlane.f32.xlu0 %v13713_v25  ;;  %v13716_v4 = vsel %vm542_vm1, %v13706_v42, 0.0 }
0x1128   : > { %v13684_v37 = vpop.xlane.xlu0 %13683 }
0x1129   : > { %v22480_v33 = vsub.f32 %v13653_v9, %v13694_v53  ;;  %v13695_v29 = vmul.f32 0.03125, %v13684_v37  ;;  %v13709_v26 = vmul.f32 %v22478_v27, %v22478_v27 }
0x112a   : > { %v13687_v32 = vpop.xlane.xlu1 %13686 }
0x112b   : > { %v22485_v2 = vsub.f32 %v13658_v59, %v13695_v29  ;;  %v13696_v11 = vmul.f32 0.03125, %v13687_v32  ;;  %13717 = vadd.xlane.f32.xlu1 %v13716_v4  ;;  %v13725_v57 = vsel %vm542_vm1, %v13709_v26, 0.0  ;;  %v13710_v7 = vmul.f32 %v22480_v33, %v22480_v33 }
0x112c   : > { %13726 = vadd.xlane.f32.xlu0 %v13725_v57 }
0x112d   : > { %v22490_v52 = vsub.f32 %v13661_v45, %v13696_v11  ;;  %v13728_v8 = vsel %vm542_vm1, %v13710_v7, 0.0  ;;  %v13711_v30 = vmul.f32 %v22485_v2, %v22485_v2  ;;  %v14710_v45 = vld [vmem:[%s22568_s6 + $0x1] ss:$0 sm:$0xff] }
0x112f   : > { %13729 = vadd.xlane.f32.xlu1 %v13728_v8  ;;  %v13731_v13 = vsel %vm542_vm1, %v13711_v30, 0.0  ;;  %v13712_v43 = vmul.f32 %v22490_v52, %v22490_v52  ;;  %v13806_v30 = vld [vmem:[%s22569_s7 + $0x18] sm:$0xff] }
0x1130   : > { %13732 = vadd.xlane.f32.xlu0 %v13731_v13 }
0x1131   : > { %v13734_v34 = vsel %vm542_vm1, %v13712_v43, 0.0  ;;  %v13803_v43 = vld [vmem:[%s22569_s7] sm:$0xff] }
0x1133   : > { %13735 = vadd.xlane.f32.xlu1 %v13734_v34 }
0x11b0   : > { %v13721_v55 = vpop.xlane.xlu0 %13720 }
0x11b1   : > { %v13739_v40 = vmul.f32 0.03125, %v13721_v55 }
0x11b3   : > { %v13747_v15 = vadd.f32 1e-05, %v13739_v40 }
0x11b4   : > { %v13724_v1 = vpop.xlane.xlu1 %13723  ;;  %v13715_v17 = vpop.xlane.xlu0 %13714 }
0x11b5   : > { %18490 = vrsqrt.f32 %v13747_v15  ;;  %v13740_v48 = vmul.f32 0.03125, %v13724_v1  ;;  %v13737_v19 = vmul.f32 0.03125, %v13715_v17  ;;  %v13804_v1 = vld [vmem:[%s22569_s7 + $0x8] sm:$0xff]  ;;  %v13807_v17 = vld [vmem:[%s22569_s7 + $0x20] sm:$0xff] }
0x11b7   : > { %v13748_v24 = vadd.f32 1e-05, %v13740_v48  ;;  %v13745_v6 = vadd.f32 1e-05, %v13737_v19 }
0x11b8   : > { %v13718_v39 = vpop.xlane.xlu1 %13717 }
0x11b9   : > { %18492 = vrsqrt.f32 %v13748_v24  ;;  %v13738_v12 = vmul.f32 0.03125, %v13718_v39  ;;  %v13727_v54 = vpop.xlane.xlu0 %13726  ;;  %v13808_v39 = vld [vmem:[%s22569_s7 + $0x28] sm:$0xff] }
0x11ba   : > { %18494 = vrsqrt.f32 %v13745_v6  ;;  %v13741_v56 = vmul.f32 0.03125, %v13727_v54 }
0x11bb   : > { %v13746_v5 = vadd.f32 1e-05, %v13738_v12  ;;  %v13809_v12 = vld [vmem:[%s22569_s7 + $0x30] sm:$0xff] }
0x11bc   : > { %v13749_v60 = vadd.f32 1e-05, %v13741_v56  ;;  %v13730_v23 = vpop.xlane.xlu1 %13729 }
0x11bd   : > { %18496 = vrsqrt.f32 %v13746_v5  ;;  %v13742_v18 = vmul.f32 0.03125, %v13730_v23  ;;  %v13733_v59 = vpop.xlane.xlu0 %13732  ;;  %v13810_v23 = vld [vmem:[%s22569_s7 + $0x38] sm:$0xff] }
0x11be   : > { %18498 = vrsqrt.f32 %v13749_v60  ;;  %v13743_v9 = vmul.f32 0.03125, %v13733_v59 }
0x11bf   : > { %v18491_v44 = vpop.eup %18490  ;;  %v13750_v61 = vadd.f32 1e-05, %v13742_v18 }
0x11c0   : > { %v13763_v21 = vmul.f32 %v18491_v44, %v22459_v22  ;;  %v13751_v20 = vadd.f32 1e-05, %v13743_v9  ;;  %v13736_v35 = vpop.xlane.xlu1 %13735 }
0x11c1   : > { %18500 = vrsqrt.f32 %v13750_v61  ;;  %v13744_v51 = vmul.f32 0.03125, %v13736_v35 }
0x11c2   : > { %v13776_v62 = vmul.f32 %v14710_v45, %v13763_v21  ;;  %18502 = vrsqrt.f32 %v13751_v20 }
0x11c3   : > { %v18493_v31 = vpop.eup %18492  ;;  %v13752_v47 = vadd.f32 1e-05, %v13744_v51 }
0x11c4   : > { %v18495_v0 = vpop.eup %18494  ;;  %v13789_v50 = vadd.f32 %v14711_v58, %v13776_v62  ;;  %v13764_v63 = vmul.f32 %v18493_v31, %v22465_v36 }
0x11c5   : > { %v13761_v16 = vmul.f32 %v18495_v0, %v22461_v28  ;;  %18504 = vrsqrt.f32 %v13752_v47 }
0x11c6   : > { %18506 = vtanh.f32 %v13789_v50  ;;  %v13777_v22 = vmul.f32 %v14710_v45, %v13764_v63 }
0x11c7   : > { %v18497_v49 = vpop.eup %18496  ;;  %v13774_v3 = vmul.f32 %v14710_v45, %v13761_v16 }
0x11c8   : > { %v18499_v46 = vpop.eup %18498  ;;  %v13790_v10 = vadd.f32 %v14711_v58, %v13777_v22  ;;  %v13762_v41 = vmul.f32 %v18497_v49, %v22470_v14  ;;  %v13805_v14 = vld [vmem:[%s22569_s7 + $0x10] sm:$0xff] }
0x11c9   : > { %v13787_v38 = vadd.f32 %v14711_v58, %v13774_v3  ;;  %v13765_v25 = vmul.f32 %v18499_v46, %v22478_v27 }
0x11ca   : > { %18508 = vtanh.f32 %v13790_v10  ;;  %v13775_v42 = vmul.f32 %v14710_v45, %v13762_v41 }
0x11cb   : > { %v18501_v53 = vpop.eup %18500  ;;  %18510 = vtanh.f32 %v13787_v38  ;;  %v13778_v36 = vmul.f32 %v14710_v45, %v13765_v25 }
0x11cc   : > { %v18503_v37 = vpop.eup %18502  ;;  %v13788_v28 = vadd.f32 %v14711_v58, %v13775_v42  ;;  %v13766_v29 = vmul.f32 %v18501_v53, %v22480_v33 }
0x11cd   : > { %v13791_v26 = vadd.f32 %v14711_v58, %v13778_v36  ;;  %v13767_v32 = vmul.f32 %v18503_v37, %v22485_v2 }
0x11ce   : > { %18512 = vtanh.f32 %v13788_v28  ;;  %v13779_v4 = vmul.f32 %v14710_v45, %v13766_v29 }
0x11cf   : > { %v18505_v27 = vpop.eup %18504  ;;  %18514 = vtanh.f32 %v13791_v26  ;;  %v13780_v11 = vmul.f32 %v14710_v45, %v13767_v32 }
0x11d0   : > { %v18507_v57 = vpop.eup %18506  ;;  %v13792_v33 = vadd.f32 %v14711_v58, %v13779_v4  ;;  %v13768_v7 = vmul.f32 %v18505_v27, %v22490_v52 }
0x11d1   : > { %v13813_v2 = vadd.f32 %v18507_v57, %v13805_v14  ;;  %v13793_v8 = vadd.f32 %v14711_v58, %v13780_v11 }
0x11d2   : > { %18516 = vtanh.f32 %v13792_v33  ;;  %v13781_v13 = vmul.f32 %v14710_v45, %v13768_v7 }
0x11d3   : > { %13821 = vst.msk [vmem:[%s22519_s12 + $0x10] sm:$0xff] %vm542_vm1, %v13813_v2  ;;  %18518 = vtanh.f32 %v13793_v8 }
0x11d4   : > { %v18509_v34 = vpop.eup %18508  ;;  %v13794_v52 = vadd.f32 %v14711_v58, %v13781_v13 }
0x11d5   : > { %v18511_v55 = vpop.eup %18510  ;;  %v13814_v40 = vadd.f32 %v18509_v34, %v13806_v30 }
0x11d6   : > { %v13811_v15 = vadd.f32 %v18511_v55, %v13803_v43  ;;  %18520 = vtanh.f32 %v13794_v52 }
0x11d7   : > { %13822 = vst.msk [vmem:[%s22519_s12 + $0x18] sm:$0xff] %vm542_vm1, %v13814_v40 }
0x11d8   : > { %v18513_v48 = vpop.eup %18512  ;;  %13819 = vst.msk [vmem:[%s22519_s12] sm:$0xff] %vm542_vm1, %v13811_v15 }
0x11d9   : > { %v18515_v19 = vpop.eup %18514  ;;  %v13812_v24 = vadd.f32 %v18513_v48, %v13804_v1 }
0x11da   : > { %v13815_v6 = vadd.f32 %v18515_v19, %v13807_v17 }
0x11db   : > { %13820 = vst.msk [vmem:[%s22519_s12 + $0x8] sm:$0xff] %vm542_vm1, %v13812_v24 }
0x11dc   : > { %v18517_v54 = vpop.eup %18516  ;;  %13823 = vst.msk [vmem:[%s22519_s12 + $0x20] sm:$0xff] %vm542_vm1, %v13815_v6 }
0x11dd   : > { %v18519_v56 = vpop.eup %18518  ;;  %v13816_v5 = vadd.f32 %v18517_v54, %v13808_v39 }
0x11de   : > { %v13817_v60 = vadd.f32 %v18519_v56, %v13809_v12 }
0x11df   : > { %13824 = vst.msk [vmem:[%s22519_s12 + $0x28] sm:$0xff] %vm542_vm1, %v13816_v5 }
0x11e0   : > { %v18521_v18 = vpop.eup %18520  ;;  %13825 = vst.msk [vmem:[%s22519_s12 + $0x30] sm:$0xff] %vm542_vm1, %v13817_v60 }
0x11e1   : > { %v13818_v59 = vadd.f32 %v18521_v18, %v13810_v23 }
0x11e3   : > { %13826 = vst.msk [vmem:[%s22519_s12 + $0x38] sm:$0xff] %vm542_vm1, %v13818_v59 }
0x11e4 PF: > { %s18_s27 = sadd.s32 1, %s18541_s27  }
0x11e5   : > { %p15_p4 = scmp.ge.s32.totalorder %s18_s27, 4  }
0x11e7   :  { %17 = sbr.rel (!%p15_p4) target bundleno = 1 (0x1), region = 82 }

</bundles_post_ra>
